<compile_context>
chip_gen: v5e
topology: v5e:2x2
jax: 0.10.0
libtpu: 0.0.40
codegen_flags: <defaults>
</compile_context>

<pallas_src>
import jax
import jax.numpy as jnp
import numpy as np
from jax.experimental import pallas as pl
from jax.experimental.pallas import tpu as pltpu

_EPS = 1e-5
_LANE = 128


def _round_up(v, m):
    return (v + m - 1) // m * m


def _make_resblock_kernel(H, W, Hout, Wout, Cinp, Coutp, stride, has_proj):
    HW = Hout * Wout
    taps = [(dy, dx) for dy in range(3) for dx in range(3)]

    def tap_load(ref, dy, dx, s):
        if s == 1:
            return ref[dy:dy + Hout, dx:dx + Wout, :]
        # stride>1 fallback (see TODO above): load once, strided value slice.
        full = ref[...]
        return full[dy:dy + s * (Hout - 1) + 1:s, dx:dx + s * (Wout - 1) + 1:s, :]

    def kernel(*refs):
        if has_proj:
            (x_ref, w1_ref, w2_ref, ws_ref, bias_ref, out_ref,
             xpad_ref, h1pad_ref, col1_ref, col2_ref) = refs
        else:
            (x_ref, w1_ref, w2_ref, bias_ref, out_ref,
             xpad_ref, h1pad_ref, col1_ref, col2_ref) = refs
            ws_ref = None

        # ---- spatial halo for conv1: zero the 1-px border strips, write interior once ----
        zr = jnp.zeros((1, W + 2, Cinp), jnp.bfloat16)
        zc = jnp.zeros((H + 2, 1, Cinp), jnp.bfloat16)
        xpad_ref[0:1, :, :] = zr
        xpad_ref[H + 1:H + 2, :, :] = zr
        xpad_ref[:, 0:1, :] = zc
        xpad_ref[:, W + 1:W + 2, :] = zc
        xpad_ref[1:H + 1, 1:W + 1, :] = x_ref[0]

        # ---- conv1: im2col (stride applied here) + ONE MXU dot over K = 9*Cinp ----
        for t, (dy, dx) in enumerate(taps):
            col1_ref[:, t * Cinp:(t + 1) * Cinp] = (
                tap_load(xpad_ref, dy, dx, stride).reshape(HW, Cinp))
        acc1 = jnp.dot(col1_ref[...], w1_ref[...], preferred_element_type=jnp.float32)
        h1 = jnp.maximum(acc1 + bias_ref[0:1, :], 0.0)          # BN1 shift + ReLU (f32)

        # ---- spatial halo for conv2: border strips + interior written straight from h1 ----
        zr2 = jnp.zeros((1, Wout + 2, Coutp), jnp.bfloat16)
        zc2 = jnp.zeros((Hout + 2, 1, Coutp), jnp.bfloat16)
        h1pad_ref[0:1, :, :] = zr2
        h1pad_ref[Hout + 1:Hout + 2, :, :] = zr2
        h1pad_ref[:, 0:1, :] = zc2
        h1pad_ref[:, Wout + 1:Wout + 2, :] = zc2
        h1pad_ref[1:Hout + 1, 1:Wout + 1, :] = (
            h1.astype(jnp.bfloat16).reshape(Hout, Wout, Coutp))

        # ---- conv2: im2col (stride 1) + ONE MXU dot over K = 9*Coutp ----
        for t, (dy, dx) in enumerate(taps):
            col2_ref[:, t * Coutp:(t + 1) * Coutp] = (
                tap_load(h1pad_ref, dy, dx, 1).reshape(HW, Coutp))
        acc2 = jnp.dot(col2_ref[...], w2_ref[...], preferred_element_type=jnp.float32)

        # ---- shortcut: the center tap of col1 IS the stride-sampled x ----
        xc = col1_ref[:, 4 * Cinp:5 * Cinp]
        if has_proj:
            sc = jnp.dot(xc, ws_ref[...], preferred_element_type=jnp.float32)
        else:
            sc = xc.astype(jnp.float32)

        # BN2 shift (+ shortcut-BN shift) + residual add + ReLU; flat lane-dense store.
        out_ref[0] = jnp.maximum(acc2 + sc + bias_ref[1:2, :], 0.0)

    return kernel


def resblock_pallas(x_nchw, params, *, stride=1):
    N, Cin, H, W = x_nchw.shape
    Cout = params["w1"].shape[3]
    has_proj = (stride != 1) or (Cin != Cout)
    Hout = (H - 1) // stride + 1
    Wout = (W - 1) // stride + 1
    HW = Hout * Wout
    Cinp = _round_up(Cin, _LANE)
    Coutp = _round_up(Cout, _LANE)

    # Layout glue (one fused pass): NCHW -> NHWC, channel pad to a lane multiple, bf16 cast.
    # TODO(synk): when chaining blocks keep NHWC/bf16 between them and drop this pass.
    x = jnp.transpose(x_nchw, (0, 2, 3, 1))
    x = jnp.pad(x, ((0, 0), (0, 0), (0, 0), (0, Cinp - Cin))).astype(jnp.bfloat16)

    def fold(p):
        g, b, m, v = p
        s = g / jnp.sqrt(v + _EPS)
        return s, b - m * s

    s1, t1 = fold(params["bn1"])
    s2, t2 = fold(params["bn2"])

    # Fold BN scales into conv weights, pad to lane-dense (K, Coutp), ship in bf16.
    w1 = params["w1"].reshape(9, Cin, Cout) * s1
    w1 = jnp.zeros((9, Cinp, Coutp), jnp.float32).at[:, :Cin, :Cout].set(w1)
    w1 = w1.reshape(9 * Cinp, Coutp).astype(jnp.bfloat16)

    w2 = params["w2"].reshape(9, Cout, Cout) * s2
    w2 = jnp.zeros((9, Coutp, Coutp), jnp.float32).at[:, :Cout, :Cout].set(w2)
    w2 = w2.reshape(9 * Coutp, Coutp).astype(jnp.bfloat16)

    if has_proj:
        ss, ts = fold(params["bns"])
        ws = params["ws"].reshape(Cin, Cout) * ss
        ws = jnp.zeros((Cinp, Coutp), jnp.float32).at[:Cin, :Cout].set(ws).astype(jnp.bfloat16)
        t_out = t2 + ts
    else:
        ws = None
        t_out = t2
    bias = jnp.zeros((2, Coutp), jnp.float32).at[0, :Cout].set(t1).at[1, :Cout].set(t_out)

    kernel = _make_resblock_kernel(H, W, Hout, Wout, Cinp, Coutp, stride, has_proj)

    in_specs = [
        pl.BlockSpec((1, H, W, Cinp), lambda n: (n, 0, 0, 0)),
        pl.BlockSpec((9 * Cinp, Coutp), lambda n: (0, 0)),
        pl.BlockSpec((9 * Coutp, Coutp), lambda n: (0, 0)),
    ]
    operands = [x, w1, w2]
    if has_proj:
        in_specs.append(pl.BlockSpec((Cinp, Coutp), lambda n: (0, 0)))
        operands.append(ws)
    in_specs.append(pl.BlockSpec((2, Coutp), lambda n: (0, 0)))
    operands.append(bias)

    flops = 2 * N * HW * Coutp * (9 * Cinp + 9 * Coutp + (Cinp if has_proj else 0))
    bytes_accessed = (N * H * W * Cinp * 2 + N * HW * Coutp * 4
                      + (9 * Cinp + 9 * Coutp + (Cinp if has_proj else 0)) * Coutp * 2
                      + 2 * Coutp * 4)

    out_flat = pl.pallas_call(
        kernel,
        out_shape=jax.ShapeDtypeStruct((N, HW, Coutp), jnp.float32),
        grid=(N,),
        in_specs=in_specs,
        out_specs=pl.BlockSpec((1, HW, Coutp), lambda n: (n, 0, 0)),
        scratch_shapes=[
            pltpu.VMEM((H + 2, W + 2, Cinp), jnp.bfloat16),          # conv1 halo (bf16)
            pltpu.VMEM((Hout + 2, Wout + 2, Coutp), jnp.bfloat16),   # conv2 halo (bf16)
            pltpu.VMEM((HW, 9 * Cinp), jnp.bfloat16),                # im2col for conv1
            pltpu.VMEM((HW, 9 * Coutp), jnp.bfloat16),               # im2col for conv2
        ],
        compiler_params=pltpu.CompilerParams(
            dimension_semantics=("parallel",),
            vmem_limit_bytes=64 * 1024 * 1024,
        ),
        cost_estimate=pl.CostEstimate(flops=flops, transcendentals=0,
                                      bytes_accessed=bytes_accessed),
    )(*operands)

    out = out_flat.reshape(N, Hout, Wout, Coutp)[:, :, :, :Cout]
    return jnp.transpose(out, (0, 3, 1, 2))   # back to NCHW


def resblock_ref(x_nchw, params, *, stride=1):
    """Pure-JAX f32 reference (same eval-mode BN semantics as the PyTorch module)."""
    x = jnp.transpose(x_nchw, (0, 2, 3, 1)).astype(jnp.float32)
    Cin = x.shape[-1]
    Cout = params["w1"].shape[3]
    has_proj = (stride != 1) or (Cin != Cout)
    dn = ("NHWC", "HWIO", "NHWC")

    def bn(y, p):
        g, b, m, v = p
        return (y - m) / jnp.sqrt(v + _EPS) * g + b

    y = jax.lax.conv_general_dilated(x, params["w1"], (stride, stride),
                                     [(1, 1), (1, 1)], dimension_numbers=dn)
    y = jnp.maximum(bn(y, params["bn1"]), 0.0)
    y = jax.lax.conv_general_dilated(y, params["w2"], (1, 1),
                                     [(1, 1), (1, 1)], dimension_numbers=dn)
    y = bn(y, params["bn2"])
    if has_proj:
        sc = jax.lax.conv_general_dilated(x, params["ws"], (stride, stride),
                                          [(0, 0), (0, 0)], dimension_numbers=dn)
        sc = bn(sc, params["bns"])
    else:
        sc = x
    out = jnp.maximum(y + sc, 0.0)
    return jnp.transpose(out, (0, 3, 1, 2))


if __name__ == "__main__":
    N, Cin, Cout, H, W, stride = 2, 4, 8, 16, 16, 1

    key = jax.random.PRNGKey(0)
    ks = jax.random.split(key, 16)
    x = jax.random.normal(ks[0], (N, Cin, H, W), jnp.float32)

    def bn_params(k0, k1, k2, k3):
        return (1.0 + 0.1 * jax.random.normal(k0, (Cout,), jnp.float32),     # gamma
                0.1 * jax.random.normal(k1, (Cout,), jnp.float32),           # beta
                0.1 * jax.random.normal(k2, (Cout,), jnp.float32),           # running_mean
                jnp.abs(jax.random.normal(k3, (Cout,), jnp.float32)) + 0.5)  # running_var

    params = {
        "w1": 0.1 * jax.random.normal(ks[1], (3, 3, Cin, Cout), jnp.float32),   # HWIO
        "w2": 0.1 * jax.random.normal(ks[2], (3, 3, Cout, Cout), jnp.float32),  # HWIO
        "ws": 0.1 * jax.random.normal(ks[3], (1, 1, Cin, Cout), jnp.float32),   # HWIO
        "bn1": bn_params(ks[4], ks[5], ks[6], ks[7]),
        "bn2": bn_params(ks[8], ks[9], ks[10], ks[11]),
        "bns": bn_params(ks[12], ks[13], ks[14], ks[15]),
    }

    out = jax.block_until_ready(resblock_pallas(x, params, stride=stride))
    ref = resblock_ref(x, params, stride=stride)

    assert out.shape == (N, Cout, H // stride, W // stride), out.shape
    # bf16 activations + weights on the MXU vs f32 reference -> widened tolerance.
    np.testing.assert_allclose(np.asarray(out), np.asarray(ref), atol=5e-2, rtol=5e-2)
    print("KERNEL_OK")
</pallas_src>

<mosaic_0001>
module attributes {stable_mosaic.version = 11 : i64} {
  func.func @kernel(%arg0: i32, %arg1: memref<1x16x16x128xbf16, #tpu.memory_space<vmem>>, %arg2: memref<1152x128xbf16, #tpu.memory_space<vmem>>, %arg3: memref<1152x128xbf16, #tpu.memory_space<vmem>>, %arg4: memref<128x128xbf16, #tpu.memory_space<vmem>>, %arg5: memref<2x128xf32, #tpu.memory_space<vmem>>, %arg6: memref<1x256x128xf32, #tpu.memory_space<vmem>>, %arg7: memref<18x18x128xbf16, #tpu.memory_space<vmem>>, %arg8: memref<18x18x128xbf16, #tpu.memory_space<vmem>>, %arg9: memref<256x1152xbf16, #tpu.memory_space<vmem>>, %arg10: memref<256x1152xbf16, #tpu.memory_space<vmem>>) attributes {dimension_semantics = [#tpu.dimension_semantics<parallel>], iteration_bounds = array<i64: 2>, scalar_prefetch = 0 : i64, scratch_operands = 4 : i64, tpu.core_type = #tpu.core_type<tc>, window_params = [{transform_indices = @transform_0, window_bounds = array<i64: 1, 16, 16, 128>}, {pipeline_mode = #tpu.pipeline_mode<synchronous>, transform_indices = @transform_1, window_bounds = array<i64: 1152, 128>}, {pipeline_mode = #tpu.pipeline_mode<synchronous>, transform_indices = @transform_2, window_bounds = array<i64: 1152, 128>}, {pipeline_mode = #tpu.pipeline_mode<synchronous>, transform_indices = @transform_3, window_bounds = array<i64: 128, 128>}, {pipeline_mode = #tpu.pipeline_mode<synchronous>, transform_indices = @transform_4, window_bounds = array<i64: 2, 128>}, {transform_indices = @transform_5, window_bounds = array<i64: 1, 256, 128>}]} {
    %cst = arith.constant 0.000000e+00 : bf16
    %0 = vector.broadcast %cst : bf16 to vector<1x18x128xbf16>
    %cst_0 = arith.constant 0.000000e+00 : bf16
    %1 = vector.broadcast %cst_0 : bf16 to vector<18x1x128xbf16>
    %c0 = arith.constant 0 : index
    %c0_1 = arith.constant 0 : index
    %c0_2 = arith.constant 0 : index
    %2 = vector.load %arg7[%c0, %c0_1, %c0_2] : memref<18x18x128xbf16, #tpu.memory_space<vmem>>, vector<1x18x128xbf16>
    tpu.vector_store %arg7[%c0, %c0_1, %c0_2], %0 {strides = array<i32>} : memref<18x18x128xbf16, #tpu.memory_space<vmem>>, vector<1x18x128xbf16>,
    %c17 = arith.constant 17 : index
    %c0_3 = arith.constant 0 : index
    %c0_4 = arith.constant 0 : index
    %3 = vector.load %arg7[%c17, %c0_3, %c0_4] : memref<18x18x128xbf16, #tpu.memory_space<vmem>>, vector<1x18x128xbf16>
    tpu.vector_store %arg7[%c17, %c0_3, %c0_4], %0 {strides = array<i32>} : memref<18x18x128xbf16, #tpu.memory_space<vmem>>, vector<1x18x128xbf16>,
    %c0_5 = arith.constant 0 : index
    %c0_6 = arith.constant 0 : index
    %c0_7 = arith.constant 0 : index
    %4 = vector.load %arg7[%c0_5, %c0_6, %c0_7] : memref<18x18x128xbf16, #tpu.memory_space<vmem>>, vector<18x1x128xbf16>
    tpu.vector_store %arg7[%c0_5, %c0_6, %c0_7], %1 {strides = array<i32>} : memref<18x18x128xbf16, #tpu.memory_space<vmem>>, vector<18x1x128xbf16>,
    %c0_8 = arith.constant 0 : index
    %c17_9 = arith.constant 17 : index
    %c0_10 = arith.constant 0 : index
    %5 = vector.load %arg7[%c0_8, %c17_9, %c0_10] : memref<18x18x128xbf16, #tpu.memory_space<vmem>>, vector<18x1x128xbf16>
    tpu.vector_store %arg7[%c0_8, %c17_9, %c0_10], %1 {strides = array<i32>} : memref<18x18x128xbf16, #tpu.memory_space<vmem>>, vector<18x1x128xbf16>,
    %c0_11 = arith.constant 0 : index
    %c0_12 = arith.constant 0 : index
    %c0_13 = arith.constant 0 : index
    %c0_14 = arith.constant 0 : index
    %6 = vector.load %arg1[%c0_11, %c0_12, %c0_13, %c0_14] : memref<1x16x16x128xbf16, #tpu.memory_space<vmem>>, vector<1x16x16x128xbf16>
    %7 = vector.shape_cast %6 : vector<1x16x16x128xbf16> to vector<16x16x128xbf16>
    %c1 = arith.constant 1 : index
    %c1_15 = arith.constant 1 : index
    %c0_16 = arith.constant 0 : index
    %8 = vector.load %arg7[%c1, %c1_15, %c0_16] : memref<18x18x128xbf16, #tpu.memory_space<vmem>>, vector<16x16x128xbf16>
    tpu.vector_store %arg7[%c1, %c1_15, %c0_16], %7 {strides = array<i32>} : memref<18x18x128xbf16, #tpu.memory_space<vmem>>, vector<16x16x128xbf16>,
    %c0_17 = arith.constant 0 : index
    %c0_18 = arith.constant 0 : index
    %c0_19 = arith.constant 0 : index
    %9 = vector.load %arg7[%c0_17, %c0_18, %c0_19] : memref<18x18x128xbf16, #tpu.memory_space<vmem>>, vector<16x16x128xbf16>
    %10 = vector.shape_cast %9 : vector<16x16x128xbf16> to vector<256x128xbf16>
    %c0_20 = arith.constant 0 : index
    %c0_21 = arith.constant 0 : index
    %11 = vector.load %arg9[%c0_20, %c0_21] : memref<256x1152xbf16, #tpu.memory_space<vmem>>, vector<256x128xbf16>
    tpu.vector_store %arg9[%c0_20, %c0_21], %10 {strides = array<i32>} : memref<256x1152xbf16, #tpu.memory_space<vmem>>, vector<256x128xbf16>,
    %c0_22 = arith.constant 0 : index
    %c1_23 = arith.constant 1 : index
    %c0_24 = arith.constant 0 : index
    %12 = vector.load %arg7[%c0_22, %c1_23, %c0_24] : memref<18x18x128xbf16, #tpu.memory_space<vmem>>, vector<16x16x128xbf16>
    %13 = vector.shape_cast %12 : vector<16x16x128xbf16> to vector<256x128xbf16>
    %c0_25 = arith.constant 0 : index
    %c128 = arith.constant 128 : index
    %14 = vector.load %arg9[%c0_25, %c128] : memref<256x1152xbf16, #tpu.memory_space<vmem>>, vector<256x128xbf16>
    tpu.vector_store %arg9[%c0_25, %c128], %13 {strides = array<i32>} : memref<256x1152xbf16, #tpu.memory_space<vmem>>, vector<256x128xbf16>,
    %c0_26 = arith.constant 0 : index
    %c2 = arith.constant 2 : index
    %c0_27 = arith.constant 0 : index
    %15 = vector.load %arg7[%c0_26, %c2, %c0_27] : memref<18x18x128xbf16, #tpu.memory_space<vmem>>, vector<16x16x128xbf16>
    %16 = vector.shape_cast %15 : vector<16x16x128xbf16> to vector<256x128xbf16>
    %c0_28 = arith.constant 0 : index
    %c256 = arith.constant 256 : index
    %17 = vector.load %arg9[%c0_28, %c256] : memref<256x1152xbf16, #tpu.memory_space<vmem>>, vector<256x128xbf16>
    tpu.vector_store %arg9[%c0_28, %c256], %16 {strides = array<i32>} : memref<256x1152xbf16, #tpu.memory_space<vmem>>, vector<256x128xbf16>,
    %c1_29 = arith.constant 1 : index
    %c0_30 = arith.constant 0 : index
    %c0_31 = arith.constant 0 : index
    %18 = vector.load %arg7[%c1_29, %c0_30, %c0_31] : memref<18x18x128xbf16, #tpu.memory_space<vmem>>, vector<16x16x128xbf16>
    %19 = vector.shape_cast %18 : vector<16x16x128xbf16> to vector<256x128xbf16>
    %c0_32 = arith.constant 0 : index
    %c384 = arith.constant 384 : index
    %20 = vector.load %arg9[%c0_32, %c384] : memref<256x1152xbf16, #tpu.memory_space<vmem>>, vector<256x128xbf16>
    tpu.vector_store %arg9[%c0_32, %c384], %19 {strides = array<i32>} : memref<256x1152xbf16, #tpu.memory_space<vmem>>, vector<256x128xbf16>,
    %c1_33 = arith.constant 1 : index
    %c1_34 = arith.constant 1 : index
    %c0_35 = arith.constant 0 : index
    %21 = vector.load %arg7[%c1_33, %c1_34, %c0_35] : memref<18x18x128xbf16, #tpu.memory_space<vmem>>, vector<16x16x128xbf16>
    %22 = vector.shape_cast %21 : vector<16x16x128xbf16> to vector<256x128xbf16>
    %c0_36 = arith.constant 0 : index
    %c512 = arith.constant 512 : index
    %23 = vector.load %arg9[%c0_36, %c512] : memref<256x1152xbf16, #tpu.memory_space<vmem>>, vector<256x128xbf16>
    tpu.vector_store %arg9[%c0_36, %c512], %22 {strides = array<i32>} : memref<256x1152xbf16, #tpu.memory_space<vmem>>, vector<256x128xbf16>,
    %c1_37 = arith.constant 1 : index
    %c2_38 = arith.constant 2 : index
    %c0_39 = arith.constant 0 : index
    %24 = vector.load %arg7[%c1_37, %c2_38, %c0_39] : memref<18x18x128xbf16, #tpu.memory_space<vmem>>, vector<16x16x128xbf16>
    %25 = vector.shape_cast %24 : vector<16x16x128xbf16> to vector<256x128xbf16>
    %c0_40 = arith.constant 0 : index
    %c640 = arith.constant 640 : index
    %26 = vector.load %arg9[%c0_40, %c640] : memref<256x1152xbf16, #tpu.memory_space<vmem>>, vector<256x128xbf16>
    tpu.vector_store %arg9[%c0_40, %c640], %25 {strides = array<i32>} : memref<256x1152xbf16, #tpu.memory_space<vmem>>, vector<256x128xbf16>,
    %c2_41 = arith.constant 2 : index
    %c0_42 = arith.constant 0 : index
    %c0_43 = arith.constant 0 : index
    %27 = vector.load %arg7[%c2_41, %c0_42, %c0_43] : memref<18x18x128xbf16, #tpu.memory_space<vmem>>, vector<16x16x128xbf16>
    %28 = vector.shape_cast %27 : vector<16x16x128xbf16> to vector<256x128xbf16>
    %c0_44 = arith.constant 0 : index
    %c768 = arith.constant 768 : index
    %29 = vector.load %arg9[%c0_44, %c768] : memref<256x1152xbf16, #tpu.memory_space<vmem>>, vector<256x128xbf16>
    tpu.vector_store %arg9[%c0_44, %c768], %28 {strides = array<i32>} : memref<256x1152xbf16, #tpu.memory_space<vmem>>, vector<256x128xbf16>,
    %c2_45 = arith.constant 2 : index
    %c1_46 = arith.constant 1 : index
    %c0_47 = arith.constant 0 : index
    %30 = vector.load %arg7[%c2_45, %c1_46, %c0_47] : memref<18x18x128xbf16, #tpu.memory_space<vmem>>, vector<16x16x128xbf16>
    %31 = vector.shape_cast %30 : vector<16x16x128xbf16> to vector<256x128xbf16>
    %c0_48 = arith.constant 0 : index
    %c896 = arith.constant 896 : index
    %32 = vector.load %arg9[%c0_48, %c896] : memref<256x1152xbf16, #tpu.memory_space<vmem>>, vector<256x128xbf16>
    tpu.vector_store %arg9[%c0_48, %c896], %31 {strides = array<i32>} : memref<256x1152xbf16, #tpu.memory_space<vmem>>, vector<256x128xbf16>,
    %c2_49 = arith.constant 2 : index
    %c2_50 = arith.constant 2 : index
    %c0_51 = arith.constant 0 : index
    %33 = vector.load %arg7[%c2_49, %c2_50, %c0_51] : memref<18x18x128xbf16, #tpu.memory_space<vmem>>, vector<16x16x128xbf16>
    %34 = vector.shape_cast %33 : vector<16x16x128xbf16> to vector<256x128xbf16>
    %c0_52 = arith.constant 0 : index
    %c1024 = arith.constant 1024 : index
    %35 = vector.load %arg9[%c0_52, %c1024] : memref<256x1152xbf16, #tpu.memory_space<vmem>>, vector<256x128xbf16>
    tpu.vector_store %arg9[%c0_52, %c1024], %34 {strides = array<i32>} : memref<256x1152xbf16, #tpu.memory_space<vmem>>, vector<256x128xbf16>,
    %c0_53 = arith.constant 0 : index
    %c0_54 = arith.constant 0 : index
    %36 = vector.load %arg9[%c0_53, %c0_54] : memref<256x1152xbf16, #tpu.memory_space<vmem>>, vector<256x1152xbf16>
    %c0_55 = arith.constant 0 : index
    %c0_56 = arith.constant 0 : index
    %37 = vector.load %arg2[%c0_55, %c0_56] : memref<1152x128xbf16, #tpu.memory_space<vmem>>, vector<1152x128xbf16>
    %cst_57 = arith.constant dense<0.000000e+00> : vector<256x128xf32>
    %38 = tpu.matmul %36, %37, %cst_57 {dimension_numbers = #tpu.dot_dimension_numbers<[1], [0], [0], [1], [0, 0, 1, 1], [], []>} : vector<256x1152xbf16>, vector<1152x128xbf16>, vector<256x128xf32> -> vector<256x128xf32>
    %c0_58 = arith.constant 0 : index
    %c0_59 = arith.constant 0 : index
    %39 = vector.load %arg5[%c0_58, %c0_59] : memref<2x128xf32, #tpu.memory_space<vmem>>, vector<1x128xf32>
    %40 = vector.broadcast %39 : vector<1x128xf32> to vector<256x128xf32>
    %41 = arith.addf %38, %40 : vector<256x128xf32>
    %cst_60 = arith.constant 0.000000e+00 : f32
    %42 = vector.broadcast %cst_60 : f32 to vector<256x128xf32>
    %43 = arith.maximumf %41, %42 : vector<256x128xf32>
    %cst_61 = arith.constant 0.000000e+00 : bf16
    %44 = vector.broadcast %cst_61 : bf16 to vector<1x18x128xbf16>
    %cst_62 = arith.constant 0.000000e+00 : bf16
    %45 = vector.broadcast %cst_62 : bf16 to vector<18x1x128xbf16>
    %c0_63 = arith.constant 0 : index
    %c0_64 = arith.constant 0 : index
    %c0_65 = arith.constant 0 : index
    %46 = vector.load %arg8[%c0_63, %c0_64, %c0_65] : memref<18x18x128xbf16, #tpu.memory_space<vmem>>, vector<1x18x128xbf16>
    tpu.vector_store %arg8[%c0_63, %c0_64, %c0_65], %44 {strides = array<i32>} : memref<18x18x128xbf16, #tpu.memory_space<vmem>>, vector<1x18x128xbf16>,
    %c17_66 = arith.constant 17 : index
    %c0_67 = arith.constant 0 : index
    %c0_68 = arith.constant 0 : index
    %47 = vector.load %arg8[%c17_66, %c0_67, %c0_68] : memref<18x18x128xbf16, #tpu.memory_space<vmem>>, vector<1x18x128xbf16>
    tpu.vector_store %arg8[%c17_66, %c0_67, %c0_68], %44 {strides = array<i32>} : memref<18x18x128xbf16, #tpu.memory_space<vmem>>, vector<1x18x128xbf16>,
    %c0_69 = arith.constant 0 : index
    %c0_70 = arith.constant 0 : index
    %c0_71 = arith.constant 0 : index
    %48 = vector.load %arg8[%c0_69, %c0_70, %c0_71] : memref<18x18x128xbf16, #tpu.memory_space<vmem>>, vector<18x1x128xbf16>
    tpu.vector_store %arg8[%c0_69, %c0_70, %c0_71], %45 {strides = array<i32>} : memref<18x18x128xbf16, #tpu.memory_space<vmem>>, vector<18x1x128xbf16>,
    %c0_72 = arith.constant 0 : index
    %c17_73 = arith.constant 17 : index
    %c0_74 = arith.constant 0 : index
    %49 = vector.load %arg8[%c0_72, %c17_73, %c0_74] : memref<18x18x128xbf16, #tpu.memory_space<vmem>>, vector<18x1x128xbf16>
    tpu.vector_store %arg8[%c0_72, %c17_73, %c0_74], %45 {strides = array<i32>} : memref<18x18x128xbf16, #tpu.memory_space<vmem>>, vector<18x1x128xbf16>,
    %50 = arith.truncf %43 : vector<256x128xf32> to vector<256x128xbf16>
    %51 = vector.shape_cast %50 : vector<256x128xbf16> to vector<16x16x128xbf16>
    %c1_75 = arith.constant 1 : index
    %c1_76 = arith.constant 1 : index
    %c0_77 = arith.constant 0 : index
    %52 = vector.load %arg8[%c1_75, %c1_76, %c0_77] : memref<18x18x128xbf16, #tpu.memory_space<vmem>>, vector<16x16x128xbf16>
    tpu.vector_store %arg8[%c1_75, %c1_76, %c0_77], %51 {strides = array<i32>} : memref<18x18x128xbf16, #tpu.memory_space<vmem>>, vector<16x16x128xbf16>,
    %c0_78 = arith.constant 0 : index
    %c0_79 = arith.constant 0 : index
    %c0_80 = arith.constant 0 : index
    %53 = vector.load %arg8[%c0_78, %c0_79, %c0_80] : memref<18x18x128xbf16, #tpu.memory_space<vmem>>, vector<16x16x128xbf16>
    %54 = vector.shape_cast %53 : vector<16x16x128xbf16> to vector<256x128xbf16>
    %c0_81 = arith.constant 0 : index
    %c0_82 = arith.constant 0 : index
    %55 = vector.load %arg10[%c0_81, %c0_82] : memref<256x1152xbf16, #tpu.memory_space<vmem>>, vector<256x128xbf16>
    tpu.vector_store %arg10[%c0_81, %c0_82], %54 {strides = array<i32>} : memref<256x1152xbf16, #tpu.memory_space<vmem>>, vector<256x128xbf16>,
    %c0_83 = arith.constant 0 : index
    %c1_84 = arith.constant 1 : index
    %c0_85 = arith.constant 0 : index
    %56 = vector.load %arg8[%c0_83, %c1_84, %c0_85] : memref<18x18x128xbf16, #tpu.memory_space<vmem>>, vector<16x16x128xbf16>
    %57 = vector.shape_cast %56 : vector<16x16x128xbf16> to vector<256x128xbf16>
    %c0_86 = arith.constant 0 : index
    %c128_87 = arith.constant 128 : index
    %58 = vector.load %arg10[%c0_86, %c128_87] : memref<256x1152xbf16, #tpu.memory_space<vmem>>, vector<256x128xbf16>
    tpu.vector_store %arg10[%c0_86, %c128_87], %57 {strides = array<i32>} : memref<256x1152xbf16, #tpu.memory_space<vmem>>, vector<256x128xbf16>,
    %c0_88 = arith.constant 0 : index
    %c2_89 = arith.constant 2 : index
    %c0_90 = arith.constant 0 : index
    %59 = vector.load %arg8[%c0_88, %c2_89, %c0_90] : memref<18x18x128xbf16, #tpu.memory_space<vmem>>, vector<16x16x128xbf16>
    %60 = vector.shape_cast %59 : vector<16x16x128xbf16> to vector<256x128xbf16>
    %c0_91 = arith.constant 0 : index
    %c256_92 = arith.constant 256 : index
    %61 = vector.load %arg10[%c0_91, %c256_92] : memref<256x1152xbf16, #tpu.memory_space<vmem>>, vector<256x128xbf16>
    tpu.vector_store %arg10[%c0_91, %c256_92], %60 {strides = array<i32>} : memref<256x1152xbf16, #tpu.memory_space<vmem>>, vector<256x128xbf16>,
    %c1_93 = arith.constant 1 : index
    %c0_94 = arith.constant 0 : index
    %c0_95 = arith.constant 0 : index
    %62 = vector.load %arg8[%c1_93, %c0_94, %c0_95] : memref<18x18x128xbf16, #tpu.memory_space<vmem>>, vector<16x16x128xbf16>
    %63 = vector.shape_cast %62 : vector<16x16x128xbf16> to vector<256x128xbf16>
    %c0_96 = arith.constant 0 : index
    %c384_97 = arith.constant 384 : index
    %64 = vector.load %arg10[%c0_96, %c384_97] : memref<256x1152xbf16, #tpu.memory_space<vmem>>, vector<256x128xbf16>
    tpu.vector_store %arg10[%c0_96, %c384_97], %63 {strides = array<i32>} : memref<256x1152xbf16, #tpu.memory_space<vmem>>, vector<256x128xbf16>,
    %c1_98 = arith.constant 1 : index
    %c1_99 = arith.constant 1 : index
    %c0_100 = arith.constant 0 : index
    %65 = vector.load %arg8[%c1_98, %c1_99, %c0_100] : memref<18x18x128xbf16, #tpu.memory_space<vmem>>, vector<16x16x128xbf16>
    %66 = vector.shape_cast %65 : vector<16x16x128xbf16> to vector<256x128xbf16>
    %c0_101 = arith.constant 0 : index
    %c512_102 = arith.constant 512 : index
    %67 = vector.load %arg10[%c0_101, %c512_102] : memref<256x1152xbf16, #tpu.memory_space<vmem>>, vector<256x128xbf16>
    tpu.vector_store %arg10[%c0_101, %c512_102], %66 {strides = array<i32>} : memref<256x1152xbf16, #tpu.memory_space<vmem>>, vector<256x128xbf16>,
    %c1_103 = arith.constant 1 : index
    %c2_104 = arith.constant 2 : index
    %c0_105 = arith.constant 0 : index
    %68 = vector.load %arg8[%c1_103, %c2_104, %c0_105] : memref<18x18x128xbf16, #tpu.memory_space<vmem>>, vector<16x16x128xbf16>
    %69 = vector.shape_cast %68 : vector<16x16x128xbf16> to vector<256x128xbf16>
    %c0_106 = arith.constant 0 : index
    %c640_107 = arith.constant 640 : index
    %70 = vector.load %arg10[%c0_106, %c640_107] : memref<256x1152xbf16, #tpu.memory_space<vmem>>, vector<256x128xbf16>
    tpu.vector_store %arg10[%c0_106, %c640_107], %69 {strides = array<i32>} : memref<256x1152xbf16, #tpu.memory_space<vmem>>, vector<256x128xbf16>,
    %c2_108 = arith.constant 2 : index
    %c0_109 = arith.constant 0 : index
    %c0_110 = arith.constant 0 : index
    %71 = vector.load %arg8[%c2_108, %c0_109, %c0_110] : memref<18x18x128xbf16, #tpu.memory_space<vmem>>, vector<16x16x128xbf16>
    %72 = vector.shape_cast %71 : vector<16x16x128xbf16> to vector<256x128xbf16>
    %c0_111 = arith.constant 0 : index
    %c768_112 = arith.constant 768 : index
    %73 = vector.load %arg10[%c0_111, %c768_112] : memref<256x1152xbf16, #tpu.memory_space<vmem>>, vector<256x128xbf16>
    tpu.vector_store %arg10[%c0_111, %c768_112], %72 {strides = array<i32>} : memref<256x1152xbf16, #tpu.memory_space<vmem>>, vector<256x128xbf16>,
    %c2_113 = arith.constant 2 : index
    %c1_114 = arith.constant 1 : index
    %c0_115 = arith.constant 0 : index
    %74 = vector.load %arg8[%c2_113, %c1_114, %c0_115] : memref<18x18x128xbf16, #tpu.memory_space<vmem>>, vector<16x16x128xbf16>
    %75 = vector.shape_cast %74 : vector<16x16x128xbf16> to vector<256x128xbf16>
    %c0_116 = arith.constant 0 : index
    %c896_117 = arith.constant 896 : index
    %76 = vector.load %arg10[%c0_116, %c896_117] : memref<256x1152xbf16, #tpu.memory_space<vmem>>, vector<256x128xbf16>
    tpu.vector_store %arg10[%c0_116, %c896_117], %75 {strides = array<i32>} : memref<256x1152xbf16, #tpu.memory_space<vmem>>, vector<256x128xbf16>,
    %c2_118 = arith.constant 2 : index
    %c2_119 = arith.constant 2 : index
    %c0_120 = arith.constant 0 : index
    %77 = vector.load %arg8[%c2_118, %c2_119, %c0_120] : memref<18x18x128xbf16, #tpu.memory_space<vmem>>, vector<16x16x128xbf16>
    %78 = vector.shape_cast %77 : vector<16x16x128xbf16> to vector<256x128xbf16>
    %c0_121 = arith.constant 0 : index
    %c1024_122 = arith.constant 1024 : index
    %79 = vector.load %arg10[%c0_121, %c1024_122] : memref<256x1152xbf16, #tpu.memory_space<vmem>>, vector<256x128xbf16>
    tpu.vector_store %arg10[%c0_121, %c1024_122], %78 {strides = array<i32>} : memref<256x1152xbf16, #tpu.memory_space<vmem>>, vector<256x128xbf16>,
    %c0_123 = arith.constant 0 : index
    %c0_124 = arith.constant 0 : index
    %80 = vector.load %arg10[%c0_123, %c0_124] : memref<256x1152xbf16, #tpu.memory_space<vmem>>, vector<256x1152xbf16>
    %c0_125 = arith.constant 0 : index
    %c0_126 = arith.constant 0 : index
    %81 = vector.load %arg3[%c0_125, %c0_126] : memref<1152x128xbf16, #tpu.memory_space<vmem>>, vector<1152x128xbf16>
    %cst_127 = arith.constant dense<0.000000e+00> : vector<256x128xf32>
    %82 = tpu.matmul %80, %81, %cst_127 {dimension_numbers = #tpu.dot_dimension_numbers<[1], [0], [0], [1], [0, 0, 1, 1], [], []>} : vector<256x1152xbf16>, vector<1152x128xbf16>, vector<256x128xf32> -> vector<256x128xf32>
    %c0_128 = arith.constant 0 : index
    %c512_129 = arith.constant 512 : index
    %83 = vector.load %arg9[%c0_128, %c512_129] : memref<256x1152xbf16, #tpu.memory_space<vmem>>, vector<256x128xbf16>
    %c0_130 = arith.constant 0 : index
    %c0_131 = arith.constant 0 : index
    %84 = vector.load %arg4[%c0_130, %c0_131] : memref<128x128xbf16, #tpu.memory_space<vmem>>, vector<128x128xbf16>
    %cst_132 = arith.constant dense<0.000000e+00> : vector<256x128xf32>
    %85 = tpu.matmul %83, %84, %cst_132 {dimension_numbers = #tpu.dot_dimension_numbers<[1], [0], [0], [1], [0, 0, 1, 1], [], []>} : vector<256x128xbf16>, vector<128x128xbf16>, vector<256x128xf32> -> vector<256x128xf32>
    %86 = arith.addf %82, %85 : vector<256x128xf32>
    %c1_133 = arith.constant 1 : index
    %c0_134 = arith.constant 0 : index
    %87 = vector.load %arg5[%c1_133, %c0_134] : memref<2x128xf32, #tpu.memory_space<vmem>>, vector<1x128xf32>
    %88 = vector.broadcast %87 : vector<1x128xf32> to vector<256x128xf32>
    %89 = arith.addf %86, %88 : vector<256x128xf32>
    %cst_135 = arith.constant 0.000000e+00 : f32
    %90 = vector.broadcast %cst_135 : f32 to vector<256x128xf32>
    %91 = arith.maximumf %89, %90 : vector<256x128xf32>
    %c0_136 = arith.constant 0 : index
    %c0_137 = arith.constant 0 : index
    %c0_138 = arith.constant 0 : index
    %92 = vector.load %arg6[%c0_136, %c0_137, %c0_138] : memref<1x256x128xf32, #tpu.memory_space<vmem>>, vector<1x256x128xf32>
    %93 = vector.shape_cast %92 : vector<1x256x128xf32> to vector<256x128xf32>
    %94 = vector.shape_cast %91 : vector<256x128xf32> to vector<1x256x128xf32>
    tpu.vector_store %arg6[%c0_136, %c0_137, %c0_138], %94 {strides = array<i32>} : memref<1x256x128xf32, #tpu.memory_space<vmem>>, vector<1x256x128xf32>,
    return
  }
  func.func @transform_0(%arg0: i32) -> (i32, i32, i32, i32) {
    %c0_i32 = arith.constant 0 : i32
    %c0_i32_0 = arith.constant 0 : i32
    %c0_i32_1 = arith.constant 0 : i32
    %c0_i32_2 = arith.constant 0 : i32
    return %arg0, %c0_i32, %c0_i32_0, %c0_i32_1 : i32, i32, i32, i32
  }
  func.func @transform_1(%arg0: i32) -> (i32, i32) {
    %c0_i32 = arith.constant 0 : i32
    %c0_i32_0 = arith.constant 0 : i32
    %c0_i32_1 = arith.constant 0 : i32
    return %c0_i32, %c0_i32_0 : i32, i32
  }
  func.func @transform_2(%arg0: i32) -> (i32, i32) {
    %c0_i32 = arith.constant 0 : i32
    %c0_i32_0 = arith.constant 0 : i32
    %c0_i32_1 = arith.constant 0 : i32
    return %c0_i32, %c0_i32_0 : i32, i32
  }
  func.func @transform_3(%arg0: i32) -> (i32, i32) {
    %c0_i32 = arith.constant 0 : i32
    %c0_i32_0 = arith.constant 0 : i32
    %c0_i32_1 = arith.constant 0 : i32
    return %c0_i32, %c0_i32_0 : i32, i32
  }
  func.func @transform_4(%arg0: i32) -> (i32, i32) {
    %c0_i32 = arith.constant 0 : i32
    %c0_i32_0 = arith.constant 0 : i32
    %c0_i32_1 = arith.constant 0 : i32
    return %c0_i32, %c0_i32_0 : i32, i32
  }
  func.func @transform_5(%arg0: i32) -> (i32, i32, i32) {
    %c0_i32 = arith.constant 0 : i32
    %c0_i32_0 = arith.constant 0 : i32
    %c0_i32_1 = arith.constant 0 : i32
    return %arg0, %c0_i32, %c0_i32_0 : i32, i32, i32
  }
}

</mosaic_0001>

<bundles_post_ra>
// kernel: tpu_custom_call.1
= control target key start
LH: loop header
LB: loop body
LE: loop exit
PB: predicated region body
PF: predicated region fallthrough
CT: control target
= control target key end

     0   :  { %10 = vsyncpa [#allocation7], 0  ;;  %s16979_s0 = inlined_call_operand.hbm [shape: bf16[2,16,16,128], index: 0, kind: input, shape index: {}]   ;;  %s16980_s1 = inlined_call_operand.hbm [shape: bf16[1152,128], index: 1, kind: input, shape index: {}]   ;;  %s16981_s2 = inlined_call_operand.hbm [shape: bf16[1152,128], index: 2, kind: input, shape index: {}]   ;;  %s16982_s3 = inlined_call_operand.hbm [shape: bf16[128,128], index: 3, kind: input, shape index: {}]   ;;  %s16983_s4 = inlined_call_operand.vmem [shape: f32[2,128], index: 4, kind: input, shape index: {}]   ;;  %s16984_s5 = inlined_call_operand.hbm [shape: f32[2,256,128], index: 5, kind: output, shape index: {}]  }
   0x1   :  { %12 = vsyncpa [#allocation7 + $0x1], 0 }
   0x2   :  { %13 = vsyncpa [#allocation10], 0 }
   0x3   :  { %14 = vsyncpa [#allocation13], 0 }
   0x4   :  { %15 = vsyncpa [#allocation8], 0 }
   0x5   :  { %17 = vsyncpa [#allocation8 + $0x1], 0  ;;  %s14285_s18 = smov 0   ;;  %s14287_s19 = smov 0  }
   0x6   :  { %s14289_s20 = smov 0   ;;  %s14291_s21 = smov 0  }
   0x7 LB: > { %s14306_s22 = sadd.s32 4294967295, %s14245_s21   ;;  %s11542_s23 = sadd.s32 4294967294, %s14245_s21   ;;  %s14245_s21 = sphi %s14291_s21, %s17190_s21   ;;  %s14241_s20 = sphi %s14289_s20, %s17189_s20   ;;  %s14237_s19 = sphi %s14287_s19, %s17188_s19   ;;  %s14233_s18 = sphi %s14285_s18, %s17187_s18  }
   0x8   : > { %p43_p0 = scmp.ne.s32.totalorder %s14237_s19, %s14233_s18  ;;  %p44_p1 = scmp.eq.s32.totalorder %s14306_s22, 0 }
   0x9   : > { %p151_p2 = scmp.eq.s32.totalorder %s14306_s22, 1  ;;  %p157_p3 = scmp.eq.s32.totalorder %s11542_s23, 1 }
   0xa   : > { %p14315_p4 = por %p44_p1, %p43_p0  ;;  %p11543_p5 = scmp.ge.s32.totalorder %s14245_s21, 1 }
   0xb   : > { %p14320_p6 = por %p157_p3, %p43_p0  ;;  %p164_p7 = scmp.lt.s32.totalorder %s14245_s21, 3 }
   0xc   : > { %s175_s28 = sshll.u32 %s16980_s1, 4  ;;  %s14247_s30 = smov [#allocation9]   ;;  %s176_s28 = int_to_ptr.hbm [resolvable:$true] %s175_s28 }
   0xd   : > { %p14328_p8 = pnand %p11543_p5, %p164_p7  ;;  %s177_s6 = sshll.u32 %s14247_s30, 4  ;;  %s178_s6 = int_to_ptr.vmem [resolvable:$true] %s177_s6 }
   0xe   : > { %s189_s10 = sshll.u32 %s16981_s2, 4  ;;  %s16985_s11 = smov 64   ;;  %s190_s10 = int_to_ptr.hbm [resolvable:$true] %s189_s10 }
   0xf   : > { %p13980_p9 = pneg %p14328_p8  ;;  %s14249_s12 = smov 4  }
  0x10   : > { %s14250_s13 = smov [#allocation11]   ;;  %s203_s17 = sshll.u32 %s16982_s3, 4  ;;  %s204_s17 = int_to_ptr.hbm [resolvable:$true] %s203_s17 }
  0x11   : > { %p14336_p10 = pnand %p13980_p9, %p44_p1  ;;  %s191_s14 = sshll.u32 %s14250_s13, 4  ;;  %s192_s14 = int_to_ptr.vmem [resolvable:$true] %s191_s14 }
  0x12   : > { %s14251_s23 = smov [#allocation12]   ;;  %s14358_s27 = sadd.s32 1, %s14245_s21  }
  0x13   : > { %13983 = dma.hbm_to_vmem [thread:$0]  (!%p14336_p10), %s176_s28, 9216, %s178_s6, [#allocation10], %s16985_s11, %s16985_s11, %s14249_s12  }
  0x14   : > { %13986 = dma.hbm_to_vmem [thread:$0]  (!%p14336_p10), %s190_s10, 9216, %s192_s14, [#allocation10], %s16985_s11, %s16985_s11, %s14249_s12  }
  0x15   : > { %s205_s26 = sshll.u32 %s14251_s23, 4  ;;  %s27_s28 = ssub.s32 %s14245_s21, %s14358_s27  ;;  %s206_s26 = int_to_ptr.vmem [resolvable:$true] %s205_s26 }
  0x16   : > { %13989 = dma.hbm_to_vmem [thread:$0]  (!%p14336_p10), %s204_s17, 1024, %s206_s26, [#allocation13], %s16985_s11, %s16985_s11, %s14249_s12  }
  0x17   : > { %s30_s30 = sadd.s32 1, %s14241_s20  ;;  %p28_p12 = scmp.eq.s32.totalorder %s27_s28, 0 }
  0x18   : > { %p37_p13 = scmp.ne.s32.totalorder %s14241_s20, %s14237_s19  ;;  %p38_p0 = scmp.eq.s32.totalorder %s14245_s21, 0 }
  0x19   : > { %s14372_s6 = scalar_select %p28_p12, %s14241_s20, %s30_s30  }
  0x1a   : > { %p14376_p3 = por %p151_p2, %p37_p13  ;;  %p14001_p5 = scmp.lt.s32.totalorder %s14245_s21, 2 }
  0x1b   : > { %s222_s9 = sand.u32 1, %s14241_s20   ;;  %s13482_s7 = sshll.u32 %s14245_s21, 7 }
  0x1c   : > { %p39_p7 = por %p38_p0, %p37_p13  ;;  %s11548_s10 = sshll.u32 %s222_s9, 7 }
  0x1d   : > { %s231_s15 = scalar_lea.hbm %s16979_s0, %s13482_s7  ;;  %s226_s17 = scalar_lea.vmem [#allocation6], %s11548_s10 }
  0x1e   : > { %s232_s16 = sshll.u32 %s231_s15, 4  ;;  %s234_s23 = sshll.u32 %s226_s17, 4  ;;  %s233_s16 = int_to_ptr.hbm [resolvable:$true] %s232_s16  ;;  %s235_s23 = int_to_ptr.vmem [resolvable:$true] %s234_s23 }
  0x1f   : > { %p14386_p9 = pnand %p14001_p5, %p39_p7  ;;  %s223_s28 = scalar_lea.sflag [#allocation7], %s222_s9 }
  0x20   : > { %s14141_s30 = sshra.s32 %s233_s16, 4  ;;  %s14148_s10 = scalar_lea.hbm %s16979_s0, 256  ;;  %s14142_s30 = int_to_ptr.hbm [resolvable:$true] %s14141_s30 }
  0x21   : > { %s14143_s11 = scalar_lea.hbm %s14142_s30, 128  ;;  %p14145_p10 = pneg %p14386_p9 }
  0x22   : > { %p14144_p2 = scmp.ne.s32.totalorder %s14142_s30, %s14143_s11  ;;  %p14149_p0 = scmp.lt.s32.totalorder %s14142_s30, %s16979_s0 }
  0x23   : > { %p14150_p5 = scmp.lt.s32.totalorder %s14148_s10, %s14143_s11 }
  0x24   : > { %p14146_p12 = pnand %p14145_p10, %p14144_p2 }
  0x25   : > { %p14151_p7 = por %p14150_p5, %p14149_p0 }
  0x26   : > { %p14147_p13 = pneg %p14146_p12 }
  0x28   : > { %p14152_p11 = pnand %p14151_p7, %p14147_p13 }
  0x2a   : > { %14155 = shalt.err (!%p14152_p11)
}
  0x2b   : > { %s16995_s9 = smov 64   ;;  %246 = sbr.rel (%p14328_p8) target bundleno = 1663 (0x67f), region = 40 }
  0x2c   : > { %13993 = dma.hbm_to_vmem [thread:$0]  (!%p14386_p9), %s233_s16, 2048, %s235_s23, %s223_s28, %s16995_s9, %s16995_s9, %s14249_s12  }
  0x30   : > { %s14406_s17 = sand.u32 1, %s14237_s19  }
  0x31   : > { %s11552_s30 = sshll.u32 %s14406_s17, 7  ;;  %s249_s11 = scalar_lea.sflag [#allocation7], %s14406_s17 }
  0x32   : > { %s14410_s7 = scalar_lea.vmem [#allocation6], %s11552_s30 }
  0x33   : > { %14216 = dma.done.wait (%p14315_p4), %s249_s11, 2048  }
  0x34   : > { %14218 = vsyncadd (%p14315_p4), %s249_s11, 4294965248 }
  0x35   : > { %14220 = dma.done.wait (%p44_p1), [#allocation10], 18432  }
  0x36   : > { %14222 = vsyncadd (%p44_p1), [#allocation10], 4294948864 }
  0x37   : > { %14224 = dma.done.wait (%p44_p1), [#allocation13], 1024  }
  0x38   : > { %14226 = vsyncadd (%p44_p1), [#allocation13], 4294966272  ;;  %v14252_v0 = vmov 0   ;;  %v13634_v1 = vld [vmem:[#allocation9 + $0x38] sm:$0xff]  ;;  %v13633_v4 = vld [vmem:[#allocation9 + $0x30] sm:$0xff]  ;;  %vm303_vm0 = vcmask 1040384  }
  0x39   : > { %296 = vst [vmem:[#allocation2] sm:$0xf] %v14252_v0  ;;  %v14424_v2 = vld [vmem:[#allocation9 + $0x78] sm:$0xff]  ;;  %4862 = vmatpush.bf16.msra.mxu0 %v13634_v1  ;;  %13940 = vmatpush.bf16.msra.mxu3 %v13634_v1  ;;  %v14430_v5 = vld [vmem:[#allocation9 + $0x70] sm:$0xff]  ;;  %vm304_vm1 = vsmask.f32 256 }
  0x3a   : > { %297 = vst [vmem:[#allocation2 + $0x4] sm:$0xf] %v14252_v0  ;;  %v14426_v3 = vld [vmem:[#allocation9 + $0xb8] sm:$0xff]  ;;  %4951 = vmatpush.bf16.msra.mxu1 %v14424_v2  ;;  %v14432_v6 = vld [vmem:[#allocation9 + $0xb0] sm:$0xff]  ;;  %v13632_v7 = vld [vmem:[#allocation9 + $0x28] sm:$0xff]  ;;  %v16996_v8 = vmov 0 }
  0x3b   : > { %298 = vst [vmem:[#allocation2 + $0x8] sm:$0x1] %v14252_v0  ;;  %5040 = vmatpush.bf16.msra.mxu2 %v14426_v3  ;;  %vm14436_vm2 = vmand %vm303_vm0, %vm304_vm1  ;;  %vm360_vm3 = vsmask.f32 7938  ;;  %vm448_vm4 = vsmask.f32 4368 }
  0x3c   : > { %300 = vst [vmem:[#allocation2 + $0xcc] sm:$0xf] %v14252_v0  ;;  %v16997_v8 = vsel %vm14436_vm2, 4294967295, %v16996_v8  ;;  %v14442_v9 = vld [vmem:[#allocation9 + $0x68] sm:$0xff]  ;;  %vm771_vm5 = vcmask 1043456   ;;  %vm1544_vm6 = vcmask 1042432   ;;  %vm14456_vm8 = vmand %vm303_vm0, %vm360_vm3 }
  0x3d   : > { %301 = vst [vmem:[#allocation2 + $0xd0] sm:$0xf] %v14252_v0  ;;  %4863 = vmatpush.bf16.msra.mxu0 %v13633_v4  ;;  %13941 = vmatpush.bf16.msra.mxu3 %v13633_v4  ;;  %v14444_v10 = vld [vmem:[#allocation9 + $0xa8] sm:$0xff]  ;;  %vm1545_vm7 = vcmask 1046532   ;;  %v13631_v11 = vld [vmem:[#allocation9 + $0x20] sm:$0xff]  ;;  %v16999_v19 = vmov 0  ;;  %vm14470_vm11 = vmor %vm304_vm1, %vm448_vm4 }
  0x3e   : > { %302 = vst [vmem:[#allocation2 + $0xd4] sm:$0x1] %v14252_v0  ;;  %4952 = vmatpush.bf16.msra.mxu1 %v14430_v5  ;;  %v342_v14 = vld [vmem:[#allocation2 + $0x90] sm:$0x1]  ;;  %v17000_v19 = vsel %vm14456_vm8, 4294967295, %v16999_v19  ;;  %v13630_v31 = vld [vmem:[#allocation9 + $0x18] sm:$0xff]  ;;  %vm14485_vm12 = vmor %vm1544_vm6, %vm1545_vm7 }
  0x3f   : > { %5695 = vst [vmem:[#allocation3] sm:$0xf] %v14252_v0  ;;  %5041 = vmatpush.bf16.msra.mxu2 %v14432_v6  ;;  %v14446_v15 = vld [vmem:[#allocation9 + $0x60] sm:$0xff]  ;;  %v343_v18 = vsel %vm14436_vm2, 0, %v342_v14  ;;  %v438_v20 = vld [vmem:[%s14410_s7 + $0x58] sm:$0xf]  ;;  %vm14491_vm13 = vmand %vm771_vm5, %vm360_vm3 }
  0x40   : > { %5696 = vst [vmem:[#allocation3 + $0x4] sm:$0xf] %v14252_v0  ;;  %v306_v12 = vld [vmem:[#allocation2] sm:$0x1]  ;;  %v14448_v16 = vld [vmem:[#allocation9 + $0xa0] sm:$0xff]  ;;  %v638_v22 = vshrl.u32 %v438_v20, 16 }
  0x41   : > { %5697 = vst [vmem:[#allocation3 + $0x8] sm:$0x1] %v14252_v0  ;;  %v886_v13 = vld [vmem:[#allocation2 + $0x4] sm:$0xf]  ;;  %v307_v17 = vsel %vm14436_vm2, 0, %v306_v12  ;;  %4864 = vmatpush.bf16.msra.mxu0 %v13632_v7  ;;  %13942 = vmatpush.bf16.msra.mxu3 %v13632_v7  ;;  %v641_v23 = vshll.u32 %v438_v20, 16 }
  0x42   : > { %5699 = vst [vmem:[#allocation3 + $0xcc] sm:$0xf] %v14252_v0  ;;  %v439_v21 = vld [vmem:[%s14410_s7 + $0x5c] sm:$0xf]  ;;  %4953 = vmatpush.bf16.msra.mxu1 %v14442_v9  ;;  %v362_v26 = vld [vmem:[#allocation2 + $0x8] sm:$0x1] }
  0x43   : > { %5700 = vst [vmem:[#allocation3 + $0xd0] sm:$0xf] %v14252_v0  ;;  %5042 = vmatpush.bf16.msra.mxu2 %v14444_v10  ;;  %v646_v24 = vshrl.u32 %v439_v21, 16  ;;  %v649_v25 = vshll.u32 %v439_v21, 16  ;;  %vm997_vm9 = vsmask.f32 3328 }
  0x44   : > { %5701 = vst [vmem:[#allocation3 + $0xd4] sm:$0x1] %v14252_v0  ;;  %vm998_vm10 = vsmask.f32 7440  ;;  %v640_v27 = vrot.slane %v638_v22, 7  ;;  %v363_v28 = vsel %vm14456_vm8, 0, %v362_v26 }
  0x45   : > { %16998 = vst [vmem:[#allocation19_spill] sm:$0xff] %v16997_v8  ;;  %v950_v29 = vld [vmem:[#allocation2 + $0x4] sm:$0xf]  ;;  %v1448_v30 = vld [vmem:[#allocation2] sm:$0xe]  ;;  %v14466_v32 = vrot.slane %v646_v24, 7  ;;  %4865 = vmatpush.bf16.msra.mxu0 %v13631_v11  ;;  %13943 = vmatpush.bf16.msra.mxu3 %v13631_v11  ;;  %vm14518_vm14 = vmor %vm997_vm9, %vm998_vm10 }
  0x46   : > { %918 = vst [vmem:[#allocation4 + $0x24] sm:$0xf] %v886_v13  ;;  %v1010_v33 = vshll.u32 %v950_v29, 16  ;;  %v1014_v34 = vshrl.u32 %v950_v29, 16  ;;  %v644_v36 = vrot.slane %v640_v27, 4  ;;  %v11557_v38 = vrot.slane %v1448_v30, 9  ;;  %4954 = vmatpush.bf16.msra.mxu1 %v14446_v15 }
  0x47   : > { %17001 = vst [vmem:[#allocation20_spill] sm:$0xff] %v17000_v19  ;;  %v1449_v37 = vld [vmem:[#allocation2 + $0x4] sm:$0xf]  ;;  %v309_v39 = vld [vmem:[#allocation2 + $0xc] sm:$0x1]  ;;  %5043 = vmatpush.bf16.msra.mxu2 %v14448_v16  ;;  %v643_v42 = vor.u32 %v641_v23, %v640_v27  ;;  %v651_v43 = vor.u32 %v649_v25, %v14466_v32  ;;  %v13628_v7 = vld [vmem:[#allocation9 + $0x8] sm:$0xff] }
  0x48   : > { %308 = vst [vmem:[#allocation2] sm:$0x1] %v307_v17  ;;  %v14476_v40 = vld [vmem:[#allocation9 + $0x58] sm:$0xff]  ;;  %v14481_v44 = vrot.slane %v1010_v33, 5  ;;  %v1016_v45 = vrot.slane %v1014_v34, 4  ;;  %v13629_v47 = vld [vmem:[#allocation9 + $0x10] sm:$0xff] }
  0x49   : > { %344 = vst [vmem:[#allocation2 + $0x90] sm:$0x1] %v343_v18  ;;  %v14478_v41 = vld [vmem:[#allocation9 + $0x98] sm:$0xff]  ;;  %v1549_v49 = vrot.slane %v1449_v37, 5  ;;  %v310_v50 = vsel %vm14436_vm2, 0, %v309_v39  ;;  %v14498_v52 = vld [vmem:[#allocation9 + $0x50] sm:$0xff]  ;;  %v652_v54 = vsel %vm14470_vm11, %v644_v36, %v651_v43  ;;  %4866 = vmatpush.bf16.msra.mxu0 %v13630_v31  ;;  %13944 = vmatpush.bf16.msra.mxu3 %v13630_v31 }
  0x4a   : > { %364 = vst [vmem:[#allocation2 + $0x8] sm:$0x1] %v363_v28  ;;  %v416_v51 = vld [vmem:[%s14410_s7] sm:$0xf]  ;;  %v1017_v56 = vor.u32 %v1016_v45, %v14481_v44  ;;  %v417_v57 = vld [vmem:[%s14410_s7 + $0x4] sm:$0xf]  ;;  %4955 = vmatpush.bf16.msra.mxu1 %v14476_v40 }
  0x4b   : > { %311 = vst [vmem:[#allocation2 + $0xc] sm:$0x1] %v310_v50  ;;  %v1550_v61 = vsel %vm14485_vm12, %v11557_v38, %v1549_v49  ;;  %5044 = vmatpush.bf16.msra.mxu2 %v14478_v41  ;;  %v14508_v62 = vld [vmem:[#allocation9 + $0x90] sm:$0xff]  ;;  %v1551_v1 = vrot.slane %v1549_v49, 4  ;;  %v451_v4 = vshrl.u32 %v416_v51, 16  ;;  %v14512_v14 = vld [vmem:[#allocation9 + $0x48] sm:$0xff] }
  0x4c   : > { %853 = vst [vmem:[#allocation2 + $0x94] sm:$0xf] %v652_v54  ;;  %v1018_v0 = vrot.slane %v1017_v56, 4  ;;  %v14514_v21 = vld [vmem:[#allocation9 + $0x88] sm:$0xff]  ;;  %v454_v25 = vshll.u32 %v416_v51, 16  ;;  %v459_v26 = vshrl.u32 %v417_v57, 16 }
  0x4d   : > { %1691 = vst [vmem:[#allocation4 + $0x8] sm:$0xf] %v1550_v61  ;;  %v453_v20 = vrot.slane %v451_v4, 7  ;;  %4867 = vmatpush.bf16.msra.mxu0 %v13629_v47  ;;  %13945 = vmatpush.bf16.msra.mxu3 %v13629_v47  ;;  %v345_v27 = vld [vmem:[#allocation2 + $0x9c] sm:$0x1]  ;;  %v462_v30 = vshll.u32 %v417_v57, 16 }
  0x4e   : > { %4956 = vmatpush.bf16.msra.mxu1 %v14498_v52  ;;  %v346_v31 = vsel %vm14436_vm2, 0, %v345_v27  ;;  %v440_v33 = vld [vmem:[%s14410_s7 + $0x60] sm:$0xf]  ;;  %v13487_v36 = vld [vmem:[#allocation4 + $0x20] sm:$0xf0]  ;;  %s11556_s15 = sshll.u32 %s14406_s17, 8 }
  0x4f   : > { %v885_v53 = vld [vmem:[#allocation2] sm:$0xf]  ;;  %5045 = vmatpush.bf16.msra.mxu2 %v14508_v62  ;;  %v457_v29 = vrot.slane %v453_v20, 4  ;;  %v13627_v34 = vld [vmem:[#allocation9] sm:$0xff]  ;;  %v456_v39 = vor.u32 %v454_v25, %v453_v20  ;;  %347 = vst [vmem:[#allocation2 + $0x9c] sm:$0x1] %v346_v31 }
  0x50   : > { %v949_v55 = vld [vmem:[#allocation2] sm:$0xf]  ;;  %917 = vst [vmem:[#allocation4] sm:$0xf] %v885_v53  ;;  %v850_v58 = vld [vmem:[#allocation2 + $0x90] sm:$0xf] }
  0x51   : > { %v1001_v59 = vshrl.u32 %v949_v55, 16  ;;  %v1004_v60 = vshll.u32 %v949_v55, 16  ;;  %v851_v63 = vsel %vm14491_vm13, %v643_v42, %v850_v58  ;;  %v951_v11 = vld [vmem:[#allocation2 + $0x8] sm:$0x1]  ;;  %v14529_v42 = vrot.slane %v459_v26, 7  ;;  %v14531_v45 = vld [vmem:[#allocation9 + $0x40] sm:$0xff]  ;;  %4868 = vmatpush.bf16.msra.mxu0 %v13628_v7  ;;  %13946 = vmatpush.bf16.msra.mxu3 %v13628_v7 }
  0x52   : > { %852 = vst [vmem:[#allocation2 + $0x90] sm:$0xf] %v851_v63  ;;  %v1020_v17 = vshll.u32 %v951_v11, 16  ;;  %v1450_v18 = vld [vmem:[#allocation2 + $0x8] sm:$0x1]  ;;  %v14533_v47 = vld [vmem:[#allocation9 + $0x80] sm:$0xff]  ;;  %4957 = vmatpush.bf16.msra.mxu1 %v14512_v14 }
  0x53   : > { %v1003_v12 = vrot.slane %v1001_v59, 4  ;;  %v1006_v13 = vrot.slane %v1004_v60, 5  ;;  %v1552_v24 = vrot.slane %v1450_v18, 5  ;;  %v773_v43 = vld [vmem:[#allocation2 + $0xc] sm:$0xf]  ;;  %v464_v55 = vor.u32 %v462_v30, %v14529_v42  ;;  %5046 = vmatpush.bf16.msra.mxu2 %v14514_v21  ;;  %s16789_s9 = scalar_lea.vmem [#allocation14], %s11556_s15 }
  0x54   : > { %v1022_v28 = vrot.slane %v1020_v17, 5  ;;  %v441_v51 = vld [vmem:[%s14410_s7 + $0x64] sm:$0xf]  ;;  %v13666_v58 = vld [vmem:[#allocation9 + $0x138] sm:$0xff]  ;;  %v774_v59 = vsel %vm14491_vm13, %v456_v39, %v773_v43  ;;  %v655_v60 = vshrl.u32 %v440_v33, 16  ;;  %v658_v63 = vshll.u32 %v440_v33, 16 }
  0x55   : > { %v1007_v23 = vor.u32 %v1006_v13, %v1003_v12  ;;  %v1553_v38 = vsel %vm14485_vm12, %v1551_v1, %v1552_v24  ;;  %v910_v53 = vld [vmem:[#allocation2 + $0x94] sm:$0xf]  ;;  %v11615_v61 = vld [vmem:[#allocation4 + $0x8] sm:$0xf]  ;;  %v666_v7 = vshll.u32 %v441_v51, 16  ;;  %4869 = vmatpush.bf16.msra.mxu0 %v13627_v34  ;;  %13947 = vmatpush.bf16.msra.mxu3 %v13627_v34  ;;  %v466_v34 = vrot.slane %v14529_v42, 4 }
  0x56   : > { %v1023_v50 = vsel %vm14518_vm14, %v1018_v0, %v1022_v28  ;;  %1692 = vst [vmem:[#allocation4 + $0x2c] sm:$0xf] %v1553_v38  ;;  %v365_v56 = vld [vmem:[#allocation2 + $0x14] sm:$0x1]  ;;  %v663_v0 = vshrl.u32 %v441_v51, 16  ;;  %v657_v4 = vrot.slane %v655_v60, 7  ;;  %4958 = vmatpush.bf16.msra.mxu1 %v14531_v45 }
  0x57   : > { %v1008_v37 = vrot.slane %v1007_v23, 4  ;;  %v11607_v49 = vld [vmem:[#allocation4] sm:$0xf]  ;;  %1417 = vst [vmem:[#allocation4 + $0x28] sm:$0xf] %v1023_v50  ;;  %v366_v11 = vsel %vm14456_vm8, 0, %v365_v56  ;;  %5047 = vmatpush.bf16.msra.mxu2 %v14533_v47 }
  0x58   : > { %942 = vst [vmem:[#allocation4 + $0x384] sm:$0xf] %v910_v53  ;;  %v11608_v1 = vor.u32 %v13487_v36, %v11607_v49  ;;  %v14550_v12 = vrot.slane %v663_v0, 7  ;;  %v312_v13 = vld [vmem:[#allocation2 + $0x18] sm:$0x1]  ;;  %v660_v17 = vor.u32 %v658_v63, %v657_v4  ;;  %v661_v18 = vrot.slane %v657_v4, 4 }
  0x59   : > { %v1013_v54 = vsel %vm14518_vm14, %v1008_v37, %v14481_v44  ;;  %v909_v57 = vld [vmem:[#allocation2 + $0x90] sm:$0xf]  ;;  %v465_v44 = vsel %vm14470_vm11, %v457_v29, %v464_v55  ;;  %775 = vst [vmem:[#allocation2 + $0xc] sm:$0xf] %v774_v59  ;;  %v857_v20 = vld [vmem:[#allocation2 + $0x9c] sm:$0xf]  ;;  %13948 = vmatpush.bf16.msrb.mxu3 %v14424_v2  ;;  %5218 = vmatpush.bf16.msrb.mxu0 %v13666_v58 }
  0x5a   : > { %941 = vst [vmem:[#allocation4 + $0x360] sm:$0xf] %v909_v57  ;;  %v313_v23 = vsel %vm14436_vm2, 0, %v312_v13  ;;  %v668_v25 = vor.u32 %v666_v7, %v14550_v12  ;;  %4870 = vmatmul.bf16.vlgmr.msra.gmra.mxu0 %v11608_v1  ;;  %v858_v28 = vsel %vm14491_vm13, %v660_v17, %v857_v20  ;;  %v418_v29 = vld [vmem:[%s14410_s7 + $0x8] sm:$0xf]  ;;  %s13939_s30 = sshll.u32 %s14306_s22, 8 }
  0x5b   : > { %1416 = vst [vmem:[#allocation4 + $0x4] sm:$0xf] %v1013_v54  ;;  %v419_v33 = vld [vmem:[%s14410_s7 + $0xc] sm:$0xf]  ;;  %v468_v36 = vshrl.u32 %v418_v29, 16  ;;  %v471_v39 = vshll.u32 %v418_v29, 16  ;;  %s11436_s24 = scalar_lea.hbm %s16984_s5, %s13939_s30 }
  0x5c   : > { %776 = vst [vmem:[#allocation2 + $0x10] sm:$0xf] %v465_v44  ;;  %v669_v31 = vsel %vm14470_vm11, %v661_v18, %v668_v25  ;;  %v476_v43 = vshrl.u32 %v419_v33, 16  ;;  %v479_v49 = vshll.u32 %v419_v33, 16  ;;  %v348_v59 = vld [vmem:[#allocation2 + $0xa8] sm:$0x1] }
  0x5d   : > { %v13488_v24 = vld [vmem:[#allocation4 + $0x28] sm:$0xf0]  ;;  %367 = vst [vmem:[#allocation2 + $0x14] sm:$0x1] %v366_v11  ;;  %13949 = vmatpush.bf16.msrb.mxu3 %v14430_v5  ;;  %v470_v20 = vrot.slane %v468_v36, 7  ;;  %v349_v25 = vsel %vm14436_vm2, 0, %v348_v59 }
  0x5e   : > { %v11609_v26 = vld [vmem:[#allocation4 + $0x24] sm:$0xf0]  ;;  %v11616_v27 = vor.u32 %v13488_v24, %v11615_v61  ;;  %314 = vst [vmem:[#allocation2 + $0x18] sm:$0x1] %v313_v23  ;;  %s11437_s29 = sshll.u32 %s16789_s9, 4  ;;  %s11439_s12 = sshll.u32 %s11436_s24, 4  ;;  %s11438_s29 = int_to_ptr.vmem [resolvable:$true] %s11437_s29  ;;  %s11440_s12 = int_to_ptr.hbm [resolvable:$true] %s11439_s12 }
  0x5f   : > { %v13595_v30 = vld [vmem:[#allocation4 + $0x380] sm:$0xf0]  ;;  %859 = vst [vmem:[#allocation2 + $0x9c] sm:$0xf] %v858_v28  ;;  %v473_v29 = vor.u32 %v471_v39, %v470_v20  ;;  %v474_v33 = vrot.slane %v470_v20, 4  ;;  %v13665_v20 = vld [vmem:[#allocation9 + $0x130] sm:$0xff] }
  0x60   : > { %5048 = vmatmul.bf16.vlgmr.msra.gmra.mxu2 %v11616_v27  ;;  %860 = vst [vmem:[#allocation2 + $0xa0] sm:$0xf] %v669_v31  ;;  %v887_v51 = vld [vmem:[#allocation2 + $0xc] sm:$0xf]  ;;  %5219 = vmatpush.bf16.msrb.mxu0 %v13665_v20  ;;  %s11425_s22 = scalar_lea.sflag [#allocation8], %s14406_s17  ;;  %s14185_s16 = sshra.s32 %s11440_s12, 4  ;;  %s14186_s16 = int_to_ptr.hbm [resolvable:$true] %s14185_s16 }
  0x61   : > { %v12039_v2 = vld [vmem:[#allocation4 + $0x360] sm:$0xf]  ;;  %v952_v53 = vld [vmem:[#allocation2 + $0xc] sm:$0xf]  ;;  %919 = vst [vmem:[#allocation4 + $0x48] sm:$0xf] %v887_v51  ;;  %13950 = vmatpush.bf16.msrb.mxu3 %v14442_v9  ;;  %p14192_p11 = scmp.lt.s32.totalorder %s14186_s16, %s16984_s5 }
  0x62   : > { %v12040_v37 = vor.u32 %v13595_v30, %v12039_v2  ;;  %v13483_v38 = vld [vmem:[#allocation4 + $0x4] sm:$0xf]  ;;  %v1451_v54 = vld [vmem:[#allocation2 + $0xc] sm:$0xe]  ;;  %v1025_v57 = vshrl.u32 %v952_v53, 16  ;;  %v1028_v58 = vshll.u32 %v952_v53, 16 }
  0x63   : > { %v11612_v50 = vor.u32 %v13483_v38, %v11609_v26  ;;  %v888_v55 = vld [vmem:[#allocation2 + $0x10] sm:$0xf]  ;;  %v11558_v63 = vrot.slane %v1451_v54, 9  ;;  %v14569_v9 = vrot.slane %v476_v43, 7  ;;  %350 = vst [vmem:[#allocation2 + $0xa8] sm:$0x1] %v349_v25 }
  0x64   : > { %4930 = vmatmul.bf16.vlgmr.msra.gmra.mxu3 %v12040_v37  ;;  %v953_v56 = vld [vmem:[#allocation2 + $0x10] sm:$0xf]  ;;  %920 = vst [vmem:[#allocation4 + $0x6c] sm:$0xf] %v888_v55  ;;  %v777_v42 = vld [vmem:[#allocation2 + $0x14] sm:$0x1] }
  0x65   : > { %4959 = vmatmul.bf16.vlgmr.msra.gmra.mxu1 %v11612_v50  ;;  %v778_v5 = vsel %vm14436_vm2, %v466_v34, %v777_v42  ;;  %v1034_v60 = vshll.u32 %v953_v56, 16  ;;  %v1038_v61 = vshrl.u32 %v953_v56, 16  ;;  %v1452_v44 = vld [vmem:[#allocation2 + $0x10] sm:$0xf]  ;;  %v1027_v1 = vrot.slane %v1025_v57, 4  ;;  %13951 = vmatpush.bf16.msrb.mxu3 %v14446_v15  ;;  %s14187_s23 = scalar_lea.hbm %s14186_s16, 256 }
  0x66   : > { %v911_v0 = vld [vmem:[#allocation2 + $0x9c] sm:$0xf]  ;;  %779 = vst [vmem:[#allocation2 + $0x14] sm:$0x1] %v778_v5  ;;  %v1030_v4 = vrot.slane %v1028_v58, 5  ;;  %v1556_v18 = vrot.slane %v1452_v44, 5  ;;  %v481_v2 = vor.u32 %v479_v49, %v14569_v9  ;;  %p14188_p1 = scmp.ne.s32.totalorder %s14186_s16, %s14187_s23 }
  0x67   : > { %v912_v7 = vld [vmem:[#allocation2 + $0xa0] sm:$0xf]  ;;  %943 = vst [vmem:[#allocation4 + $0x3a8] sm:$0xf] %v911_v0  ;;  %v1036_v11 = vrot.slane %v1034_v60, 5  ;;  %v1040_v13 = vrot.slane %v1038_v61, 4 }
  0x68   : > { %944 = vst [vmem:[#allocation4 + $0x3cc] sm:$0xf] %v912_v7  ;;  %v1031_v17 = vor.u32 %v1030_v4, %v1027_v1  ;;  %v780_v24 = vld [vmem:[#allocation2 + $0x18] sm:$0xf]  ;;  %v1557_v28 = vsel %vm14485_vm12, %v11558_v63, %v1556_v18  ;;  %v1558_v31 = vrot.slane %v1556_v18, 4  ;;  %v482_v51 = vsel %vm14470_vm11, %v474_v33, %v481_v2  ;;  %p14189_p4 = pnand %p14188_p1, %p14376_p3  ;;  %s14191_s13 = scalar_lea.hbm %s16984_s5, 512 }
  0x69   : > { %v1041_v23 = vor.u32 %v1040_v13, %v1036_v11  ;;  %v11643_v26 = vld [vmem:[#allocation4 + $0x48] sm:$0xf]  ;;  %1693 = vst [vmem:[#allocation4 + $0x50] sm:$0xf] %v1557_v28  ;;  %v781_v37 = vsel %vm14491_vm13, %v473_v29, %v780_v24  ;;  %v443_v43 = vld [vmem:[%s14410_s7 + $0x6c] sm:$0xf]  ;;  %13952 = vmatpush.bf16.msrb.mxu3 %v14476_v40  ;;  %p14193_p9 = scmp.lt.s32.totalorder %s14191_s13, %s14187_s23 }
  0x6a   : > { %v1032_v27 = vrot.slane %v1031_v17, 4  ;;  %v442_v38 = vld [vmem:[%s14410_s7 + $0x68] sm:$0xf]  ;;  %v368_v53 = vld [vmem:[#allocation2 + $0x20] sm:$0x1]  ;;  %v680_v60 = vshrl.u32 %v443_v43, 16  ;;  %p14190_p8 = pneg %p14189_p4 }
  0x6b   : > { %v13496_v30 = vld [vmem:[#allocation4 + $0x68] sm:$0xf0]  ;;  %v1042_v36 = vrot.slane %v1041_v23, 4  ;;  %782 = vst [vmem:[#allocation2 + $0x18] sm:$0xf] %v781_v37  ;;  %v672_v42 = vshrl.u32 %v442_v38, 16  ;;  %p14194_p2 = por %p14193_p9, %p14192_p11 }
  0x6c   : > { %v11644_v15 = vor.u32 %v13496_v30, %v11643_v26  ;;  %v1037_v34 = vsel %vm14518_vm14, %v1032_v27, %v1036_v11  ;;  %783 = vst [vmem:[#allocation2 + $0x1c] sm:$0xf] %v482_v51  ;;  %v675_v57 = vshll.u32 %v442_v38, 16  ;;  %v683_v40 = vshll.u32 %v443_v43, 16  ;;  %v14590_v44 = vld [vmem:[%s14410_s7 + $0x10] sm:$0xf] }
  0x6d   : > { %v954_v50 = vld [vmem:[#allocation2 + $0x14] sm:$0x1]  ;;  %1418 = vst [vmem:[#allocation4 + $0x4c] sm:$0xf] %v1037_v34  ;;  %v674_v61 = vrot.slane %v672_v42, 7  ;;  %13953 = vmatpush.bf16.msrb.mxu3 %v14498_v52  ;;  %v14594_v0 = vrot.slane %v680_v60, 7  ;;  %p14195_p10 = pnand %p14194_p2, %p14190_p8 }
  0x6e   : > { %v1453_v39 = vld [vmem:[#allocation2 + $0x14] sm:$0x1]  ;;  %4875 = vmatmul.bf16.gmra.mxu0 %v11644_v15  ;;  %v12075_v49 = vld [vmem:[#allocation4 + $0x3a8] sm:$0xf]  ;;  %v1044_v54 = vshll.u32 %v954_v50, 16  ;;  %v369_v4 = vsel %vm14456_vm8, 0, %v368_v53 }
  0x6f   : > { %v1559_v55 = vrot.slane %v1453_v39, 5  ;;  %v13604_v56 = vld [vmem:[#allocation4 + $0x3c8] sm:$0xf0]  ;;  %v864_v1 = vld [vmem:[#allocation2 + $0xa8] sm:$0xf]  ;;  %v483_v7 = vrot.slane %v14569_v9, 4  ;;  %v677_v11 = vor.u32 %v675_v57, %v674_v61  ;;  %v685_v52 = vor.u32 %v683_v40, %v14594_v0 }
  0x70   : > { %v12076_v58 = vor.u32 %v13604_v56, %v12075_v49  ;;  %v1046_v59 = vrot.slane %v1044_v54, 5  ;;  %v678_v13 = vrot.slane %v674_v61, 4  ;;  %v315_v17 = vld [vmem:[#allocation2 + $0x24] sm:$0x1]  ;;  %v11651_v18 = vld [vmem:[#allocation4 + $0x50] sm:$0xf] }
  0x71   : > { %v1560_v5 = vsel %vm14485_vm12, %v1558_v31, %v1559_v55  ;;  %370 = vst [vmem:[#allocation2 + $0x20] sm:$0x1] %v369_v4  ;;  %v485_v23 = vshrl.u32 %v14590_v44, 16  ;;  %v865_v25 = vsel %vm14491_vm13, %v677_v11, %v864_v1  ;;  %13954 = vmatpush.bf16.msrb.mxu3 %v14512_v14  ;;  %v421_v31 = vld [vmem:[%s14410_s7 + $0x14] sm:$0xf]  ;;  %v316_v34 = vsel %vm14436_vm2, 0, %v315_v17 }
  0x72   : > { %1694 = vst [vmem:[#allocation4 + $0x74] sm:$0xf] %v1560_v5  ;;  %v1047_v63 = vsel %vm14518_vm14, %v1042_v36, %v1046_v59  ;;  %v889_v24 = vld [vmem:[#allocation2 + $0x18] sm:$0xf]  ;;  %v686_v29 = vsel %vm14470_vm11, %v678_v13, %v685_v52  ;;  %v488_v42 = vshll.u32 %v14590_v44, 16  ;;  %v493_v57 = vshrl.u32 %v421_v31, 16 }
  0x73   : > { %1419 = vst [vmem:[#allocation4 + $0x70] sm:$0xf] %v1047_v63  ;;  %v955_v26 = vld [vmem:[#allocation2 + $0x18] sm:$0xf]  ;;  %v890_v28 = vld [vmem:[#allocation2 + $0x1c] sm:$0xf] }
  0x74   : > { %4935 = vmatmul.bf16.gmra.mxu3 %v12076_v58  ;;  %v1454_v27 = vld [vmem:[#allocation2 + $0x18] sm:$0xe]  ;;  %v13492_v9 = vld [vmem:[#allocation4 + $0x4c] sm:$0xf]  ;;  %921 = vst [vmem:[#allocation4 + $0x90] sm:$0xf] %v889_v24 }
  0x75   : > { %v956_v30 = vld [vmem:[#allocation2 + $0x1c] sm:$0xf]  ;;  %922 = vst [vmem:[#allocation4 + $0xb4] sm:$0xf] %v890_v28  ;;  %v1049_v33 = vshrl.u32 %v955_v26, 16  ;;  %v1052_v2 = vshll.u32 %v955_v26, 16  ;;  %13955 = vmatpush.bf16.msrb.mxu3 %v14531_v45 }
  0x76   : > { %v1058_v15 = vshll.u32 %v956_v30, 16  ;;  %866 = vst [vmem:[#allocation2 + $0xa8] sm:$0xf] %v865_v25  ;;  %v1455_v37 = vld [vmem:[#allocation2 + $0x1c] sm:$0xf]  ;;  %v1062_v50 = vshrl.u32 %v956_v30, 16 }
  0x77   : > { %867 = vst [vmem:[#allocation2 + $0xac] sm:$0xf] %v686_v29  ;;  %v1051_v38 = vrot.slane %v1049_v33, 4  ;;  %v1054_v43 = vrot.slane %v1052_v2, 5  ;;  %v11559_v51 = vrot.slane %v1454_v27, 9  ;;  %v1563_v53 = vrot.slane %v1455_v37, 5 }
  0x78   : > { %v487_v49 = vrot.slane %v485_v23, 7  ;;  %v784_v55 = vld [vmem:[#allocation2 + $0x20] sm:$0x1]  ;;  %317 = vst [vmem:[#allocation2 + $0x24] sm:$0x1] %v316_v34  ;;  %v1060_v59 = vrot.slane %v1058_v15, 5 }
  0x79   : > { %v13497_v36 = vld [vmem:[#allocation4 + $0x70] sm:$0xf0]  ;;  %13956 = vmatpush.bf16.msra.mxu3 %v14426_v3  ;;  %v1055_v56 = vor.u32 %v1054_v43, %v1051_v38  ;;  %v785_v58 = vsel %vm14436_vm2, %v483_v7, %v784_v55  ;;  %v1564_v45 = vsel %vm14485_vm12, %v11559_v51, %v1563_v53  ;;  %v351_v5 = vld [vmem:[#allocation2 + $0xb4] sm:$0x1]  ;;  %v444_v60 = vld [vmem:[%s14410_s7 + $0x70] sm:$0xf] }
  0x7a   : > { %v11652_v14 = vor.u32 %v13497_v36, %v11651_v18  ;;  %v11645_v39 = vld [vmem:[#allocation4 + $0x6c] sm:$0xf0]  ;;  %786 = vst [vmem:[#allocation2 + $0x20] sm:$0x1] %v785_v58  ;;  %v1064_v40 = vrot.slane %v1062_v50, 4  ;;  %v490_v1 = vor.u32 %v488_v42, %v487_v49  ;;  %v14617_v44 = vrot.slane %v493_v57, 7 }
  0x7b   : > { %v11648_v54 = vor.u32 %v13492_v9, %v11645_v39  ;;  %v11679_v3 = vld [vmem:[#allocation4 + $0x90] sm:$0xf]  ;;  %v1056_v61 = vrot.slane %v1055_v56, 4  ;;  %1695 = vst [vmem:[#allocation4 + $0x98] sm:$0xf] %v1564_v45  ;;  %v491_v13 = vrot.slane %v487_v49, 4 }
  0x7c   : > { %5053 = vmatmul.bf16.gmra.mxu2 %v11652_v14  ;;  %v13505_v63 = vld [vmem:[#allocation4 + $0xb0] sm:$0xf0]  ;;  %v496_v17 = vshll.u32 %v421_v31, 16  ;;  %v352_v20 = vsel %vm14436_vm2, 0, %v351_v5  ;;  %v689_v23 = vshrl.u32 %v444_v60, 16  ;;  %v1065_v24 = vor.u32 %v1064_v40, %v1060_v59 }
  0x7d   : > { %4964 = vmatmul.bf16.gmra.mxu1 %v11648_v54  ;;  %13957 = vmatpush.bf16.msra.mxu3 %v14432_v6  ;;  %v11680_v4 = vor.u32 %v13505_v63, %v11679_v3  ;;  %v913_v7 = vld [vmem:[#allocation2 + $0xa8] sm:$0xf]  ;;  %v1061_v11 = vsel %vm14518_vm14, %v1056_v61, %v1060_v59  ;;  %v445_v18 = vld [vmem:[%s14410_s7 + $0x74] sm:$0xf]  ;;  %v1565_v27 = vrot.slane %v1563_v53, 4  ;;  %v692_v31 = vshll.u32 %v444_v60, 16 }
  0x7e   : > { %v914_v52 = vld [vmem:[#allocation2 + $0xac] sm:$0xf]  ;;  %945 = vst [vmem:[#allocation4 + $0x3f0] sm:$0xf] %v913_v7  ;;  %v498_v25 = vor.u32 %v496_v17, %v14617_v44  ;;  %v697_v6 = vshrl.u32 %v445_v18, 16  ;;  %v700_v26 = vshll.u32 %v445_v18, 16 }
  0x7f   : > { %4880 = vmatmul.bf16.gmra.mxu0 %v11680_v4  ;;  %946 = vst [vmem:[#allocation4 + $0x414] sm:$0xf] %v914_v52  ;;  %v787_v9 = vld [vmem:[#allocation2 + $0x24] sm:$0xf]  ;;  %v691_v28 = vrot.slane %v689_v23, 7  ;;  %v1066_v36 = vrot.slane %v1065_v24, 4 }
  0x80   : > { %1420 = vst [vmem:[#allocation4 + $0x94] sm:$0xf] %v1061_v11  ;;  %v499_v29 = vsel %vm14470_vm11, %v491_v13, %v498_v25  ;;  %v788_v30 = vsel %vm14491_vm13, %v490_v1, %v787_v9  ;;  %v14631_v33 = vrot.slane %v697_v6, 7  ;;  %v371_v2 = vld [vmem:[#allocation2 + $0x2c] sm:$0x1]  ;;  %v13664_v54 = vld [vmem:[#allocation9 + $0x128] sm:$0xff] }
  0x81   : > { %13958 = vmatpush.bf16.msra.mxu3 %v14444_v10  ;;  %353 = vst [vmem:[#allocation2 + $0xb4] sm:$0x1] %v352_v20  ;;  %v957_v15 = vld [vmem:[#allocation2 + $0x20] sm:$0x1]  ;;  %v695_v38 = vrot.slane %v691_v28, 4  ;;  %v372_v43 = vsel %vm14456_vm8, 0, %v371_v2  ;;  %v694_v49 = vor.u32 %v692_v31, %v691_v28  ;;  %5220 = vmatpush.bf16.msrb.mxu0 %v13664_v54 }
  0x82   : > { %v1456_v34 = vld [vmem:[#allocation2 + $0x20] sm:$0x1]  ;;  %789 = vst [vmem:[#allocation2 + $0x24] sm:$0xf] %v788_v30  ;;  %v1068_v37 = vshll.u32 %v957_v15, 16  ;;  %v702_v10 = vor.u32 %v700_v26, %v14631_v33 }
  0x83   : > { %v1566_v14 = vrot.slane %v1456_v34, 5  ;;  %790 = vst [vmem:[#allocation2 + $0x28] sm:$0xf] %v499_v29  ;;  %v318_v50 = vld [vmem:[#allocation2 + $0x30] sm:$0x1] }
  0x84   : > { %v1070_v51 = vrot.slane %v1068_v37, 5  ;;  %373 = vst [vmem:[#allocation2 + $0x2c] sm:$0x1] %v372_v43  ;;  %v703_v56 = vsel %vm14470_vm11, %v695_v38, %v702_v10  ;;  %v319_v59 = vsel %vm14436_vm2, 0, %v318_v50  ;;  %v11687_v45 = vld [vmem:[#allocation4 + $0x98] sm:$0xf] }
  0x85   : > { %13959 = vmatpush.bf16.msra.mxu3 %v14448_v16  ;;  %v12111_v39 = vld [vmem:[#allocation4 + $0x3f0] sm:$0xf]  ;;  %v1567_v53 = vsel %vm14485_vm12, %v1565_v27, %v1566_v14  ;;  %874 = vst [vmem:[#allocation2 + $0xb8] sm:$0xf] %v703_v56  ;;  %v500_v16 = vrot.slane %v14617_v44, 4  ;;  %v653_v38 = vrot.slane %v14466_v32, 4 }
  0x86   : > { %v13613_v55 = vld [vmem:[#allocation4 + $0x410] sm:$0xf0]  ;;  %1696 = vst [vmem:[#allocation4 + $0xbc] sm:$0xf] %v1567_v53  ;;  %v1071_v57 = vsel %vm14518_vm14, %v1066_v36, %v1070_v51  ;;  %v422_v1 = vld [vmem:[%s14410_s7 + $0x18] sm:$0xf] }
  0x87   : > { %v12112_v42 = vor.u32 %v13613_v55, %v12111_v39  ;;  %1421 = vst [vmem:[#allocation4 + $0xb8] sm:$0xf] %v1071_v57  ;;  %v13501_v44 = vld [vmem:[#allocation4 + $0x94] sm:$0xf]  ;;  %v502_v31 = vshrl.u32 %v422_v1, 16 }
  0x88   : > { %v871_v58 = vld [vmem:[#allocation2 + $0xb4] sm:$0xf]  ;;  %320 = vst [vmem:[#allocation2 + $0x30] sm:$0x1] %v319_v59  ;;  %v374_v10 = vld [vmem:[#allocation2 + $0x38] sm:$0x1] }
  0x89   : > { %13960 = vmatpush.bf16.msra.mxu3 %v14478_v41  ;;  %v891_v5 = vld [vmem:[#allocation2 + $0x24] sm:$0xf]  ;;  %v872_v60 = vsel %vm14491_vm13, %v694_v49, %v871_v58  ;;  %v423_v41 = vld [vmem:[%s14410_s7 + $0x1c] sm:$0xf]  ;;  %v504_v14 = vrot.slane %v502_v31, 7  ;;  %v375_v57 = vsel %vm14456_vm8, 0, %v374_v10 }
  0x8a   : > { %4940 = vmatmul.bf16.gmra.mxu3 %v12112_v42  ;;  %v958_v3 = vld [vmem:[#allocation2 + $0x24] sm:$0xf]  ;;  %v892_v40 = vld [vmem:[#allocation2 + $0x28] sm:$0xf]  ;;  %923 = vst [vmem:[#allocation4 + $0xd8] sm:$0xf] %v891_v5 }
  0x8b   : > { %v1457_v61 = vld [vmem:[#allocation2 + $0x24] sm:$0xe]  ;;  %v959_v63 = vld [vmem:[#allocation2 + $0x28] sm:$0xf]  ;;  %924 = vst [vmem:[#allocation4 + $0xfc] sm:$0xf] %v892_v40 }
  0x8c   : > { %v1073_v4 = vshrl.u32 %v958_v3, 16  ;;  %v1076_v7 = vshll.u32 %v958_v3, 16  ;;  %v1082_v11 = vshll.u32 %v959_v63, 16  ;;  %v1086_v13 = vshrl.u32 %v959_v63, 16  ;;  %873 = vst [vmem:[#allocation2 + $0xb4] sm:$0xf] %v872_v60 }
  0x8d   : > { %v791_v17 = vld [vmem:[#allocation2 + $0x2c] sm:$0x1]  ;;  %v1458_v18 = vld [vmem:[#allocation2 + $0x28] sm:$0xf]  ;;  %13961 = vmatpush.bf16.msra.mxu3 %v14508_v62  ;;  %v916_v26 = vld [vmem:[#allocation2 + $0xb8] sm:$0xf] }
  0x8e   : > { %v13506_v52 = vld [vmem:[#allocation4 + $0xb8] sm:$0xf0]  ;;  %v792_v20 = vsel %vm14436_vm2, %v500_v16, %v791_v17  ;;  %v1075_v23 = vrot.slane %v1073_v4, 4  ;;  %v1078_v24 = vrot.slane %v1076_v7, 5  ;;  %v1084_v25 = vrot.slane %v1082_v11, 5 }
  0x8f   : > { %v11688_v6 = vor.u32 %v13506_v52, %v11687_v45  ;;  %793 = vst [vmem:[#allocation2 + $0x2c] sm:$0x1] %v792_v20  ;;  %v1088_v27 = vrot.slane %v1086_v13, 4  ;;  %v11560_v9 = vrot.slane %v1457_v61, 9  ;;  %v11681_v28 = vld [vmem:[#allocation4 + $0xb4] sm:$0xf0] }
  0x90   : > { %948 = vst [vmem:[#allocation4 + $0x45c] sm:$0xf] %v916_v26  ;;  %v1079_v29 = vor.u32 %v1078_v24, %v1075_v23  ;;  %v1570_v30 = vrot.slane %v1458_v18, 5  ;;  %v11684_v2 = vor.u32 %v13501_v44, %v11681_v28  ;;  %v505_v62 = vshll.u32 %v422_v1, 16  ;;  %v398_v55 = vld [vmem:[#allocation2 + $0x98] sm:$0x1] }
  0x91   : > { %5058 = vmatmul.bf16.gmra.mxu2 %v11688_v6  ;;  %v510_v15 = vshrl.u32 %v423_v41, 16  ;;  %13962 = vmatpush.bf16.msra.mxu3 %v14514_v21  ;;  %v11715_v34 = vld [vmem:[#allocation4 + $0xd8] sm:$0xf]  ;;  %v1089_v50 = vor.u32 %v1088_v27, %v1084_v25  ;;  %v508_v56 = vrot.slane %v504_v14, 4  ;;  %v513_v42 = vshll.u32 %v423_v41, 16 }
  0x92   : > { %v1080_v36 = vrot.slane %v1079_v29, 4  ;;  %v1571_v37 = vsel %vm14485_vm12, %v11560_v9, %v1570_v30  ;;  %4969 = vmatmul.bf16.gmra.mxu1 %v11684_v2  ;;  %v13514_v43 = vld [vmem:[#allocation4 + $0xf8] sm:$0xf0]  ;;  %v1572_v21 = vrot.slane %v1570_v30, 4  ;;  %v507_v54 = vor.u32 %v505_v62, %v504_v14  ;;  %376 = vst [vmem:[#allocation2 + $0x38] sm:$0x1] %v375_v57 }
  0x93   : > { %1697 = vst [vmem:[#allocation4 + $0xe0] sm:$0xf] %v1571_v37  ;;  %v512_v39 = vrot.slane %v510_v15, 7  ;;  %v11716_v51 = vor.u32 %v13514_v43, %v11715_v34  ;;  %v915_v53 = vld [vmem:[#allocation2 + $0xb4] sm:$0xf]  ;;  %v399_v16 = vsel %vm14456_vm8, 0, %v398_v55 }
  0x94   : > { %v1085_v49 = vsel %vm14518_vm14, %v1080_v36, %v1084_v25  ;;  %947 = vst [vmem:[#allocation4 + $0x438] sm:$0xf] %v915_v53  ;;  %v1090_v45 = vrot.slane %v1089_v50, 4  ;;  %v794_v61 = vld [vmem:[#allocation2 + $0x30] sm:$0xf]  ;;  %v670_v2 = vrot.slane %v14550_v12, 4 }
  0x95   : > { %13963 = vmatpush.bf16.msra.mxu3 %v14533_v47  ;;  %4885 = vmatmul.bf16.gmra.mxu0 %v11716_v51  ;;  %1422 = vst [vmem:[#allocation4 + $0xdc] sm:$0xf] %v1085_v49  ;;  %v515_v3 = vor.u32 %v513_v42, %v512_v39  ;;  %v985_v40 = vld [vmem:[#allocation2 + $0x90] sm:$0xf]  ;;  %v517_v44 = vrot.slane %v512_v39, 4  ;;  %v795_v47 = vsel %vm14491_vm13, %v507_v54, %v794_v61 }
  0x96   : > { %v960_v58 = vld [vmem:[#allocation2 + $0x2c] sm:$0x1]  ;;  %400 = vst [vmem:[#allocation2 + $0x98] sm:$0x1] %v399_v16  ;;  %v986_v4 = vld [vmem:[#allocation2 + $0x94] sm:$0xf] }
  0x97   : > { %v1459_v59 = vld [vmem:[#allocation2 + $0x2c] sm:$0x1]  ;;  %v1092_v5 = vshll.u32 %v960_v58, 16  ;;  %v321_v7 = vld [vmem:[#allocation2 + $0x3c] sm:$0x1]  ;;  %v516_v13 = vsel %vm14470_vm11, %v508_v56, %v515_v3  ;;  %v1289_v41 = vshrl.u32 %v985_v40, 16 }
  0x98   : > { %v1573_v60 = vrot.slane %v1459_v59, 5  ;;  %v13622_v11 = vld [vmem:[#allocation4 + $0x458] sm:$0xf0]  ;;  %v1292_v17 = vshll.u32 %v985_v40, 16  ;;  %796 = vst [vmem:[#allocation2 + $0x30] sm:$0xf] %v795_v47 }
  0x99   : > { %v1094_v63 = vrot.slane %v1092_v5, 5  ;;  %v1298_v52 = vshll.u32 %v986_v4, 16  ;;  %v1302_v20 = vshrl.u32 %v986_v4, 16  ;;  %v322_v23 = vsel %vm14436_vm2, 0, %v321_v7  ;;  %797 = vst [vmem:[#allocation2 + $0x34] sm:$0xf] %v516_v13 }
  0x9a   : > { %v1574_v1 = vsel %vm14485_vm12, %v1572_v21, %v1573_v60  ;;  %v1291_v25 = vrot.slane %v1289_v41, 4  ;;  %v1294_v6 = vrot.slane %v1292_v17, 5  ;;  %v11723_v27 = vld [vmem:[#allocation4 + $0xe0] sm:$0xf]  ;;  %v798_v29 = vld [vmem:[#allocation2 + $0x38] sm:$0x1] }
  0x9b   : > { %1698 = vst [vmem:[#allocation4 + $0x104] sm:$0xf] %v1574_v1  ;;  %v1095_v18 = vsel %vm14518_vm14, %v1090_v45, %v1094_v63  ;;  %v12147_v24 = vld [vmem:[#allocation4 + $0x438] sm:$0xf]  ;;  %v1300_v9 = vrot.slane %v1298_v52, 5  ;;  %v1304_v28 = vrot.slane %v1302_v20, 4  ;;  %v799_v62 = vsel %vm14436_vm2, %v517_v44, %v798_v29 }
  0x9c   : > { %1423 = vst [vmem:[#allocation4 + $0x100] sm:$0xf] %v1095_v18  ;;  %v12148_v26 = vor.u32 %v13622_v11, %v12147_v24  ;;  %v1295_v30 = vor.u32 %v1294_v6, %v1291_v25  ;;  %v424_v31 = vld [vmem:[%s14410_s7 + $0x20] sm:$0xf]  ;;  %v425_v34 = vld [vmem:[%s14410_s7 + $0x24] sm:$0xf] }
  0x9d   : > { %323 = vst [vmem:[#allocation2 + $0x3c] sm:$0x1] %v322_v23  ;;  %v854_v15 = vld [vmem:[#allocation2 + $0x98] sm:$0x1]  ;;  %v519_v36 = vshrl.u32 %v424_v31, 16  ;;  %v522_v43 = vshll.u32 %v424_v31, 16  ;;  %v1305_v55 = vor.u32 %v1304_v28, %v1300_v9 }
  0x9e   : > { %4945 = vmatmul.bf16.gmra.mxu3 %v12148_v26  ;;  %v13510_v37 = vld [vmem:[#allocation4 + $0xdc] sm:$0xf]  ;;  %800 = vst [vmem:[#allocation2 + $0x38] sm:$0x1] %v799_v62  ;;  %v855_v14 = vsel %vm14436_vm2, %v653_v38, %v854_v15  ;;  %v1296_v10 = vrot.slane %v1295_v30, 4  ;;  %v527_v51 = vshrl.u32 %v425_v34, 16 }
  0x9f   : > { %856 = vst [vmem:[#allocation2 + $0x98] sm:$0x1] %v855_v14  ;;  %v14684_v39 = vrot.slane %v519_v36, 7  ;;  %v893_v49 = vld [vmem:[#allocation2 + $0x30] sm:$0xf]  ;;  %v1306_v3 = vrot.slane %v1305_v55, 4 }
  0xa0   : > { %v961_v21 = vld [vmem:[#allocation2 + $0x30] sm:$0xf]  ;;  %v1301_v54 = vsel %vm14518_vm14, %v1296_v10, %v1300_v9  ;;  %925 = vst [vmem:[#allocation4 + $0x120] sm:$0xf] %v893_v49  ;;  %v894_v16 = vld [vmem:[#allocation2 + $0x34] sm:$0xf] }
  0xa1   : > { %v1460_v56 = vld [vmem:[#allocation2 + $0x30] sm:$0xe]  ;;  %v1097_v32 = vshrl.u32 %v961_v21, 16  ;;  %v1100_v57 = vshll.u32 %v961_v21, 16  ;;  %v962_v58 = vld [vmem:[#allocation2 + $0x34] sm:$0xf]  ;;  %v524_v52 = vor.u32 %v522_v43, %v14684_v39 }
  0xa2   : > { %v13515_v50 = vld [vmem:[#allocation4 + $0x100] sm:$0xf0]  ;;  %1440 = vst [vmem:[#allocation4 + $0x364] sm:$0xf] %v1301_v54  ;;  %v1106_v5 = vshll.u32 %v962_v58, 16  ;;  %v1110_v60 = vshrl.u32 %v962_v58, 16 }
  0xa3   : > { %v11724_v53 = vor.u32 %v13515_v50, %v11723_v27  ;;  %v11717_v42 = vld [vmem:[#allocation4 + $0xfc] sm:$0xf0]  ;;  %926 = vst [vmem:[#allocation4 + $0x144] sm:$0xf] %v894_v16  ;;  %v1099_v59 = vrot.slane %v1097_v32, 4  ;;  %v1102_v45 = vrot.slane %v1100_v57, 5 }
  0xa4   : > { %v11720_v38 = vor.u32 %v13510_v37, %v11717_v42  ;;  %v1461_v61 = vld [vmem:[#allocation2 + $0x34] sm:$0xf]  ;;  %v11561_v40 = vrot.slane %v1460_v56, 9  ;;  %v14688_v63 = vrot.slane %v527_v51, 7  ;;  %v530_v1 = vshll.u32 %v425_v34, 16 }
  0xa5   : > { %5063 = vmatmul.bf16.gmra.mxu2 %v11724_v53  ;;  %v963_v44 = vld [vmem:[#allocation2 + $0x38] sm:$0x1]  ;;  %v1103_v47 = vor.u32 %v1102_v45, %v1099_v59  ;;  %v1108_v4 = vrot.slane %v1106_v5, 5  ;;  %v1112_v7 = vrot.slane %v1110_v60, 4  ;;  %v1577_v17 = vrot.slane %v1461_v61, 5 }
  0xa6   : > { %4974 = vmatmul.bf16.gmra.mxu1 %v11720_v38  ;;  %v1462_v11 = vld [vmem:[#allocation2 + $0x38] sm:$0x1]  ;;  %v1116_v13 = vshll.u32 %v963_v44, 16  ;;  %v525_v25 = vrot.slane %v14684_v39, 4  ;;  %v532_v28 = vor.u32 %v530_v1, %v14688_v63  ;;  %v801_v29 = vld [vmem:[#allocation2 + $0x3c] sm:$0xf] }
  0xa7   : > { %v987_v41 = vld [vmem:[#allocation2 + $0x98] sm:$0x1]  ;;  %v1580_v18 = vrot.slane %v1462_v11, 5  ;;  %v1104_v20 = vrot.slane %v1103_v47, 4  ;;  %v1113_v23 = vor.u32 %v1112_v7, %v1108_v4  ;;  %v11751_v6 = vld [vmem:[#allocation4 + $0x120] sm:$0xf]  ;;  %v1578_v27 = vsel %vm14485_vm12, %v11561_v40, %v1577_v17 }
  0xa8   : > { %v1308_v24 = vshll.u32 %v987_v41, 16  ;;  %v1118_v26 = vrot.slane %v1116_v13, 5  ;;  %v1579_v9 = vrot.slane %v1577_v17, 4  ;;  %v687_v30 = vrot.slane %v14594_v0, 4  ;;  %1699 = vst [vmem:[#allocation4 + $0x128] sm:$0xf] %v1578_v27 }
  0xa9   : > { %v1109_v31 = vsel %vm14518_vm14, %v1104_v20, %v1108_v4  ;;  %v1114_v62 = vrot.slane %v1113_v23, 4  ;;  %v377_v37 = vld [vmem:[#allocation2 + $0x44] sm:$0x1]  ;;  %v802_v50 = vsel %vm14491_vm13, %v524_v52, %v801_v29  ;;  %v988_v51 = vld [vmem:[#allocation2 + $0x9c] sm:$0xf]  ;;  %v533_v53 = vsel %vm14470_vm11, %v525_v25, %v532_v28  ;;  %v13663_v44 = vld [vmem:[#allocation9 + $0x120] sm:$0xff] }
  0xaa   : > { %v1310_v15 = vrot.slane %v1308_v24, 5  ;;  %v13523_v34 = vld [vmem:[#allocation4 + $0x140] sm:$0xf0]  ;;  %1424 = vst [vmem:[#allocation4 + $0x124] sm:$0xf] %v1109_v31  ;;  %v1581_v36 = vsel %vm14485_vm12, %v1579_v9, %v1580_v18  ;;  %v534_v49 = vrot.slane %v14688_v63, 4  ;;  %5221 = vmatpush.bf16.msrb.mxu0 %v13663_v44 }
  0xab   : > { %v11752_v14 = vor.u32 %v13523_v34, %v11751_v6  ;;  %v1119_v10 = vsel %vm14518_vm14, %v1114_v62, %v1118_v26  ;;  %1700 = vst [vmem:[#allocation4 + $0x14c] sm:$0xf] %v1581_v36  ;;  %v401_v39 = vld [vmem:[#allocation2 + $0xa4] sm:$0x1]  ;;  %v989_v21 = vld [vmem:[#allocation2 + $0xa0] sm:$0xf] }
  0xac   : > { %v1311_v43 = vsel %vm14518_vm14, %v1306_v3, %v1310_v15  ;;  %1425 = vst [vmem:[#allocation4 + $0x148] sm:$0xf] %v1119_v10  ;;  %v1313_v54 = vshrl.u32 %v988_v51, 16  ;;  %v378_v55 = vsel %vm14456_vm8, 0, %v377_v37  ;;  %v1316_v56 = vshll.u32 %v988_v51, 16 }
  0xad   : > { %4890 = vmatmul.bf16.gmra.mxu0 %v11752_v14  ;;  %1441 = vst [vmem:[#allocation4 + $0x388] sm:$0xf] %v1311_v43  ;;  %v1322_v42 = vshll.u32 %v989_v21, 16  ;;  %v1326_v32 = vshrl.u32 %v989_v21, 16  ;;  %v402_v57 = vsel %vm14456_vm8, 0, %v401_v39 }
  0xae   : > { %803 = vst [vmem:[#allocation2 + $0x3c] sm:$0xf] %v802_v50  ;;  %v1315_v38 = vrot.slane %v1313_v54, 4  ;;  %v324_v16 = vld [vmem:[#allocation2 + $0x48] sm:$0x1]  ;;  %v1318_v58 = vrot.slane %v1316_v56, 5 }
  0xaf   : > { %804 = vst [vmem:[#allocation2 + $0x40] sm:$0xf] %v533_v53  ;;  %v1324_v59 = vrot.slane %v1322_v42, 5  ;;  %v1328_v45 = vrot.slane %v1326_v32, 4  ;;  %v325_v5 = vsel %vm14436_vm2, 0, %v324_v16 }
  0xb0   : > { %v13591_v60 = vld [vmem:[#allocation4 + $0x364] sm:$0xf]  ;;  %v11759_v3 = vld [vmem:[#allocation4 + $0x128] sm:$0xf]  ;;  %379 = vst [vmem:[#allocation2 + $0x44] sm:$0x1] %v378_v55  ;;  %v1319_v63 = vor.u32 %v1318_v58, %v1315_v38 }
  0xb1   : > { %v426_v61 = vld [vmem:[%s14410_s7 + $0x28] sm:$0xf]  ;;  %v13519_v40 = vld [vmem:[#allocation4 + $0x124] sm:$0xf]  ;;  %403 = vst [vmem:[#allocation2 + $0xa4] sm:$0x1] %v402_v57  ;;  %v1329_v1 = vor.u32 %v1328_v45, %v1324_v59 }
  0xb2   : > { %v536_v47 = vshrl.u32 %v426_v61, 16  ;;  %v13524_v4 = vld [vmem:[#allocation4 + $0x148] sm:$0xf0]  ;;  %326 = vst [vmem:[#allocation2 + $0x48] sm:$0x1] %v325_v5  ;;  %v1320_v41 = vrot.slane %v1319_v63, 4 }
  0xb3   : > { %v427_v7 = vld [vmem:[%s14410_s7 + $0x2c] sm:$0xf]  ;;  %v11753_v11 = vld [vmem:[#allocation4 + $0x144] sm:$0xf0]  ;;  %v11760_v13 = vor.u32 %v13524_v4, %v11759_v3  ;;  %v14717_v17 = vrot.slane %v1329_v1, 4  ;;  %v539_v23 = vshll.u32 %v426_v61, 16 }
  0xb4   : > { %v538_v18 = vrot.slane %v536_v47, 7  ;;  %v11756_v52 = vor.u32 %v13519_v40, %v11753_v11  ;;  %v12041_v20 = vld [vmem:[#allocation4 + $0x384] sm:$0xf0]  ;;  %v544_v24 = vshrl.u32 %v427_v7, 16  ;;  %v547_v25 = vshll.u32 %v427_v7, 16 }
  0xb5   : > { %v12044_v6 = vor.u32 %v13591_v60, %v12041_v20  ;;  %5068 = vmatmul.bf16.gmra.mxu2 %v11760_v13  ;;  %v895_v26 = vld [vmem:[#allocation2 + $0x3c] sm:$0xf]  ;;  %v1325_v9 = vsel %vm14518_vm14, %v1320_v41, %v1324_v59  ;;  %v380_v38 = vld [vmem:[#allocation2 + $0x50] sm:$0x1]  ;;  %v991_v7 = vld [vmem:[#allocation2 + $0xa8] sm:$0xf] }
  0xb6   : > { %v964_v27 = vld [vmem:[#allocation2 + $0x3c] sm:$0xf]  ;;  %4979 = vmatmul.bf16.gmra.mxu1 %v11756_v52  ;;  %v896_v29 = vld [vmem:[#allocation2 + $0x40] sm:$0xf]  ;;  %927 = vst [vmem:[#allocation4 + $0x168] sm:$0xf] %v895_v26  ;;  %v541_v43 = vor.u32 %v539_v23, %v538_v18 }
  0xb7   : > { %v1463_v28 = vld [vmem:[#allocation2 + $0x3c] sm:$0xe]  ;;  %v965_v31 = vld [vmem:[#allocation2 + $0x40] sm:$0xf]  ;;  %5019 = vmatmul.bf16.vlgmr.msrb.gmra.mxu3 %v12044_v6  ;;  %928 = vst [vmem:[#allocation4 + $0x18c] sm:$0xf] %v896_v29 }
  0xb8   : > { %v805_v62 = vld [vmem:[#allocation2 + $0x44] sm:$0x1]  ;;  %v1121_v15 = vshrl.u32 %v964_v27, 16  ;;  %v1124_v34 = vshll.u32 %v964_v27, 16  ;;  %v1130_v37 = vshll.u32 %v965_v31, 16  ;;  %v1134_v14 = vshrl.u32 %v965_v31, 16 }
  0xb9   : > { %v806_v36 = vsel %vm14436_vm2, %v534_v49, %v805_v62  ;;  %v861_v10 = vld [vmem:[#allocation2 + $0xa4] sm:$0x1]  ;;  %1442 = vst [vmem:[#allocation4 + $0x3ac] sm:$0xf] %v1325_v9  ;;  %v1464_v53 = vld [vmem:[#allocation2 + $0x40] sm:$0xf] }
  0xba   : > { %807 = vst [vmem:[#allocation2 + $0x44] sm:$0x1] %v806_v36  ;;  %v1123_v50 = vrot.slane %v1121_v15, 4  ;;  %v1126_v39 = vrot.slane %v1124_v34, 5  ;;  %v862_v51 = vsel %vm14436_vm2, %v670_v2, %v861_v10  ;;  %v1132_v21 = vrot.slane %v1130_v37, 5  ;;  %v13662_v9 = vld [vmem:[#allocation9 + $0x118] sm:$0xff] }
  0xbb   : > { %v1136_v54 = vrot.slane %v1134_v14, 4  ;;  %863 = vst [vmem:[#allocation2 + $0xa4] sm:$0x1] %v862_v51  ;;  %v11562_v55 = vrot.slane %v1463_v28, 9  ;;  %v1584_v56 = vrot.slane %v1464_v53, 5  ;;  %v542_v42 = vrot.slane %v538_v18, 4  ;;  %5222 = vmatpush.bf16.msrb.mxu0 %v13662_v9 }
  0xbc   : > { %v1127_v49 = vor.u32 %v1126_v39, %v1123_v50  ;;  %v546_v32 = vrot.slane %v544_v24, 7  ;;  %v808_v57 = vld [vmem:[#allocation2 + $0x48] sm:$0xf]  ;;  %v404_v2 = vld [vmem:[#allocation2 + $0xb0] sm:$0x1]  ;;  %v381_v63 = vsel %vm14456_vm8, 0, %v380_v38 }
  0xbd   : > { %v1137_v16 = vor.u32 %v1136_v54, %v1132_v21  ;;  %v1585_v58 = vsel %vm14485_vm12, %v11562_v55, %v1584_v56  ;;  %v1586_v59 = vrot.slane %v1584_v56, 4  ;;  %v809_v12 = vsel %vm14491_vm13, %v541_v43, %v808_v57  ;;  %v11787_v45 = vld [vmem:[#allocation4 + $0x168] sm:$0xf]  ;;  %382 = vst [vmem:[#allocation2 + $0x50] sm:$0x1] %v381_v63 }
  0xbe   : > { %v1128_v5 = vrot.slane %v1127_v49, 4  ;;  %1701 = vst [vmem:[#allocation4 + $0x170] sm:$0xf] %v1585_v58  ;;  %v549_v60 = vor.u32 %v547_v25, %v546_v32  ;;  %v551_v3 = vrot.slane %v546_v32, 4  ;;  %v13532_v61 = vld [vmem:[#allocation4 + $0x188] sm:$0xf0] }
  0xbf   : > { %v1138_v40 = vrot.slane %v1137_v16, 4  ;;  %810 = vst [vmem:[#allocation2 + $0x48] sm:$0xf] %v809_v12  ;;  %v11788_v1 = vor.u32 %v13532_v61, %v11787_v45  ;;  %v405_v4 = vsel %vm14456_vm8, 0, %v404_v2  ;;  %v992_v23 = vld [vmem:[#allocation2 + $0xac] sm:$0xf] }
  0xc0   : > { %v1133_v44 = vsel %vm14518_vm14, %v1128_v5, %v1132_v21  ;;  %v550_v47 = vsel %vm14470_vm11, %v542_v42, %v549_v60  ;;  %406 = vst [vmem:[#allocation2 + $0xb0] sm:$0x1] %v405_v4  ;;  %v1337_v24 = vshrl.u32 %v991_v7, 16  ;;  %v1340_v26 = vshll.u32 %v991_v7, 16  ;;  %v327_v31 = vld [vmem:[#allocation2 + $0x54] sm:$0x1] }
  0xc1   : > { %v966_v11 = vld [vmem:[#allocation2 + $0x44] sm:$0x1]  ;;  %1426 = vst [vmem:[#allocation4 + $0x16c] sm:$0xf] %v1133_v44  ;;  %4895 = vmatmul.bf16.gmra.mxu0 %v11788_v1  ;;  %v1346_v27 = vshll.u32 %v992_v23, 16  ;;  %v1350_v21 = vshrl.u32 %v992_v23, 16 }
  0xc2   : > { %v1465_v13 = vld [vmem:[#allocation2 + $0x44] sm:$0x1]  ;;  %v1140_v41 = vshll.u32 %v966_v11, 16  ;;  %811 = vst [vmem:[#allocation2 + $0x4c] sm:$0xf] %v550_v47  ;;  %v1339_v29 = vrot.slane %v1337_v24, 4 }
  0xc3   : > { %v990_v18 = vld [vmem:[#allocation2 + $0xa4] sm:$0x1]  ;;  %v1587_v52 = vrot.slane %v1465_v13, 5  ;;  %v1342_v36 = vrot.slane %v1340_v26, 5  ;;  %v14743_v37 = vrot.slane %v1346_v27, 5  ;;  %v328_v54 = vsel %vm14436_vm2, 0, %v327_v31 }
  0xc4   : > { %v1332_v20 = vshll.u32 %v990_v18, 16  ;;  %v1142_v25 = vrot.slane %v1140_v41, 5  ;;  %v812_v10 = vld [vmem:[#allocation2 + $0x50] sm:$0x1]  ;;  %v13600_v38 = vld [vmem:[#allocation4 + $0x3ac] sm:$0xf] }
  0xc5   : > { %v1588_v6 = vsel %vm14485_vm12, %v1586_v59, %v1587_v52  ;;  %v11795_v39 = vld [vmem:[#allocation4 + $0x170] sm:$0xf]  ;;  %v813_v51 = vsel %vm14436_vm2, %v551_v3, %v812_v10  ;;  %v1343_v53 = vor.u32 %v1342_v36, %v1339_v29  ;;  %v1352_v59 = vrot.slane %v1350_v21, 4  ;;  %329 = vst [vmem:[#allocation2 + $0x54] sm:$0x1] %v328_v54 }
  0xc6   : > { %v1334_v28 = vrot.slane %v1332_v20, 5  ;;  %1702 = vst [vmem:[#allocation4 + $0x194] sm:$0xf] %v1588_v6  ;;  %v1143_v62 = vsel %vm14518_vm14, %v1138_v40, %v1142_v25  ;;  %v897_v15 = vld [vmem:[#allocation2 + $0x48] sm:$0xf] }
  0xc7   : > { %v967_v34 = vld [vmem:[#allocation2 + $0x48] sm:$0xf]  ;;  %1427 = vst [vmem:[#allocation4 + $0x190] sm:$0xf] %v1143_v62  ;;  %v868_v16 = vld [vmem:[#allocation2 + $0xb0] sm:$0x1] }
  0xc8   : > { %v1335_v14 = vsel %vm14518_vm14, %v14717_v17, %v1334_v28  ;;  %v1145_v43 = vshrl.u32 %v967_v34, 16  ;;  %v1148_v50 = vshll.u32 %v967_v34, 16  ;;  %929 = vst [vmem:[#allocation4 + $0x1b0] sm:$0xf] %v897_v15  ;;  %v13528_v49 = vld [vmem:[#allocation4 + $0x16c] sm:$0xf]  ;;  %v869_v60 = vsel %vm14436_vm2, %v687_v30, %v868_v16 }
  0xc9   : > { %1443 = vst [vmem:[#allocation4 + $0x3d0] sm:$0xf] %v1335_v14  ;;  %v898_v55 = vld [vmem:[#allocation2 + $0x4c] sm:$0xf]  ;;  %v1344_v58 = vrot.slane %v1343_v53, 4  ;;  %v1353_v30 = vor.u32 %v1352_v59, %v14743_v37 }
  0xca   : > { %v968_v56 = vld [vmem:[#allocation2 + $0x4c] sm:$0xf]  ;;  %930 = vst [vmem:[#allocation4 + $0x1d4] sm:$0xf] %v898_v55  ;;  %v1147_v42 = vrot.slane %v1145_v43, 4  ;;  %v1150_v17 = vrot.slane %v1148_v50, 5 }
  0xcb   : > { %v1154_v32 = vshll.u32 %v968_v56, 16  ;;  %v1158_v57 = vshrl.u32 %v968_v56, 16  ;;  %814 = vst [vmem:[#allocation2 + $0x50] sm:$0x1] %v813_v51  ;;  %v1466_v3 = vld [vmem:[#allocation2 + $0x48] sm:$0xe]  ;;  %v1349_v40 = vsel %vm14518_vm14, %v1344_v58, %v14743_v37 }
  0xcc   : > { %v1151_v2 = vor.u32 %v1150_v17, %v1147_v42  ;;  %870 = vst [vmem:[#allocation2 + $0xb0] sm:$0x1] %v869_v60  ;;  %v1467_v63 = vld [vmem:[#allocation2 + $0x4c] sm:$0xf]  ;;  %v11563_v1 = vrot.slane %v1466_v3, 9  ;;  %v1354_v36 = vrot.slane %v1353_v30, 4 }
  0xcd   : > { %v13533_v12 = vld [vmem:[#allocation4 + $0x190] sm:$0xf0]  ;;  %v1156_v45 = vrot.slane %v1154_v32, 5  ;;  %v1160_v5 = vrot.slane %v1158_v57, 4  ;;  %1444 = vst [vmem:[#allocation4 + $0x3f4] sm:$0xf] %v1349_v40 }
  0xce   : > { %v11796_v61 = vor.u32 %v13533_v12, %v11795_v39  ;;  %v11789_v44 = vld [vmem:[#allocation4 + $0x18c] sm:$0xf0]  ;;  %v1152_v47 = vrot.slane %v1151_v2, 4  ;;  %v1591_v7 = vrot.slane %v1467_v63, 5  ;;  %v429_v31 = vld [vmem:[%s14410_s7 + $0x34] sm:$0xf] }
  0xcf   : > { %v1161_v4 = vor.u32 %v1160_v5, %v1156_v45  ;;  %v11792_v11 = vor.u32 %v13528_v49, %v11789_v44  ;;  %v11823_v41 = vld [vmem:[#allocation4 + $0x1b0] sm:$0xf]  ;;  %v561_v37 = vshrl.u32 %v429_v31, 16  ;;  %v564_v14 = vshll.u32 %v429_v31, 16  ;;  %v383_v51 = vld [vmem:[#allocation2 + $0x5c] sm:$0x1] }
  0xd0   : > { %v12077_v0 = vld [vmem:[#allocation4 + $0x3cc] sm:$0xf0]  ;;  %5073 = vmatmul.bf16.gmra.mxu2 %v11796_v61  ;;  %v1157_v18 = vsel %vm14518_vm14, %v1152_v47, %v1156_v45  ;;  %v1592_v20 = vsel %vm14485_vm12, %v11563_v1, %v1591_v7  ;;  %v1593_v25 = vrot.slane %v1591_v7, 4  ;;  %v407_v53 = vld [vmem:[#allocation2 + $0xbc] sm:$0x1]  ;;  %v704_v1 = vrot.slane %v14631_v33, 4 }
  0xd1   : > { %v12080_v13 = vor.u32 %v13600_v38, %v12077_v0  ;;  %v1162_v52 = vrot.slane %v1161_v4, 4  ;;  %v428_v23 = vld [vmem:[%s14410_s7 + $0x30] sm:$0xf]  ;;  %4984 = vmatmul.bf16.gmra.mxu1 %v11792_v11  ;;  %v13541_v24 = vld [vmem:[#allocation4 + $0x1d0] sm:$0xf0]  ;;  %v14768_v54 = vrot.slane %v561_v37, 7 }
  0xd2   : > { %1428 = vst [vmem:[#allocation4 + $0x1b4] sm:$0xf] %v1157_v18  ;;  %v553_v6 = vshrl.u32 %v428_v23, 16  ;;  %v11824_v26 = vor.u32 %v13541_v24, %v11823_v41  ;;  %v969_v27 = vld [vmem:[#allocation2 + $0x50] sm:$0x1]  ;;  %v556_v15 = vshll.u32 %v428_v23, 16 }
  0xd3   : > { %5024 = vmatmul.bf16.gmra.mxu3 %v12080_v13  ;;  %v1468_v9 = vld [vmem:[#allocation2 + $0x50] sm:$0x1]  ;;  %1703 = vst [vmem:[#allocation4 + $0x1b8] sm:$0xf] %v1592_v20  ;;  %v1164_v28 = vshll.u32 %v969_v27, 16  ;;  %v566_v57 = vor.u32 %v564_v14, %v14768_v54  ;;  %v384_v38 = vsel %vm14456_vm8, 0, %v383_v51 }
  0xd4   : > { %v1594_v29 = vrot.slane %v1468_v9, 5  ;;  %v555_v62 = vrot.slane %v553_v6, 7  ;;  %4900 = vmatmul.bf16.gmra.mxu0 %v11824_v26  ;;  %v993_v34 = vld [vmem:[#allocation2 + $0xb0] sm:$0x1]  ;;  %v815_v55 = vld [vmem:[#allocation2 + $0x54] sm:$0xf] }
  0xd5   : > { %v1166_v10 = vrot.slane %v1164_v28, 5  ;;  %v1356_v43 = vshll.u32 %v993_v34, 16  ;;  %v994_v17 = vld [vmem:[#allocation2 + $0xb4] sm:$0xf]  ;;  %v995_v32 = vld [vmem:[#allocation2 + $0xb8] sm:$0xf] }
  0xd6   : > { %v1595_v50 = vsel %vm14485_vm12, %v1593_v25, %v1594_v29  ;;  %v558_v39 = vor.u32 %v556_v15, %v555_v62  ;;  %v559_v21 = vrot.slane %v555_v62, 4  ;;  %v408_v16 = vsel %vm14456_vm8, 0, %v407_v53  ;;  %v330_v63 = vld [vmem:[#allocation2 + $0x60] sm:$0x1]  ;;  %385 = vst [vmem:[#allocation2 + $0x5c] sm:$0x1] %v384_v38 }
  0xd7   : > { %1704 = vst [vmem:[#allocation4 + $0x1dc] sm:$0xf] %v1595_v50  ;;  %v1167_v56 = vsel %vm14518_vm14, %v1162_v52, %v1166_v10  ;;  %v1358_v49 = vrot.slane %v1356_v43, 5  ;;  %v1361_v12 = vshrl.u32 %v994_v17, 16  ;;  %v1364_v2 = vshll.u32 %v994_v17, 16  ;;  %v4871_v41 = vpop.f32.mrf.mxu0 }
  0xd8   : > { %v816_v42 = vsel %vm14491_vm13, %v558_v39, %v815_v55  ;;  %1429 = vst [vmem:[#allocation4 + $0x1d8] sm:$0xf] %v1167_v56  ;;  %v567_v45 = vsel %vm14470_vm11, %v559_v21, %v566_v57  ;;  %v1370_v5 = vshll.u32 %v995_v32, 16  ;;  %v1374_v60 = vshrl.u32 %v995_v32, 16  ;;  %v13609_v7 = vld [vmem:[#allocation4 + $0x3f4] sm:$0xf] }
  0xd9   : > { %v1359_v58 = vsel %vm14518_vm14, %v1354_v36, %v1358_v49  ;;  %817 = vst [vmem:[#allocation2 + $0x54] sm:$0xf] %v816_v42  ;;  %v13537_v3 = vld [vmem:[#allocation4 + $0x1b4] sm:$0xf]  ;;  %v1363_v61 = vrot.slane %v1361_v12, 4  ;;  %v1366_v40 = vrot.slane %v1364_v2, 5 }
  0xda   : > { %v11831_v59 = vld [vmem:[#allocation4 + $0x1b8] sm:$0xf]  ;;  %1445 = vst [vmem:[#allocation4 + $0x418] sm:$0xf] %v1359_v58  ;;  %v568_v44 = vrot.slane %v14768_v54, 4  ;;  %v14785_v47 = vrot.slane %v1370_v5, 5 }
  0xdb   : > { %818 = vst [vmem:[#allocation2 + $0x58] sm:$0xf] %v567_v45  ;;  %v331_v4 = vsel %vm14436_vm2, 0, %v330_v63  ;;  %v1367_v0 = vor.u32 %v1366_v40, %v1363_v61  ;;  %v14792_v30 = vld [vmem:[%s16983_s4] ss:$0 sm:$0xff]  ;;  %v1376_v23 = vrot.slane %v1374_v60, 4 }
  0xdc   : > { %409 = vst [vmem:[#allocation2 + $0xbc] sm:$0x1] %v408_v16  ;;  %v430_v33 = vld [vmem:[%s14410_s7 + $0x38] sm:$0xf]  ;;  %v431_v18 = vld [vmem:[%s14410_s7 + $0x3c] sm:$0xf]  ;;  %v4872_v24 = vadd.f32 %v14792_v30, %v4871_v41 }
  0xdd   : > { %332 = vst [vmem:[#allocation2 + $0x60] sm:$0x1] %v331_v4  ;;  %v1368_v20 = vrot.slane %v1367_v0, 4  ;;  %v570_v25 = vshrl.u32 %v430_v33, 16  ;;  %v573_v28 = vshll.u32 %v430_v33, 16  ;;  %v578_v29 = vshrl.u32 %v431_v18, 16 }
  0xde   : > { %v13542_v11 = vld [vmem:[#allocation4 + $0x1d8] sm:$0xf0]  ;;  %v819_v43 = vld [vmem:[#allocation2 + $0x5c] sm:$0x1]  ;;  %v1377_v55 = vor.u32 %v1376_v23, %v14785_v47  ;;  %v581_v5 = vshll.u32 %v431_v18, 16 }
  0xdf   : > { %v11832_v13 = vor.u32 %v13542_v11, %v11831_v59  ;;  %v11825_v52 = vld [vmem:[#allocation4 + $0x1d4] sm:$0xf0]  ;;  %v1373_v34 = vsel %vm14518_vm14, %v1368_v20, %v14785_v47  ;;  %v820_v51 = vsel %vm14436_vm2, %v568_v44, %v819_v43  ;;  %v572_v57 = vrot.slane %v570_v25, 7  ;;  %v1484_v18 = vld [vmem:[#allocation2 + $0x90] sm:$0xe] }
  0xe0   : > { %v11828_v6 = vor.u32 %v13537_v3, %v11825_v52  ;;  %v899_v26 = vld [vmem:[#allocation2 + $0x54] sm:$0xf]  ;;  %1446 = vst [vmem:[#allocation4 + $0x43c] sm:$0xf] %v1373_v34  ;;  %v14807_v59 = vrot.slane %v578_v29, 7  ;;  %v1378_v40 = vrot.slane %v1377_v55, 4 }
  0xe1   : > { %5078 = vmatmul.bf16.gmra.mxu2 %v11832_v13  ;;  %v970_v27 = vld [vmem:[#allocation2 + $0x54] sm:$0xf]  ;;  %v12113_v31 = vld [vmem:[#allocation4 + $0x414] sm:$0xf0]  ;;  %931 = vst [vmem:[#allocation4 + $0x1f8] sm:$0xf] %v899_v26  ;;  %v575_v2 = vor.u32 %v573_v28, %v572_v57 }
  0xe2   : > { %v4960_v9 = vpop.f32.mrf.mxu1  ;;  %v1169_v62 = vshrl.u32 %v970_v27, 16  ;;  %v1172_v15 = vshll.u32 %v970_v27, 16  ;;  %4989 = vmatmul.bf16.gmra.mxu1 %v11828_v6  ;;  %v12116_v37 = vor.u32 %v13609_v7, %v12113_v31  ;;  %v900_v14 = vld [vmem:[#allocation2 + $0x58] sm:$0xf]  ;;  %v1469_v56 = vld [vmem:[#allocation2 + $0x54] sm:$0xe]  ;;  %v583_v4 = vor.u32 %v581_v5, %v14807_v59 }
  0xe3   : > { %v14800_v36 = vadd.f32 %v4960_v9, %v4872_v24  ;;  %v971_v10 = vld [vmem:[#allocation2 + $0x58] sm:$0xf]  ;;  %932 = vst [vmem:[#allocation4 + $0x21c] sm:$0xf] %v900_v14  ;;  %v875_v54 = vld [vmem:[#allocation2 + $0xbc] sm:$0x1]  ;;  %v5049_v26 = vpop.f32.mrf.mxu2 }
  0xe4   : > { %v1171_v50 = vrot.slane %v1169_v62, 4  ;;  %v1174_v39 = vrot.slane %v1172_v15, 5  ;;  %5029 = vmatmul.bf16.gmra.mxu3 %v12116_v37  ;;  %v1178_v53 = vshll.u32 %v971_v10, 16  ;;  %v1182_v21 = vshrl.u32 %v971_v10, 16  ;;  %821 = vst [vmem:[#allocation2 + $0x5c] sm:$0x1] %v820_v51  ;;  %v14820_v62 = vpop.f32.mrf.mxu0 }
  0xe5   : > { %v876_v42 = vsel %vm14436_vm2, %v704_v1, %v875_v54  ;;  %v1470_v17 = vld [vmem:[#allocation2 + $0x58] sm:$0xf]  ;;  %v11564_v32 = vrot.slane %v1469_v56, 9  ;;  %v576_v45 = vrot.slane %v572_v57, 4  ;;  %v822_v60 = vld [vmem:[#allocation2 + $0x60] sm:$0xf]  ;;  %v14827_v10 = vadd.f32 %v5049_v26, %v14800_v36 }
  0xe6   : > { %v1175_v49 = vor.u32 %v1174_v39, %v1171_v50  ;;  %v1180_v38 = vrot.slane %v1178_v53, 5  ;;  %v1184_v16 = vrot.slane %v1182_v21, 4  ;;  %877 = vst [vmem:[#allocation2 + $0xbc] sm:$0x1] %v876_v42  ;;  %v1598_v58 = vrot.slane %v1470_v17, 5  ;;  %v13658_v31 = vld [vmem:[#allocation9 + $0xf8] sm:$0xff] }
  0xe7   : > { %v386_v1 = vld [vmem:[#allocation2 + $0x68] sm:$0x1]  ;;  %v823_v7 = vsel %vm14491_vm13, %v575_v2, %v822_v60  ;;  %v584_v33 = vsel %vm14470_vm11, %v576_v45, %v583_v4  ;;  %v1485_v52 = vld [vmem:[#allocation2 + $0x94] sm:$0xf]  ;;  %v1486_v9 = vld [vmem:[#allocation2 + $0x98] sm:$0x1]  ;;  %v14824_v14 = vpop.f32.mrf.mxu3  ;;  %5129 = vmatpush.bf16.msrb.mxu3 %v13658_v31 }
  0xe8   : > { %v1176_v12 = vrot.slane %v1175_v49, 4  ;;  %v11859_v3 = vld [vmem:[#allocation4 + $0x1f8] sm:$0xf]  ;;  %v1185_v61 = vor.u32 %v1184_v16, %v1180_v38  ;;  %v1599_v63 = vsel %vm14485_vm12, %v11564_v32, %v1598_v58  ;;  %v1600_v47 = vrot.slane %v1598_v58, 4  ;;  %824 = vst [vmem:[#allocation2 + $0x60] sm:$0xf] %v823_v7 }
  0xe9   : > { %1705 = vst [vmem:[#allocation4 + $0x200] sm:$0xf] %v1599_v63  ;;  %v387_v13 = vsel %vm14456_vm8, 0, %v386_v1  ;;  %v11569_v28 = vrot.slane %v1484_v18, 9  ;;  %v1633_v29 = vrot.slane %v1485_v52, 5  ;;  %v13661_v37 = vld [vmem:[#allocation9 + $0x110] sm:$0xff] }
  0xea   : > { %v1181_v44 = vsel %vm14518_vm14, %v1176_v12, %v1180_v38  ;;  %v13550_v11 = vld [vmem:[#allocation4 + $0x218] sm:$0xf0]  ;;  %v1186_v0 = vrot.slane %v1185_v61, 4  ;;  %825 = vst [vmem:[#allocation2 + $0x64] sm:$0xf] %v584_v33  ;;  %v14829_v43 = vpop.f32.mrf.mxu1  ;;  %v585_v51 = vrot.slane %v14807_v59, 4  ;;  %5223 = vmatpush.bf16.msrb.mxu0 %v13661_v37 }
  0xeb   : > { %1430 = vst [vmem:[#allocation4 + $0x1fc] sm:$0xf] %v1181_v44  ;;  %v11860_v41 = vor.u32 %v13550_v11, %v11859_v3  ;;  %v972_v20 = vld [vmem:[#allocation2 + $0x5c] sm:$0x1]  ;;  %v333_v50 = vld [vmem:[#allocation2 + $0x6c] sm:$0x1]  ;;  %v1634_v53 = vsel %vm14485_vm12, %v11569_v28, %v1633_v29  ;;  %v14844_v1 = vpop.f32.mrf.mxu2 }
  0xec   : > { %v1471_v23 = vld [vmem:[#allocation2 + $0x5c] sm:$0x1]  ;;  %v1188_v24 = vshll.u32 %v972_v20, 16  ;;  %388 = vst [vmem:[#allocation2 + $0x68] sm:$0x1] %v387_v13  ;;  %v13657_v21 = vld [vmem:[#allocation9 + $0xf0] sm:$0xff] }
  0xed   : > { %4905 = vmatmul.bf16.gmra.mxu0 %v11860_v41  ;;  %v996_v25 = vld [vmem:[#allocation2 + $0xbc] sm:$0x1]  ;;  %v1601_v6 = vrot.slane %v1471_v23, 5  ;;  %v1635_v55 = vrot.slane %v1633_v29, 4  ;;  %v1636_v56 = vrot.slane %v1486_v9, 5  ;;  %v334_v36 = vsel %vm14436_vm2, 0, %v333_v50  ;;  %5130 = vmatpush.bf16.msrb.mxu3 %v13657_v21 }
  0xee   : > { %v1380_v27 = vshll.u32 %v996_v25, 16  ;;  %v1190_v15 = vrot.slane %v1188_v24, 5  ;;  %1715 = vst [vmem:[#allocation4 + $0x368] sm:$0xf] %v1634_v53  ;;  %v13618_v13 = vld [vmem:[#allocation4 + $0x43c] sm:$0xf] }
  0xef   : > { %v1602_v34 = vsel %vm14485_vm12, %v1600_v47, %v1601_v6  ;;  %v901_v42 = vld [vmem:[#allocation2 + $0x60] sm:$0xf]  ;;  %v1637_v3 = vsel %vm14485_vm12, %v1635_v55, %v1636_v56  ;;  %v432_v52 = vld [vmem:[%s14410_s7 + $0x40] sm:$0xf]  ;;  %v14850_v6 = vpop.f32.mrf.mxu3  ;;  %335 = vst [vmem:[#allocation2 + $0x6c] sm:$0x1] %v334_v36 }
  0xf0   : > { %v1382_v39 = vrot.slane %v1380_v27, 5  ;;  %1706 = vst [vmem:[#allocation4 + $0x224] sm:$0xf] %v1602_v34  ;;  %v1191_v54 = vsel %vm14518_vm14, %v1186_v0, %v1190_v15  ;;  %v973_v17 = vld [vmem:[#allocation2 + $0x60] sm:$0xf]  ;;  %v4876_v0 = vpop.f32.mrf.mxu0  ;;  %v587_v27 = vshrl.u32 %v432_v52, 16 }
  0xf1   : > { %1431 = vst [vmem:[#allocation4 + $0x220] sm:$0xf] %v1191_v54  ;;  %v11867_v32 = vld [vmem:[#allocation4 + $0x200] sm:$0xf]  ;;  %v902_v57 = vld [vmem:[#allocation2 + $0x64] sm:$0xf]  ;;  %v4877_v18 = vadd.f32 %v14792_v30, %v4876_v0 }
  0xf2   : > { %v1383_v49 = vsel %vm14518_vm14, %v1378_v40, %v1382_v39  ;;  %v974_v38 = vld [vmem:[#allocation2 + $0x64] sm:$0xf]  ;;  %933 = vst [vmem:[#allocation4 + $0x240] sm:$0xf] %v901_v42  ;;  %v1193_v58 = vshrl.u32 %v973_v17, 16  ;;  %v1196_v59 = vshll.u32 %v973_v17, 16 }
  0xf3   : > { %1447 = vst [vmem:[#allocation4 + $0x460] sm:$0xf] %v1383_v49  ;;  %v826_v16 = vld [vmem:[#allocation2 + $0x68] sm:$0x1]  ;;  %v13546_v12 = vld [vmem:[#allocation4 + $0x1fc] sm:$0xf] }
  0xf4   : > { %934 = vst [vmem:[#allocation4 + $0x264] sm:$0xf] %v902_v57  ;;  %v827_v2 = vsel %vm14436_vm2, %v585_v51, %v826_v16  ;;  %v1202_v45 = vshll.u32 %v974_v38, 16  ;;  %v1206_v5 = vshrl.u32 %v974_v38, 16  ;;  %v1472_v60 = vld [vmem:[#allocation2 + $0x60] sm:$0xe] }
  0xf5   : > { %828 = vst [vmem:[#allocation2 + $0x68] sm:$0x1] %v827_v2  ;;  %v1195_v61 = vrot.slane %v1193_v58, 4  ;;  %v1198_v40 = vrot.slane %v1196_v59, 5  ;;  %v1473_v63 = vld [vmem:[#allocation2 + $0x64] sm:$0xf] }
  0xf6   : > { %v1204_v47 = vrot.slane %v1202_v45, 5  ;;  %v1208_v4 = vrot.slane %v1206_v5, 4  ;;  %v11565_v7 = vrot.slane %v1472_v60, 9  ;;  %v1605_v11 = vrot.slane %v1473_v63, 5  ;;  %1716 = vst [vmem:[#allocation4 + $0x38c] sm:$0xf] %v1637_v3 }
  0xf7   : > { %v13551_v44 = vld [vmem:[#allocation4 + $0x220] sm:$0xf0]  ;;  %v1199_v33 = vor.u32 %v1198_v40, %v1195_v61  ;;  %17010 = vst [vmem:[#allocation21_spill] sm:$0xff] %v14850_v6  ;;  %v590_v15 = vshll.u32 %v432_v52, 16  ;;  %v589_v51 = vrot.slane %v587_v27, 7  ;;  %v13656_v61 = vld [vmem:[#allocation9 + $0xe8] sm:$0xff] }
  0xf8   : > { %v11868_v41 = vor.u32 %v13551_v44, %v11867_v32  ;;  %v11861_v20 = vld [vmem:[#allocation4 + $0x21c] sm:$0xf0]  ;;  %v1209_v23 = vor.u32 %v1208_v4, %v1204_v47  ;;  %v1606_v24 = vsel %vm14485_vm12, %v11565_v7, %v1605_v11  ;;  %v1607_v25 = vrot.slane %v1605_v11, 4  ;;  %v433_v39 = vld [vmem:[%s14410_s7 + $0x44] sm:$0xf]  ;;  %5131 = vmatpush.bf16.msrb.mxu3 %v13656_v61 }
  0xf9   : > { %v11864_v9 = vor.u32 %v13546_v12, %v11861_v20  ;;  %v1200_v29 = vrot.slane %v1199_v33, 4  ;;  %1707 = vst [vmem:[#allocation4 + $0x248] sm:$0xf] %v1606_v24  ;;  %v11895_v37 = vld [vmem:[#allocation4 + $0x240] sm:$0xf]  ;;  %v595_v54 = vshrl.u32 %v433_v39, 16  ;;  %v592_v17 = vor.u32 %v590_v15, %v589_v51  ;;  %v14871_v20 = vpop.f32.mrf.mxu3 }
  0xfa   : > { %v4965_v26 = vpop.f32.mrf.mxu1  ;;  %v12149_v28 = vld [vmem:[#allocation4 + $0x45c] sm:$0xf0]  ;;  %5083 = vmatmul.bf16.gmra.mxu2 %v11868_v41  ;;  %v1210_v50 = vrot.slane %v1209_v23, 4  ;;  %v598_v55 = vshll.u32 %v433_v39, 16  ;;  %v389_v56 = vld [vmem:[#allocation2 + $0x74] sm:$0x1] }
  0xfb   : > { %v4966_v31 = vadd.f32 %v4965_v26, %v4877_v18  ;;  %v12152_v34 = vor.u32 %v13618_v13, %v12149_v28  ;;  %4994 = vmatmul.bf16.gmra.mxu1 %v11864_v9  ;;  %v13559_v53 = vld [vmem:[#allocation4 + $0x260] sm:$0xf0]  ;;  %v1205_v21 = vsel %vm14518_vm14, %v1200_v29, %v1204_v47  ;;  %v593_v38 = vrot.slane %v589_v51, 4  ;;  %v1487_v58 = vld [vmem:[#allocation2 + $0x9c] sm:$0xe]  ;;  %v14861_v47 = vpop.f32.mrf.mxu0  ;;  %v13682_v23 = vld [vmem:[#allocation9 + $0x1b8] sm:$0xff] }
  0xfc   : > { %v11896_v36 = vor.u32 %v13559_v53, %v11895_v37  ;;  %v975_v49 = vld [vmem:[#allocation2 + $0x68] sm:$0x1]  ;;  %1432 = vst [vmem:[#allocation4 + $0x244] sm:$0xf] %v1205_v21  ;;  %v597_v16 = vrot.slane %v595_v54, 7  ;;  %v390_v59 = vsel %vm14456_vm8, 0, %v389_v56  ;;  %5396 = vmatpush.bf16.msrb.mxu2 %v13682_v23 }
  0xfd   : > { %5034 = vmatmul.bf16.gmra.mxu3 %v12152_v34  ;;  %v1474_v42 = vld [vmem:[#allocation2 + $0x68] sm:$0x1]  ;;  %v1212_v32 = vshll.u32 %v975_v49, 16  ;;  %v1488_v12 = vld [vmem:[#allocation2 + $0xa0] sm:$0xf]  ;;  %v11570_v2 = vrot.slane %v1487_v58, 9 }
  0xfe   : > { %v1608_v57 = vrot.slane %v1474_v42, 5  ;;  %4910 = vmatmul.bf16.gmra.mxu0 %v11896_v36  ;;  %v600_v60 = vor.u32 %v598_v55, %v597_v16  ;;  %v829_v3 = vld [vmem:[#allocation2 + $0x6c] sm:$0xf]  ;;  %391 = vst [vmem:[#allocation2 + $0x74] sm:$0x1] %v390_v59  ;;  %v1640_v44 = vrot.slane %v1488_v12, 5 }
  0xff   : > { %v1214_v45 = vrot.slane %v1212_v32, 5  ;;  %v5054_v40 = vpop.f32.mrf.mxu2  ;;  %v830_v63 = vsel %vm14491_vm13, %v592_v17, %v829_v3  ;;  %v1489_v11 = vld [vmem:[#allocation2 + $0xa4] sm:$0x1]  ;;  %v13655_v13 = vld [vmem:[#allocation9 + $0xe0] sm:$0xff]  ;;  %v13660_v41 = vld [vmem:[#allocation9 + $0x108] sm:$0xff]  ;;  %v602_v27 = vrot.slane %v597_v16, 4 }
 0x100   : > { %v1609_v5 = vsel %vm14485_vm12, %v1607_v25, %v1608_v57  ;;  %v601_v7 = vsel %vm14470_vm11, %v593_v38, %v600_v60  ;;  %831 = vst [vmem:[#allocation2 + $0x6c] sm:$0xf] %v830_v63  ;;  %v14867_v0 = vadd.f32 %v5054_v40, %v4966_v31  ;;  %v1641_v33 = vsel %vm14485_vm12, %v11570_v2, %v1640_v44  ;;  %v11903_v24 = vld [vmem:[#allocation4 + $0x248] sm:$0xf]  ;;  %v13596_v26 = vld [vmem:[#allocation4 + $0x388] sm:$0xf0] }
 0x101   : > { %1708 = vst [vmem:[#allocation4 + $0x26c] sm:$0xf] %v1609_v5  ;;  %v1215_v4 = vsel %vm14518_vm14, %v1210_v50, %v1214_v45  ;;  %v1642_v18 = vrot.slane %v1640_v44, 4  ;;  %v1643_v52 = vrot.slane %v1489_v11, 5  ;;  %v12047_v25 = vld [vmem:[#allocation4 + $0x368] sm:$0xf]  ;;  %5224 = vmatpush.bf16.msrb.mxu0 %v13660_v41  ;;  %5132 = vmatpush.bf16.msrb.mxu3 %v13655_v13 }
 0x102   : > { %1433 = vst [vmem:[#allocation4 + $0x268] sm:$0xf] %v1215_v4  ;;  %v336_v9 = vld [vmem:[#allocation2 + $0x78] sm:$0x1]  ;;  %v14875_v29 = vpop.f32.mrf.mxu1  ;;  %v435_v37 = vld [vmem:[%s14410_s7 + $0x4c] sm:$0xf]  ;;  %v12048_v49 = vor.u32 %v13596_v26, %v12047_v25  ;;  %v14887_v4 = vpop.f32.mrf.mxu3 }
 0x103   : > { %832 = vst [vmem:[#allocation2 + $0x70] sm:$0xf] %v601_v7  ;;  %v1644_v28 = vsel %vm14485_vm12, %v1642_v18, %v1643_v52  ;;  %v337_v31 = vsel %vm14436_vm2, 0, %v336_v9  ;;  %v434_v15 = vld [vmem:[%s14410_s7 + $0x48] sm:$0xf]  ;;  %v612_v55 = vshrl.u32 %v435_v37, 16  ;;  %v4881_v5 = vpop.f32.mrf.mxu0 }
 0x104   : > { %1717 = vst [vmem:[#allocation4 + $0x3b0] sm:$0xf] %v1641_v33  ;;  %v13555_v34 = vld [vmem:[#allocation4 + $0x244] sm:$0xf]  ;;  %v604_v50 = vshrl.u32 %v434_v15, 16  ;;  %v607_v51 = vshll.u32 %v434_v15, 16  ;;  %v4882_v7 = vadd.f32 %v14792_v30, %v4881_v5 }
 0x105   : > { %1718 = vst [vmem:[#allocation4 + $0x3d4] sm:$0xf] %v1644_v28  ;;  %v833_v39 = vld [vmem:[#allocation2 + $0x74] sm:$0x1]  ;;  %v615_v56 = vshll.u32 %v435_v37, 16 }
 0x106   : > { %338 = vst [vmem:[#allocation2 + $0x78] sm:$0x1] %v337_v31  ;;  %v834_v21 = vsel %vm14436_vm2, %v602_v27, %v833_v39  ;;  %v14883_v54 = vrot.slane %v604_v50, 7  ;;  %v392_v58 = vld [vmem:[#allocation2 + $0x80] sm:$0x1] }
 0x107   : > { %v903_v42 = vld [vmem:[#allocation2 + $0x6c] sm:$0xf]  ;;  %835 = vst [vmem:[#allocation2 + $0x74] sm:$0x1] %v834_v21  ;;  %v14885_v32 = vpop.f32.mrf.mxu2  ;;  %v393_v26 = vsel %vm14456_vm8, 0, %v392_v58 }
 0x108   : > { %v13560_v53 = vld [vmem:[#allocation4 + $0x268] sm:$0xf0]  ;;  %v976_v17 = vld [vmem:[#allocation2 + $0x6c] sm:$0xf]  ;;  %935 = vst [vmem:[#allocation4 + $0x288] sm:$0xf] %v903_v42  ;;  %v609_v11 = vor.u32 %v607_v51, %v14883_v54 }
 0x109   : > { %v11904_v36 = vor.u32 %v13560_v53, %v11903_v24  ;;  %v11897_v57 = vld [vmem:[#allocation4 + $0x264] sm:$0xf0]  ;;  %v1217_v38 = vshrl.u32 %v976_v17, 16  ;;  %v1220_v16 = vshll.u32 %v976_v17, 16  ;;  %v1475_v45 = vld [vmem:[#allocation2 + $0x6c] sm:$0xe] }
 0x10a   : > { %v11900_v59 = vor.u32 %v13555_v34, %v11897_v57  ;;  %v904_v12 = vld [vmem:[#allocation2 + $0x70] sm:$0xf]  ;;  %v11566_v44 = vrot.slane %v1475_v45, 9  ;;  %v610_v13 = vrot.slane %v14883_v54, 4  ;;  %v14892_v24 = vrot.slane %v612_v55, 7  ;;  %v13654_v45 = vld [vmem:[#allocation9 + $0xd8] sm:$0xff] }
 0x10b   : > { %5088 = vmatmul.bf16.gmra.mxu2 %v11904_v36  ;;  %v977_v2 = vld [vmem:[#allocation2 + $0x70] sm:$0xf]  ;;  %936 = vst [vmem:[#allocation4 + $0x2ac] sm:$0xf] %v904_v12  ;;  %v1219_v60 = vrot.slane %v1217_v38, 4  ;;  %v1222_v3 = vrot.slane %v1220_v16, 5  ;;  %5133 = vmatpush.bf16.msrb.mxu3 %v13654_v45 }
 0x10c   : > { %v1226_v61 = vshll.u32 %v977_v2, 16  ;;  %v1230_v40 = vshrl.u32 %v977_v2, 16  ;;  %4999 = vmatmul.bf16.gmra.mxu1 %v11900_v59  ;;  %v1476_v63 = vld [vmem:[#allocation2 + $0x70] sm:$0xf]  ;;  %v1490_v27 = vld [vmem:[#allocation2 + $0xa8] sm:$0xe]  ;;  %v617_v21 = vor.u32 %v615_v56, %v14892_v24 }
 0x10d   : > { %5108 = vmatmul.bf16.vlgmr.msra.gmra.mxu3 %v12048_v49  ;;  %v1223_v41 = vor.u32 %v1222_v3, %v1219_v60  ;;  %v1612_v52 = vrot.slane %v1476_v63, 5  ;;  %v836_v25 = vld [vmem:[#allocation2 + $0x78] sm:$0xf]  ;;  %394 = vst [vmem:[#allocation2 + $0x80] sm:$0x1] %v393_v26  ;;  %v11571_v38 = vrot.slane %v1490_v27, 9  ;;  %v14911_v63 = vpop.f32.mrf.mxu0 }
 0x10e   : > { %v1228_v33 = vrot.slane %v1226_v61, 5  ;;  %v1232_v18 = vrot.slane %v1230_v40, 4  ;;  %v978_v9 = vld [vmem:[#allocation2 + $0x74] sm:$0x1]  ;;  %v837_v36 = vsel %vm14491_vm13, %v609_v11, %v836_v25  ;;  %v1491_v49 = vld [vmem:[#allocation2 + $0xac] sm:$0xf]  ;;  %v618_v59 = vsel %vm14470_vm11, %v610_v13, %v617_v21 }
 0x10f   : > { %v4970_v23 = vpop.f32.mrf.mxu1  ;;  %v1224_v28 = vrot.slane %v1223_v41, 4  ;;  %v1477_v15 = vld [vmem:[#allocation2 + $0x74] sm:$0x1]  ;;  %v1613_v34 = vsel %vm14485_vm12, %v11566_v44, %v1612_v52  ;;  %v1614_v37 = vrot.slane %v1612_v52, 4  ;;  %v11931_v50 = vld [vmem:[#allocation4 + $0x288] sm:$0xf] }
 0x110   : > { %v1233_v31 = vor.u32 %v1232_v18, %v1228_v33  ;;  %v1236_v39 = vshll.u32 %v978_v9, 16  ;;  %v1615_v51 = vrot.slane %v1477_v15, 5  ;;  %1709 = vst [vmem:[#allocation4 + $0x290] sm:$0xf] %v1613_v34  ;;  %v4971_v53 = vadd.f32 %v4970_v23, %v4882_v7  ;;  %v12083_v56 = vld [vmem:[#allocation4 + $0x3b0] sm:$0xf] }
 0x111   : > { %v1229_v54 = vsel %vm14518_vm14, %v1224_v28, %v1228_v33  ;;  %v1492_v12 = vld [vmem:[#allocation2 + $0xb0] sm:$0x1]  ;;  %v1647_v2 = vrot.slane %v1491_v49, 5  ;;  %v13605_v3 = vld [vmem:[#allocation4 + $0x3d0] sm:$0xf0]  ;;  %v13674_v40 = vld [vmem:[#allocation9 + $0x178] sm:$0xff]  ;;  %v14916_v33 = vpop.f32.mrf.mxu3 }
 0x112   : > { %v1234_v55 = vrot.slane %v1233_v31, 4  ;;  %v13568_v42 = vld [vmem:[#allocation4 + $0x2a8] sm:$0xf0]  ;;  %v1238_v17 = vrot.slane %v1236_v39, 5  ;;  %1434 = vst [vmem:[#allocation4 + $0x28c] sm:$0xf] %v1229_v54  ;;  %v1616_v57 = vsel %vm14485_vm12, %v1614_v37, %v1615_v51  ;;  %5307 = vmatpush.bf16.msrb.mxu1 %v13674_v40  ;;  %v12084_v9 = vor.u32 %v13605_v3, %v12083_v56 }
 0x113   : > { %v11932_v58 = vor.u32 %v13568_v42, %v11931_v50  ;;  %1710 = vst [vmem:[#allocation4 + $0x2b4] sm:$0xf] %v1616_v57  ;;  %v1650_v61 = vrot.slane %v1492_v12, 5  ;;  %v619_v44 = vrot.slane %v14892_v24, 4  ;;  %v1648_v7 = vsel %vm14485_vm12, %v11571_v38, %v1647_v2  ;;  %v13653_v13 = vld [vmem:[#allocation9 + $0xd0] sm:$0xff]  ;;  %v13680_v26 = vld [vmem:[#allocation9 + $0x1a8] sm:$0xff] }
 0x114   : > { %v5059_v16 = vpop.f32.mrf.mxu2  ;;  %v1239_v60 = vsel %vm14518_vm14, %v1234_v55, %v1238_v17  ;;  %838 = vst [vmem:[#allocation2 + $0x78] sm:$0xf] %v837_v36  ;;  %v1649_v11 = vrot.slane %v1647_v2, 4  ;;  %v13681_v41 = vld [vmem:[#allocation9 + $0x1b0] sm:$0xff]  ;;  %5134 = vmatpush.bf16.msrb.mxu3 %v13653_v13  ;;  %v13672_v50 = vld [vmem:[#allocation9 + $0x168] sm:$0xff]  ;;  %v13671_v42 = vld [vmem:[#allocation9 + $0x160] sm:$0xff] }
 0x115   : > { %v14907_v5 = vadd.f32 %v5059_v16, %v4971_v53  ;;  %4915 = vmatmul.bf16.gmra.mxu0 %v11932_v58  ;;  %1435 = vst [vmem:[#allocation4 + $0x2b0] sm:$0xf] %v1239_v60  ;;  %v13673_v18 = vld [vmem:[#allocation9 + $0x170] sm:$0xff]  ;;  %5397 = vmatpush.bf16.msrb.mxu2 %v13681_v41  ;;  %v4886_v2 = vpop.f32.mrf.mxu0 }
 0x116   : > { %839 = vst [vmem:[#allocation2 + $0x7c] sm:$0xf] %v618_v59  ;;  %v339_v52 = vld [vmem:[#allocation2 + $0x84] sm:$0x1]  ;;  %v1651_v25 = vsel %vm14485_vm12, %v1649_v11, %v1650_v61  ;;  %v840_v28 = vld [vmem:[#allocation2 + $0x80] sm:$0x1]  ;;  %5308 = vmatpush.bf16.msrb.mxu1 %v13673_v18  ;;  %v4887_v3 = vadd.f32 %v14792_v30, %v4886_v2 }
 0x117   : > { %v11939_v23 = vld [vmem:[#allocation4 + $0x290] sm:$0xf]  ;;  %1719 = vst [vmem:[#allocation4 + $0x3f8] sm:$0xf] %v1648_v7  ;;  %v14920_v24 = vpop.f32.mrf.mxu1  ;;  %v340_v27 = vsel %vm14436_vm2, 0, %v339_v52  ;;  %v841_v34 = vsel %vm14436_vm2, %v619_v44, %v840_v28 }
 0x118   : > { %1720 = vst [vmem:[#allocation4 + $0x41c] sm:$0xf] %v1651_v25  ;;  %v14925_v31 = vld [vmem:[%s14410_s7 + $0x50] sm:$0xf]  ;;  %v437_v41 = vld [vmem:[%s14410_s7 + $0x54] sm:$0xf] }
 0x119   : > { %v13564_v15 = vld [vmem:[#allocation4 + $0x28c] sm:$0xf]  ;;  %341 = vst [vmem:[#allocation2 + $0x84] sm:$0x1] %v340_v27  ;;  %v621_v39 = vshrl.u32 %v14925_v31, 16  ;;  %5398 = vmatpush.bf16.msrb.mxu2 %v13680_v26  ;;  %v624_v61 = vshll.u32 %v14925_v31, 16  ;;  %v14932_v11 = vpop.f32.mrf.mxu3 }
 0x11a   : > { %v13569_v37 = vld [vmem:[#allocation4 + $0x2b0] sm:$0xf0]  ;;  %842 = vst [vmem:[#allocation2 + $0x80] sm:$0x1] %v841_v34  ;;  %5309 = vmatpush.bf16.msrb.mxu1 %v13672_v50  ;;  %v395_v28 = vld [vmem:[#allocation2 + $0x8c] sm:$0x1] }
 0x11b   : > { %v11940_v51 = vor.u32 %v13569_v37, %v11939_v23  ;;  %v905_v53 = vld [vmem:[#allocation2 + $0x78] sm:$0xf] }
 0x11c   : > { %v979_v21 = vld [vmem:[#allocation2 + $0x78] sm:$0xf]  ;;  %v11933_v55 = vld [vmem:[#allocation4 + $0x2ac] sm:$0xf0]  ;;  %937 = vst [vmem:[#allocation4 + $0x2d0] sm:$0xf] %v905_v53  ;;  %v14934_v13 = vpop.f32.mrf.mxu2 }
 0x11d   : > { %v1478_v54 = vld [vmem:[#allocation2 + $0x78] sm:$0xe]  ;;  %5113 = vmatmul.bf16.gmra.mxu3 %v12084_v9  ;;  %v1241_v36 = vshrl.u32 %v979_v21, 16  ;;  %v1244_v49 = vshll.u32 %v979_v21, 16  ;;  %v11936_v17 = vor.u32 %v13564_v15, %v11933_v55  ;;  %5093 = vmatmul.bf16.gmra.mxu2 %v11940_v51  ;;  %v906_v57 = vld [vmem:[#allocation2 + $0x7c] sm:$0xf] }
 0x11e   : > { %v980_v38 = vld [vmem:[#allocation2 + $0x7c] sm:$0xf]  ;;  %938 = vst [vmem:[#allocation4 + $0x2f4] sm:$0xf] %v906_v57  ;;  %v11567_v45 = vrot.slane %v1478_v54, 9  ;;  %v623_v9 = vrot.slane %v621_v39, 7  ;;  %5310 = vmatpush.bf16.msrb.mxu1 %v13671_v42 }
 0x11f   : > { %v1479_v16 = vld [vmem:[#allocation2 + $0x7c] sm:$0xf]  ;;  %v1243_v58 = vrot.slane %v1241_v36, 4  ;;  %v1246_v56 = vrot.slane %v1244_v49, 5  ;;  %v1250_v59 = vshll.u32 %v980_v38, 16  ;;  %v1254_v12 = vshrl.u32 %v980_v38, 16  ;;  %5004 = vmatmul.bf16.gmra.mxu1 %v11936_v17 }
 0x120   : > { %v1619_v60 = vrot.slane %v1479_v16, 5  ;;  %v843_v18 = vld [vmem:[#allocation2 + $0x84] sm:$0xf]  ;;  %v12119_v51 = vld [vmem:[#allocation4 + $0x3f8] sm:$0xf]  ;;  %v626_v54 = vor.u32 %v624_v61, %v623_v9  ;;  %v627_v55 = vrot.slane %v623_v9, 4 }
 0x121   : > { %v1247_v40 = vor.u32 %v1246_v56, %v1243_v58  ;;  %v1252_v44 = vrot.slane %v1250_v59, 5  ;;  %v1256_v7 = vrot.slane %v1254_v12, 4  ;;  %v981_v52 = vld [vmem:[#allocation2 + $0x80] sm:$0x1]  ;;  %v13614_v53 = vld [vmem:[#allocation4 + $0x418] sm:$0xf0] }
 0x122   : > { %v1480_v23 = vld [vmem:[#allocation2 + $0x80] sm:$0x1]  ;;  %v1620_v25 = vsel %vm14485_vm12, %v11567_v45, %v1619_v60  ;;  %v1621_v26 = vrot.slane %v1619_v60, 4  ;;  %v1260_v34 = vshll.u32 %v981_v52, 16  ;;  %v629_v36 = vshrl.u32 %v437_v41, 16 }
 0x123   : > { %v4975_v27 = vpop.f32.mrf.mxu1  ;;  %v1248_v15 = vrot.slane %v1247_v40, 4  ;;  %v1257_v31 = vor.u32 %v1256_v7, %v1252_v44  ;;  %v1622_v37 = vrot.slane %v1480_v23, 5  ;;  %1711 = vst [vmem:[#allocation4 + $0x2d8] sm:$0xf] %v1620_v25  ;;  %v11967_v50 = vld [vmem:[#allocation4 + $0x2d0] sm:$0xf]  ;;  %v844_v12 = vsel %vm14491_vm13, %v626_v54, %v843_v18  ;;  %v14964_v54 = vpop.f32.mrf.mxu0 }
 0x124   : > { %v4976_v21 = vadd.f32 %v4975_v27, %v4887_v3  ;;  %v1493_v49 = vld [vmem:[#allocation2 + $0xb4] sm:$0xe]  ;;  %v1262_v39 = vrot.slane %v1260_v34, 5  ;;  %v1494_v16 = vld [vmem:[#allocation2 + $0xb8] sm:$0xf]  ;;  %v14943_v42 = vrot.slane %v629_v36, 7 }
 0x125   : > { %v1253_v17 = vsel %vm14518_vm14, %v1248_v15, %v1252_v44  ;;  %v1258_v57 = vrot.slane %v1257_v31, 4  ;;  %v1623_v38 = vsel %vm14485_vm12, %v1621_v26, %v1622_v37  ;;  %v1495_v58 = vld [vmem:[#allocation2 + $0xbc] sm:$0x1]  ;;  %v13577_v56 = vld [vmem:[#allocation4 + $0x2f0] sm:$0xf0]  ;;  %v632_v59 = vshll.u32 %v437_v41, 16  ;;  %v14958_v31 = vpop.f32.mrf.mxu3 }
 0x126   : > { %1436 = vst [vmem:[#allocation4 + $0x2d4] sm:$0xf] %v1253_v17  ;;  %v11968_v2 = vor.u32 %v13577_v56, %v11967_v50  ;;  %v396_v60 = vsel %vm14456_vm8, 0, %v395_v28  ;;  %v11572_v3 = vrot.slane %v1493_v49, 9  ;;  %v1787_v61 = vld [vmem:[#allocation2 + $0xc] sm:$0xf]  ;;  %v12120_v41 = vor.u32 %v13614_v53, %v12119_v51 }
 0x127   : > { %v1263_v45 = vsel %vm14518_vm14, %v1258_v57, %v1262_v39  ;;  %1712 = vst [vmem:[#allocation4 + $0x2fc] sm:$0xf] %v1623_v38  ;;  %v634_v40 = vor.u32 %v632_v59, %v14943_v42  ;;  %v1654_v44 = vrot.slane %v1494_v16, 5  ;;  %v1657_v7 = vrot.slane %v1495_v58, 5  ;;  %v13670_v26 = vld [vmem:[#allocation9 + $0x158] sm:$0xff]  ;;  %v13652_v28 = vld [vmem:[#allocation9 + $0xc8] sm:$0xff] }
 0x128   : > { %1437 = vst [vmem:[#allocation4 + $0x2f8] sm:$0xf] %v1263_v45  ;;  %4920 = vmatmul.bf16.gmra.mxu0 %v11968_v2  ;;  %v1836_v52 = vshrl.u32 %v1787_v61, 16  ;;  %v14956_v27 = vld [vmem:[#allocation2 + $0x10] sm:$0xf]  ;;  %v1839_v9 = vshll.u32 %v1787_v61, 16  ;;  %v5064_v34 = vpop.f32.mrf.mxu2  ;;  %5311 = vmatpush.bf16.msrb.mxu1 %v13670_v26 }
 0x129   : > { %845 = vst [vmem:[#allocation2 + $0x84] sm:$0xf] %v844_v12  ;;  %v635_v18 = vsel %vm14470_vm11, %v627_v55, %v634_v40  ;;  %v1655_v23 = vsel %vm14485_vm12, %v11572_v3, %v1654_v44  ;;  %v1656_v25 = vrot.slane %v1654_v44, 4  ;;  %v13659_v15 = vld [vmem:[#allocation9 + $0x100] sm:$0xff]  ;;  %v14962_v53 = vadd.f32 %v5064_v34, %v4976_v21  ;;  %v13669_v36 = vld [vmem:[#allocation9 + $0x150] sm:$0xff]  ;;  %5135 = vmatpush.bf16.msrb.mxu3 %v13652_v28  ;;  %v13678_v39 = vld [vmem:[#allocation9 + $0x198] sm:$0xff] }
 0x12a   : > { %397 = vst [vmem:[#allocation2 + $0x8c] sm:$0x1] %v396_v60  ;;  %v13679_v37 = vld [vmem:[#allocation9 + $0x1a0] sm:$0xff]  ;;  %v11975_v50 = vld [vmem:[#allocation4 + $0x2d8] sm:$0xf]  ;;  %5225 = vmatpush.bf16.msrb.mxu0 %v13659_v15  ;;  %v636_v57 = vrot.slane %v14943_v42, 4 }
 0x12b   : > { %846 = vst [vmem:[#allocation2 + $0x88] sm:$0xf] %v635_v18  ;;  %v1658_v51 = vsel %vm14485_vm12, %v1656_v25, %v1657_v7  ;;  %v14966_v55 = vpop.f32.mrf.mxu1  ;;  %5399 = vmatpush.bf16.msrb.mxu2 %v13679_v37  ;;  %v1838_v38 = vrot.slane %v1836_v52, 4  ;;  %v1841_v16 = vrot.slane %v1839_v9, 5  ;;  %v13651_v56 = vld [vmem:[#allocation9 + $0xc0] sm:$0xff]  ;;  %v13668_v59 = vld [vmem:[#allocation9 + $0x148] sm:$0xff] }
 0x12c   : > { %1721 = vst [vmem:[#allocation4 + $0x440] sm:$0xf] %v1655_v23  ;;  %v1845_v12 = vshll.u32 %v14956_v27, 16  ;;  %v1849_v2 = vshrl.u32 %v14956_v27, 16  ;;  %5312 = vmatpush.bf16.msrb.mxu1 %v13669_v36  ;;  %v13677_v40 = vld [vmem:[#allocation9 + $0x190] sm:$0xff]  ;;  %v13667_v27 = vld [vmem:[#allocation9 + $0x140] sm:$0xff] }
 0x12d   : > { %v13573_v49 = vld [vmem:[#allocation4 + $0x2d4] sm:$0xf]  ;;  %5118 = vmatmul.bf16.gmra.mxu3 %v12120_v41  ;;  %1722 = vst [vmem:[#allocation4 + $0x464] sm:$0xf] %v1658_v51  ;;  %v1723_v42 = vld [vmem:[#allocation2 + $0xc] sm:$0xf]  ;;  %v1842_v9 = vor.u32 %v1841_v16, %v1838_v38 }
 0x12e   : > { %v13578_v17 = vld [vmem:[#allocation4 + $0x2f8] sm:$0xf0]  ;;  %v1724_v52 = vld [vmem:[#allocation2 + $0x10] sm:$0xf]  ;;  %5136 = vmatpush.bf16.msrb.mxu3 %v13651_v56  ;;  %1755 = vst [vmem:[#allocation4 + $0xc] sm:$0xf] %v1723_v42 }
 0x12f   : > { %v11969_v58 = vld [vmem:[#allocation4 + $0x2f4] sm:$0xf0]  ;;  %v11976_v21 = vor.u32 %v13578_v17, %v11975_v50  ;;  %5400 = vmatpush.bf16.msrb.mxu2 %v13678_v39  ;;  %v14973_v50 = vpop.f32.mrf.mxu3  ;;  %1756 = vst [vmem:[#allocation4 + $0x30] sm:$0xf] %v1724_v52 }
 0x130   : > { %v11972_v45 = vor.u32 %v13573_v49, %v11969_v58  ;;  %v907_v60 = vld [vmem:[#allocation2 + $0x84] sm:$0xf]  ;;  %v14975_v51 = vpop.f32.mrf.mxu2  ;;  %5313 = vmatpush.bf16.msrb.mxu1 %v13668_v59  ;;  %v13676_v58 = vld [vmem:[#allocation9 + $0x188] sm:$0xff] }
 0x131   : > { %v982_v3 = vld [vmem:[#allocation2 + $0x84] sm:$0xf]  ;;  %5098 = vmatmul.bf16.gmra.mxu2 %v11976_v21  ;;  %939 = vst [vmem:[#allocation4 + $0x318] sm:$0xf] %v907_v60  ;;  %v847_v44 = vld [vmem:[#allocation2 + $0x8c] sm:$0x1] }
 0x132   : > { %v1481_v61 = vld [vmem:[#allocation2 + $0x84] sm:$0xe]  ;;  %v1265_v7 = vshrl.u32 %v982_v3, 16  ;;  %v1268_v41 = vshll.u32 %v982_v3, 16  ;;  %5009 = vmatmul.bf16.gmra.mxu1 %v11972_v45  ;;  %v908_v18 = vld [vmem:[#allocation2 + $0x88] sm:$0xf]  ;;  %v848_v23 = vsel %vm14436_vm2, %v636_v57, %v847_v44  ;;  %v4891_v57 = vpop.f32.mrf.mxu0 }
 0x133   : > { %v983_v25 = vld [vmem:[#allocation2 + $0x88] sm:$0xf]  ;;  %940 = vst [vmem:[#allocation4 + $0x33c] sm:$0xf] %v908_v18  ;;  %v11568_v36 = vrot.slane %v1481_v61, 9  ;;  %v4892_v45 = vadd.f32 %v14792_v30, %v4891_v57  ;;  %5401 = vmatpush.bf16.msrb.mxu2 %v13677_v40  ;;  %v4980_v3 = vpop.f32.mrf.mxu1  ;;  %v1843_v44 = vrot.slane %v1842_v9, 4 }
 0x134   : > { %v1482_v26 = vld [vmem:[#allocation2 + $0x88] sm:$0xf]  ;;  %v1267_v28 = vrot.slane %v1265_v7, 4  ;;  %v1270_v15 = vrot.slane %v1268_v41, 5  ;;  %v1274_v34 = vshll.u32 %v983_v25, 16  ;;  %v1278_v37 = vshrl.u32 %v983_v25, 16  ;;  %5314 = vmatpush.bf16.msrb.mxu1 %v13667_v27 }
 0x135   : > { %849 = vst [vmem:[#allocation2 + $0x8c] sm:$0x1] %v848_v23  ;;  %v1626_v49 = vrot.slane %v1482_v26, 5  ;;  %v12155_v17 = vld [vmem:[#allocation4 + $0x440] sm:$0xf]  ;;  %v4981_v41 = vadd.f32 %v4980_v3, %v4892_v45  ;;  %v1847_v18 = vrot.slane %v1845_v12, 5 }
 0x136   : > { %v1271_v39 = vor.u32 %v1270_v15, %v1267_v28  ;;  %v1276_v21 = vrot.slane %v1274_v34, 5  ;;  %v1280_v38 = vrot.slane %v1278_v37, 4  ;;  %v13623_v16 = vld [vmem:[#allocation4 + $0x460] sm:$0xf0]  ;;  %v2283_v23 = vld [vmem:[#allocation2 + $0xc] sm:$0xe] }
 0x137   : > { %v1627_v56 = vsel %vm14485_vm12, %v11568_v36, %v1626_v49  ;;  %v1628_v60 = vrot.slane %v1626_v49, 4  ;;  %v1789_v61 = vld [vmem:[#allocation2 + $0x14] sm:$0x1]  ;;  %v12156_v26 = vor.u32 %v13623_v16, %v12155_v17  ;;  %v1851_v30 = vrot.slane %v1849_v2, 4  ;;  %v2284_v28 = vld [vmem:[#allocation2 + $0x10] sm:$0xf]  ;;  %5402 = vmatpush.bf16.msrb.mxu2 %v13676_v58 }
 0x138   : > { %v1272_v7 = vrot.slane %v1271_v39, 4  ;;  %v1281_v59 = vor.u32 %v1280_v38, %v1276_v21  ;;  %1713 = vst [vmem:[#allocation4 + $0x320] sm:$0xf] %v1627_v56  ;;  %v12003_v25 = vld [vmem:[#allocation4 + $0x318] sm:$0xf]  ;;  %v1855_v42 = vshll.u32 %v1789_v61, 16  ;;  %v1848_v52 = vsel %vm14518_vm14, %v1843_v44, %v1847_v18  ;;  %v5069_v3 = vpop.f32.mrf.mxu2 }
 0x139   : > { %v2285_v9 = vld [vmem:[#allocation2 + $0x14] sm:$0x1]  ;;  %v11573_v34 = vrot.slane %v2283_v23, 9  ;;  %v1852_v12 = vor.u32 %v1851_v30, %v1847_v18  ;;  %v2381_v49 = vrot.slane %v2284_v28, 5  ;;  %v14987_v2 = vld [vmem:[%s16983_s4] ss:$0 sm:$0xff] }
 0x13a   : > { %v1277_v15 = vsel %vm14518_vm14, %v1272_v7, %v1276_v21  ;;  %v1282_v40 = vrot.slane %v1281_v59, 4  ;;  %v13586_v37 = vld [vmem:[#allocation4 + $0x338] sm:$0xf0]  ;;  %v1857_v36 = vrot.slane %v1855_v42, 5  ;;  %v4932_v27 = vadd.f32 %v14987_v2, %v14824_v14  ;;  %2251 = vst [vmem:[#allocation4 + $0x10] sm:$0xf] %v1848_v52  ;;  %v5020_v21 = vpop.f32.mrf.mxu3  ;;  %v14993_v61 = vpop.f32.mrf.mxu0 }
 0x13b   : > { %1438 = vst [vmem:[#allocation4 + $0x31c] sm:$0xf] %v1277_v15  ;;  %v12004_v17 = vor.u32 %v13586_v37, %v12003_v25  ;;  %v1853_v45 = vrot.slane %v1852_v12, 4  ;;  %v2382_v58 = vsel %vm14485_vm12, %v11573_v34, %v2381_v49  ;;  %v13690_v56 = vld [vmem:[#allocation9 + $0x1f8] sm:$0xff]  ;;  %v2383_v44 = vrot.slane %v2381_v49, 4  ;;  %v13675_v30 = vld [vmem:[#allocation9 + $0x180] sm:$0xff] }
 0x13c   : > { %v984_v57 = vld [vmem:[#allocation2 + $0x8c] sm:$0x1]  ;;  %v2384_v7 = vrot.slane %v2285_v9, 5  ;;  %2523 = vst [vmem:[#allocation4 + $0x14] sm:$0xf] %v2382_v58  ;;  %v14995_v14 = vadd.f32 %v5020_v21, %v4932_v27  ;;  %v14997_v59 = vadd.f32 %v5069_v3, %v4981_v41  ;;  %5485 = vmatpush.bf16.msra.mxu3 %v13690_v56  ;;  %5403 = vmatpush.bf16.msrb.mxu2 %v13675_v30 }
 0x13d   : > { %v1483_v39 = vld [vmem:[#allocation2 + $0x8c] sm:$0x1]  ;;  %v1284_v38 = vshll.u32 %v984_v57, 16  ;;  %4925 = vmatmul.bf16.gmra.mxu0 %v12004_v17  ;;  %5123 = vmatmul.bf16.gmra.mxu3 %v12156_v26  ;;  %v1858_v25 = vsel %vm14518_vm14, %v1853_v45, %v1857_v36  ;;  %v2556_v42 = vld [vmem:[#allocation2 + $0x18] sm:$0xf] }
 0x13e   : > { %v1629_v16 = vrot.slane %v1483_v39, 5  ;;  %v2385_v26 = vsel %vm14485_vm12, %v2383_v44, %v2384_v7  ;;  %v13698_v28 = vld [vmem:[#allocation9 + $0x238] sm:$0xff]  ;;  %2252 = vst [vmem:[#allocation4 + $0x34] sm:$0xf] %v1858_v25  ;;  %v2557_v41 = vld [vmem:[#allocation2 + $0x1c] sm:$0xf] }
 0x13f   : > { %v1286_v18 = vrot.slane %v1284_v38, 5  ;;  %v1790_v52 = vld [vmem:[#allocation2 + $0x18] sm:$0xf]  ;;  %5574 = vmatpush.bf16.msra.mxu0 %v13698_v28  ;;  %v1791_v9 = vld [vmem:[#allocation2 + $0x1c] sm:$0xf]  ;;  %v15007_v38 = vpop.f32.mrf.mxu1 }
 0x140   : > { %v1630_v23 = vsel %vm14485_vm12, %v1628_v60, %v1629_v16  ;;  %v1725_v60 = vld [vmem:[#allocation2 + $0x18] sm:$0xf]  ;;  %v12011_v34 = vld [vmem:[#allocation4 + $0x320] sm:$0xf]  ;;  %2524 = vst [vmem:[#allocation4 + $0x38] sm:$0xf] %v2385_v26 }
 0x141   : > { %1714 = vst [vmem:[#allocation4 + $0x344] sm:$0xf] %v1630_v23  ;;  %v1287_v15 = vsel %vm14518_vm14, %v1282_v40, %v1286_v18  ;;  %v1726_v37 = vld [vmem:[#allocation2 + $0x1c] sm:$0xf]  ;;  %v1792_v12 = vld [vmem:[#allocation2 + $0x20] sm:$0x1] }
 0x142   : > { %1439 = vst [vmem:[#allocation4 + $0x340] sm:$0xf] %v1287_v15  ;;  %v13484_v36 = vld [vmem:[#allocation4 + $0xc] sm:$0xf]  ;;  %v11617_v49 = vld [vmem:[#allocation4 + $0x2c] sm:$0xf0]  ;;  %v4896_v16 = vpop.f32.mrf.mxu0 }
 0x143   : > { %2588 = vst [vmem:[#allocation4 + $0x18] sm:$0xf] %v2556_v42  ;;  %v1860_v27 = vshrl.u32 %v1790_v52, 16  ;;  %v1863_v17 = vshll.u32 %v1790_v52, 16  ;;  %v1869_v57 = vshll.u32 %v1791_v9, 16  ;;  %v1873_v39 = vshrl.u32 %v1791_v9, 16  ;;  %v15009_v52 = vpop.f32.mrf.mxu2 }
 0x144   : > { %v13582_v40 = vld [vmem:[#allocation4 + $0x31c] sm:$0xf]  ;;  %v11623_v21 = vld [vmem:[#allocation4 + $0x10] sm:$0xf]  ;;  %2589 = vst [vmem:[#allocation4 + $0x3c] sm:$0xf] %v2557_v41  ;;  %v11620_v15 = vor.u32 %v13484_v36, %v11617_v49  ;;  %v4897_v36 = vadd.f32 %v14987_v2, %v4896_v16 }
 0x145   : > { %v1879_v45 = vshll.u32 %v1792_v12, 16  ;;  %1757 = vst [vmem:[#allocation4 + $0x54] sm:$0xf] %v1725_v60  ;;  %v1862_v58 = vrot.slane %v1860_v27, 4  ;;  %v1865_v56 = vrot.slane %v1863_v17, 5  ;;  %v1871_v3 = vrot.slane %v1869_v57, 5 }
 0x146   : > { %1758 = vst [vmem:[#allocation4 + $0x78] sm:$0xf] %v1726_v37  ;;  %v1875_v7 = vrot.slane %v1873_v39, 4  ;;  %v13489_v25 = vld [vmem:[#allocation4 + $0x30] sm:$0xf0] }
 0x147   : > { %v1881_v18 = vrot.slane %v1879_v45, 5  ;;  %v1866_v30 = vor.u32 %v1865_v56, %v1862_v58  ;;  %v2286_v26 = vld [vmem:[#allocation2 + $0x18] sm:$0xe]  ;;  %v2287_v42 = vld [vmem:[#allocation2 + $0x1c] sm:$0xf]  ;;  %v11624_v17 = vor.u32 %v13489_v25, %v11623_v21  ;;  %v15013_v58 = vpop.f32.mrf.mxu3 }
 0x148   : > { %v13587_v44 = vld [vmem:[#allocation4 + $0x340] sm:$0xf0]  ;;  %v1876_v41 = vor.u32 %v1875_v7, %v1871_v3  ;;  %v2288_v9 = vld [vmem:[#allocation2 + $0x20] sm:$0x1]  ;;  %v11574_v12 = vrot.slane %v2286_v26, 9  ;;  %v2388_v60 = vrot.slane %v2287_v42, 5 }
 0x149   : > { %v12012_v23 = vor.u32 %v13587_v44, %v12011_v34  ;;  %v12005_v28 = vld [vmem:[#allocation4 + $0x33c] sm:$0xf0]  ;;  %v1867_v57 = vrot.slane %v1866_v30, 4  ;;  %v2391_v37 = vrot.slane %v2288_v9, 5  ;;  %17011 = vst [vmem:[#allocation22_spill] sm:$0xff] %v15013_v58 }
 0x14a   : > { %v12008_v27 = vor.u32 %v13582_v40, %v12005_v28  ;;  %v1877_v39 = vrot.slane %v1876_v41, 4  ;;  %v2389_v34 = vsel %vm14485_vm12, %v11574_v12, %v2388_v60  ;;  %v2390_v45 = vrot.slane %v2388_v60, 4  ;;  %v2558_v56 = vld [vmem:[#allocation2 + $0x24] sm:$0xf]  ;;  %v2559_v44 = vld [vmem:[#allocation2 + $0x28] sm:$0xf] }
 0x14b   : > { %5103 = vmatmul.bf16.gmra.mxu2 %v12012_v23  ;;  %v1872_v49 = vsel %vm14518_vm14, %v1867_v57, %v1871_v3  ;;  %2525 = vst [vmem:[#allocation4 + $0x5c] sm:$0xf] %v2389_v34  ;;  %v1727_v7 = vld [vmem:[#allocation2 + $0x24] sm:$0xf]  ;;  %v15022_v23 = vpop.f32.mrf.mxu0  ;;  %v1728_v16 = vld [vmem:[#allocation2 + $0x28] sm:$0xf] }
 0x14c   : > { %5014 = vmatmul.bf16.gmra.mxu1 %v12008_v27  ;;  %v1882_v40 = vsel %vm14518_vm14, %v1877_v39, %v1881_v18  ;;  %2253 = vst [vmem:[#allocation4 + $0x58] sm:$0xf] %v1872_v49  ;;  %v2392_v21 = vsel %vm14485_vm12, %v2390_v45, %v2391_v37  ;;  %v1793_v25 = vld [vmem:[#allocation2 + $0x24] sm:$0xf]  ;;  %v1794_v3 = vld [vmem:[#allocation2 + $0x28] sm:$0xf] }
 0x14d   : > { %5137 = vmatmul.bf16.vlgmr.msrb.gmra.mxu3 %v11620_v15  ;;  %5226 = vmatmul.bf16.vlgmr.msrb.gmra.mxu0 %v11624_v17  ;;  %2254 = vst [vmem:[#allocation4 + $0x7c] sm:$0xf] %v1882_v40  ;;  %v1795_v26 = vld [vmem:[#allocation2 + $0x2c] sm:$0x1]  ;;  %v1884_v18 = vshrl.u32 %v1793_v25, 16  ;;  %v1887_v28 = vshll.u32 %v1793_v25, 16 }
 0x14e   : > { %v4985_v30 = vpop.f32.mrf.mxu1  ;;  %2526 = vst [vmem:[#allocation4 + $0x80] sm:$0xf] %v2392_v21  ;;  %v1893_v41 = vshll.u32 %v1794_v3, 16  ;;  %v11631_v9 = vld [vmem:[#allocation4 + $0x18] sm:$0xf]  ;;  %v1897_v12 = vshrl.u32 %v1794_v3, 16 }
 0x14f   : > { %v4986_v42 = vadd.f32 %v4985_v30, %v4897_v36  ;;  %2590 = vst [vmem:[#allocation4 + $0x60] sm:$0xf] %v2558_v56  ;;  %v1903_v60 = vshll.u32 %v1795_v26, 16  ;;  %v2289_v15 = vld [vmem:[#allocation2 + $0x24] sm:$0xe]  ;;  %v1886_v27 = vrot.slane %v1884_v18, 4 }
 0x150   : > { %2591 = vst [vmem:[#allocation4 + $0x84] sm:$0xf] %v2559_v44  ;;  %v1889_v17 = vrot.slane %v1887_v28, 5  ;;  %v1895_v57 = vrot.slane %v1893_v41, 5  ;;  %v13490_v37 = vld [vmem:[#allocation4 + $0x38] sm:$0xf0]  ;;  %v4937_v44 = vadd.f32 %v14987_v2, %v14871_v20 }
 0x151   : > { %1759 = vst [vmem:[#allocation4 + $0x9c] sm:$0xf] %v1727_v7  ;;  %v1899_v34 = vrot.slane %v1897_v12, 4  ;;  %v11575_v45 = vrot.slane %v2289_v15, 9  ;;  %v13485_v49 = vld [vmem:[#allocation4 + $0x14] sm:$0xf]  ;;  %v11632_v26 = vor.u32 %v13490_v37, %v11631_v9 }
 0x152   : > { %1760 = vst [vmem:[#allocation4 + $0xc0] sm:$0xf] %v1728_v16  ;;  %v1890_v56 = vor.u32 %v1889_v17, %v1886_v27  ;;  %v2290_v40 = vld [vmem:[#allocation2 + $0x28] sm:$0xf]  ;;  %v2291_v21 = vld [vmem:[#allocation2 + $0x2c] sm:$0x1] }
 0x153   : > { %v5074_v39 = vpop.f32.mrf.mxu2  ;;  %v11625_v25 = vld [vmem:[#allocation4 + $0x34] sm:$0xf0]  ;;  %v1900_v30 = vor.u32 %v1899_v34, %v1895_v57  ;;  %v1905_v7 = vrot.slane %v1903_v60, 5  ;;  %v2395_v3 = vrot.slane %v2290_v40, 5  ;;  %v13493_v18 = vld [vmem:[#allocation4 + $0x54] sm:$0xf]  ;;  %v4901_v34 = vpop.f32.mrf.mxu0 }
 0x154   : > { %v15024_v36 = vadd.f32 %v5074_v39, %v4986_v42  ;;  %v11653_v28 = vld [vmem:[#allocation4 + $0x74] sm:$0xf0]  ;;  %v1891_v16 = vrot.slane %v1890_v56, 4  ;;  %v2398_v12 = vrot.slane %v2291_v21, 5  ;;  %v13498_v58 = vld [vmem:[#allocation4 + $0x78] sm:$0xf0]  ;;  %v11628_v39 = vor.u32 %v13485_v49, %v11625_v25 }
 0x155   : > { %v11659_v15 = vld [vmem:[#allocation4 + $0x58] sm:$0xf]  ;;  %v1901_v17 = vrot.slane %v1900_v30, 4  ;;  %v2396_v20 = vsel %vm14485_vm12, %v11575_v45, %v2395_v3  ;;  %v2397_v60 = vrot.slane %v2395_v3, 4  ;;  %v2560_v56 = vld [vmem:[#allocation2 + $0x30] sm:$0xf]  ;;  %v11656_v40 = vor.u32 %v13493_v18, %v11653_v28 }
 0x156   : > { %17012 = vst [vmem:[#allocation23_spill] sm:$0xff] %v15024_v36  ;;  %v5025_v41 = vpop.f32.mrf.mxu3  ;;  %v15030_v27 = vpop.f32.mrf.mxu1  ;;  %v1896_v9 = vsel %vm14518_vm14, %v1891_v16, %v1895_v57  ;;  %v11660_v21 = vor.u32 %v13498_v58, %v11659_v15  ;;  %v2561_v45 = vld [vmem:[#allocation2 + $0x34] sm:$0xf]  ;;  %v1796_v49 = vld [vmem:[#allocation2 + $0x30] sm:$0xf] }
 0x157   : > { %v15028_v42 = vadd.f32 %v5025_v41, %v4937_v44  ;;  %17013 = vst [vmem:[#allocation24_spill] sm:$0xff] %v15030_v27  ;;  %v1906_v37 = vsel %vm14518_vm14, %v1901_v17, %v1905_v7  ;;  %v2399_v44 = vsel %vm14485_vm12, %v2397_v60, %v2398_v12  ;;  %v1797_v57 = vld [vmem:[#allocation2 + $0x34] sm:$0xf]  ;;  %v1908_v30 = vshrl.u32 %v1796_v49, 16  ;;  %v13689_v41 = vld [vmem:[#allocation9 + $0x1f0] sm:$0xff] }
 0x158   : > { %2527 = vst [vmem:[#allocation4 + $0xa4] sm:$0xf] %v2396_v20  ;;  %v1911_v3 = vshll.u32 %v1796_v49, 16  ;;  %v13697_v7 = vld [vmem:[#allocation9 + $0x230] sm:$0xff]  ;;  %v1729_v16 = vld [vmem:[#allocation2 + $0x30] sm:$0xf]  ;;  %5486 = vmatpush.bf16.msra.mxu3 %v13689_v41 }
 0x159   : > { %2255 = vst [vmem:[#allocation4 + $0xa0] sm:$0xf] %v1896_v9  ;;  %v1730_v58 = vld [vmem:[#allocation2 + $0x34] sm:$0xf]  ;;  %v1798_v18 = vld [vmem:[#allocation2 + $0x38] sm:$0x1]  ;;  %5575 = vmatpush.bf16.msra.mxu0 %v13697_v7 }
 0x15a   : > { %2256 = vst [vmem:[#allocation4 + $0xc4] sm:$0xf] %v1906_v37  ;;  %v1910_v12 = vrot.slane %v1908_v30, 4  ;;  %v1913_v15 = vrot.slane %v1911_v3, 5  ;;  %v1917_v17 = vshll.u32 %v1797_v57, 16  ;;  %v1921_v20 = vshrl.u32 %v1797_v57, 16 }
 0x15b   : > { %5404 = vmatmul.bf16.vlgmr.msrb.gmra.mxu2 %v11632_v26  ;;  %v15040_v25 = vpop.f32.mrf.mxu2  ;;  %2528 = vst [vmem:[#allocation4 + $0xc8] sm:$0xf] %v2399_v44  ;;  %v4902_v26 = vadd.f32 %v14987_v2, %v4901_v34  ;;  %v2292_v34 = vld [vmem:[#allocation2 + $0x30] sm:$0xe]  ;;  %v2294_v49 = vld [vmem:[#allocation2 + $0x38] sm:$0x1] }
 0x15c   : > { %17014 = vst [vmem:[#allocation25_spill] sm:$0xff] %v15040_v25  ;;  %5315 = vmatmul.bf16.vlgmr.msrb.gmra.mxu1 %v11628_v39  ;;  %v1927_v39 = vshll.u32 %v1798_v18, 16  ;;  %v1914_v60 = vor.u32 %v1913_v15, %v1910_v12  ;;  %v1919_v37 = vrot.slane %v1917_v17, 5  ;;  %v1923_v44 = vrot.slane %v1921_v20, 4  ;;  %v11667_v30 = vld [vmem:[#allocation4 + $0x60] sm:$0xf] }
 0x15d   : > { %2592 = vst [vmem:[#allocation4 + $0xa8] sm:$0xf] %v2560_v56  ;;  %5142 = vmatmul.bf16.gmra.mxu3 %v11656_v40  ;;  %5231 = vmatmul.bf16.gmra.mxu0 %v11660_v21  ;;  %v15045_v40 = vpop.f32.mrf.mxu0  ;;  %v13499_v3 = vld [vmem:[#allocation4 + $0x80] sm:$0xf0]  ;;  %v11661_v57 = vld [vmem:[#allocation4 + $0x7c] sm:$0xf0] }
 0x15e   : > { %2593 = vst [vmem:[#allocation4 + $0xcc] sm:$0xf] %v2561_v45  ;;  %v15043_v28 = vpop.f32.mrf.mxu3  ;;  %v2293_v45 = vld [vmem:[#allocation2 + $0x34] sm:$0xf]  ;;  %v1915_v21 = vrot.slane %v1914_v60, 4  ;;  %v1924_v6 = vor.u32 %v1923_v44, %v1919_v37  ;;  %v1929_v41 = vrot.slane %v1927_v39, 5 }
 0x15f   : > { %1761 = vst [vmem:[#allocation4 + $0xe4] sm:$0xf] %v1729_v16  ;;  %v4990_v9 = vpop.f32.mrf.mxu1  ;;  %v11576_v16 = vrot.slane %v2292_v34, 9  ;;  %v2402_v7 = vrot.slane %v2293_v45, 5  ;;  %v2405_v15 = vrot.slane %v2294_v49, 5  ;;  %v11668_v34 = vor.u32 %v13499_v3, %v11667_v30  ;;  %v13696_v25 = vld [vmem:[#allocation9 + $0x228] sm:$0xff] }
 0x160   : > { %1762 = vst [vmem:[#allocation4 + $0x108] sm:$0xf] %v1730_v58  ;;  %v4991_v56 = vadd.f32 %v4990_v9, %v4902_v26  ;;  %v13494_v58 = vld [vmem:[#allocation4 + $0x5c] sm:$0xf]  ;;  %v1920_v12 = vsel %vm14518_vm14, %v1915_v21, %v1919_v37  ;;  %v11689_v17 = vld [vmem:[#allocation4 + $0xbc] sm:$0xf0]  ;;  %v4942_v45 = vadd.f32 %v14987_v2, %v14916_v33  ;;  %5576 = vmatpush.bf16.msra.mxu0 %v13696_v25 }
 0x161   : > { %17015 = vst [vmem:[#allocation26_spill] sm:$0xff] %v15045_v40  ;;  %v13502_v26 = vld [vmem:[#allocation4 + $0x9c] sm:$0xf]  ;;  %v1925_v9 = vrot.slane %v1924_v6, 4  ;;  %v2403_v60 = vsel %vm14485_vm12, %v11576_v16, %v2402_v7  ;;  %v11695_v44 = vld [vmem:[#allocation4 + $0xa0] sm:$0xf] }
 0x162   : > { %2257 = vst [vmem:[#allocation4 + $0xe8] sm:$0xf] %v1920_v12  ;;  %v2404_v39 = vrot.slane %v2402_v7, 4  ;;  %v13507_v40 = vld [vmem:[#allocation4 + $0xc0] sm:$0xf0]  ;;  %v11692_v33 = vor.u32 %v13502_v26, %v11689_v17 }
 0x163   : > { %2529 = vst [vmem:[#allocation4 + $0xec] sm:$0xf] %v2403_v60  ;;  %v1930_v37 = vsel %vm14518_vm14, %v1925_v9, %v1929_v41  ;;  %v2562_v21 = vld [vmem:[#allocation2 + $0x3c] sm:$0xf]  ;;  %v2563_v49 = vld [vmem:[#allocation2 + $0x40] sm:$0xf]  ;;  %v11696_v60 = vor.u32 %v13507_v40, %v11695_v44 }
 0x164   : > { %v5079_v18 = vpop.f32.mrf.mxu2  ;;  %2258 = vst [vmem:[#allocation4 + $0x10c] sm:$0xf] %v1930_v37  ;;  %v2406_v6 = vsel %vm14485_vm12, %v2404_v39, %v2405_v15  ;;  %v1799_v16 = vld [vmem:[#allocation2 + $0x3c] sm:$0xf]  ;;  %v1800_v30 = vld [vmem:[#allocation2 + $0x40] sm:$0xf] }
 0x165   : > { %v15049_v20 = vadd.f32 %v5079_v18, %v4991_v56  ;;  %v11664_v56 = vor.u32 %v13494_v58, %v11661_v57  ;;  %2530 = vst [vmem:[#allocation4 + $0x110] sm:$0xf] %v2406_v6  ;;  %v1932_v7 = vshrl.u32 %v1799_v16, 16  ;;  %v1935_v12 = vshll.u32 %v1799_v16, 16  ;;  %v1732_v15 = vld [vmem:[#allocation2 + $0x40] sm:$0xf] }
 0x166   : > { %2594 = vst [vmem:[#allocation4 + $0xf0] sm:$0xf] %v2562_v21  ;;  %v1941_v41 = vshll.u32 %v1800_v30, 16  ;;  %v1945_v9 = vshrl.u32 %v1800_v30, 16  ;;  %v1801_v39 = vld [vmem:[#allocation2 + $0x44] sm:$0x1] }
 0x167   : > { %17016 = vst [vmem:[#allocation27_spill] sm:$0xff] %v15049_v20  ;;  %v5030_v18 = vpop.f32.mrf.mxu3  ;;  %v1934_v58 = vrot.slane %v1932_v7, 4  ;;  %v1937_v57 = vrot.slane %v1935_v12, 5  ;;  %v1731_v20 = vld [vmem:[#allocation2 + $0x3c] sm:$0xf]  ;;  %v1951_v26 = vshll.u32 %v1801_v39, 16  ;;  %v15061_v44 = vpop.f32.mrf.mxu1 }
 0x168   : > { %v15059_v3 = vadd.f32 %v5030_v18, %v4942_v45  ;;  %2595 = vst [vmem:[#allocation4 + $0x114] sm:$0xf] %v2563_v49  ;;  %v1943_v18 = vrot.slane %v1941_v41, 5  ;;  %v2295_v17 = vld [vmem:[#allocation2 + $0x3c] sm:$0xe] }
 0x169   : > { %1763 = vst [vmem:[#allocation4 + $0x12c] sm:$0xf] %v1731_v20  ;;  %v1938_v45 = vor.u32 %v1937_v57, %v1934_v58  ;;  %v1953_v49 = vrot.slane %v1951_v26, 5  ;;  %v2296_v6 = vld [vmem:[#allocation2 + $0x40] sm:$0xf] }
 0x16a   : > { %v4906_v37 = vpop.f32.mrf.mxu0  ;;  %1764 = vst [vmem:[#allocation4 + $0x150] sm:$0xf] %v1732_v15  ;;  %v2297_v20 = vld [vmem:[#allocation2 + $0x44] sm:$0x1]  ;;  %v2409_v30 = vrot.slane %v2296_v6, 5 }
 0x16b   : > { %5409 = vmatmul.bf16.gmra.mxu2 %v11668_v34  ;;  %v1947_v34 = vrot.slane %v1945_v9, 4  ;;  %v1939_v40 = vrot.slane %v1938_v45, 4  ;;  %17017 = vst [vmem:[#allocation28_spill] sm:$0xff] %v15061_v44  ;;  %v2412_v12 = vrot.slane %v2297_v20, 5  ;;  %v13503_v58 = vld [vmem:[#allocation4 + $0xa4] sm:$0xf]  ;;  %v4907_v6 = vadd.f32 %v14987_v2, %v4906_v37 }
 0x16c   : > { %5320 = vmatmul.bf16.gmra.mxu1 %v11664_v56  ;;  %v11577_v56 = vrot.slane %v2295_v17, 9  ;;  %v2411_v9 = vrot.slane %v2409_v30, 4  ;;  %v15067_v57 = vpop.f32.mrf.mxu2  ;;  %v11697_v39 = vld [vmem:[#allocation4 + $0xc4] sm:$0xf0]  ;;  %v13511_v45 = vld [vmem:[#allocation4 + $0xe4] sm:$0xf] }
 0x16d   : > { %5147 = vmatmul.bf16.gmra.mxu3 %v11692_v33  ;;  %5236 = vmatmul.bf16.gmra.mxu0 %v11696_v60  ;;  %v1948_v21 = vor.u32 %v1947_v34, %v1943_v18  ;;  %v1944_v16 = vsel %vm14518_vm14, %v1939_v40, %v1943_v18  ;;  %v11703_v33 = vld [vmem:[#allocation4 + $0xa8] sm:$0xf]  ;;  %v13508_v60 = vld [vmem:[#allocation4 + $0xc8] sm:$0xf0]  ;;  %17018 = vst [vmem:[#allocation29_spill] sm:$0xff] %v15067_v57 }
 0x16e   : > { %2259 = vst [vmem:[#allocation4 + $0x130] sm:$0xf] %v1944_v16  ;;  %v2410_v41 = vsel %vm14485_vm12, %v11577_v56, %v2409_v30  ;;  %v2413_v18 = vsel %vm14485_vm12, %v2411_v9, %v2412_v12  ;;  %v11704_v34 = vor.u32 %v13508_v60, %v11703_v33  ;;  %v11725_v26 = vld [vmem:[#allocation4 + $0x104] sm:$0xf0]  ;;  %v13516_v56 = vld [vmem:[#allocation4 + $0x108] sm:$0xf0]  ;;  %v11700_v20 = vor.u32 %v13503_v58, %v11697_v39 }
 0x16f   : > { %v1949_v7 = vrot.slane %v1948_v21, 4  ;;  %2531 = vst [vmem:[#allocation4 + $0x134] sm:$0xf] %v2410_v41  ;;  %v11731_v40 = vld [vmem:[#allocation4 + $0xe8] sm:$0xf]  ;;  %v15075_v21 = vpop.f32.mrf.mxu3  ;;  %v11728_v60 = vor.u32 %v13511_v45, %v11725_v26 }
 0x170   : > { %2532 = vst [vmem:[#allocation4 + $0x158] sm:$0xf] %v2413_v18  ;;  %v2564_v16 = vld [vmem:[#allocation2 + $0x48] sm:$0xf]  ;;  %v11732_v9 = vor.u32 %v13516_v56, %v11731_v40  ;;  %v13688_v37 = vld [vmem:[#allocation9 + $0x1e8] sm:$0xff] }
 0x171   : > { %v1954_v15 = vsel %vm14518_vm14, %v1949_v7, %v1953_v49  ;;  %v2565_v49 = vld [vmem:[#allocation2 + $0x4c] sm:$0xf]  ;;  %2596 = vst [vmem:[#allocation4 + $0x138] sm:$0xf] %v2564_v16  ;;  %v1802_v30 = vld [vmem:[#allocation2 + $0x48] sm:$0xf]  ;;  %5487 = vmatpush.bf16.msra.mxu3 %v13688_v37 }
 0x172   : > { %2260 = vst [vmem:[#allocation4 + $0x154] sm:$0xf] %v1954_v15  ;;  %v15073_v17 = vpop.f32.mrf.mxu0  ;;  %v1803_v7 = vld [vmem:[#allocation2 + $0x4c] sm:$0xf]  ;;  %v1956_v41 = vshrl.u32 %v1802_v30, 16  ;;  %v1959_v12 = vshll.u32 %v1802_v30, 16 }
 0x173   : > { %17019 = vst [vmem:[#allocation30_spill] sm:$0xff] %v15073_v17  ;;  %v1965_v15 = vshll.u32 %v1803_v7, 16  ;;  %v1969_v18 = vshrl.u32 %v1803_v7, 16  ;;  %v1804_v39 = vld [vmem:[#allocation2 + $0x50] sm:$0x1] }
 0x174   : > { %2597 = vst [vmem:[#allocation4 + $0x15c] sm:$0xf] %v2565_v49  ;;  %v1958_v57 = vrot.slane %v1956_v41, 4  ;;  %v1961_v44 = vrot.slane %v1959_v12, 5  ;;  %v2298_v36 = vld [vmem:[#allocation2 + $0x48] sm:$0xe] }
 0x175   : > { %v1967_v27 = vrot.slane %v1965_v15, 5  ;;  %v1971_v58 = vrot.slane %v1969_v18, 4  ;;  %v2299_v45 = vld [vmem:[#allocation2 + $0x4c] sm:$0xf]  ;;  %v1733_v40 = vld [vmem:[#allocation2 + $0x48] sm:$0xf] }
 0x176   : > { %v1962_v16 = vor.u32 %v1961_v44, %v1958_v57  ;;  %v2300_v56 = vld [vmem:[#allocation2 + $0x50] sm:$0x1]  ;;  %1765 = vst [vmem:[#allocation4 + $0x174] sm:$0xf] %v1733_v40  ;;  %v11739_v25 = vld [vmem:[#allocation4 + $0xf0] sm:$0xf] }
 0x177   : > { %v1972_v30 = vor.u32 %v1971_v58, %v1967_v27  ;;  %v2419_v18 = vrot.slane %v2300_v56, 5  ;;  %v13517_v37 = vld [vmem:[#allocation4 + $0x110] sm:$0xf0]  ;;  %v11767_v40 = vld [vmem:[#allocation4 + $0x130] sm:$0xf] }
 0x178   : > { %v4995_v33 = vpop.f32.mrf.mxu1  ;;  %v1963_v44 = vrot.slane %v1962_v16, 4  ;;  %v11733_v16 = vld [vmem:[#allocation4 + $0x10c] sm:$0xf0]  ;;  %v2566_v56 = vld [vmem:[#allocation2 + $0x54] sm:$0xf] }
 0x179   : > { %v4996_v17 = vadd.f32 %v4995_v33, %v4907_v6  ;;  %v1734_v6 = vld [vmem:[#allocation2 + $0x4c] sm:$0xf]  ;;  %v1973_v57 = vrot.slane %v1972_v30, 4  ;;  %v11578_v33 = vrot.slane %v2298_v36, 9  ;;  %v13512_v36 = vld [vmem:[#allocation4 + $0xec] sm:$0xf] }
 0x17a   : > { %1766 = vst [vmem:[#allocation4 + $0x198] sm:$0xf] %v1734_v6  ;;  %v1968_v15 = vsel %vm14518_vm14, %v1963_v44, %v1967_v27  ;;  %v13525_v6 = vld [vmem:[#allocation4 + $0x150] sm:$0xf0]  ;;  %v11736_v44 = vor.u32 %v13512_v36, %v11733_v16  ;;  %v1807_v16 = vld [vmem:[#allocation2 + $0x5c] sm:$0x1] }
 0x17b   : > { %5414 = vmatmul.bf16.gmra.mxu2 %v11704_v34  ;;  %v1975_v34 = vshll.u32 %v1804_v39, 16  ;;  %v4911_v7 = vpop.f32.mrf.mxu0  ;;  %2261 = vst [vmem:[#allocation4 + $0x178] sm:$0xf] %v1968_v15 }
 0x17c   : > { %5325 = vmatmul.bf16.gmra.mxu1 %v11700_v20  ;;  %v4947_v20 = vadd.f32 %v14987_v2, %v14958_v31  ;;  %2598 = vst [vmem:[#allocation4 + $0x180] sm:$0xf] %v2566_v56 }
 0x17d   : > { %5152 = vmatmul.bf16.gmra.mxu3 %v11728_v60  ;;  %5241 = vmatmul.bf16.gmra.mxu0 %v11732_v9  ;;  %v5084_v49 = vpop.f32.mrf.mxu2  ;;  %v1977_v12 = vrot.slane %v1975_v34, 5  ;;  %v2416_v60 = vrot.slane %v2299_v45, 5  ;;  %v11740_v34 = vor.u32 %v13517_v37, %v11739_v25  ;;  %v11761_v45 = vld [vmem:[#allocation4 + $0x14c] sm:$0xf0] }
 0x17e   : > { %v15078_v26 = vadd.f32 %v5084_v49, %v4996_v17  ;;  %v13520_v49 = vld [vmem:[#allocation4 + $0x12c] sm:$0xf] }
 0x17f   : > { %v1978_v31 = vsel %vm14518_vm14, %v1973_v57, %v1977_v12  ;;  %v2417_v58 = vsel %vm14485_vm12, %v11578_v33, %v2416_v60  ;;  %v2418_v39 = vrot.slane %v2416_v60, 4  ;;  %v4912_v57 = vadd.f32 %v14987_v2, %v4911_v7  ;;  %v1806_v33 = vld [vmem:[#allocation2 + $0x58] sm:$0xf] }
 0x180   : > { %17020 = vst [vmem:[#allocation31_spill] sm:$0xff] %v15078_v26  ;;  %v5035_v41 = vpop.f32.mrf.mxu3  ;;  %v15084_v17 = vpop.f32.mrf.mxu1  ;;  %v11764_v25 = vor.u32 %v13520_v49, %v11761_v45  ;;  %v2302_v26 = vld [vmem:[#allocation2 + $0x58] sm:$0xf]  ;;  %v2301_v49 = vld [vmem:[#allocation2 + $0x54] sm:$0xe] }
 0x181   : > { %v15082_v9 = vadd.f32 %v5035_v41, %v4947_v20  ;;  %17021 = vst [vmem:[#allocation32_spill] sm:$0xff] %v15084_v17  ;;  %v2420_v30 = vsel %vm14485_vm12, %v2418_v39, %v2419_v18  ;;  %v2567_v20 = vld [vmem:[#allocation2 + $0x58] sm:$0xf]  ;;  %v1805_v41 = vld [vmem:[#allocation2 + $0x54] sm:$0xf]  ;;  %v11768_v18 = vor.u32 %v13525_v6, %v11767_v40  ;;  %v2423_v40 = vrot.slane %v2302_v26, 5 }
 0x182   : > { %2262 = vst [vmem:[#allocation4 + $0x19c] sm:$0xf] %v1978_v31  ;;  %v1980_v60 = vshrl.u32 %v1805_v41, 16  ;;  %v1983_v15 = vshll.u32 %v1805_v41, 16  ;;  %v1989_v31 = vshll.u32 %v1806_v33, 16 }
 0x183   : > { %2533 = vst [vmem:[#allocation4 + $0x17c] sm:$0xf] %v2417_v58  ;;  %v15099_v37 = vpop.f32.mrf.mxu0  ;;  %v1993_v58 = vshrl.u32 %v1806_v33, 16  ;;  %v2303_v45 = vld [vmem:[#allocation2 + $0x5c] sm:$0x1] }
 0x184   : > { %2534 = vst [vmem:[#allocation4 + $0x1a0] sm:$0xf] %v2420_v30  ;;  %v1982_v30 = vrot.slane %v1980_v60, 4  ;;  %v1985_v36 = vrot.slane %v1983_v15, 5  ;;  %v1991_v56 = vrot.slane %v1989_v31, 5  ;;  %v2426_v15 = vrot.slane %v2303_v45, 5 }
 0x185   : > { %v15094_v27 = vpop.f32.mrf.mxu2  ;;  %2599 = vst [vmem:[#allocation4 + $0x1a4] sm:$0xf] %v2567_v20  ;;  %v1999_v20 = vshll.u32 %v1807_v16, 16  ;;  %v11803_v45 = vld [vmem:[#allocation4 + $0x178] sm:$0xf] }
 0x186   : > { %17022 = vst [vmem:[#allocation33_spill] sm:$0xff] %v15094_v27  ;;  %v1995_v27 = vrot.slane %v1993_v58, 4  ;;  %v1986_v17 = vor.u32 %v1985_v36, %v1982_v30  ;;  %v1735_v58 = vld [vmem:[#allocation2 + $0x54] sm:$0xf]  ;;  %v13521_v36 = vld [vmem:[#allocation4 + $0x134] sm:$0xf] }
 0x187   : > { %17023 = vst [vmem:[#allocation34_spill] sm:$0xff] %v15099_v37  ;;  %v2001_v33 = vrot.slane %v1999_v20, 5  ;;  %v11579_v37 = vrot.slane %v2301_v49, 9 }
 0x188   : > { %v15097_v12 = vpop.f32.mrf.mxu3  ;;  %v1987_v41 = vrot.slane %v1986_v17, 4  ;;  %1767 = vst [vmem:[#allocation4 + $0x1bc] sm:$0xf] %v1735_v58  ;;  %v11775_v17 = vld [vmem:[#allocation4 + $0x138] sm:$0xf] }
 0x189   : > { %v5000_v39 = vpop.f32.mrf.mxu1  ;;  %v2424_v30 = vsel %vm14485_vm12, %v11579_v37, %v2423_v40 }
 0x18a   : > { %v5001_v7 = vadd.f32 %v5000_v39, %v4912_v57  ;;  %v2425_v57 = vrot.slane %v2423_v40, 4  ;;  %v1736_v39 = vld [vmem:[#allocation2 + $0x58] sm:$0xf]  ;;  %2535 = vst [vmem:[#allocation4 + $0x1c4] sm:$0xf] %v2424_v30 }
 0x18b   : > { %5419 = vmatmul.bf16.gmra.mxu2 %v11740_v34  ;;  %v1996_v34 = vor.u32 %v1995_v27, %v1991_v56  ;;  %1768 = vst [vmem:[#allocation4 + $0x1e0] sm:$0xf] %v1736_v39 }
 0x18c   : > { %5330 = vmatmul.bf16.gmra.mxu1 %v11736_v44 }
 0x18d   : > { %5157 = vmatmul.bf16.gmra.mxu3 %v11764_v25  ;;  %5246 = vmatmul.bf16.gmra.mxu0 %v11768_v18  ;;  %v1997_v44 = vrot.slane %v1996_v34, 4  ;;  %v1992_v25 = vsel %vm14518_vm14, %v1987_v41, %v1991_v56  ;;  %v13526_v18 = vld [vmem:[#allocation4 + $0x158] sm:$0xf0]  ;;  %v13529_v56 = vld [vmem:[#allocation4 + $0x174] sm:$0xf] }
 0x18e   : > { %v5089_v6 = vpop.f32.mrf.mxu2  ;;  %2263 = vst [vmem:[#allocation4 + $0x1c0] sm:$0xf] %v1992_v25  ;;  %v11797_v34 = vld [vmem:[#allocation4 + $0x194] sm:$0xf0]  ;;  %v11776_v49 = vor.u32 %v13526_v18, %v11775_v17  ;;  %v2568_v41 = vld [vmem:[#allocation2 + $0x60] sm:$0xf] }
 0x18f   : > { %v15101_v60 = vadd.f32 %v5089_v6, %v5001_v7  ;;  %v2002_v26 = vsel %vm14518_vm14, %v1997_v44, %v2001_v33  ;;  %v11769_v7 = vld [vmem:[#allocation4 + $0x154] sm:$0xf0]  ;;  %v13534_v6 = vld [vmem:[#allocation4 + $0x198] sm:$0xf0]  ;;  %v2569_v33 = vld [vmem:[#allocation2 + $0x64] sm:$0xf]  ;;  %v11800_v39 = vor.u32 %v13529_v56, %v11797_v34 }
 0x190   : > { %v5109_v31 = vpop.f32.mrf.mxu3  ;;  %2264 = vst [vmem:[#allocation4 + $0x1e4] sm:$0xf] %v2002_v26  ;;  %v11772_v37 = vor.u32 %v13521_v36, %v11769_v7  ;;  %v1808_v44 = vld [vmem:[#allocation2 + $0x60] sm:$0xf]  ;;  %v11804_v25 = vor.u32 %v13534_v6, %v11803_v45  ;;  %v13687_v36 = vld [vmem:[#allocation9 + $0x1e0] sm:$0xff] }
 0x191   : > { %v15106_v27 = vadd.f32 %v5109_v31, %v14995_v14  ;;  %v15112_v16 = vpop.f32.mrf.mxu1  ;;  %v2427_v14 = vsel %vm14485_vm12, %v2425_v57, %v2426_v15  ;;  %2600 = vst [vmem:[#allocation4 + $0x1c8] sm:$0xf] %v2568_v41  ;;  %v1809_v31 = vld [vmem:[#allocation2 + $0x64] sm:$0xf]  ;;  %v2004_v57 = vshrl.u32 %v1808_v44, 16  ;;  %v2007_v15 = vshll.u32 %v1808_v44, 16  ;;  %5488 = vmatpush.bf16.msra.mxu3 %v13687_v36 }
 0x192   : > { %17025 = vst [vmem:[#allocation36_spill] sm:$0xff] %v15112_v16  ;;  %v4916_v20 = vpop.f32.mrf.mxu0  ;;  %v2013_v26 = vshll.u32 %v1809_v31, 16  ;;  %v2017_v17 = vshrl.u32 %v1809_v31, 16  ;;  %v13695_v7 = vld [vmem:[#allocation9 + $0x220] sm:$0xff]  ;;  %v2305_v16 = vld [vmem:[#allocation2 + $0x64] sm:$0xf] }
 0x193   : > { %17024 = vst [vmem:[#allocation35_spill] sm:$0xff] %v15106_v27  ;;  %v4917_v18 = vadd.f32 %v14987_v2, %v4916_v20  ;;  %v2006_v30 = vrot.slane %v2004_v57, 4  ;;  %v2430_v45 = vrot.slane %v2305_v16, 5  ;;  %5577 = vmatpush.bf16.msra.mxu0 %v13695_v7  ;;  %v13535_v36 = vld [vmem:[#allocation4 + $0x1a0] sm:$0xf0] }
 0x194   : > { %2536 = vst [vmem:[#allocation4 + $0x1e8] sm:$0xf] %v2427_v14  ;;  %v2009_v14 = vrot.slane %v2007_v15, 5  ;;  %v2015_v41 = vrot.slane %v2013_v26, 5  ;;  %v2019_v27 = vrot.slane %v2017_v17, 4 }
 0x195   : > { %2601 = vst [vmem:[#allocation4 + $0x1ec] sm:$0xf] %v2569_v33  ;;  %v2432_v26 = vrot.slane %v2430_v45, 4 }
 0x196   : > { %v15116_v40 = vpop.f32.mrf.mxu2  ;;  %v2010_v33 = vor.u32 %v2009_v14, %v2006_v30  ;;  %v2020_v56 = vor.u32 %v2019_v27, %v2015_v41  ;;  %v1737_v30 = vld [vmem:[#allocation2 + $0x60] sm:$0xf]  ;;  %v1738_v14 = vld [vmem:[#allocation2 + $0x64] sm:$0xf] }
 0x197   : > { %17026 = vst [vmem:[#allocation37_spill] sm:$0xff] %v15116_v40 }
 0x198   : > { %v15118_v58 = vpop.f32.mrf.mxu3  ;;  %v2011_v6 = vrot.slane %v2010_v33, 4  ;;  %v2021_v57 = vrot.slane %v2020_v56, 4  ;;  %1769 = vst [vmem:[#allocation4 + $0x204] sm:$0xf] %v1737_v30  ;;  %v13530_v33 = vld [vmem:[#allocation4 + $0x17c] sm:$0xf]  ;;  %v4939_v56 = vadd.f32 %v14987_v2, %v14887_v4 }
 0x199   : > { %17027 = vst [vmem:[#allocation38_spill] sm:$0xff] %v15118_v58  ;;  %v1810_v58 = vld [vmem:[#allocation2 + $0x68] sm:$0x1] }
 0x19a   : > { %v15121_v40 = vpop.f32.mrf.mxu0  ;;  %v2023_v34 = vshll.u32 %v1810_v58, 16  ;;  %1770 = vst [vmem:[#allocation4 + $0x228] sm:$0xf] %v1738_v14 }
 0x19b   : > { %5424 = vmatmul.bf16.gmra.mxu2 %v11776_v49  ;;  %17028 = vst [vmem:[#allocation39_spill] sm:$0xff] %v15121_v40  ;;  %v2304_v49 = vld [vmem:[#allocation2 + $0x60] sm:$0xe] }
 0x19c   : > { %5335 = vmatmul.bf16.gmra.mxu1 %v11772_v37  ;;  %v5005_v44 = vpop.f32.mrf.mxu1  ;;  %v2306_v37 = vld [vmem:[#allocation2 + $0x68] sm:$0x1]  ;;  %v11580_v31 = vrot.slane %v2304_v49, 9  ;;  %v2025_v15 = vrot.slane %v2023_v34, 5 }
 0x19d   : > { %5162 = vmatmul.bf16.gmra.mxu3 %v11800_v39  ;;  %5251 = vmatmul.bf16.gmra.mxu0 %v11804_v25  ;;  %v5006_v20 = vadd.f32 %v5005_v44, %v4917_v18  ;;  %v2433_v17 = vrot.slane %v2306_v37, 5  ;;  %v2016_v39 = vsel %vm14518_vm14, %v2011_v6, %v2015_v41  ;;  %v11811_v18 = vld [vmem:[#allocation4 + $0x180] sm:$0xf]  ;;  %v13543_v6 = vld [vmem:[#allocation4 + $0x1e0] sm:$0xf0] }
 0x19e   : > { %v2026_v16 = vsel %vm14518_vm14, %v2021_v57, %v2025_v15  ;;  %v2431_v7 = vsel %vm14485_vm12, %v11580_v31, %v2430_v45  ;;  %v11805_v44 = vld [vmem:[#allocation4 + $0x19c] sm:$0xf0]  ;;  %2265 = vst [vmem:[#allocation4 + $0x208] sm:$0xf] %v2016_v39  ;;  %v11812_v49 = vor.u32 %v13535_v36, %v11811_v18  ;;  %v2570_v45 = vld [vmem:[#allocation2 + $0x6c] sm:$0xf]  ;;  %v5028_v57 = vadd.f32 %v15043_v28, %v4939_v56 }
 0x19f   : > { %v2434_v41 = vsel %vm14485_vm12, %v2432_v26, %v2433_v17  ;;  %2266 = vst [vmem:[#allocation4 + $0x22c] sm:$0xf] %v2026_v16  ;;  %v2571_v31 = vld [vmem:[#allocation2 + $0x70] sm:$0xf]  ;;  %v11808_v15 = vor.u32 %v13530_v33, %v11805_v44  ;;  %v1811_v26 = vld [vmem:[#allocation2 + $0x6c] sm:$0xf] }
 0x1a0   : > { %v5114_v40 = vpop.f32.mrf.mxu3  ;;  %v5094_v27 = vpop.f32.mrf.mxu2  ;;  %2537 = vst [vmem:[#allocation4 + $0x20c] sm:$0xf] %v2431_v7  ;;  %v1812_v17 = vld [vmem:[#allocation2 + $0x70] sm:$0xf]  ;;  %v2028_v4 = vshrl.u32 %v1811_v26, 16  ;;  %v2031_v2 = vshll.u32 %v1811_v26, 16 }
 0x1a1   : > { %v15126_v58 = vadd.f32 %v5114_v40, %v15028_v42  ;;  %v15130_v25 = vadd.f32 %v5094_v27, %v5006_v20  ;;  %v13538_v42 = vld [vmem:[#allocation4 + $0x1bc] sm:$0xf]  ;;  %v11833_v40 = vld [vmem:[#allocation4 + $0x1dc] sm:$0xf0]  ;;  %2538 = vst [vmem:[#allocation4 + $0x230] sm:$0xf] %v2434_v41 }
 0x1a2   : > { %v11839_v20 = vld [vmem:[#allocation4 + $0x1c0] sm:$0xf]  ;;  %2602 = vst [vmem:[#allocation4 + $0x210] sm:$0xf] %v2570_v45  ;;  %v11836_v14 = vor.u32 %v13538_v42, %v11833_v40  ;;  %v2037_v16 = vshll.u32 %v1812_v17, 16  ;;  %v2041_v18 = vshrl.u32 %v1812_v17, 16 }
 0x1a3   : > { %17029 = vst [vmem:[#allocation40_spill] sm:$0xff] %v15126_v58  ;;  %v11840_v27 = vor.u32 %v13543_v6, %v11839_v20  ;;  %v2030_v7 = vrot.slane %v2028_v4, 4  ;;  %v2033_v41 = vrot.slane %v2031_v2, 5  ;;  %v1813_v28 = vld [vmem:[#allocation2 + $0x74] sm:$0x1] }
 0x1a4   : > { %v15138_v34 = vpop.f32.mrf.mxu1  ;;  %2603 = vst [vmem:[#allocation4 + $0x234] sm:$0xf] %v2571_v31  ;;  %v2039_v33 = vrot.slane %v2037_v16, 5  ;;  %v2043_v44 = vrot.slane %v2041_v18, 4  ;;  %v15148_v42 = vld [vmem:[%s16983_s4] ss:$0 sm:$0xff] }
 0x1a5   : > { %v4921_v37 = vpop.f32.mrf.mxu0  ;;  %v2034_v56 = vor.u32 %v2033_v41, %v2030_v7  ;;  %v2308_v20 = vld [vmem:[#allocation2 + $0x70] sm:$0xf]  ;;  %v2307_v45 = vld [vmem:[#allocation2 + $0x6c] sm:$0xe]  ;;  %v2309_v31 = vld [vmem:[#allocation2 + $0x74] sm:$0x1] }
 0x1a6   : > { %v4922_v40 = vadd.f32 %v15148_v42, %v4921_v37  ;;  %v2044_v6 = vor.u32 %v2043_v44, %v2039_v33  ;;  %v11581_v26 = vrot.slane %v2307_v45, 9  ;;  %v2437_v4 = vrot.slane %v2308_v20, 5  ;;  %v1739_v58 = vld [vmem:[#allocation2 + $0x6c] sm:$0xf]  ;;  %v1740_v37 = vld [vmem:[#allocation2 + $0x70] sm:$0xf] }
 0x1a7   : > { %v2440_v2 = vrot.slane %v2309_v31, 5  ;;  %1771 = vst [vmem:[#allocation4 + $0x24c] sm:$0xf] %v1739_v58  ;;  %v13544_v44 = vld [vmem:[#allocation4 + $0x1e8] sm:$0xf0]  ;;  %v4944_v58 = vadd.f32 %v15148_v42, %v14932_v11 }
 0x1a8   : > { %v5116_v30 = vpop.f32.mrf.mxu3  ;;  %v15143_v36 = vpop.f32.mrf.mxu2  ;;  %v2439_v41 = vrot.slane %v2437_v4, 4  ;;  %1772 = vst [vmem:[#allocation4 + $0x270] sm:$0xf] %v1740_v37  ;;  %v1815_v37 = vld [vmem:[#allocation2 + $0x7c] sm:$0xf] }
 0x1a9   : > { %v15141_v39 = vadd.f32 %v5116_v30, %v5028_v57  ;;  %v2035_v57 = vrot.slane %v2034_v56, 4  ;;  %v2045_v30 = vrot.slane %v2044_v6, 4  ;;  %v13539_v56 = vld [vmem:[#allocation4 + $0x1c4] sm:$0xf]  ;;  %v11869_v6 = vld [vmem:[#allocation4 + $0x224] sm:$0xf0] }
 0x1ab   : > { %5429 = vmatmul.bf16.gmra.mxu2 %v11812_v49  ;;  %17030 = vst [vmem:[#allocation41_spill] sm:$0xff] %v15141_v39  ;;  %v2047_v49 = vshll.u32 %v1813_v28, 16  ;;  %v2040_v7 = vsel %vm14518_vm14, %v2035_v57, %v2039_v33  ;;  %v11847_v28 = vld [vmem:[#allocation4 + $0x1c8] sm:$0xf]  ;;  %v2441_v33 = vsel %vm14485_vm12, %v2439_v41, %v2440_v2 }
 0x1ac   : > { %5340 = vmatmul.bf16.gmra.mxu1 %v11808_v15  ;;  %2267 = vst [vmem:[#allocation4 + $0x250] sm:$0xf] %v2040_v7  ;;  %v11848_v31 = vor.u32 %v13544_v44, %v11847_v28  ;;  %v11875_v57 = vld [vmem:[#allocation4 + $0x208] sm:$0xf]  ;;  %v2061_v44 = vshll.u32 %v1815_v37, 16 }
 0x1ad   : > { %5167 = vmatmul.bf16.gmra.mxu3 %v11836_v14  ;;  %5256 = vmatmul.bf16.gmra.mxu0 %v11840_v27  ;;  %v2049_v15 = vrot.slane %v2047_v49, 5  ;;  %v4923_v39 = vpop.f32.mrf.mxu0  ;;  %v11841_v49 = vld [vmem:[#allocation4 + $0x1e4] sm:$0xf0]  ;;  %2540 = vst [vmem:[#allocation4 + $0x278] sm:$0xf] %v2441_v33 }
 0x1ae   : > { %v4924_v2 = vadd.f32 %v15148_v42, %v4923_v39 }
 0x1af   : > { %v5010_v17 = vpop.f32.mrf.mxu1  ;;  %v2050_v27 = vsel %vm14518_vm14, %v2045_v30, %v2049_v15  ;;  %v13552_v15 = vld [vmem:[#allocation4 + $0x228] sm:$0xf0]  ;;  %v5033_v30 = vadd.f32 %v15075_v21, %v4944_v58  ;;  %v1816_v58 = vld [vmem:[#allocation2 + $0x80] sm:$0x1] }
 0x1b0   : > { %v5011_v16 = vadd.f32 %v5010_v17, %v4922_v40  ;;  %v5119_v18 = vpop.f32.mrf.mxu3  ;;  %v2438_v40 = vsel %vm14485_vm12, %v11581_v26, %v2437_v4  ;;  %2268 = vst [vmem:[#allocation4 + $0x274] sm:$0xf] %v2050_v27  ;;  %v2572_v26 = vld [vmem:[#allocation2 + $0x78] sm:$0xf]  ;;  %v2573_v17 = vld [vmem:[#allocation2 + $0x7c] sm:$0xf]  ;;  %v11844_v4 = vor.u32 %v13539_v56, %v11841_v49  ;;  %v11876_v28 = vor.u32 %v13552_v15, %v11875_v57 }
 0x1b1   : > { %v15154_v14 = vadd.f32 %v5119_v18, %v15059_v3  ;;  %v13547_v3 = vld [vmem:[#allocation4 + $0x204] sm:$0xf]  ;;  %2539 = vst [vmem:[#allocation4 + $0x254] sm:$0xf] %v2438_v40  ;;  %v1814_v18 = vld [vmem:[#allocation2 + $0x78] sm:$0xf] }
 0x1b2   : > { %2604 = vst [vmem:[#allocation4 + $0x258] sm:$0xf] %v2572_v26  ;;  %v11872_v27 = vor.u32 %v13547_v3, %v11869_v6  ;;  %v2052_v11 = vshrl.u32 %v1814_v18, 16  ;;  %v2065_v40 = vshrl.u32 %v1815_v37, 16  ;;  %v13686_v49 = vld [vmem:[#allocation9 + $0x1d8] sm:$0xff]  ;;  %v2063_v26 = vrot.slane %v2061_v44, 5 }
 0x1b3   : > { %17031 = vst [vmem:[#allocation42_spill] sm:$0xff] %v15154_v14  ;;  %v2310_v57 = vld [vmem:[#allocation2 + $0x78] sm:$0xe]  ;;  %v2312_v15 = vld [vmem:[#allocation2 + $0x80] sm:$0x1]  ;;  %5489 = vmatpush.bf16.msra.mxu3 %v13686_v49  ;;  %v13694_v44 = vld [vmem:[#allocation9 + $0x218] sm:$0xff] }
 0x1b4   : > { %v5099_v20 = vpop.f32.mrf.mxu2  ;;  %2605 = vst [vmem:[#allocation4 + $0x27c] sm:$0xf] %v2573_v17  ;;  %v2054_v21 = vrot.slane %v2052_v11, 4  ;;  %v2067_v6 = vrot.slane %v2065_v40, 4  ;;  %v2071_v17 = vshll.u32 %v1816_v58, 16  ;;  %v2447_v11 = vrot.slane %v2312_v15, 5  ;;  %5578 = vmatpush.bf16.msra.mxu0 %v13694_v44 }
 0x1b5   : > { %v15164_v45 = vadd.f32 %v5099_v20, %v5011_v16  ;;  %v2055_v16 = vshll.u32 %v1814_v18, 16  ;;  %v2311_v18 = vld [vmem:[#allocation2 + $0x7c] sm:$0xf]  ;;  %v13553_v49 = vld [vmem:[#allocation4 + $0x230] sm:$0xf0] }
 0x1b6   : > { %v2068_v37 = vor.u32 %v2067_v6, %v2063_v26  ;;  %v13548_v6 = vld [vmem:[#allocation4 + $0x20c] sm:$0xf] }
 0x1b7   : > { %v5012_v33 = vpop.f32.mrf.mxu1  ;;  %v2057_v56 = vrot.slane %v2055_v16, 5 }
 0x1b8   : > { %v5121_v7 = vpop.f32.mrf.mxu3  ;;  %v5013_v39 = vadd.f32 %v5012_v33, %v4924_v2  ;;  %v2444_v2 = vrot.slane %v2311_v18, 5  ;;  %v1741_v33 = vld [vmem:[#allocation2 + $0x78] sm:$0xf]  ;;  %v11905_v18 = vld [vmem:[#allocation4 + $0x26c] sm:$0xf0] }
 0x1b9   : > { %v15168_v41 = vadd.f32 %v5121_v7, %v5033_v30  ;;  %v2058_v3 = vor.u32 %v2057_v56, %v2054_v21  ;;  %v2073_v7 = vrot.slane %v2071_v17, 5  ;;  %v1742_v21 = vld [vmem:[#allocation2 + $0x7c] sm:$0xf]  ;;  %1773 = vst [vmem:[#allocation4 + $0x294] sm:$0xf] %v1741_v33 }
 0x1ba   : > { %v4926_v20 = vpop.f32.mrf.mxu0  ;;  %1774 = vst [vmem:[#allocation4 + $0x2b8] sm:$0xf] %v1742_v21  ;;  %v11877_v17 = vld [vmem:[#allocation4 + $0x22c] sm:$0xf0]  ;;  %v1818_v33 = vld [vmem:[#allocation2 + $0x88] sm:$0xf] }
 0x1bb   : > { %5434 = vmatmul.bf16.gmra.mxu2 %v11848_v31  ;;  %17032 = vst [vmem:[#allocation43_spill] sm:$0xff] %v15168_v41  ;;  %v2059_v30 = vrot.slane %v2058_v3, 4  ;;  %v4927_v15 = vadd.f32 %v15148_v42, %v4926_v20  ;;  %v11880_v44 = vor.u32 %v13548_v6, %v11877_v17  ;;  %v1819_v6 = vld [vmem:[#allocation2 + $0x8c] sm:$0x1] }
 0x1bc   : > { %5345 = vmatmul.bf16.gmra.mxu1 %v11844_v4  ;;  %v5101_v14 = vpop.f32.mrf.mxu2  ;;  %v11582_v4 = vrot.slane %v2310_v57, 9  ;;  %v4949_v57 = vadd.f32 %v15148_v42, %v14973_v50 }
 0x1bd   : > { %v15170_v31 = vadd.f32 %v5101_v14, %v5013_v39  ;;  %5172 = vmatmul.bf16.gmra.mxu3 %v11872_v27  ;;  %5261 = vmatmul.bf16.gmra.mxu0 %v11876_v28  ;;  %v2064_v40 = vsel %vm14518_vm14, %v2059_v30, %v2063_v26  ;;  %v2069_v14 = vrot.slane %v2068_v37, 4  ;;  %v2446_v28 = vrot.slane %v2444_v2, 4  ;;  %v11883_v39 = vld [vmem:[#allocation4 + $0x210] sm:$0xf]  ;;  %v13556_v26 = vld [vmem:[#allocation4 + $0x24c] sm:$0xf] }
 0x1be   : > { %v2445_v3 = vsel %vm14485_vm12, %v11582_v4, %v2444_v2  ;;  %2269 = vst [vmem:[#allocation4 + $0x298] sm:$0xf] %v2064_v40  ;;  %v11884_v30 = vor.u32 %v13553_v49, %v11883_v39  ;;  %v11911_v37 = vld [vmem:[#allocation4 + $0x250] sm:$0xf]  ;;  %v2574_v4 = vld [vmem:[#allocation2 + $0x84] sm:$0xf] }
 0x1bf   : > { %v2074_v58 = vsel %vm14518_vm14, %v2069_v14, %v2073_v7  ;;  %v13561_v7 = vld [vmem:[#allocation4 + $0x270] sm:$0xf0]  ;;  %2541 = vst [vmem:[#allocation4 + $0x29c] sm:$0xf] %v2445_v3  ;;  %v2575_v2 = vld [vmem:[#allocation2 + $0x88] sm:$0xf]  ;;  %v11908_v14 = vor.u32 %v13556_v26, %v11905_v18 }
 0x1c0   : > { %v5124_v16 = vpop.f32.mrf.mxu3  ;;  %2270 = vst [vmem:[#allocation4 + $0x2bc] sm:$0xf] %v2074_v58  ;;  %v2085_v58 = vshll.u32 %v1818_v33, 16  ;;  %v2089_v3 = vshrl.u32 %v1818_v33, 16  ;;  %v2095_v26 = vshll.u32 %v1819_v6, 16 }
 0x1c1   : > { %v15175_v27 = vadd.f32 %v5124_v16, %v15082_v9  ;;  %v2448_v9 = vsel %vm14485_vm12, %v2446_v28, %v2447_v11  ;;  %v5038_v16 = vadd.f32 %v15097_v12, %v4949_v57  ;;  %2606 = vst [vmem:[#allocation4 + $0x2a0] sm:$0xf] %v2574_v4  ;;  %v1817_v11 = vld [vmem:[#allocation2 + $0x84] sm:$0xf]  ;;  %v11912_v28 = vor.u32 %v13561_v7, %v11911_v37  ;;  %v2314_v18 = vld [vmem:[#allocation2 + $0x88] sm:$0xf] }
 0x1c2   : > { %v4928_v56 = vpop.f32.mrf.mxu0  ;;  %2542 = vst [vmem:[#allocation4 + $0x2c0] sm:$0xf] %v2448_v9  ;;  %v2076_v50 = vshrl.u32 %v1817_v11, 16  ;;  %v2079_v20 = vshll.u32 %v1817_v11, 16  ;;  %v2087_v17 = vrot.slane %v2085_v58, 5  ;;  %v2091_v57 = vrot.slane %v2089_v3, 4 }
 0x1c3   : > { %17033 = vst [vmem:[#allocation44_spill] sm:$0xff] %v15175_v27  ;;  %v2313_v7 = vld [vmem:[#allocation2 + $0x84] sm:$0xe]  ;;  %v2097_v11 = vrot.slane %v2095_v26, 5  ;;  %v11919_v3 = vld [vmem:[#allocation4 + $0x258] sm:$0xf] }
 0x1c4   : > { %2607 = vst [vmem:[#allocation4 + $0x2c4] sm:$0xf] %v2575_v2  ;;  %v2078_v27 = vrot.slane %v2076_v50, 4  ;;  %v2081_v12 = vrot.slane %v2079_v20, 5  ;;  %v2315_v2 = vld [vmem:[#allocation2 + $0x8c] sm:$0x1] }
 0x1c5   : > { %v11583_v33 = vrot.slane %v2313_v7, 9  ;;  %v1743_v20 = vld [vmem:[#allocation2 + $0x84] sm:$0xf]  ;;  %v2454_v58 = vrot.slane %v2315_v2, 5  ;;  %v13562_v6 = vld [vmem:[#allocation4 + $0x278] sm:$0xf0] }
 0x1c6   : > { %v2082_v41 = vor.u32 %v2081_v12, %v2078_v27  ;;  %v1744_v27 = vld [vmem:[#allocation2 + $0x88] sm:$0xf]  ;;  %1775 = vst [vmem:[#allocation4 + $0x2dc] sm:$0xf] %v1743_v20  ;;  %v1821_v20 = vld [vmem:[#allocation2 + $0x94] sm:$0xf] }
 0x1c7   : > { %1776 = vst [vmem:[#allocation4 + $0x300] sm:$0xf] %v1744_v27  ;;  %v11913_v26 = vld [vmem:[#allocation4 + $0x274] sm:$0xf0] }
 0x1c8   : > { %v5126_v40 = vpop.f32.mrf.mxu3 }
 0x1c9   : > { %v5015_v21 = vpop.f32.mrf.mxu1  ;;  %v15187_v49 = vadd.f32 %v5126_v40, %v5038_v16  ;;  %v2083_v16 = vrot.slane %v2082_v41, 4 }
 0x1ca   : > { %v5016_v39 = vadd.f32 %v5015_v21, %v4927_v15  ;;  %v5227_v9 = vpop.f32.mrf.mxu0  ;;  %v4929_v15 = vadd.f32 %v15148_v42, %v4928_v56  ;;  %v2451_v21 = vrot.slane %v2314_v18, 5  ;;  %v4874_v56 = vadd.f32 %v15148_v42, %v14820_v62 }
 0x1cb   : > { %5439 = vmatmul.bf16.gmra.mxu2 %v11884_v30  ;;  %v2092_v30 = vor.u32 %v2091_v57, %v2087_v17 }
 0x1cc   : > { %5350 = vmatmul.bf16.gmra.mxu1 %v11880_v44  ;;  %v2452_v57 = vsel %vm14485_vm12, %v11583_v33, %v2451_v21  ;;  %v4963_v7 = vadd.f32 %v14829_v43, %v4874_v56  ;;  %v2576_v33 = vld [vmem:[#allocation2 + $0x90] sm:$0xf]  ;;  %v13850_v43 = vld [vmem:[#allocation11 + $0x38] sm:$0xff] }
 0x1cd   : > { %5177 = vmatmul.bf16.gmra.mxu3 %v11908_v14  ;;  %5266 = vmatmul.bf16.gmra.mxu0 %v11912_v28  ;;  %v2093_v44 = vrot.slane %v2092_v30, 4  ;;  %v11941_v30 = vld [vmem:[#allocation4 + $0x2b4] sm:$0xf0]  ;;  %2543 = vst [vmem:[#allocation4 + $0x2e4] sm:$0xf] %v2452_v57 }
 0x1ce   : > { %v5104_v4 = vpop.f32.mrf.mxu2  ;;  %2608 = vst [vmem:[#allocation4 + $0x2e8] sm:$0xf] %v2576_v33  ;;  %10525 = vmatpush.bf16.msra.mxu2 %v13850_v43  ;;  %v2316_v33 = vld [vmem:[#allocation2 + $0x90] sm:$0xe] }
 0x1cf   : > { %v15189_v37 = vadd.f32 %v5104_v4, %v5016_v39  ;;  %v2088_v39 = vsel %vm14518_vm14, %v2083_v16, %v2087_v17  ;;  %v2098_v41 = vsel %vm14518_vm14, %v2093_v44, %v2097_v11  ;;  %v2453_v4 = vrot.slane %v2451_v21, 4  ;;  %v13557_v17 = vld [vmem:[#allocation4 + $0x254] sm:$0xf]  ;;  %v11947_v11 = vld [vmem:[#allocation4 + $0x298] sm:$0xf] }
 0x1d0   : > { %v5138_v50 = vpop.f32.mrf.mxu3  ;;  %2271 = vst [vmem:[#allocation4 + $0x2e0] sm:$0xf] %v2088_v39  ;;  %v11920_v16 = vor.u32 %v13562_v6, %v11919_v3  ;;  %v13570_v44 = vld [vmem:[#allocation4 + $0x2b8] sm:$0xf0]  ;;  %v2577_v21 = vld [vmem:[#allocation2 + $0x94] sm:$0xf] }
 0x1d1   : > { %v5017_v40 = vpop.f32.mrf.mxu1  ;;  %v5139_v28 = vadd.f32 %v5138_v50, %v14827_v10  ;;  %2272 = vst [vmem:[#allocation4 + $0x304] sm:$0xf] %v2098_v41  ;;  %v2455_v10 = vsel %vm14485_vm12, %v2453_v4, %v2454_v58  ;;  %v1820_v50 = vld [vmem:[#allocation2 + $0x90] sm:$0xf]  ;;  %v2109_v6 = vshll.u32 %v1821_v20, 16 }
 0x1d2   : > { %v5018_v14 = vadd.f32 %v5017_v40, %v4929_v15  ;;  %v5229_v12 = vpop.f32.mrf.mxu0  ;;  %v13565_v15 = vld [vmem:[#allocation4 + $0x294] sm:$0xf]  ;;  %2544 = vst [vmem:[#allocation4 + $0x308] sm:$0xf] %v2455_v10  ;;  %v11916_v40 = vor.u32 %v13557_v17, %v11913_v26  ;;  %v2100_v56 = vshrl.u32 %v1820_v50, 16  ;;  %v2103_v41 = vshll.u32 %v1820_v50, 16 }
 0x1d3   : > { %v5228_v18 = vadd.f32 %v5227_v9, %v5139_v28  ;;  %v5052_v9 = vadd.f32 %v14844_v1, %v4963_v7  ;;  %v11944_v58 = vor.u32 %v13565_v15, %v11941_v30  ;;  %v11948_v28 = vor.u32 %v13570_v44, %v11947_v11  ;;  %2609 = vst [vmem:[#allocation4 + $0x30c] sm:$0xf] %v2577_v21  ;;  %v13685_v26 = vld [vmem:[#allocation9 + $0x1d0] sm:$0xff]  ;;  %v1822_v30 = vld [vmem:[#allocation2 + $0x98] sm:$0x1] }
 0x1d4   : > { %v2102_v4 = vrot.slane %v2100_v56, 4  ;;  %v2113_v1 = vshrl.u32 %v1821_v20, 16  ;;  %v2105_v10 = vrot.slane %v2103_v41, 5  ;;  %v2111_v7 = vrot.slane %v2109_v6, 5  ;;  %5490 = vmatpush.bf16.msra.mxu3 %v13685_v26  ;;  %v2318_v50 = vld [vmem:[#allocation2 + $0x98] sm:$0x1] }
 0x1d5   : > { %v11584_v20 = vrot.slane %v2316_v33, 9  ;;  %v13693_v56 = vld [vmem:[#allocation9 + $0x210] sm:$0xff]  ;;  %v11977_v33 = vld [vmem:[#allocation4 + $0x2fc] sm:$0xf0] }
 0x1d6   : > { %v5106_v62 = vpop.f32.mrf.mxu2  ;;  %v2115_v11 = vrot.slane %v2113_v1, 4  ;;  %5579 = vmatpush.bf16.msra.mxu0 %v13693_v56  ;;  %v1824_v56 = vld [vmem:[#allocation2 + $0xa0] sm:$0xf] }
 0x1d7   : > { %v15204_v2 = vadd.f32 %v5106_v62, %v5018_v14  ;;  %v13938_v62 = vld [vmem:[#allocation12 + $0x38] sm:$0xff] }
 0x1d8   : > { %v5140_v39 = vpop.f32.mrf.mxu3  ;;  %9268 = vmatpush.bf16.msra.mxu1 %v13938_v62  ;;  %v2116_v21 = vor.u32 %v2115_v11, %v2111_v7  ;;  %v13571_v62 = vld [vmem:[#allocation4 + $0x2c0] sm:$0xf0]  ;;  %v11949_v11 = vld [vmem:[#allocation4 + $0x2bc] sm:$0xf0] }
 0x1d9   : > { %v5316_v27 = vpop.f32.mrf.mxu1  ;;  %v5141_v3 = vadd.f32 %v5140_v39, %v5052_v9  ;;  %v2317_v9 = vld [vmem:[#allocation2 + $0x94] sm:$0xf] }
 0x1da   : > { %v5317_v14 = vadd.f32 %v5316_v27, %v5228_v18  ;;  %v5232_v57 = vpop.f32.mrf.mxu0  ;;  %v2106_v18 = vor.u32 %v2105_v10, %v2102_v4  ;;  %v2458_v27 = vrot.slane %v2317_v9, 5  ;;  %v2117_v41 = vrot.slane %v2116_v21, 4  ;;  %v11955_v4 = vld [vmem:[#allocation4 + $0x2a0] sm:$0xf] }
 0x1db   : > { %5444 = vmatmul.bf16.gmra.mxu2 %v11920_v16  ;;  %v5230_v17 = vadd.f32 %v5229_v12, %v5141_v3  ;;  %v2119_v16 = vshll.u32 %v1822_v30, 16  ;;  %v1745_v3 = vld [vmem:[#allocation2 + $0x90] sm:$0xf] }
 0x1dc   : > { %5355 = vmatmul.bf16.gmra.mxu1 %v11916_v40  ;;  %v2107_v40 = vrot.slane %v2106_v18, 4  ;;  %1777 = vst [vmem:[#allocation4 + $0x324] sm:$0xf] %v1745_v3  ;;  %v2460_v30 = vrot.slane %v2458_v27, 4 }
 0x1dd   : > { %5182 = vmatmul.bf16.gmra.mxu3 %v11944_v58  ;;  %5271 = vmatmul.bf16.gmra.mxu0 %v11948_v28  ;;  %v2121_v12 = vrot.slane %v2119_v16, 5  ;;  %v4879_v58 = vadd.f32 %v15148_v42, %v14861_v47  ;;  %v2461_v47 = vrot.slane %v2318_v50, 5  ;;  %v13574_v16 = vld [vmem:[#allocation4 + $0x2dc] sm:$0xf]  ;;  %v2578_v50 = vld [vmem:[#allocation2 + $0x9c] sm:$0xf] }
 0x1de   : > { %v5405_v15 = vpop.f32.mrf.mxu2  ;;  %v2112_v1 = vsel %vm14518_vm14, %v2107_v40, %v2111_v7  ;;  %v11956_v40 = vor.u32 %v13571_v62, %v11955_v4  ;;  %2610 = vst [vmem:[#allocation4 + $0x330] sm:$0xf] %v2578_v50  ;;  %v2137_v62 = vshrl.u32 %v1824_v56, 16 }
 0x1df   : > { %v15207_v44 = vadd.f32 %v5405_v15, %v5317_v14  ;;  %v1746_v14 = vld [vmem:[#allocation2 + $0x94] sm:$0xf]  ;;  %v2122_v10 = vsel %vm14518_vm14, %v2117_v41, %v2121_v12  ;;  %v2459_v15 = vsel %vm14485_vm12, %v11584_v20, %v2458_v27  ;;  %2273 = vst [vmem:[#allocation4 + $0x328] sm:$0xf] %v2112_v1  ;;  %v2462_v7 = vsel %vm14485_vm12, %v2460_v30, %v2461_v47  ;;  %v11983_v12 = vld [vmem:[#allocation4 + $0x2e0] sm:$0xf] }
 0x1e0   : > { %v5143_v43 = vpop.f32.mrf.mxu3  ;;  %1778 = vst [vmem:[#allocation4 + $0x348] sm:$0xf] %v1746_v14  ;;  %v4968_v21 = vadd.f32 %v14875_v29, %v4879_v58  ;;  %v13579_v20 = vld [vmem:[#allocation4 + $0x300] sm:$0xf0]  ;;  %v2579_v27 = vld [vmem:[#allocation2 + $0xa0] sm:$0xf]  ;;  %v11980_v41 = vor.u32 %v13574_v16, %v11977_v33 }
 0x1e1   : > { %v5318_v39 = vpop.f32.mrf.mxu1  ;;  %v5144_v6 = vadd.f32 %v5143_v43, %v14867_v0  ;;  %2274 = vst [vmem:[#allocation4 + $0x34c] sm:$0xf] %v2122_v10  ;;  %v1823_v43 = vld [vmem:[#allocation2 + $0x9c] sm:$0xf]  ;;  %v2133_v1 = vshll.u32 %v1824_v56, 16 }
 0x1e2   : > { %v5319_v28 = vadd.f32 %v5318_v39, %v5230_v17  ;;  %v5234_v26 = vpop.f32.mrf.mxu0  ;;  %v13566_v17 = vld [vmem:[#allocation4 + $0x29c] sm:$0xf]  ;;  %2545 = vst [vmem:[#allocation4 + $0x32c] sm:$0xf] %v2459_v15  ;;  %v2124_v29 = vshrl.u32 %v1823_v43, 16  ;;  %v2127_v58 = vshll.u32 %v1823_v43, 16 }
 0x1e3   : > { %v5233_v0 = vadd.f32 %v5232_v57, %v5144_v6  ;;  %2546 = vst [vmem:[#allocation4 + $0x350] sm:$0xf] %v2462_v7  ;;  %v5057_v57 = vadd.f32 %v14885_v32, %v4968_v21  ;;  %v11952_v39 = vor.u32 %v13566_v17, %v11949_v11  ;;  %v11984_v6 = vor.u32 %v13579_v20, %v11983_v12  ;;  %v1825_v47 = vld [vmem:[#allocation2 + $0xa4] sm:$0x1]  ;;  %v2320_v33 = vld [vmem:[#allocation2 + $0xa0] sm:$0xf] }
 0x1e4   : > { %2611 = vst [vmem:[#allocation4 + $0x354] sm:$0xf] %v2579_v27  ;;  %v2126_v15 = vrot.slane %v2124_v29, 4  ;;  %v2129_v30 = vrot.slane %v2127_v58, 5  ;;  %v2135_v17 = vrot.slane %v2133_v1, 5  ;;  %v2139_v11 = vrot.slane %v2137_v62, 4 }
 0x1e5   : > { %v2143_v16 = vshll.u32 %v1825_v47, 16  ;;  %v2321_v12 = vld [vmem:[#allocation2 + $0xa4] sm:$0x1]  ;;  %v1747_v56 = vld [vmem:[#allocation2 + $0x9c] sm:$0xf] }
 0x1e6   : > { %v5407_v18 = vpop.f32.mrf.mxu2  ;;  %v2130_v7 = vor.u32 %v2129_v30, %v2126_v15  ;;  %v2468_v29 = vrot.slane %v2321_v12, 5  ;;  %1779 = vst [vmem:[#allocation4 + $0x36c] sm:$0xf] %v1747_v56  ;;  %v13580_v62 = vld [vmem:[#allocation4 + $0x308] sm:$0xf0] }
 0x1e7   : > { %v15221_v9 = vadd.f32 %v5407_v18, %v5319_v28  ;;  %v2145_v50 = vrot.slane %v2143_v16, 5  ;;  %v13575_v47 = vld [vmem:[#allocation4 + $0x2e4] sm:$0xf]  ;;  %v2580_v12 = vld [vmem:[#allocation2 + $0xa8] sm:$0xf] }
 0x1e8   : > { %v5145_v14 = vpop.f32.mrf.mxu3  ;;  %v2131_v20 = vrot.slane %v2130_v7, 4  ;;  %2612 = vst [vmem:[#allocation4 + $0x378] sm:$0xf] %v2580_v12  ;;  %v2324_v12 = vld [vmem:[#allocation2 + $0xb0] sm:$0x1] }
 0x1e9   : > { %v5321_v3 = vpop.f32.mrf.mxu1  ;;  %v5146_v4 = vadd.f32 %v5145_v14, %v5057_v57 }
 0x1ea   : > { %v5322_v28 = vadd.f32 %v5321_v3, %v5233_v0  ;;  %v5237_v10 = vpop.f32.mrf.mxu0  ;;  %v2140_v0 = vor.u32 %v2139_v11, %v2135_v17  ;;  %v1748_v3 = vld [vmem:[#allocation2 + $0xa0] sm:$0xf]  ;;  %v2136_v14 = vsel %vm14518_vm14, %v2131_v20, %v2135_v17  ;;  %v11985_v17 = vld [vmem:[#allocation4 + $0x304] sm:$0xf0]  ;;  %v2581_v20 = vld [vmem:[#allocation2 + $0xac] sm:$0xf] }
 0x1eb   : > { %5449 = vmatmul.bf16.gmra.mxu2 %v11956_v40  ;;  %v5235_v32 = vadd.f32 %v5234_v26, %v5146_v4  ;;  %v2319_v40 = vld [vmem:[#allocation2 + $0x9c] sm:$0xe]  ;;  %1780 = vst [vmem:[#allocation4 + $0x390] sm:$0xf] %v1748_v3 }
 0x1ec   : > { %5360 = vmatmul.bf16.gmra.mxu1 %v11952_v39  ;;  %v11585_v27 = vrot.slane %v2319_v40, 9  ;;  %v2141_v57 = vrot.slane %v2140_v0, 4  ;;  %v2465_v39 = vrot.slane %v2320_v33, 5  ;;  %2275 = vst [vmem:[#allocation4 + $0x370] sm:$0xf] %v2136_v14 }
 0x1ed   : > { %5187 = vmatmul.bf16.gmra.mxu3 %v11980_v41  ;;  %5276 = vmatmul.bf16.gmra.mxu0 %v11984_v6  ;;  %v4884_v41 = vadd.f32 %v15148_v42, %v14911_v63  ;;  %v12019_v0 = vld [vmem:[#allocation4 + $0x328] sm:$0xf]  ;;  %v13588_v40 = vld [vmem:[#allocation4 + $0x348] sm:$0xf0]  ;;  %2613 = vst [vmem:[#allocation4 + $0x39c] sm:$0xf] %v2581_v20 }
 0x1ee   : > { %v5410_v18 = vpop.f32.mrf.mxu2  ;;  %v2146_v4 = vsel %vm14518_vm14, %v2141_v57, %v2145_v50  ;;  %v2466_v15 = vsel %vm14485_vm12, %v11585_v27, %v2465_v39  ;;  %v2467_v30 = vrot.slane %v2465_v39, 4  ;;  %v11988_v50 = vor.u32 %v13575_v47, %v11985_v17  ;;  %v1826_v27 = vld [vmem:[#allocation2 + $0xa8] sm:$0xf]  ;;  %v1827_v57 = vld [vmem:[#allocation2 + $0xac] sm:$0xf] }
 0x1ef   : > { %v15224_v21 = vadd.f32 %v5410_v18, %v5322_v28  ;;  %v11991_v28 = vld [vmem:[#allocation4 + $0x2e8] sm:$0xf]  ;;  %2276 = vst [vmem:[#allocation4 + $0x394] sm:$0xf] %v2146_v4  ;;  %v4973_v7 = vadd.f32 %v14920_v24, %v4884_v41  ;;  %v12020_v56 = vor.u32 %v13588_v40, %v12019_v0  ;;  %v13849_v24 = vld [vmem:[#allocation11 + $0x30] sm:$0xff]  ;;  %v2148_v3 = vshrl.u32 %v1826_v27, 16 }
 0x1f0   : > { %v5148_v43 = vpop.f32.mrf.mxu3  ;;  %v12013_v18 = vld [vmem:[#allocation4 + $0x344] sm:$0xf0]  ;;  %v11992_v33 = vor.u32 %v13580_v62, %v11991_v28  ;;  %2547 = vst [vmem:[#allocation4 + $0x374] sm:$0xf] %v2466_v15  ;;  %v2151_v41 = vshll.u32 %v1826_v27, 16  ;;  %10526 = vmatpush.bf16.msra.mxu2 %v13849_v24  ;;  %v13937_v15 = vld [vmem:[#allocation12 + $0x30] sm:$0xff] }
 0x1f1   : > { %v5323_v26 = vpop.f32.mrf.mxu1  ;;  %v5149_v58 = vadd.f32 %v5148_v43, %v14907_v5  ;;  %v2469_v5 = vsel %vm14485_vm12, %v2467_v30, %v2468_v29  ;;  %v2150_v28 = vrot.slane %v2148_v3, 4  ;;  %v13684_v62 = vld [vmem:[#allocation9 + $0x1c8] sm:$0xff]  ;;  %9269 = vmatpush.bf16.msra.mxu1 %v13937_v15  ;;  %v2323_v0 = vld [vmem:[#allocation2 + $0xac] sm:$0xf]  ;;  %v2475_v15 = vrot.slane %v2324_v12, 5 }
 0x1f2   : > { %v5324_v6 = vadd.f32 %v5323_v26, %v5235_v32  ;;  %v5239_v1 = vpop.f32.mrf.mxu0  ;;  %v13583_v32 = vld [vmem:[#allocation4 + $0x324] sm:$0xf]  ;;  %2548 = vst [vmem:[#allocation4 + $0x398] sm:$0xf] %v2469_v5  ;;  %v2153_v30 = vrot.slane %v2151_v41, 5  ;;  %5491 = vmatpush.bf16.msra.mxu3 %v13684_v62 }
 0x1f3   : > { %v5238_v11 = vadd.f32 %v5237_v10, %v5149_v58  ;;  %v5062_v10 = vadd.f32 %v14934_v13, %v4973_v7  ;;  %v12016_v43 = vor.u32 %v13583_v32, %v12013_v18  ;;  %v2161_v13 = vshrl.u32 %v1827_v57, 16  ;;  %v2322_v7 = vld [vmem:[#allocation2 + $0xa8] sm:$0xe]  ;;  %v13584_v41 = vld [vmem:[#allocation4 + $0x32c] sm:$0xf] }
 0x1f4   : > { %v11586_v20 = vrot.slane %v2322_v7, 9 }
 0x1f5   : > { %v2163_v32 = vrot.slane %v2161_v13, 4  ;;  %v13589_v13 = vld [vmem:[#allocation4 + $0x350] sm:$0xf0] }
 0x1f6   : > { %v5412_v63 = vpop.f32.mrf.mxu2 }
 0x1f7   : > { %v15238_v16 = vadd.f32 %v5412_v63, %v5324_v6  ;;  %v2157_v6 = vshll.u32 %v1827_v57, 16  ;;  %v1828_v63 = vld [vmem:[#allocation2 + $0xb0] sm:$0x1]  ;;  %v13692_v57 = vld [vmem:[#allocation9 + $0x208] sm:$0xff] }
 0x1f8   : > { %v5150_v26 = vpop.f32.mrf.mxu3  ;;  %v2167_v5 = vshll.u32 %v1828_v63, 16  ;;  %5580 = vmatpush.bf16.msra.mxu0 %v13692_v57 }
 0x1f9   : > { %v5326_v39 = vpop.f32.mrf.mxu1  ;;  %v5151_v29 = vadd.f32 %v5150_v26, %v5062_v10  ;;  %v2159_v47 = vrot.slane %v2157_v6, 5  ;;  %v2472_v10 = vrot.slane %v2323_v0, 5  ;;  %v1750_v26 = vld [vmem:[#allocation2 + $0xac] sm:$0xf]  ;;  %v12021_v6 = vld [vmem:[#allocation4 + $0x34c] sm:$0xf0] }
 0x1fa   : > { %v5327_v14 = vadd.f32 %v5326_v39, %v5238_v11  ;;  %v5242_v58 = vpop.f32.mrf.mxu0  ;;  %v2154_v11 = vor.u32 %v2153_v30, %v2150_v28  ;;  %v1749_v39 = vld [vmem:[#allocation2 + $0xa8] sm:$0xf]  ;;  %1782 = vst [vmem:[#allocation4 + $0x3d8] sm:$0xf] %v1750_v26  ;;  %v13592_v30 = vld [vmem:[#allocation4 + $0x36c] sm:$0xf] }
 0x1fb   : > { %5454 = vmatmul.bf16.gmra.mxu2 %v11992_v33  ;;  %v5240_v4 = vadd.f32 %v5239_v1, %v5151_v29  ;;  %v2164_v33 = vor.u32 %v2163_v32, %v2159_v47  ;;  %v2169_v1 = vrot.slane %v2167_v5, 5  ;;  %1781 = vst [vmem:[#allocation4 + $0x3b4] sm:$0xf] %v1749_v39  ;;  %v13597_v0 = vld [vmem:[#allocation4 + $0x390] sm:$0xf0] }
 0x1fc   : > { %5365 = vmatmul.bf16.gmra.mxu1 %v11988_v50  ;;  %v2155_v40 = vrot.slane %v2154_v11, 4  ;;  %v354_v11 = vld [vmem:[#allocation2 + $0xc0] sm:$0x1] }
 0x1fd   : > { %5192 = vmatmul.bf16.gmra.mxu3 %v12016_v43  ;;  %5281 = vmatmul.bf16.gmra.mxu0 %v12020_v56  ;;  %v2165_v24 = vrot.slane %v2164_v33, 4  ;;  %v4889_v43 = vadd.f32 %v15148_v42, %v14964_v54  ;;  %v2473_v54 = vsel %vm14485_vm12, %v11586_v20, %v2472_v10  ;;  %v12024_v20 = vor.u32 %v13584_v41, %v12021_v6  ;;  %v446_v6 = vld [vmem:[%s14410_s7 + $0x78] sm:$0xf] }
 0x1fe   : > { %v5415_v17 = vpop.f32.mrf.mxu2  ;;  %v2160_v29 = vsel %vm14518_vm14, %v2155_v40, %v2159_v47  ;;  %v12055_v47 = vld [vmem:[#allocation4 + $0x370] sm:$0xf]  ;;  %2549 = vst [vmem:[#allocation4 + $0x3bc] sm:$0xf] %v2473_v54  ;;  %v2582_v40 = vld [vmem:[#allocation2 + $0xb4] sm:$0xf] }
 0x1ff   : > { %v15241_v18 = vadd.f32 %v5415_v17, %v5327_v14  ;;  %v12027_v14 = vld [vmem:[#allocation4 + $0x330] sm:$0xf]  ;;  %v2170_v62 = vsel %vm14518_vm14, %v2165_v24, %v2169_v1  ;;  %2277 = vst [vmem:[#allocation4 + $0x3b8] sm:$0xf] %v2160_v29  ;;  %v4978_v5 = vadd.f32 %v14966_v55, %v4889_v43  ;;  %v2583_v1 = vld [vmem:[#allocation2 + $0xb8] sm:$0xf]  ;;  %v12056_v39 = vor.u32 %v13597_v0, %v12055_v47 }
 0x200   : > { %v5153_v27 = vpop.f32.mrf.mxu3  ;;  %v12049_v17 = vld [vmem:[#allocation4 + $0x38c] sm:$0xf0]  ;;  %2278 = vst [vmem:[#allocation4 + $0x3dc] sm:$0xf] %v2170_v62  ;;  %v12028_v33 = vor.u32 %v13589_v13, %v12027_v14  ;;  %v1831_v62 = vld [vmem:[#allocation2 + $0xbc] sm:$0x1] }
 0x201   : > { %v5328_v50 = vpop.f32.mrf.mxu1  ;;  %v5154_v3 = vadd.f32 %v5153_v27, %v14962_v53  ;;  %v5067_v12 = vadd.f32 %v14975_v51, %v4978_v5  ;;  %2614 = vst [vmem:[#allocation4 + $0x3c0] sm:$0xf] %v2582_v40  ;;  %v12052_v57 = vor.u32 %v13592_v30, %v12049_v17  ;;  %v2191_v17 = vshll.u32 %v1831_v62, 16  ;;  %v2327_v5 = vld [vmem:[#allocation2 + $0xbc] sm:$0x1] }
 0x202   : > { %v5329_v56 = vadd.f32 %v5328_v50, %v5240_v4  ;;  %v5244_v28 = vpop.f32.mrf.mxu0  ;;  %v2474_v4 = vrot.slane %v2472_v10, 4  ;;  %v1829_v10 = vld [vmem:[#allocation2 + $0xb4] sm:$0xf]  ;;  %v1830_v50 = vld [vmem:[#allocation2 + $0xb8] sm:$0xf]  ;;  %v706_v47 = vshrl.u32 %v446_v6, 16 }
 0x203   : > { %v5243_v53 = vadd.f32 %v5242_v58, %v5154_v3  ;;  %v355_v58 = vsel %vm14436_vm2, 0, %v354_v11  ;;  %2615 = vst [vmem:[#allocation4 + $0x3e4] sm:$0xf] %v2583_v1  ;;  %v2172_v26 = vshrl.u32 %v1829_v10, 16  ;;  %v2175_v24 = vshll.u32 %v1829_v10, 16 }
 0x204   : > { %v2476_v32 = vsel %vm14485_vm12, %v2474_v4, %v2475_v15  ;;  %v2181_v3 = vshll.u32 %v1830_v50, 16  ;;  %v2185_v14 = vshrl.u32 %v1830_v50, 16  ;;  %356 = vst [vmem:[#allocation2 + $0xc0] sm:$0x1] %v355_v58  ;;  %v2325_v11 = vld [vmem:[#allocation2 + $0xb4] sm:$0xe] }
 0x205   : > { %2550 = vst [vmem:[#allocation4 + $0x3e0] sm:$0xf] %v2476_v32  ;;  %v2174_v51 = vrot.slane %v2172_v26, 4  ;;  %v2177_v41 = vrot.slane %v2175_v24, 5  ;;  %v2193_v0 = vrot.slane %v2191_v17, 5  ;;  %v11587_v58 = vrot.slane %v2325_v11, 9 }
 0x206   : > { %v5417_v63 = vpop.f32.mrf.mxu2  ;;  %v2183_v54 = vrot.slane %v2181_v3, 5  ;;  %v2187_v4 = vrot.slane %v2185_v14, 4  ;;  %v2482_v1 = vrot.slane %v2327_v5, 5  ;;  %v12063_v50 = vld [vmem:[#allocation4 + $0x378] sm:$0xf]  ;;  %v4894_v26 = vadd.f32 %v15148_v42, %v14993_v61 }
 0x207   : > { %v15255_v7 = vadd.f32 %v5417_v63, %v5329_v56  ;;  %v2178_v30 = vor.u32 %v2177_v41, %v2174_v51  ;;  %v2326_v63 = vld [vmem:[#allocation2 + $0xb8] sm:$0xf]  ;;  %v410_v14 = vld [vmem:[#allocation2 + $0xc8] sm:$0x1]  ;;  %v13593_v51 = vld [vmem:[#allocation4 + $0x374] sm:$0xf] }
 0x208   : > { %v5155_v55 = vpop.f32.mrf.mxu3  ;;  %v2479_v40 = vrot.slane %v2326_v63, 5  ;;  %v12057_v41 = vld [vmem:[#allocation4 + $0x394] sm:$0xf0]  ;;  %v13601_v17 = vld [vmem:[#allocation4 + $0x3b4] sm:$0xf]  ;;  %v4983_v5 = vadd.f32 %v15007_v38, %v4894_v26 }
 0x209   : > { %v5331_v27 = vpop.f32.mrf.mxu1  ;;  %v5156_v56 = vadd.f32 %v5155_v55, %v5067_v12  ;;  %v708_v12 = vrot.slane %v706_v47, 7  ;;  %v1752_v55 = vld [vmem:[#allocation2 + $0xb8] sm:$0xf] }
 0x20a   : > { %v5332_v43 = vadd.f32 %v5331_v27, %v5243_v53  ;;  %v5247_v29 = vpop.f32.mrf.mxu0  ;;  %v2188_v53 = vor.u32 %v2187_v4, %v2183_v54  ;;  %v1751_v27 = vld [vmem:[#allocation2 + $0xb4] sm:$0xf]  ;;  %1784 = vst [vmem:[#allocation4 + $0x420] sm:$0xf] %v1752_v55  ;;  %v2481_v4 = vrot.slane %v2479_v40, 4 }
 0x20b   : > { %5459 = vmatmul.bf16.gmra.mxu2 %v12028_v33  ;;  %v5245_v13 = vadd.f32 %v5244_v28, %v5156_v56  ;;  %v2179_v33 = vrot.slane %v2178_v30, 4  ;;  %v13598_v56 = vld [vmem:[#allocation4 + $0x398] sm:$0xf0]  ;;  %1783 = vst [vmem:[#allocation4 + $0x3fc] sm:$0xf] %v1751_v27  ;;  %v13848_v27 = vld [vmem:[#allocation11 + $0x28] sm:$0xff] }
 0x20c   : > { %5370 = vmatmul.bf16.gmra.mxu1 %v12024_v20  ;;  %v2189_v28 = vrot.slane %v2188_v53, 4  ;;  %v2483_v63 = vsel %vm14485_vm12, %v2481_v4, %v2482_v1  ;;  %v712_v53 = vrot.slane %v708_v12, 4  ;;  %10527 = vmatpush.bf16.msra.mxu2 %v13848_v27 }
 0x20d   : > { %5197 = vmatmul.bf16.gmra.mxu3 %v12052_v57  ;;  %5286 = vmatmul.bf16.gmra.mxu0 %v12056_v39  ;;  %v2184_v57 = vsel %vm14518_vm14, %v2179_v33, %v2183_v54  ;;  %v447_v39 = vld [vmem:[%s14410_s7 + $0x7c] sm:$0xf]  ;;  %v2480_v54 = vsel %vm14485_vm12, %v11587_v58, %v2479_v40  ;;  %v12091_v58 = vld [vmem:[#allocation4 + $0x3b8] sm:$0xf]  ;;  %2552 = vst [vmem:[#allocation4 + $0x428] sm:$0xf] %v2483_v63 }
 0x20e   : > { %v5420_v15 = vpop.f32.mrf.mxu2  ;;  %v2194_v3 = vsel %vm14518_vm14, %v2189_v28, %v2193_v0  ;;  %v714_v30 = vshrl.u32 %v447_v39, 16  ;;  %2279 = vst [vmem:[#allocation4 + $0x400] sm:$0xf] %v2184_v57  ;;  %v717_v42 = vshll.u32 %v447_v39, 16  ;;  %v12085_v0 = vld [vmem:[#allocation4 + $0x3d4] sm:$0xf0] }
 0x20f   : > { %v15261_v32 = vadd.f32 %v5420_v15, %v5332_v43  ;;  %v709_v15 = vshll.u32 %v446_v6, 16  ;;  %2280 = vst [vmem:[#allocation4 + $0x424] sm:$0xf] %v2194_v3  ;;  %v12064_v6 = vor.u32 %v13598_v56, %v12063_v50  ;;  %v13606_v28 = vld [vmem:[#allocation4 + $0x3d8] sm:$0xf0]  ;;  %v12088_v50 = vor.u32 %v13601_v17, %v12085_v0  ;;  %v13936_v56 = vld [vmem:[#allocation12 + $0x28] sm:$0xff] }
 0x210   : > { %v5158_v10 = vpop.f32.mrf.mxu3  ;;  %v15275_v11 = vrot.slane %v714_v30, 7  ;;  %2551 = vst [vmem:[#allocation4 + $0x404] sm:$0xf] %v2480_v54  ;;  %v12092_v26 = vor.u32 %v13606_v28, %v12091_v58  ;;  %9270 = vmatpush.bf16.msra.mxu1 %v13936_v56  ;;  %v13607_v17 = vld [vmem:[#allocation4 + $0x3e0] sm:$0xf0] }
 0x211   : > { %v5333_v20 = vpop.f32.mrf.mxu1  ;;  %v5159_v43 = vadd.f32 %v5158_v10, %v14997_v59  ;;  %v878_v59 = vld [vmem:[#allocation2 + $0xc0] sm:$0xf]  ;;  %v711_v47 = vor.u32 %v709_v15, %v708_v12  ;;  %v5072_v12 = vadd.f32 %v15009_v52, %v4983_v5  ;;  %v13683_v52 = vld [vmem:[#allocation9 + $0x1c0] sm:$0xff]  ;;  %v357_v15 = vld [vmem:[#allocation2 + $0xcc] sm:$0x1] }
 0x212   : > { %v5334_v24 = vadd.f32 %v5333_v20, %v5245_v13  ;;  %v5249_v62 = vpop.f32.mrf.mxu0  ;;  %v719_v40 = vor.u32 %v717_v42, %v15275_v11  ;;  %v12060_v20 = vor.u32 %v13593_v51, %v12057_v41  ;;  %v721_v51 = vrot.slane %v15275_v11, 4  ;;  %5492 = vmatpush.bf16.msra.mxu3 %v13683_v52  ;;  %v15294_v11 = vld [vmem:[%s16983_s4] ss:$0 sm:$0xff] }
 0x213   : > { %v5248_v61 = vadd.f32 %v5247_v29, %v5159_v43  ;;  %v411_v29 = vsel %vm14456_vm8, 0, %v410_v14  ;;  %v879_v1 = vsel %vm14491_vm13, %v711_v47, %v878_v59  ;;  %v13691_v47 = vld [vmem:[#allocation9 + $0x200] sm:$0xff] }
 0x214   : > { %880 = vst [vmem:[#allocation2 + $0xc0] sm:$0xf] %v879_v1  ;;  %v720_v55 = vsel %vm14470_vm11, %v712_v53, %v719_v40  ;;  %5581 = vmatpush.bf16.msra.mxu0 %v13691_v47 }
 0x215   : > { %412 = vst [vmem:[#allocation2 + $0xc8] sm:$0x1] %v411_v29  ;;  %v17034_v29 = vld [vmem:[#allocation23_spill] sm:$0xff] }
 0x216   : > { %v5422_v13 = vpop.f32.mrf.mxu2  ;;  %881 = vst [vmem:[#allocation2 + $0xc4] sm:$0xf] %v720_v55 }
 0x217   : > { %v15278_v33 = vadd.f32 %v5422_v13, %v5334_v24  ;;  %v12099_v13 = vld [vmem:[#allocation4 + $0x3c0] sm:$0xf] }
 0x218   : > { %v5160_v10 = vpop.f32.mrf.mxu3 }
 0x219   : > { %v5336_v38 = vpop.f32.mrf.mxu1  ;;  %v5161_v39 = vadd.f32 %v5160_v10, %v5072_v12  ;;  %v13602_v12 = vld [vmem:[#allocation4 + $0x3bc] sm:$0xf] }
 0x21a   : > { %v5337_v57 = vadd.f32 %v5336_v38, %v5248_v61  ;;  %v5252_v24 = vpop.f32.mrf.mxu0 }
 0x21b   : > { %5464 = vmatmul.bf16.gmra.mxu2 %v12064_v6  ;;  %v5250_v43 = vadd.f32 %v5249_v62, %v5161_v39  ;;  %v2584_v41 = vld [vmem:[#allocation2 + $0xc0] sm:$0xf]  ;;  %v4899_v6 = vadd.f32 %v15294_v11, %v15022_v23  ;;  %v358_v39 = vsel %vm14436_vm2, 0, %v357_v15 }
 0x21c   : > { %5375 = vmatmul.bf16.gmra.mxu1 %v12060_v20  ;;  %v1832_v54 = vld [vmem:[#allocation2 + $0xc0] sm:$0xf]  ;;  %2616 = vst [vmem:[#allocation4 + $0x408] sm:$0xf] %v2584_v41  ;;  %v882_v30 = vld [vmem:[#allocation2 + $0xc8] sm:$0x1] }
 0x21d   : > { %5202 = vmatmul.bf16.gmra.mxu3 %v12088_v50  ;;  %5291 = vmatmul.bf16.gmra.mxu0 %v12092_v26  ;;  %v2328_v4 = vld [vmem:[#allocation2 + $0xc0] sm:$0xe]  ;;  %v2196_v61 = vshrl.u32 %v1832_v54, 16  ;;  %v2199_v42 = vshll.u32 %v1832_v54, 16  ;;  %v2585_v63 = vld [vmem:[#allocation2 + $0xc4] sm:$0xf]  ;;  %v883_v40 = vsel %vm14436_vm2, %v721_v51, %v882_v30  ;;  %v12100_v54 = vor.u32 %v13607_v17, %v12099_v13 }
 0x21e   : > { %v5425_v3 = vpop.f32.mrf.mxu2  ;;  %v1753_v53 = vld [vmem:[#allocation2 + $0xc0] sm:$0xf]  ;;  %v11588_v5 = vrot.slane %v2328_v4, 9  ;;  %2617 = vst [vmem:[#allocation4 + $0x42c] sm:$0xf] %v2585_v63  ;;  %v17035_v51 = vld [vmem:[#allocation24_spill] sm:$0xff] }
 0x21f   : > { %v15288_v14 = vadd.f32 %v5425_v3, %v5337_v57  ;;  %v1754_v28 = vld [vmem:[#allocation2 + $0xc4] sm:$0xf]  ;;  %v12093_v20 = vld [vmem:[#allocation4 + $0x3dc] sm:$0xf0]  ;;  %1785 = vst [vmem:[#allocation4 + $0x444] sm:$0xf] %v1753_v53  ;;  %v4988_v41 = vadd.f32 %v17035_v51, %v4899_v6 }
 0x220   : > { %v5163_v59 = vpop.f32.mrf.mxu3  ;;  %v1833_v1 = vld [vmem:[#allocation2 + $0xc4] sm:$0xf]  ;;  %v2198_v10 = vrot.slane %v2196_v61, 4  ;;  %v2201_v50 = vrot.slane %v2199_v42, 5  ;;  %1786 = vst [vmem:[#allocation4 + $0x468] sm:$0xf] %v1754_v28  ;;  %v12096_v47 = vor.u32 %v13602_v12, %v12093_v20 }
 0x221   : > { %v5338_v62 = vpop.f32.mrf.mxu1  ;;  %v5164_v58 = vadd.f32 %v5163_v59, %v17034_v29  ;;  %v2205_v27 = vshll.u32 %v1833_v1, 16  ;;  %v2209_v55 = vshrl.u32 %v1833_v1, 16  ;;  %v2329_v57 = vld [vmem:[#allocation2 + $0xc4] sm:$0xf]  ;;  %884 = vst [vmem:[#allocation2 + $0xc8] sm:$0x1] %v883_v40 }
 0x222   : > { %v15298_v0 = vadd.f32 %v5338_v62, %v5250_v43  ;;  %v5254_v38 = vpop.f32.mrf.mxu0  ;;  %v2202_v43 = vor.u32 %v2201_v50, %v2198_v10  ;;  %v2486_v3 = vrot.slane %v2329_v57, 5  ;;  %v13610_v4 = vld [vmem:[#allocation4 + $0x3fc] sm:$0xf]  ;;  %v12121_v30 = vld [vmem:[#allocation4 + $0x41c] sm:$0xf0]  ;;  %v17036_v59 = vld [vmem:[#allocation25_spill] sm:$0xff] }
 0x223   : > { %v5253_v23 = vadd.f32 %v5252_v24, %v5164_v58  ;;  %v2207_v52 = vrot.slane %v2205_v27, 5  ;;  %v2211_v56 = vrot.slane %v2209_v55, 4  ;;  %359 = vst [vmem:[#allocation2 + $0xcc] sm:$0x1] %v358_v39  ;;  %v12127_v61 = vld [vmem:[#allocation4 + $0x400] sm:$0xf]  ;;  %v5077_v63 = vadd.f32 %v17036_v59, %v4988_v41 }
 0x224   : > { %v13615_v24 = vld [vmem:[#allocation4 + $0x420] sm:$0xf0]  ;;  %v2203_v62 = vrot.slane %v2202_v43, 4  ;;  %v2487_v15 = vsel %vm14485_vm12, %v11588_v5, %v2486_v3  ;;  %v2587_v53 = vld [vmem:[#allocation2 + $0xd0] sm:$0xf]  ;;  %v12124_v6 = vor.u32 %v13610_v4, %v12121_v30  ;;  %v2488_v20 = vrot.slane %v2486_v3, 4 }
 0x225   : > { %v13935_v42 = vld [vmem:[#allocation12 + $0x20] sm:$0xff]  ;;  %2553 = vst [vmem:[#allocation4 + $0x44c] sm:$0xf] %v2487_v15  ;;  %v2620_v29 = vld [vmem:[#allocation2 + $0x18] sm:$0xf]  ;;  %v2212_v17 = vor.u32 %v2211_v56, %v2207_v52  ;;  %v12128_v5 = vor.u32 %v13615_v24, %v12127_v61  ;;  %v13934_v27 = vld [vmem:[#allocation12 + $0x18] sm:$0xff] }
 0x226   : > { %v15305_v26 = vpop.f32.mrf.mxu2  ;;  %9271 = vmatpush.bf16.msra.mxu1 %v13935_v42  ;;  %v2208_v13 = vsel %vm14518_vm14, %v2203_v62, %v2207_v52  ;;  %2619 = vst [vmem:[#allocation4 + $0x474] sm:$0xf] %v2587_v53  ;;  %v2669_v40 = vshrl.u32 %v2620_v29, 16  ;;  %v2621_v50 = vld [vmem:[#allocation2 + $0x1c] sm:$0xf]  ;;  %v2672_v57 = vshll.u32 %v2620_v29, 16 }
 0x227   : > { %2281 = vst [vmem:[#allocation4 + $0x448] sm:$0xf] %v2208_v13  ;;  %v2678_v39 = vshll.u32 %v2621_v50, 16  ;;  %v2622_v4 = vld [vmem:[#allocation2 + $0x20] sm:$0x1]  ;;  %v2213_v56 = vrot.slane %v2212_v17, 4 }
 0x228   : > { %v5165_v28 = vpop.f32.mrf.mxu3  ;;  %v2671_v55 = vrot.slane %v2669_v40, 4  ;;  %v1834_v51 = vld [vmem:[#allocation2 + $0xc8] sm:$0x1]  ;;  %v2674_v61 = vrot.slane %v2672_v57, 5  ;;  %v2682_v42 = vshrl.u32 %v2621_v50, 16  ;;  %v2688_v62 = vshll.u32 %v2622_v4, 16 }
 0x229   : > { %v5341_v58 = vpop.f32.mrf.mxu1  ;;  %v5166_v10 = vadd.f32 %v5165_v28, %v5077_v63  ;;  %v2330_v41 = vld [vmem:[#allocation2 + $0xc8] sm:$0x1]  ;;  %v2215_v30 = vshll.u32 %v1834_v51, 16  ;;  %v2680_v3 = vrot.slane %v2678_v39, 5  ;;  %v13933_v59 = vld [vmem:[#allocation12 + $0x10] sm:$0xff]  ;;  %v13932_v40 = vld [vmem:[#allocation12 + $0x8] sm:$0xff] }
 0x22a   : > { %v5342_v1 = vadd.f32 %v5341_v58, %v5253_v23  ;;  %v5257_v12 = vpop.f32.mrf.mxu0  ;;  %9272 = vmatpush.bf16.msra.mxu1 %v13934_v27  ;;  %v2586_v23 = vld [vmem:[#allocation2 + $0xcc] sm:$0xf]  ;;  %v2675_v63 = vor.u32 %v2674_v61, %v2671_v55  ;;  %v2684_v53 = vrot.slane %v2682_v42, 4  ;;  %v3117_v29 = vld [vmem:[#allocation2 + $0x1c] sm:$0xf] }
 0x22b   : > { %5469 = vmatmul.bf16.gmra.mxu2 %v12100_v54  ;;  %v5255_v43 = vadd.f32 %v5254_v38, %v5166_v10  ;;  %v2489_v54 = vrot.slane %v2330_v41, 5  ;;  %2618 = vst [vmem:[#allocation4 + $0x450] sm:$0xf] %v2586_v23  ;;  %v2217_v15 = vrot.slane %v2215_v30, 5  ;;  %v17037_v58 = vld [vmem:[#allocation26_spill] sm:$0xff]  ;;  %v2690_v10 = vrot.slane %v2688_v62, 5 }
 0x22c   : > { %5380 = vmatmul.bf16.gmra.mxu1 %v12096_v47  ;;  %v3116_v47 = vld [vmem:[#allocation2 + $0x18] sm:$0xe]  ;;  %v4904_v28 = vadd.f32 %v15294_v11, %v17037_v58  ;;  %v2685_v55 = vor.u32 %v2684_v53, %v2680_v3  ;;  %v13616_v41 = vld [vmem:[#allocation4 + $0x428] sm:$0xf0]  ;;  %v13611_v23 = vld [vmem:[#allocation4 + $0x404] sm:$0xf] }
 0x22d   : > { %5207 = vmatmul.bf16.gmra.mxu3 %v12124_v6  ;;  %5296 = vmatmul.bf16.gmra.mxu0 %v12128_v5  ;;  %v2490_v38 = vsel %vm14485_vm12, %v2488_v20, %v2489_v54  ;;  %v2218_v17 = vsel %vm14518_vm14, %v2213_v56, %v2217_v15  ;;  %v3118_v5 = vld [vmem:[#allocation2 + $0x20] sm:$0x1]  ;;  %v17038_v20 = vld [vmem:[#allocation27_spill] sm:$0xff]  ;;  %v11589_v57 = vrot.slane %v3116_v47, 9  ;;  %v12135_v51 = vld [vmem:[#allocation4 + $0x408] sm:$0xf] }
 0x22e   : > { %v5430_v52 = vpop.f32.mrf.mxu2  ;;  %2554 = vst [vmem:[#allocation4 + $0x470] sm:$0xf] %v2490_v38  ;;  %9273 = vmatpush.bf16.msra.mxu1 %v13933_v59  ;;  %v3217_v56 = vrot.slane %v3118_v5, 5  ;;  %v2686_v54 = vrot.slane %v2685_v55, 4  ;;  %v12129_v61 = vld [vmem:[#allocation4 + $0x424] sm:$0xf0]  ;;  %v12136_v59 = vor.u32 %v13616_v41, %v12135_v51 }
 0x22f   : > { %v15313_v24 = vadd.f32 %v5430_v52, %v5342_v1  ;;  %v2676_v1 = vrot.slane %v2675_v63, 4  ;;  %2282 = vst [vmem:[#allocation4 + $0x46c] sm:$0xf] %v2218_v17  ;;  %v3214_v52 = vrot.slane %v3117_v29, 5  ;;  %v17039_v15 = vld [vmem:[#allocation28_spill] sm:$0xff]  ;;  %v13931_v53 = vld [vmem:[#allocation12] sm:$0xff] }
 0x230   : > { %v5168_v6 = vpop.f32.mrf.mxu3  ;;  %v4993_v38 = vadd.f32 %v17039_v15, %v4904_v28  ;;  %v13619_v63 = vld [vmem:[#allocation4 + $0x444] sm:$0xf]  ;;  %v12157_v47 = vld [vmem:[#allocation4 + $0x464] sm:$0xf0]  ;;  %v17040_v58 = vld [vmem:[#allocation29_spill] sm:$0xff] }
 0x231   : > { %v5343_v13 = vpop.f32.mrf.mxu1  ;;  %v5169_v27 = vadd.f32 %v5168_v6, %v17038_v20  ;;  %v2681_v4 = vsel %vm14518_vm14, %v2676_v1, %v2680_v3  ;;  %v3215_v42 = vsel %vm14485_vm12, %v11589_v57, %v3214_v52  ;;  %v3216_v62 = vrot.slane %v3214_v52, 4  ;;  %v2623_v17 = vld [vmem:[#allocation2 + $0x24] sm:$0xf] }
 0x232   : > { %v15321_v50 = vadd.f32 %v5343_v13, %v5255_v43  ;;  %v5259_v39 = vpop.f32.mrf.mxu0  ;;  %3084 = vst [vmem:[#allocation4 + $0x1c] sm:$0xf] %v2681_v4  ;;  %9274 = vmatpush.bf16.msra.mxu1 %v13932_v40  ;;  %v2691_v3 = vsel %vm14518_vm14, %v2686_v54, %v2690_v10  ;;  %v5082_v13 = vadd.f32 %v17040_v58, %v4993_v38  ;;  %v2624_v40 = vld [vmem:[#allocation2 + $0x28] sm:$0xf]  ;;  %v2693_v10 = vshrl.u32 %v2623_v17, 16 }
 0x233   : > { %v5258_v30 = vadd.f32 %v5257_v12, %v5169_v27  ;;  %3356 = vst [vmem:[#allocation4 + $0x20] sm:$0xf] %v3215_v42  ;;  %v12163_v12 = vld [vmem:[#allocation4 + $0x448] sm:$0xf]  ;;  %v3218_v29 = vsel %vm14485_vm12, %v3216_v62, %v3217_v56  ;;  %v12132_v6 = vor.u32 %v13611_v23, %v12129_v61  ;;  %v12160_v5 = vor.u32 %v13619_v63, %v12157_v47  ;;  %v13847_v27 = vld [vmem:[#allocation11 + $0x20] sm:$0xff] }
 0x234   : > { %3085 = vst [vmem:[#allocation4 + $0x40] sm:$0xf] %v2691_v3  ;;  %v2696_v41 = vshll.u32 %v2623_v17, 16  ;;  %10528 = vmatpush.bf16.msra.mxu2 %v13847_v27  ;;  %v2695_v52 = vrot.slane %v2693_v10, 4  ;;  %v2702_v56 = vshll.u32 %v2624_v40, 16  ;;  %v2706_v54 = vshrl.u32 %v2624_v40, 16 }
 0x235   : > { %3357 = vst [vmem:[#allocation4 + $0x44] sm:$0xf] %v3218_v29  ;;  %v2625_v61 = vld [vmem:[#allocation2 + $0x2c] sm:$0x1]  ;;  %v3120_v62 = vld [vmem:[#allocation2 + $0x28] sm:$0xf] }
 0x236   : > { %v15326_v43 = vpop.f32.mrf.mxu2  ;;  %v13624_v20 = vld [vmem:[#allocation4 + $0x468] sm:$0xf0]  ;;  %9275 = vmatpush.bf16.msra.mxu1 %v13931_v53  ;;  %v2698_v42 = vrot.slane %v2696_v41, 5  ;;  %v2704_v38 = vrot.slane %v2702_v56, 5  ;;  %v2708_v63 = vrot.slane %v2706_v54, 4  ;;  %v2712_v47 = vshll.u32 %v2625_v61, 16 }
 0x237   : > { %v12164_v51 = vor.u32 %v13624_v20, %v12163_v12  ;;  %v3221_v3 = vrot.slane %v3120_v62, 5  ;;  %v3119_v12 = vld [vmem:[#allocation2 + $0x24] sm:$0xe]  ;;  %v3121_v53 = vld [vmem:[#allocation2 + $0x2c] sm:$0x1] }
 0x238   : > { %v5170_v1 = vpop.f32.mrf.mxu3  ;;  %v2709_v29 = vor.u32 %v2708_v63, %v2704_v38  ;;  %v2714_v58 = vrot.slane %v2712_v47, 5  ;;  %v3224_v17 = vrot.slane %v3121_v53, 5  ;;  %v17041_v40 = vld [vmem:[#allocation30_spill] sm:$0xff]  ;;  %v12171_v56 = vld [vmem:[#allocation4 + $0x450] sm:$0xf]  ;;  %v17043_v63 = vld [vmem:[#allocation32_spill] sm:$0xff] }
 0x239   : > { %v5346_v28 = vpop.f32.mrf.mxu1  ;;  %v5171_v57 = vadd.f32 %v5170_v1, %v5082_v13  ;;  %v11590_v13 = vrot.slane %v3119_v12, 9  ;;  %v13625_v54 = vld [vmem:[#allocation4 + $0x470] sm:$0xf0]  ;;  %v12165_v62 = vld [vmem:[#allocation4 + $0x46c] sm:$0xf0] }
 0x23a   : > { %v5347_v55 = vadd.f32 %v5346_v28, %v5258_v30  ;;  %v5262_v4 = vpop.f32.mrf.mxu0  ;;  %v2699_v30 = vor.u32 %v2698_v42, %v2695_v52  ;;  %v4909_v28 = vadd.f32 %v15294_v11, %v17041_v40  ;;  %v2710_v27 = vrot.slane %v2709_v29, 4  ;;  %v11639_v12 = vld [vmem:[#allocation4 + $0x20] sm:$0xf]  ;;  %v17044_v29 = vld [vmem:[#allocation33_spill] sm:$0xff] }
 0x23b   : > { %5474 = vmatmul.bf16.gmra.mxu2 %v12136_v59  ;;  %v5260_v23 = vadd.f32 %v5259_v39, %v5171_v57  ;;  %v3223_v39 = vrot.slane %v3221_v3, 4  ;;  %v3222_v10 = vsel %vm14485_vm12, %v11590_v13, %v3221_v3  ;;  %v12172_v47 = vor.u32 %v13625_v54, %v12171_v56  ;;  %v13486_v3 = vld [vmem:[#allocation4 + $0x1c] sm:$0xf]  ;;  %v2628_v56 = vld [vmem:[#allocation2 + $0x38] sm:$0x1] }
 0x23c   : > { %5385 = vmatmul.bf16.gmra.mxu1 %v12132_v6  ;;  %v2700_v6 = vrot.slane %v2699_v30, 4  ;;  %3358 = vst [vmem:[#allocation4 + $0x68] sm:$0xf] %v3222_v10  ;;  %v2715_v61 = vsel %vm14518_vm14, %v2710_v27, %v2714_v58  ;;  %v11633_v30 = vld [vmem:[#allocation4 + $0x3c] sm:$0xf0] }
 0x23d   : > { %5212 = vmatmul.bf16.gmra.mxu3 %v12160_v5  ;;  %5301 = vmatmul.bf16.gmra.mxu0 %v12164_v51  ;;  %v3225_v41 = vsel %vm14485_vm12, %v3223_v39, %v3224_v17  ;;  %3087 = vst [vmem:[#allocation4 + $0x88] sm:$0xf] %v2715_v61  ;;  %v13491_v53 = vld [vmem:[#allocation4 + $0x40] sm:$0xf0]  ;;  %v2626_v39 = vld [vmem:[#allocation2 + $0x30] sm:$0xf]  ;;  %v11636_v40 = vor.u32 %v13486_v3, %v11633_v30 }
 0x23e   : > { %v5435_v15 = vpop.f32.mrf.mxu2  ;;  %v2705_v51 = vsel %vm14518_vm14, %v2700_v6, %v2704_v38  ;;  %3359 = vst [vmem:[#allocation4 + $0x8c] sm:$0xf] %v3225_v41  ;;  %v4998_v38 = vadd.f32 %v17043_v63, %v4909_v28  ;;  %v2627_v58 = vld [vmem:[#allocation2 + $0x34] sm:$0xf]  ;;  %v11640_v27 = vor.u32 %v13491_v53, %v11639_v12  ;;  %v2717_v10 = vshrl.u32 %v2626_v39, 16 }
 0x23f   : > { %v15336_v59 = vadd.f32 %v5435_v15, %v5347_v55  ;;  %v17042_v55 = vld [vmem:[#allocation31_spill] sm:$0xff]  ;;  %3086 = vst [vmem:[#allocation4 + $0x64] sm:$0xf] %v2705_v51  ;;  %v2720_v28 = vshll.u32 %v2626_v39, 16  ;;  %v2730_v51 = vshrl.u32 %v2627_v58, 16 }
 0x240   : > { %v5173_v20 = vpop.f32.mrf.mxu3  ;;  %v5087_v13 = vadd.f32 %v17044_v29, %v4998_v38  ;;  %v2719_v54 = vrot.slane %v2717_v10, 4  ;;  %v3123_v38 = vld [vmem:[#allocation2 + $0x34] sm:$0xf]  ;;  %v3124_v3 = vld [vmem:[#allocation2 + $0x38] sm:$0x1]  ;;  %v17046_v10 = vld [vmem:[#allocation34_spill] sm:$0xff] }
 0x241   : > { %v5348_v1 = vpop.f32.mrf.mxu1  ;;  %v5174_v57 = vadd.f32 %v5173_v20, %v17042_v55  ;;  %v2732_v63 = vrot.slane %v2730_v51, 4  ;;  %v3228_v30 = vrot.slane %v3123_v38, 5 }
 0x242   : > { %v15342_v5 = vadd.f32 %v5348_v1, %v5260_v23  ;;  %v5264_v52 = vpop.f32.mrf.mxu0  ;;  %v13620_v23 = vld [vmem:[#allocation4 + $0x44c] sm:$0xf] }
 0x243   : > { %v5263_v42 = vadd.f32 %v5262_v4, %v5174_v57  ;;  %v12168_v6 = vor.u32 %v13620_v23, %v12165_v62  ;;  %v2726_v57 = vshll.u32 %v2627_v58, 16  ;;  %v2722_v23 = vrot.slane %v2720_v28, 5  ;;  %v11675_v38 = vld [vmem:[#allocation4 + $0x68] sm:$0xf] }
 0x244   : > { %v3230_v39 = vrot.slane %v3228_v30, 4 }
 0x245   : > { %v2728_v62 = vrot.slane %v2726_v57, 5  ;;  %v2723_v12 = vor.u32 %v2722_v23, %v2719_v54 }
 0x246   : > { %v15351_v15 = vpop.f32.mrf.mxu2 }
 0x247   : > { %v2733_v53 = vor.u32 %v2732_v63, %v2728_v62  ;;  %v13915_v63 = vld [vmem:[#allocation4 + $0x30] sm:$0xf0] }
 0x248   : > { %v5175_v4 = vpop.f32.mrf.mxu3 }
 0x249   : > { %v5351_v17 = vpop.f32.mrf.mxu1  ;;  %v5176_v20 = vadd.f32 %v5175_v4, %v5087_v13  ;;  %v2724_v4 = vrot.slane %v2723_v12, 4  ;;  %v17048_v12 = vld [vmem:[#allocation37_spill] sm:$0xff] }
 0x24a   : > { %v5352_v1 = vadd.f32 %v5351_v17, %v5263_v42  ;;  %v5267_v55 = vpop.f32.mrf.mxu0  ;;  %v2736_v42 = vshll.u32 %v2628_v56, 16 }
 0x24b   : > { %5479 = vmatmul.bf16.gmra.mxu2 %v12172_v47  ;;  %v5265_v41 = vadd.f32 %v5264_v52, %v5176_v20  ;;  %v3122_v47 = vld [vmem:[#allocation2 + $0x30] sm:$0xe]  ;;  %v2734_v20 = vrot.slane %v2733_v53, 4  ;;  %v2729_v56 = vsel %vm14518_vm14, %v2724_v4, %v2728_v62 }
 0x24c   : > { %5390 = vmatmul.bf16.gmra.mxu1 %v12168_v6  ;;  %v11591_v13 = vrot.slane %v3122_v47, 9  ;;  %v3231_v6 = vrot.slane %v3124_v3, 5  ;;  %v2738_v52 = vrot.slane %v2736_v42, 5  ;;  %3088 = vst [vmem:[#allocation4 + $0xac] sm:$0xf] %v2729_v56 }
 0x24d   : > { %5493 = vmatmul.bf16.vlgmr.msra.gmra.mxu3 %v11636_v40  ;;  %5582 = vmatmul.bf16.vlgmr.msra.gmra.mxu0 %v11640_v27  ;;  %v4914_v40 = vadd.f32 %v15294_v11, %v17046_v10  ;;  %v13495_v47 = vld [vmem:[#allocation4 + $0x64] sm:$0xf]  ;;  %v11669_v3 = vld [vmem:[#allocation4 + $0x84] sm:$0xf0] }
 0x24e   : > { %v5440_v61 = vpop.f32.mrf.mxu2  ;;  %v3232_v57 = vsel %vm14485_vm12, %v3230_v39, %v3231_v6  ;;  %v2739_v54 = vsel %vm14518_vm14, %v2734_v20, %v2738_v52  ;;  %v2630_v6 = vld [vmem:[#allocation2 + $0x40] sm:$0xf] }
 0x24f   : > { %v15355_v29 = vadd.f32 %v5440_v61, %v5352_v1  ;;  %v3229_v1 = vsel %vm14485_vm12, %v11591_v13, %v3228_v30  ;;  %3361 = vst [vmem:[#allocation4 + $0xd4] sm:$0xf] %v3232_v57  ;;  %v12519_v61 = vld [vmem:[#allocation4 + $0x10] sm:$0xf]  ;;  %v13500_v30 = vld [vmem:[#allocation4 + $0x88] sm:$0xf0] }
 0x250   : > { %v5178_v17 = vpop.f32.mrf.mxu3  ;;  %3360 = vst [vmem:[#allocation4 + $0xb0] sm:$0xf] %v3229_v1  ;;  %v12520_v62 = vor.u32 %v13915_v63, %v12519_v61  ;;  %v2629_v13 = vld [vmem:[#allocation2 + $0x3c] sm:$0xf]  ;;  %v2754_v56 = vshrl.u32 %v2630_v6, 16 }
 0x251   : > { %17045 = vst [vmem:[#allocation23_spill] sm:$0xff] %v15355_v29  ;;  %v5353_v58 = vpop.f32.mrf.mxu1  ;;  %v5179_v28 = vadd.f32 %v5178_v17, %v15101_v60  ;;  %v17047_v60 = vld [vmem:[#allocation36_spill] sm:$0xff]  ;;  %v13846_v17 = vld [vmem:[#allocation11 + $0x18] sm:$0xff]  ;;  %v2741_v4 = vshrl.u32 %v2629_v13, 16  ;;  %v2744_v10 = vshll.u32 %v2629_v13, 16 }
 0x252   : > { %v15361_v27 = vadd.f32 %v5353_v58, %v5265_v41  ;;  %v5269_v51 = vpop.f32.mrf.mxu0  ;;  %3089 = vst [vmem:[#allocation4 + $0xd0] sm:$0xf] %v2739_v54  ;;  %v5003_v42 = vadd.f32 %v17047_v60, %v4914_v40  ;;  %v11672_v58 = vor.u32 %v13495_v47, %v11669_v3  ;;  %10529 = vmatpush.bf16.msra.mxu2 %v13846_v17  ;;  %v2631_v60 = vld [vmem:[#allocation2 + $0x44] sm:$0x1]  ;;  %v3126_v47 = vld [vmem:[#allocation2 + $0x40] sm:$0xf] }
 0x253   : > { %v5268_v23 = vadd.f32 %v5267_v55, %v5179_v28  ;;  %v11676_v55 = vor.u32 %v13500_v30, %v11675_v38  ;;  %v2750_v28 = vshll.u32 %v2630_v6, 16  ;;  %v2743_v40 = vrot.slane %v2741_v4, 4  ;;  %v3125_v3 = vld [vmem:[#allocation2 + $0x3c] sm:$0xe]  ;;  %v3127_v30 = vld [vmem:[#allocation2 + $0x44] sm:$0x1] }
 0x254   : > { %v5092_v53 = vadd.f32 %v17048_v12, %v5003_v42  ;;  %v2746_v61 = vrot.slane %v2744_v10, 5  ;;  %v2756_v12 = vrot.slane %v2754_v56, 4  ;;  %v2760_v29 = vshll.u32 %v2631_v60, 16  ;;  %v17049_v17 = vld [vmem:[#allocation39_spill] sm:$0xff] }
 0x255   : > { %v2752_v63 = vrot.slane %v2750_v28, 5  ;;  %v11592_v6 = vrot.slane %v3125_v3, 9  ;;  %v4919_v4 = vadd.f32 %v15294_v11, %v17049_v17 }
 0x256   : > { %v15370_v41 = vpop.f32.mrf.mxu2 }
 0x257   : > { %v2757_v13 = vor.u32 %v2756_v12, %v2752_v63  ;;  %v13916_v12 = vld [vmem:[#allocation4 + $0x78] sm:$0xf0] }
 0x258   : > { %v5180_v39 = vpop.f32.mrf.mxu3 }
 0x259   : > { %v5356_v52 = vpop.f32.mrf.mxu1  ;;  %v5181_v1 = vadd.f32 %v5180_v39, %v5092_v53  ;;  %v3235_v53 = vrot.slane %v3126_v47, 5  ;;  %v2758_v28 = vrot.slane %v2757_v13, 4  ;;  %v11711_v47 = vld [vmem:[#allocation4 + $0xb0] sm:$0xf]  ;;  %v2632_v13 = vld [vmem:[#allocation2 + $0x48] sm:$0xf] }
 0x25a   : > { %v5357_v20 = vadd.f32 %v5356_v52, %v5268_v23  ;;  %v5272_v57 = vpop.f32.mrf.mxu0  ;;  %v2747_v23 = vor.u32 %v2746_v61, %v2743_v40  ;;  %v2762_v52 = vrot.slane %v2760_v29, 5  ;;  %v11705_v3 = vld [vmem:[#allocation4 + $0xcc] sm:$0xf0] }
 0x25b   : > { %v5270_v54 = vadd.f32 %v5269_v51, %v5181_v1  ;;  %v3237_v39 = vrot.slane %v3235_v53, 4 }
 0x25c   : > { %9276 = vmatmul.bf16.vlgmr.msra.gmra.mxu1 %v12520_v62  ;;  %v3238_v62 = vrot.slane %v3127_v30, 5  ;;  %v2748_v51 = vrot.slane %v2747_v23, 4  ;;  %v2763_v60 = vsel %vm14518_vm14, %v2758_v28, %v2762_v52  ;;  %v13504_v23 = vld [vmem:[#allocation4 + $0xac] sm:$0xf]  ;;  %v2768_v28 = vshll.u32 %v2632_v13, 16 }
 0x25d   : > { %5498 = vmatmul.bf16.gmra.mxu3 %v11672_v58  ;;  %5587 = vmatmul.bf16.gmra.mxu0 %v11676_v55  ;;  %v3236_v58 = vsel %vm14485_vm12, %v11592_v6, %v3235_v53  ;;  %3091 = vst [vmem:[#allocation4 + $0x118] sm:$0xf] %v2763_v60  ;;  %v2633_v6 = vld [vmem:[#allocation2 + $0x4c] sm:$0xf]  ;;  %v11708_v17 = vor.u32 %v13504_v23, %v11705_v3 }
 0x25e   : > { %v5445_v42 = vpop.f32.mrf.mxu2  ;;  %v2753_v29 = vsel %vm14518_vm14, %v2748_v51, %v2752_v63  ;;  %v3239_v40 = vsel %vm14485_vm12, %v3237_v39, %v3238_v62  ;;  %3362 = vst [vmem:[#allocation4 + $0xf8] sm:$0xf] %v3236_v58  ;;  %v13509_v63 = vld [vmem:[#allocation4 + $0xd0] sm:$0xf0]  ;;  %v2774_v58 = vshll.u32 %v2633_v6, 16 }
 0x25f   : > { %v15374_v38 = vadd.f32 %v5445_v42, %v5357_v20  ;;  %3090 = vst [vmem:[#allocation4 + $0xf4] sm:$0xf] %v2753_v29  ;;  %v12523_v42 = vld [vmem:[#allocation4 + $0x58] sm:$0xf] }
 0x260   : > { %v5183_v10 = vpop.f32.mrf.mxu3  ;;  %3363 = vst [vmem:[#allocation4 + $0x11c] sm:$0xf] %v3239_v40  ;;  %v12524_v53 = vor.u32 %v13916_v12, %v12523_v42  ;;  %v2776_v60 = vrot.slane %v2774_v58, 5  ;;  %v3129_v12 = vld [vmem:[#allocation2 + $0x4c] sm:$0xf] }
 0x261   : > { %v5358_v1 = vpop.f32.mrf.mxu1  ;;  %v5184_v20 = vadd.f32 %v5183_v10, %v15130_v25  ;;  %v5008_v25 = vadd.f32 %v15138_v34, %v4919_v4  ;;  %v2778_v34 = vshrl.u32 %v2633_v6, 16  ;;  %v3242_v23 = vrot.slane %v3129_v12, 5 }
 0x262   : > { %v15380_v55 = vadd.f32 %v5358_v1, %v5270_v54  ;;  %v5274_v56 = vpop.f32.mrf.mxu0  ;;  %v2765_v1 = vshrl.u32 %v2632_v13, 16 }
 0x263   : > { %v5273_v61 = vadd.f32 %v5272_v57, %v5184_v20  ;;  %v5097_v30 = vadd.f32 %v15143_v36, %v5008_v25  ;;  %v11712_v57 = vor.u32 %v13509_v63, %v11711_v47  ;;  %v2634_v20 = vld [vmem:[#allocation2 + $0x50] sm:$0x1]  ;;  %v2770_v36 = vrot.slane %v2768_v28, 5  ;;  %v3128_v47 = vld [vmem:[#allocation2 + $0x48] sm:$0xe] }
 0x264   : > { %v2767_v29 = vrot.slane %v2765_v1, 4  ;;  %v2780_v42 = vrot.slane %v2778_v34, 4  ;;  %v3130_v63 = vld [vmem:[#allocation2 + $0x50] sm:$0x1]  ;;  %v11593_v13 = vrot.slane %v3128_v47, 9  ;;  %v3244_v6 = vrot.slane %v3242_v23, 4 }
 0x265   : > { %v11741_v12 = vld [vmem:[#allocation4 + $0x114] sm:$0xf0] }
 0x266   : > { %v15389_v54 = vpop.f32.mrf.mxu2  ;;  %v2771_v3 = vor.u32 %v2770_v36, %v2767_v29  ;;  %v12527_v29 = vld [vmem:[#allocation4 + $0xa0] sm:$0xf]  ;;  %v13917_v36 = vld [vmem:[#allocation4 + $0xc0] sm:$0xf0] }
 0x267   : > { %v12528_v47 = vor.u32 %v13917_v36, %v12527_v29 }
 0x268   : > { %v5185_v62 = vpop.f32.mrf.mxu3 }
 0x269   : > { %v5361_v52 = vpop.f32.mrf.mxu1  ;;  %v5186_v39 = vadd.f32 %v5185_v62, %v5097_v30  ;;  %v2781_v30 = vor.u32 %v2780_v42, %v2776_v60  ;;  %v11747_v42 = vld [vmem:[#allocation4 + $0xf8] sm:$0xf] }
 0x26a   : > { %v5362_v51 = vadd.f32 %v5361_v52, %v5273_v61  ;;  %v5277_v10 = vpop.f32.mrf.mxu0  ;;  %v2784_v61 = vshll.u32 %v2634_v20, 16 }
 0x26b   : > { %v5275_v4 = vadd.f32 %v5274_v56, %v5186_v39  ;;  %v2772_v39 = vrot.slane %v2771_v3, 4  ;;  %v2782_v1 = vrot.slane %v2781_v30, 4 }
 0x26c   : > { %9281 = vmatmul.bf16.gmra.mxu1 %v12524_v53  ;;  %v3245_v53 = vrot.slane %v3130_v63, 5  ;;  %v2786_v56 = vrot.slane %v2784_v61, 5  ;;  %v13518_v61 = vld [vmem:[#allocation4 + $0x118] sm:$0xf0]  ;;  %v2635_v63 = vld [vmem:[#allocation2 + $0x54] sm:$0xf] }
 0x26d   : > { %5503 = vmatmul.bf16.gmra.mxu3 %v11708_v17  ;;  %5592 = vmatmul.bf16.gmra.mxu0 %v11712_v57  ;;  %v2777_v34 = vsel %vm14518_vm14, %v2772_v39, %v2776_v60 }
 0x26e   : > { %v5450_v40 = vpop.f32.mrf.mxu2  ;;  %v3246_v17 = vsel %vm14485_vm12, %v3244_v6, %v3245_v53  ;;  %v2787_v20 = vsel %vm14518_vm14, %v2782_v1, %v2786_v56  ;;  %3092 = vst [vmem:[#allocation4 + $0x13c] sm:$0xf] %v2777_v34  ;;  %v13845_v53 = vld [vmem:[#allocation11 + $0x10] sm:$0xff]  ;;  %v2789_v56 = vshrl.u32 %v2635_v63, 16 }
 0x26f   : > { %v15393_v25 = vadd.f32 %v5450_v40, %v5362_v51  ;;  %v3243_v51 = vsel %vm14485_vm12, %v11593_v13, %v3242_v23  ;;  %3365 = vst [vmem:[#allocation4 + $0x164] sm:$0xf] %v3246_v17  ;;  %v2636_v23 = vld [vmem:[#allocation2 + $0x58] sm:$0xf]  ;;  %v11748_v13 = vor.u32 %v13518_v61, %v11747_v42  ;;  %10530 = vmatpush.bf16.msra.mxu2 %v13845_v53  ;;  %v2637_v17 = vld [vmem:[#allocation2 + $0x5c] sm:$0x1] }
 0x270   : > { %v5188_v62 = vpop.f32.mrf.mxu3  ;;  %3364 = vst [vmem:[#allocation4 + $0x140] sm:$0xf] %v3243_v51  ;;  %v2791_v1 = vrot.slane %v2789_v56, 4  ;;  %v2802_v51 = vshrl.u32 %v2636_v23, 16  ;;  %v3132_v42 = vld [vmem:[#allocation2 + $0x58] sm:$0xf] }
 0x271   : > { %v5363_v52 = vpop.f32.mrf.mxu1  ;;  %v5189_v57 = vadd.f32 %v5188_v62, %v15164_v45  ;;  %3093 = vst [vmem:[#allocation4 + $0x160] sm:$0xf] %v2787_v20  ;;  %v13513_v45 = vld [vmem:[#allocation4 + $0xf4] sm:$0xf]  ;;  %v2798_v62 = vshll.u32 %v2636_v23, 16 }
 0x272   : > { %v15397_v28 = vadd.f32 %v5363_v52, %v5275_v4  ;;  %v5279_v58 = vpop.f32.mrf.mxu0  ;;  %v11744_v30 = vor.u32 %v13513_v45, %v11741_v12  ;;  %v2792_v52 = vshll.u32 %v2635_v63, 16  ;;  %v2804_v36 = vrot.slane %v2802_v51, 4  ;;  %v3133_v61 = vld [vmem:[#allocation2 + $0x5c] sm:$0x1] }
 0x273   : > { %v5278_v40 = vadd.f32 %v5277_v10, %v5189_v57  ;;  %v2800_v20 = vrot.slane %v2798_v62, 5  ;;  %v2808_v45 = vshll.u32 %v2637_v17, 16  ;;  %v3249_v63 = vrot.slane %v3132_v42, 5 }
 0x274   : > { %v2794_v34 = vrot.slane %v2792_v52, 5 }
 0x275   : > { %v3251_v53 = vrot.slane %v3249_v63, 4  ;;  %v13522_v42 = vld [vmem:[#allocation4 + $0x13c] sm:$0xf] }
 0x276   : > { %v15406_v4 = vpop.f32.mrf.mxu2 }
 0x278   : > { %v5190_v60 = vpop.f32.mrf.mxu3 }
 0x279   : > { %v5366_v3 = vpop.f32.mrf.mxu1  ;;  %v5191_v10 = vadd.f32 %v5190_v60, %v15170_v31  ;;  %v2795_v31 = vor.u32 %v2794_v34, %v2791_v1  ;;  %v2810_v60 = vrot.slane %v2808_v45, 5  ;;  %v13527_v45 = vld [vmem:[#allocation4 + $0x160] sm:$0xf0] }
 0x27a   : > { %v5367_v6 = vadd.f32 %v5366_v3, %v5278_v40  ;;  %v5282_v39 = vpop.f32.mrf.mxu0  ;;  %v3131_v40 = vld [vmem:[#allocation2 + $0x54] sm:$0xe]  ;;  %v2805_v3 = vor.u32 %v2804_v36, %v2800_v20  ;;  %v13918_v36 = vld [vmem:[#allocation4 + $0x108] sm:$0xf0] }
 0x27b   : > { %v5280_v57 = vadd.f32 %v5279_v58, %v5191_v10  ;;  %v11594_v23 = vrot.slane %v3131_v40, 9  ;;  %v2796_v58 = vrot.slane %v2795_v31, 4  ;;  %v2638_v40 = vld [vmem:[#allocation2 + $0x60] sm:$0xf] }
 0x27c   : > { %9286 = vmatmul.bf16.gmra.mxu1 %v12528_v47  ;;  %v3252_v47 = vrot.slane %v3133_v61, 5  ;;  %v2806_v52 = vrot.slane %v2805_v3, 4  ;;  %v2639_v61 = vld [vmem:[#allocation2 + $0x64] sm:$0xf] }
 0x27d   : > { %5508 = vmatmul.bf16.gmra.mxu3 %v11744_v30  ;;  %5597 = vmatmul.bf16.gmra.mxu0 %v11748_v13  ;;  %v3250_v62 = vsel %vm14485_vm12, %v11594_v23, %v3249_v63  ;;  %v2801_v13 = vsel %vm14518_vm14, %v2796_v58, %v2800_v20  ;;  %v11777_v20 = vld [vmem:[#allocation4 + $0x15c] sm:$0xf0]  ;;  %v2813_v58 = vshrl.u32 %v2638_v40, 16 }
 0x27e   : > { %v5455_v29 = vpop.f32.mrf.mxu2  ;;  %v3253_v1 = vsel %vm14485_vm12, %v3251_v53, %v3252_v47  ;;  %3366 = vst [vmem:[#allocation4 + $0x188] sm:$0xf] %v3250_v62  ;;  %v2811_v17 = vsel %vm14518_vm14, %v2806_v52, %v2810_v60  ;;  %v2826_v52 = vshrl.u32 %v2639_v61, 16 }
 0x27f   : > { %v15409_v12 = vadd.f32 %v5455_v29, %v5367_v6  ;;  %3094 = vst [vmem:[#allocation4 + $0x184] sm:$0xf] %v2801_v13  ;;  %v12531_v29 = vld [vmem:[#allocation4 + $0xe8] sm:$0xf]  ;;  %v2815_v13 = vrot.slane %v2813_v58, 4 }
 0x280   : > { %v5193_v10 = vpop.f32.mrf.mxu3  ;;  %3095 = vst [vmem:[#allocation4 + $0x1a8] sm:$0xf] %v2811_v17  ;;  %v12532_v31 = vor.u32 %v13918_v36, %v12531_v29  ;;  %v2828_v36 = vrot.slane %v2826_v52, 4 }
 0x281   : > { %v5368_v56 = vpop.f32.mrf.mxu1  ;;  %v5194_v30 = vadd.f32 %v5193_v10, %v15189_v37  ;;  %3367 = vst [vmem:[#allocation4 + $0x1ac] sm:$0xf] %v3253_v1  ;;  %v11783_v37 = vld [vmem:[#allocation4 + $0x140] sm:$0xf]  ;;  %v2822_v10 = vshll.u32 %v2639_v61, 16 }
 0x282   : > { %v15413_v6 = vadd.f32 %v5368_v56, %v5280_v57  ;;  %v5284_v51 = vpop.f32.mrf.mxu0  ;;  %v11784_v23 = vor.u32 %v13527_v45, %v11783_v37  ;;  %v2816_v56 = vshll.u32 %v2638_v40, 16  ;;  %v3136_v37 = vld [vmem:[#allocation2 + $0x68] sm:$0x1] }
 0x283   : > { %v5283_v34 = vadd.f32 %v5282_v39, %v5194_v30  ;;  %v11780_v39 = vor.u32 %v13522_v42, %v11777_v20  ;;  %v2640_v30 = vld [vmem:[#allocation2 + $0x68] sm:$0x1]  ;;  %v2824_v29 = vrot.slane %v2822_v10, 5 }
 0x284   : > { %17050 = vst [vmem:[#allocation24_spill] sm:$0xff] %v15413_v6  ;;  %v2818_v17 = vrot.slane %v2816_v56, 5 }
 0x285   : > { %v2829_v20 = vor.u32 %v2828_v36, %v2824_v29  ;;  %v13919_v36 = vld [vmem:[#allocation4 + $0x150] sm:$0xf0] }
 0x286   : > { %v15422_v57 = vpop.f32.mrf.mxu2  ;;  %v2819_v42 = vor.u32 %v2818_v17, %v2815_v13  ;;  %v17054_v13 = vld [vmem:[#allocation21_spill] sm:$0xff] }
 0x287   : > { %17051 = vst [vmem:[#allocation25_spill] sm:$0xff] %v15422_v57  ;;  %v3135_v57 = vld [vmem:[#allocation2 + $0x64] sm:$0xf]  ;;  %v2830_v58 = vrot.slane %v2829_v20, 4  ;;  %v12535_v17 = vld [vmem:[#allocation4 + $0x130] sm:$0xf] }
 0x288   : > { %v5195_v3 = vpop.f32.mrf.mxu3  ;;  %v3256_v45 = vrot.slane %v3135_v57, 5  ;;  %v11813_v20 = vld [vmem:[#allocation4 + $0x1a4] sm:$0xf0] }
 0x289   : > { %v5371_v63 = vpop.f32.mrf.mxu1  ;;  %v5196_v60 = vadd.f32 %v5195_v3, %v15204_v2  ;;  %v2832_v2 = vshll.u32 %v2640_v30, 16 }
 0x28a   : > { %v5372_v47 = vadd.f32 %v5371_v63, %v5283_v34  ;;  %v5287_v53 = vpop.f32.mrf.mxu0  ;;  %v3134_v34 = vld [vmem:[#allocation2 + $0x60] sm:$0xe]  ;;  %v3258_v61 = vrot.slane %v3256_v45, 4 }
 0x28b   : > { %v5285_v62 = vadd.f32 %v5284_v51, %v5196_v60  ;;  %v11595_v40 = vrot.slane %v3134_v34, 9  ;;  %v2834_v51 = vrot.slane %v2832_v2, 5  ;;  %v2820_v60 = vrot.slane %v2819_v42, 4  ;;  %v11819_v34 = vld [vmem:[#allocation4 + $0x188] sm:$0xf] }
 0x28c   : > { %9291 = vmatmul.bf16.gmra.mxu1 %v12532_v31  ;;  %v3259_v31 = vrot.slane %v3136_v37, 5  ;;  %v17056_v37 = vld [vmem:[#allocation22_spill] sm:$0xff]  ;;  %v13531_v42 = vld [vmem:[#allocation4 + $0x184] sm:$0xf] }
 0x28d   : > { %5513 = vmatmul.bf16.gmra.mxu3 %v11780_v39  ;;  %5602 = vmatmul.bf16.gmra.mxu0 %v11784_v23  ;;  %v17053_v23 = vld [vmem:[#allocation35_spill] sm:$0xff]  ;;  %v2825_v52 = vsel %vm14518_vm14, %v2820_v60, %v2824_v29  ;;  %v2835_v30 = vsel %vm14518_vm14, %v2830_v58, %v2834_v51  ;;  %v13536_v29 = vld [vmem:[#allocation4 + $0x1a8] sm:$0xf0]  ;;  %v12536_v51 = vor.u32 %v13919_v36, %v12535_v17 }
 0x28e   : > { %v5460_v1 = vpop.f32.mrf.mxu2  ;;  %v3260_v57 = vsel %vm14485_vm12, %v3258_v61, %v3259_v31  ;;  %3096 = vst [vmem:[#allocation4 + $0x1cc] sm:$0xf] %v2825_v52  ;;  %v2641_v61 = vld [vmem:[#allocation2 + $0x6c] sm:$0xf]  ;;  %v11816_v60 = vor.u32 %v13531_v42, %v11813_v20  ;;  %v13844_v58 = vld [vmem:[#allocation11 + $0x8] sm:$0xff] }
 0x28f   : > { %v15425_v6 = vadd.f32 %v5460_v1, %v5372_v47  ;;  %v3257_v47 = vsel %vm14485_vm12, %v11595_v40, %v3256_v45  ;;  %3369 = vst [vmem:[#allocation4 + $0x1f4] sm:$0xf] %v3260_v57  ;;  %v4934_v1 = vadd.f32 %v15294_v11, %v17054_v13  ;;  %v17057_v40 = vld [vmem:[#allocation38_spill] sm:$0xff]  ;;  %v2840_v57 = vshll.u32 %v2641_v61, 16  ;;  %10531 = vmatpush.bf16.msra.mxu2 %v13844_v58  ;;  %v3138_v42 = vld [vmem:[#allocation2 + $0x70] sm:$0xf] }
 0x290   : > { %v5198_v3 = vpop.f32.mrf.mxu3  ;;  %3368 = vst [vmem:[#allocation4 + $0x1d0] sm:$0xf] %v3257_v47  ;;  %v2837_v47 = vshrl.u32 %v2641_v61, 16  ;;  %v3137_v20 = vld [vmem:[#allocation2 + $0x6c] sm:$0xe] }
 0x291   : > { %v5373_v63 = vpop.f32.mrf.mxu1  ;;  %v5199_v39 = vadd.f32 %v5198_v3, %v17053_v23  ;;  %3097 = vst [vmem:[#allocation4 + $0x1f0] sm:$0xf] %v2835_v30  ;;  %v5023_v45 = vadd.f32 %v17056_v37, %v4934_v1  ;;  %v2842_v17 = vrot.slane %v2840_v57, 5 }
 0x292   : > { %v15429_v56 = vadd.f32 %v5373_v63, %v5285_v62  ;;  %v5289_v10 = vpop.f32.mrf.mxu0  ;;  %v2642_v63 = vld [vmem:[#allocation2 + $0x70] sm:$0xf]  ;;  %v2839_v13 = vrot.slane %v2837_v47, 4 }
 0x293   : > { %v5288_v62 = vadd.f32 %v5287_v53, %v5199_v39  ;;  %v5112_v31 = vadd.f32 %v17057_v40, %v5023_v45  ;;  %v11820_v53 = vor.u32 %v13536_v29, %v11819_v34  ;;  %v2846_v52 = vshll.u32 %v2642_v63, 16  ;;  %v2643_v45 = vld [vmem:[#allocation2 + $0x74] sm:$0x1] }
 0x294   : > { %17052 = vst [vmem:[#allocation26_spill] sm:$0xff] %v15429_v56  ;;  %v2850_v1 = vshrl.u32 %v2642_v63, 16  ;;  %v2856_v56 = vshll.u32 %v2643_v45, 16  ;;  %v3139_v29 = vld [vmem:[#allocation2 + $0x74] sm:$0x1]  ;;  %v11596_v63 = vrot.slane %v3137_v20, 9 }
 0x295   : > { %v2848_v36 = vrot.slane %v2846_v52, 5  ;;  %v12539_v45 = vld [vmem:[#allocation4 + $0x178] sm:$0xf] }
 0x296   : > { %v15440_v2 = vpop.f32.mrf.mxu2 }
 0x297   : > { %17055 = vst [vmem:[#allocation27_spill] sm:$0xff] %v15440_v2  ;;  %v2852_v2 = vrot.slane %v2850_v1, 4 }
 0x298   : > { %v5200_v11 = vpop.f32.mrf.mxu3 }
 0x299   : > { %v5376_v3 = vpop.f32.mrf.mxu1  ;;  %v5201_v39 = vadd.f32 %v5200_v11, %v5112_v31  ;;  %v3263_v31 = vrot.slane %v3138_v42, 5  ;;  %v2853_v61 = vor.u32 %v2852_v2, %v2848_v36  ;;  %v13545_v42 = vld [vmem:[#allocation4 + $0x1f0] sm:$0xf0] }
 0x29a   : > { %v5377_v23 = vadd.f32 %v5376_v3, %v5288_v62  ;;  %v5292_v30 = vpop.f32.mrf.mxu0  ;;  %v2843_v62 = vor.u32 %v2842_v17, %v2839_v13  ;;  %v2858_v3 = vrot.slane %v2856_v56, 5  ;;  %v13920_v17 = vld [vmem:[#allocation4 + $0x198] sm:$0xf0] }
 0x29b   : > { %v5290_v37 = vadd.f32 %v5289_v10, %v5201_v39  ;;  %v3265_v11 = vrot.slane %v3263_v31, 4  ;;  %v2854_v39 = vrot.slane %v2853_v61, 4  ;;  %v3264_v57 = vsel %vm14485_vm12, %v11596_v63, %v3263_v31  ;;  %v2645_v31 = vld [vmem:[#allocation2 + $0x7c] sm:$0xf] }
 0x29c   : > { %9296 = vmatmul.bf16.gmra.mxu1 %v12536_v51  ;;  %v3266_v51 = vrot.slane %v3139_v29, 5  ;;  %v2844_v10 = vrot.slane %v2843_v62, 4  ;;  %3370 = vst [vmem:[#allocation4 + $0x218] sm:$0xf] %v3264_v57  ;;  %v13540_v62 = vld [vmem:[#allocation4 + $0x1cc] sm:$0xf]  ;;  %v12540_v20 = vor.u32 %v13920_v17, %v12539_v45 }
 0x29d   : > { %5518 = vmatmul.bf16.gmra.mxu3 %v11816_v60  ;;  %5607 = vmatmul.bf16.gmra.mxu0 %v11820_v53  ;;  %v17060_v60 = vld [vmem:[#allocation40_spill] sm:$0xff]  ;;  %v2859_v13 = vsel %vm14518_vm14, %v2854_v39, %v2858_v3  ;;  %v17062_v3 = vld [vmem:[#allocation41_spill] sm:$0xff]  ;;  %v2870_v57 = vshll.u32 %v2645_v31, 16 }
 0x29e   : > { %v5465_v40 = vpop.f32.mrf.mxu2  ;;  %v2849_v52 = vsel %vm14518_vm14, %v2844_v10, %v2848_v36  ;;  %v3267_v56 = vsel %vm14485_vm12, %v3265_v11, %v3266_v51  ;;  %3099 = vst [vmem:[#allocation4 + $0x238] sm:$0xf] %v2859_v13  ;;  %v11849_v36 = vld [vmem:[#allocation4 + $0x1ec] sm:$0xf0]  ;;  %v2644_v29 = vld [vmem:[#allocation2 + $0x78] sm:$0xf] }
 0x29f   : > { %v15444_v34 = vadd.f32 %v5465_v40, %v5377_v23  ;;  %3098 = vst [vmem:[#allocation4 + $0x214] sm:$0xf] %v2849_v52  ;;  %v11855_v40 = vld [vmem:[#allocation4 + $0x1d0] sm:$0xf]  ;;  %v2864_v39 = vshll.u32 %v2644_v29, 16  ;;  %v2872_v17 = vrot.slane %v2870_v57, 5 }
 0x2a0   : > { %v5203_v47 = vpop.f32.mrf.mxu3  ;;  %3371 = vst [vmem:[#allocation4 + $0x23c] sm:$0xf] %v3267_v56  ;;  %v11856_v51 = vor.u32 %v13545_v42, %v11855_v40  ;;  %v2646_v52 = vld [vmem:[#allocation2 + $0x80] sm:$0x1]  ;;  %v3140_v40 = vld [vmem:[#allocation2 + $0x78] sm:$0xe] }
 0x2a1   : > { %17058 = vst [vmem:[#allocation28_spill] sm:$0xff] %v15444_v34  ;;  %v5378_v58 = vpop.f32.mrf.mxu1  ;;  %v5204_v53 = vadd.f32 %v5203_v47, %v17060_v60  ;;  %v2874_v60 = vshrl.u32 %v2645_v31, 16  ;;  %v2866_v45 = vrot.slane %v2864_v39, 5  ;;  %v3142_v42 = vld [vmem:[#allocation2 + $0x80] sm:$0x1]  ;;  %v11597_v31 = vrot.slane %v3140_v40, 9 }
 0x2a2   : > { %v15448_v23 = vadd.f32 %v5378_v58, %v5290_v37  ;;  %v5294_v2 = vpop.f32.mrf.mxu0  ;;  %v2861_v58 = vshrl.u32 %v2644_v29, 16 }
 0x2a3   : > { %v5293_v1 = vadd.f32 %v5292_v30, %v5204_v53  ;;  %v11852_v30 = vor.u32 %v13540_v62, %v11849_v36 }
 0x2a4   : > { %17059 = vst [vmem:[#allocation29_spill] sm:$0xff] %v15448_v23  ;;  %v2863_v56 = vrot.slane %v2861_v58, 4  ;;  %v3141_v23 = vld [vmem:[#allocation2 + $0x7c] sm:$0xf] }
 0x2a5   : > { %v3270_v62 = vrot.slane %v3141_v23, 5  ;;  %v11885_v40 = vld [vmem:[#allocation4 + $0x234] sm:$0xf0] }
 0x2a6   : > { %v15457_v37 = vpop.f32.mrf.mxu2  ;;  %v2867_v36 = vor.u32 %v2866_v45, %v2863_v56  ;;  %v11891_v45 = vld [vmem:[#allocation4 + $0x218] sm:$0xf] }
 0x2a7   : > { %17061 = vst [vmem:[#allocation30_spill] sm:$0xff] %v15457_v37  ;;  %v2876_v37 = vrot.slane %v2874_v60, 4 }
 0x2a8   : > { %v5205_v63 = vpop.f32.mrf.mxu3 }
 0x2a9   : > { %v5381_v61 = vpop.f32.mrf.mxu1  ;;  %v5206_v11 = vadd.f32 %v5205_v63, %v17062_v3  ;;  %v2877_v29 = vor.u32 %v2876_v37, %v2872_v17 }
 0x2aa   : > { %v5382_v10 = vadd.f32 %v5381_v61, %v5293_v1  ;;  %v5297_v47 = vpop.f32.mrf.mxu0  ;;  %v2880_v1 = vshll.u32 %v2646_v52, 16  ;;  %v3272_v61 = vrot.slane %v3270_v62, 4  ;;  %v12543_v52 = vld [vmem:[#allocation4 + $0x1c0] sm:$0xf] }
 0x2ab   : > { %v5295_v53 = vadd.f32 %v5294_v2, %v5206_v11  ;;  %v2868_v11 = vrot.slane %v2867_v36, 4  ;;  %v2878_v58 = vrot.slane %v2877_v29, 4  ;;  %v2647_v36 = vld [vmem:[#allocation2 + $0x84] sm:$0xf]  ;;  %v2648_v29 = vld [vmem:[#allocation2 + $0x88] sm:$0xf] }
 0x2ac   : > { %9301 = vmatmul.bf16.gmra.mxu1 %v12540_v20  ;;  %v3273_v20 = vrot.slane %v3142_v42, 5  ;;  %v2882_v2 = vrot.slane %v2880_v1, 5  ;;  %v13549_v1 = vld [vmem:[#allocation4 + $0x214] sm:$0xf]  ;;  %v13554_v42 = vld [vmem:[#allocation4 + $0x238] sm:$0xf0] }
 0x2ad   : > { %5523 = vmatmul.bf16.gmra.mxu3 %v11852_v30  ;;  %5612 = vmatmul.bf16.gmra.mxu0 %v11856_v51  ;;  %v17063_v51 = vld [vmem:[#allocation42_spill] sm:$0xff]  ;;  %v2873_v57 = vsel %vm14518_vm14, %v2868_v11, %v2872_v17 }
 0x2ae   : > { %v5470_v13 = vpop.f32.mrf.mxu2  ;;  %v3274_v23 = vsel %vm14485_vm12, %v3272_v61, %v3273_v20  ;;  %v2883_v60 = vsel %vm14518_vm14, %v2878_v58, %v2882_v2  ;;  %3100 = vst [vmem:[#allocation4 + $0x25c] sm:$0xf] %v2873_v57  ;;  %v11888_v20 = vor.u32 %v13549_v1, %v11885_v40  ;;  %v11892_v61 = vor.u32 %v13554_v42, %v11891_v45  ;;  %v13843_v2 = vld [vmem:[#allocation11] sm:$0xff] }
 0x2af   : > { %v15460_v34 = vadd.f32 %v5470_v13, %v5382_v10  ;;  %v3271_v10 = vsel %vm14485_vm12, %v11597_v31, %v3270_v62  ;;  %3373 = vst [vmem:[#allocation4 + $0x284] sm:$0xf] %v3274_v23  ;;  %v13921_v13 = vld [vmem:[#allocation4 + $0x1e0] sm:$0xf0]  ;;  %v2888_v58 = vshll.u32 %v2647_v36, 16  ;;  %10532 = vmatpush.bf16.msra.mxu2 %v13843_v2  ;;  %v2898_v23 = vshrl.u32 %v2648_v29, 16 }
 0x2b0   : > { %v5208_v3 = vpop.f32.mrf.mxu3  ;;  %3372 = vst [vmem:[#allocation4 + $0x260] sm:$0xf] %v3271_v10  ;;  %v12544_v62 = vor.u32 %v13921_v13, %v12543_v52  ;;  %v2894_v10 = vshll.u32 %v2648_v29, 16  ;;  %v2649_v52 = vld [vmem:[#allocation2 + $0x8c] sm:$0x1] }
 0x2b1   : > { %v5383_v63 = vpop.f32.mrf.mxu1  ;;  %v5209_v30 = vadd.f32 %v5208_v3, %v17063_v51  ;;  %3101 = vst [vmem:[#allocation4 + $0x280] sm:$0xf] %v2883_v60  ;;  %v5705_v60 = vld [vmem:[#allocation3 + $0xc] sm:$0x1]  ;;  %v5702_v13 = vld [vmem:[#allocation3] sm:$0x1] }
 0x2b2   : > { %v15464_v39 = vadd.f32 %v5383_v63, %v5295_v53  ;;  %v5299_v37 = vpop.f32.mrf.mxu0  ;;  %v2885_v63 = vshrl.u32 %v2647_v36, 16  ;;  %v5706_v45 = vsel %vm14436_vm2, 0, %v5705_v60  ;;  %v2890_v1 = vrot.slane %v2888_v58, 5  ;;  %v3143_v29 = vld [vmem:[#allocation2 + $0x84] sm:$0xe] }
 0x2b3   : > { %v5298_v56 = vadd.f32 %v5297_v47, %v5209_v30  ;;  %v17065_v47 = vld [vmem:[#allocation43_spill] sm:$0xff]  ;;  %v2896_v40 = vrot.slane %v2894_v10, 5  ;;  %5707 = vst [vmem:[#allocation3 + $0xc] sm:$0x1] %v5706_v45  ;;  %v2900_v36 = vrot.slane %v2898_v23, 4 }
 0x2b4   : > { %v2887_v30 = vrot.slane %v2885_v63, 4  ;;  %v5703_v63 = vsel %vm14436_vm2, 0, %v5702_v13 }
 0x2b5   : > { %5704 = vst [vmem:[#allocation3] sm:$0x1] %v5703_v63 }
 0x2b6   : > { %v15473_v53 = vpop.f32.mrf.mxu2 }
 0x2b7   : > { %17064 = vst [vmem:[#allocation31_spill] sm:$0xff] %v15473_v53 }
 0x2b8   : > { %v5210_v17 = vpop.f32.mrf.mxu3  ;;  %v11921_v63 = vld [vmem:[#allocation4 + $0x27c] sm:$0xf0] }
 0x2b9   : > { %v5386_v31 = vpop.f32.mrf.mxu1  ;;  %v5211_v11 = vadd.f32 %v5210_v17, %v17065_v47  ;;  %v11598_v17 = vrot.slane %v3143_v29, 9  ;;  %v2901_v47 = vor.u32 %v2900_v36, %v2896_v40  ;;  %v6276_v29 = vld [vmem:[#allocation3 + $0x4] sm:$0xf] }
 0x2ba   : > { %v5387_v3 = vadd.f32 %v5386_v31, %v5298_v56  ;;  %v5302_v51 = vpop.f32.mrf.mxu0  ;;  %v3144_v56 = vld [vmem:[#allocation2 + $0x88] sm:$0xf]  ;;  %v2904_v31 = vshll.u32 %v2649_v52, 16  ;;  %6308 = vst [vmem:[#allocation5 + $0x24] sm:$0xf] %v6276_v29 }
 0x2bb   : > { %v5300_v57 = vadd.f32 %v5299_v37, %v5211_v11  ;;  %v3145_v37 = vld [vmem:[#allocation2 + $0x8c] sm:$0x1]  ;;  %v3277_v2 = vrot.slane %v3144_v56, 5  ;;  %v2902_v52 = vrot.slane %v2901_v47, 4  ;;  %v12547_v56 = vld [vmem:[#allocation4 + $0x208] sm:$0xf] }
 0x2bc   : > { %9306 = vmatmul.bf16.gmra.mxu1 %v12544_v62  ;;  %v2891_v62 = vor.u32 %v2890_v1, %v2887_v30  ;;  %v2906_v11 = vrot.slane %v2904_v31, 5  ;;  %v3280_v58 = vrot.slane %v3145_v37, 5  ;;  %v17068_v30 = vld [vmem:[#allocation44_spill] sm:$0xff]  ;;  %v11927_v37 = vld [vmem:[#allocation4 + $0x260] sm:$0xf] }
 0x2bd   : > { %5528 = vmatmul.bf16.gmra.mxu3 %v11888_v20  ;;  %5617 = vmatmul.bf16.gmra.mxu0 %v11892_v61  ;;  %v3278_v20 = vsel %vm14485_vm12, %v11598_v17, %v3277_v2  ;;  %v3279_v61 = vrot.slane %v3277_v2, 4  ;;  %v13558_v17 = vld [vmem:[#allocation4 + $0x25c] sm:$0xf]  ;;  %v13563_v2 = vld [vmem:[#allocation4 + $0x280] sm:$0xf0] }
 0x2be   : > { %v5475_v53 = vpop.f32.mrf.mxu2  ;;  %3374 = vst [vmem:[#allocation4 + $0x2a8] sm:$0xf] %v3278_v20  ;;  %v2907_v31 = vsel %vm14518_vm14, %v2902_v52, %v2906_v11  ;;  %v11928_v11 = vor.u32 %v13563_v2, %v11927_v37  ;;  %v5759_v52 = vld [vmem:[#allocation3 + $0x14] sm:$0x1]  ;;  %v2652_v29 = vld [vmem:[#allocation2 + $0x98] sm:$0x1] }
 0x2bf   : > { %v15478_v42 = vadd.f32 %v5475_v53, %v5387_v3  ;;  %v2892_v3 = vrot.slane %v2891_v62, 4  ;;  %v3281_v1 = vsel %vm14485_vm12, %v3279_v61, %v3280_v58  ;;  %3103 = vst [vmem:[#allocation4 + $0x2c8] sm:$0xf] %v2907_v31  ;;  %v2650_v58 = vld [vmem:[#allocation2 + $0x90] sm:$0xf]  ;;  %v11924_v61 = vor.u32 %v13558_v17, %v11921_v63 }
 0x2c0   : > { %v5213_v53 = vpop.f32.mrf.mxu3  ;;  %3375 = vst [vmem:[#allocation4 + $0x2cc] sm:$0xf] %v3281_v1  ;;  %v2928_v2 = vshll.u32 %v2652_v29, 16  ;;  %v3146_v63 = vld [vmem:[#allocation2 + $0x90] sm:$0xe] }
 0x2c1   : > { %17066 = vst [vmem:[#allocation32_spill] sm:$0xff] %v15478_v42  ;;  %v5388_v10 = vpop.f32.mrf.mxu1  ;;  %v5214_v60 = vadd.f32 %v5213_v53, %v17068_v30  ;;  %v2897_v13 = vsel %vm14518_vm14, %v2892_v3, %v2896_v40  ;;  %v6275_v40 = vld [vmem:[#allocation3] sm:$0xf]  ;;  %v2909_v30 = vshrl.u32 %v2650_v58, 16  ;;  %v12551_v29 = vld [vmem:[#allocation4 + $0x250] sm:$0xf] }
 0x2c2   : > { %v15484_v23 = vadd.f32 %v5388_v10, %v5300_v57  ;;  %v5304_v45 = vpop.f32.mrf.mxu0  ;;  %3102 = vst [vmem:[#allocation4 + $0x2a4] sm:$0xf] %v2897_v13  ;;  %v13922_v57 = vld [vmem:[#allocation4 + $0x228] sm:$0xf0]  ;;  %v2912_v13 = vshll.u32 %v2650_v58, 16 }
 0x2c3   : > { %v5303_v36 = vadd.f32 %v5302_v51, %v5214_v60  ;;  %v12548_v47 = vor.u32 %v13922_v57, %v12547_v56  ;;  %6307 = vst [vmem:[#allocation5] sm:$0xf] %v6275_v40  ;;  %v2651_v51 = vld [vmem:[#allocation2 + $0x94] sm:$0xf]  ;;  %v5760_v56 = vsel %vm14456_vm8, 0, %v5759_v52  ;;  %v2911_v57 = vrot.slane %v2909_v30, 4 }
 0x2c4   : > { %17067 = vst [vmem:[#allocation33_spill] sm:$0xff] %v15484_v23  ;;  %v2918_v31 = vshll.u32 %v2651_v51, 16  ;;  %v2922_v17 = vshrl.u32 %v2651_v51, 16 }
 0x2c5   : > { %5761 = vst [vmem:[#allocation3 + $0x14] sm:$0x1] %v5760_v56  ;;  %v2930_v56 = vrot.slane %v2928_v2, 5  ;;  %v11963_v2 = vld [vmem:[#allocation4 + $0x2a8] sm:$0xf] }
 0x2c6   : > { %v15493_v62 = vpop.f32.mrf.mxu2  ;;  %v2920_v37 = vrot.slane %v2918_v31, 5 }
 0x2c7   : > { %17069 = vst [vmem:[#allocation34_spill] sm:$0xff] %v15493_v62  ;;  %v2914_v62 = vrot.slane %v2912_v13, 5  ;;  %v11599_v13 = vrot.slane %v3146_v63, 9 }
 0x2c8   : > { %v5215_v53 = vpop.f32.mrf.mxu3 }
 0x2c9   : > { %v5391_v10 = vpop.f32.mrf.mxu1  ;;  %v5216_v20 = vadd.f32 %v5215_v53, %v15187_v49  ;;  %v13703_v49 = vld [vmem:[#allocation5 + $0x20] sm:$0xf0] }
 0x2ca   : > { %v5392_v3 = vadd.f32 %v5391_v10, %v5303_v36  ;;  %v5583_v60 = vpop.f32.mrf.mxu0  ;;  %v12615_v58 = vld [vmem:[#allocation5] sm:$0xf]  ;;  %v3148_v10 = vld [vmem:[#allocation2 + $0x98] sm:$0x1] }
 0x2cb   : > { %v5305_v1 = vadd.f32 %v5304_v45, %v5216_v20  ;;  %v3147_v45 = vld [vmem:[#allocation2 + $0x94] sm:$0xf]  ;;  %v12616_v53 = vor.u32 %v13703_v49, %v12615_v58  ;;  %v2924_v20 = vrot.slane %v2922_v17, 4  ;;  %v13923_v49 = vld [vmem:[#allocation4 + $0x270] sm:$0xf0] }
 0x2cc   : > { %9311 = vmatmul.bf16.gmra.mxu1 %v12548_v47  ;;  %v2915_v47 = vor.u32 %v2914_v62, %v2911_v57  ;;  %v3284_v31 = vrot.slane %v3147_v45, 5  ;;  %v5708_v58 = vld [vmem:[#allocation3 + $0x18] sm:$0x1]  ;;  %v13567_v45 = vld [vmem:[#allocation4 + $0x2a4] sm:$0xf] }
 0x2cd   : > { %5533 = vmatmul.bf16.gmra.mxu3 %v11924_v61  ;;  %5622 = vmatmul.bf16.gmra.mxu0 %v11928_v11  ;;  %v2925_v51 = vor.u32 %v2924_v20, %v2920_v37  ;;  %v3287_v61 = vrot.slane %v3148_v10, 5 }
 0x2ce   : > { %v5480_v40 = vpop.f32.mrf.mxu2  ;;  %v2916_v23 = vrot.slane %v2915_v47, 4  ;;  %10533 = vmatmul.bf16.vlgmr.msra.gmra.mxu2 %v12616_v53  ;;  %v3286_v57 = vrot.slane %v3284_v31, 4  ;;  %v12552_v53 = vor.u32 %v13923_v49, %v12551_v29 }
 0x2cf   : > { %v15498_v36 = vadd.f32 %v5480_v40, %v5392_v3  ;;  %v2926_v47 = vrot.slane %v2925_v51, 4 }
 0x2d0   : > { %v5494_v30 = vpop.f32.mrf.mxu3  ;;  %v2921_v62 = vsel %vm14518_vm14, %v2916_v23, %v2920_v37  ;;  %v3288_v23 = vsel %vm14485_vm12, %v3286_v57, %v3287_v61  ;;  %v13572_v37 = vld [vmem:[#allocation4 + $0x2c8] sm:$0xf0]  ;;  %v5762_v61 = vld [vmem:[#allocation3 + $0x20] sm:$0x1] }
 0x2d1   : > { %17070 = vst [vmem:[#allocation36_spill] sm:$0xff] %v15498_v36  ;;  %v5393_v52 = vpop.f32.mrf.mxu1  ;;  %v5495_v11 = vadd.f32 %v5494_v30, %v15207_v44  ;;  %v3285_v44 = vsel %vm14485_vm12, %v11599_v13, %v3284_v31  ;;  %v2931_v10 = vsel %vm14518_vm14, %v2926_v47, %v2930_v56  ;;  %v2654_v30 = vld [vmem:[#allocation2 + $0xa0] sm:$0xf]  ;;  %v11964_v56 = vor.u32 %v13572_v37, %v11963_v2 }
 0x2d2   : > { %v15500_v3 = vadd.f32 %v5393_v52, %v5305_v1  ;;  %v5585_v40 = vpop.f32.mrf.mxu0  ;;  %v5709_v1 = vsel %vm14436_vm2, 0, %v5708_v58  ;;  %3104 = vst [vmem:[#allocation4 + $0x2ec] sm:$0xf] %v2921_v62  ;;  %v2653_v52 = vld [vmem:[#allocation2 + $0x9c] sm:$0xf]  ;;  %v13858_v58 = vld [vmem:[#allocation11 + $0x78] sm:$0xff] }
 0x2d3   : > { %v5584_v17 = vadd.f32 %v5583_v60, %v5495_v11  ;;  %5710 = vst [vmem:[#allocation3 + $0x18] sm:$0x1] %v5709_v1  ;;  %v11957_v60 = vld [vmem:[#allocation4 + $0x2c4] sm:$0xf0]  ;;  %v2933_v57 = vshrl.u32 %v2653_v52, 16  ;;  %v2936_v47 = vshll.u32 %v2653_v52, 16  ;;  %10614 = vmatpush.bf16.msrb.mxu3 %v13858_v58 }
 0x2d4   : > { %17071 = vst [vmem:[#allocation37_spill] sm:$0xff] %v15500_v3  ;;  %v11960_v62 = vor.u32 %v13567_v45, %v11957_v60  ;;  %v2942_v1 = vshll.u32 %v2654_v30, 16  ;;  %v2655_v60 = vld [vmem:[#allocation2 + $0xa4] sm:$0x1]  ;;  %v2946_v52 = vshrl.u32 %v2654_v30, 16 }
 0x2d5   : > { %v5663_v63 = vmax.f32 %v5584_v17, 0.0  ;;  %3105 = vst [vmem:[#allocation4 + $0x310] sm:$0xf] %v2931_v10  ;;  %v6163_v10 = vld [vmem:[#allocation3 + $0xc] sm:$0xf]  ;;  %v2938_v45 = vrot.slane %v2936_v47, 5 }
 0x2d6   : > { %3376 = vst [vmem:[#allocation4 + $0x2f0] sm:$0xf] %v3285_v44  ;;  %v2952_v47 = vshll.u32 %v2655_v60, 16 }
 0x2d7   : > { %v5810_v20 = vpack.c.bf16 %v5663_v63, %v5663_v63  ;;  %3377 = vst [vmem:[#allocation4 + $0x314] sm:$0xf] %v3288_v23  ;;  %v5763_v63 = vsel %vm14456_vm8, 0, %v5762_v61 }
 0x2d8   : > { %v5496_v13 = vpop.f32.mrf.mxu3  ;;  %5764 = vst [vmem:[#allocation3 + $0x20] sm:$0x1] %v5763_v63  ;;  %v12555_v63 = vld [vmem:[#allocation4 + $0x298] sm:$0xf] }
 0x2d9   : > { %v15513_v11 = vpop.f32.mrf.mxu1  ;;  %v5843_v31 = vshrl.u32 %v5810_v20, 16  ;;  %v5497_v51 = vadd.f32 %v5496_v13, %v15221_v9  ;;  %v5846_v49 = vshll.u32 %v5810_v20, 16  ;;  %v2935_v9 = vrot.slane %v2933_v57, 4  ;;  %v3149_v13 = vld [vmem:[#allocation2 + $0x9c] sm:$0xe] }
 0x2da   : > { %17072 = vst [vmem:[#allocation39_spill] sm:$0xff] %v15513_v11  ;;  %v5588_v17 = vpop.f32.mrf.mxu0  ;;  %v2948_v57 = vrot.slane %v2946_v52, 4  ;;  %v13576_v60 = vld [vmem:[#allocation4 + $0x2ec] sm:$0xf] }
 0x2db   : > { %v15516_v29 = vrot.slane %v5843_v31, 7  ;;  %v5586_v44 = vadd.f32 %v5585_v40, %v5497_v51  ;;  %v2939_v37 = vor.u32 %v2938_v45, %v2935_v9  ;;  %v3150_v31 = vld [vmem:[#allocation2 + $0xa0] sm:$0xf]  ;;  %v13924_v9 = vld [vmem:[#allocation4 + $0x2b8] sm:$0xf0] }
 0x2dc   : > { %9316 = vmatmul.bf16.gmra.mxu1 %v12552_v53  ;;  %v2944_v53 = vrot.slane %v2942_v1, 5  ;;  %v6167_v1 = vld [vmem:[#allocation3 + $0x14] sm:$0x1]  ;;  %v5711_v11 = vld [vmem:[#allocation3 + $0x24] sm:$0x1] }
 0x2dd   : > { %v5848_v2 = vor.u32 %v5846_v49, %v15516_v29  ;;  %v5664_v23 = vmax.f32 %v5586_v44, 0.0  ;;  %5538 = vmatmul.bf16.gmra.mxu3 %v11960_v62  ;;  %5627 = vmatmul.bf16.gmra.mxu0 %v11964_v56  ;;  %v2940_v61 = vrot.slane %v2939_v37, 4  ;;  %v3151_v56 = vld [vmem:[#allocation2 + $0xa4] sm:$0x1]  ;;  %v11600_v44 = vrot.slane %v3149_v13, 9 }
 0x2de   : > { %v5849_v30 = vrot.slane %v15516_v29, 4  ;;  %v5712_v29 = vsel %vm14436_vm2, 0, %v5711_v11  ;;  %v2954_v13 = vrot.slane %v2952_v47, 5  ;;  %v3294_v36 = vrot.slane %v3151_v56, 5 }
 0x2df   : > { %v6164_v40 = vsel %vm14491_vm13, %v5848_v2, %v6163_v10  ;;  %v5811_v20 = vpack.c.bf16 %v5664_v23, %v5664_v23  ;;  %v2945_v45 = vsel %vm14518_vm14, %v2940_v61, %v2944_v53  ;;  %v2949_v2 = vor.u32 %v2948_v57, %v2944_v53  ;;  %5713 = vst [vmem:[#allocation3 + $0x24] sm:$0x1] %v5712_v29  ;;  %v13866_v57 = vld [vmem:[#allocation11 + $0xb8] sm:$0xff]  ;;  %v6170_v29 = vld [vmem:[#allocation3 + $0x18] sm:$0xf] }
 0x2e0   : > { %6165 = vst [vmem:[#allocation3 + $0xc] sm:$0xf] %v6164_v40  ;;  %v5499_v58 = vpop.f32.mrf.mxu3  ;;  %v3291_v23 = vrot.slane %v3150_v31, 5  ;;  %v12556_v47 = vor.u32 %v13924_v9, %v12555_v63  ;;  %10703 = vmatpush.bf16.msrb.mxu0 %v13866_v57  ;;  %v13925_v57 = vld [vmem:[#allocation4 + $0x300] sm:$0xf0] }
 0x2e1   : > { %v15523_v51 = vpop.f32.mrf.mxu1  ;;  %v5851_v49 = vshrl.u32 %v5811_v20, 16  ;;  %v5500_v62 = vadd.f32 %v5499_v58, %v15224_v21  ;;  %v5854_v37 = vshll.u32 %v5811_v20, 16  ;;  %v11999_v21 = vld [vmem:[#allocation4 + $0x2f0] sm:$0xf]  ;;  %v13581_v58 = vld [vmem:[#allocation4 + $0x310] sm:$0xf0] }
 0x2e2   : > { %17073 = vst [vmem:[#allocation35_spill] sm:$0xff] %v15523_v51  ;;  %v5590_v10 = vpop.f32.mrf.mxu0  ;;  %v11993_v51 = vld [vmem:[#allocation4 + $0x30c] sm:$0xf0]  ;;  %v3292_v3 = vsel %vm14485_vm12, %v11600_v44, %v3291_v23  ;;  %v2950_v20 = vrot.slane %v2949_v2, 4  ;;  %v5765_v44 = vld [vmem:[#allocation3 + $0x2c] sm:$0x1] }
 0x2e3   : > { %v5853_v40 = vrot.slane %v5851_v49, 7  ;;  %v5589_v52 = vadd.f32 %v5588_v17, %v5500_v62  ;;  %3106 = vst [vmem:[#allocation4 + $0x334] sm:$0xf] %v2945_v45  ;;  %v13882_v17 = vld [vmem:[#allocation11 + $0x138] sm:$0xff]  ;;  %v3293_v62 = vrot.slane %v3291_v23, 4  ;;  %v11996_v2 = vor.u32 %v13576_v60, %v11993_v51 }
 0x2e4   : > { %v13874_v49 = vld [vmem:[#allocation11 + $0xf8] sm:$0xff]  ;;  %3378 = vst [vmem:[#allocation4 + $0x338] sm:$0xf] %v3292_v3  ;;  %10881 = vmatpush.bf16.msrb.mxu2 %v13882_v17  ;;  %v5766_v23 = vsel %vm14456_vm8, 0, %v5765_v44  ;;  %v2955_v63 = vsel %vm14518_vm14, %v2950_v20, %v2954_v13  ;;  %v12559_v17 = vld [vmem:[#allocation4 + $0x2e0] sm:$0xf] }
 0x2e5   : > { %v5856_v61 = vor.u32 %v5854_v37, %v5853_v40  ;;  %v5858_v53 = vrot.slane %v5853_v40, 4  ;;  %v5665_v31 = vmax.f32 %v5589_v52, 0.0  ;;  %v12000_v37 = vor.u32 %v13581_v58, %v11999_v21  ;;  %10792 = vmatpush.bf16.msrb.mxu1 %v13874_v49  ;;  %5767 = vst [vmem:[#allocation3 + $0x2c] sm:$0x1] %v5766_v23  ;;  %v5714_v21 = vld [vmem:[#allocation3 + $0x30] sm:$0x1] }
 0x2e6   : > { %v3295_v9 = vsel %vm14485_vm12, %v3293_v62, %v3294_v36  ;;  %3107 = vst [vmem:[#allocation4 + $0x358] sm:$0xf] %v2955_v63  ;;  %v6174_v62 = vld [vmem:[#allocation3 + $0x20] sm:$0x1] }
 0x2e7   : > { %v5857_v42 = vsel %vm14470_vm11, %v5849_v30, %v5856_v61  ;;  %v6168_v11 = vsel %vm14436_vm2, %v5858_v53, %v6167_v1  ;;  %v5812_v45 = vpack.c.bf16 %v5665_v31, %v5665_v31  ;;  %v6277_v1 = vld [vmem:[#allocation3 + $0xc] sm:$0xf]  ;;  %3379 = vst [vmem:[#allocation4 + $0x35c] sm:$0xf] %v3295_v9 }
 0x2e8   : > { %6166 = vst [vmem:[#allocation3 + $0x10] sm:$0xf] %v5857_v42  ;;  %v5501_v40 = vpop.f32.mrf.mxu3 }
 0x2e9   : > { %v15537_v56 = vpop.f32.mrf.mxu1  ;;  %6169 = vst [vmem:[#allocation3 + $0x14] sm:$0x1] %v6168_v11  ;;  %v5860_v3 = vshrl.u32 %v5812_v45, 16  ;;  %v5502_v30 = vadd.f32 %v5501_v40, %v15238_v16  ;;  %v5863_v52 = vshll.u32 %v5812_v45, 16  ;;  %v2656_v45 = vld [vmem:[#allocation2 + $0xa8] sm:$0xf] }
 0x2ea   : > { %v5593_v42 = vpop.f32.mrf.mxu0  ;;  %6309 = vst [vmem:[#allocation5 + $0x48] sm:$0xf] %v6277_v1  ;;  %v5768_v1 = vld [vmem:[#allocation3 + $0x38] sm:$0x1] }
 0x2eb   : > { %v5862_v51 = vrot.slane %v5860_v3, 7  ;;  %v5591_v60 = vadd.f32 %v5590_v10, %v5502_v30  ;;  %v5715_v10 = vsel %vm14436_vm2, 0, %v5714_v21  ;;  %v13585_v3 = vld [vmem:[#allocation4 + $0x334] sm:$0xf] }
 0x2ec   : > { %9321 = vmatmul.bf16.gmra.mxu1 %v12556_v47  ;;  %v13857_v47 = vld [vmem:[#allocation11 + $0x70] sm:$0xff]  ;;  %5716 = vst [vmem:[#allocation3 + $0x30] sm:$0x1] %v5715_v10 }
 0x2ed   : > { %v5865_v61 = vor.u32 %v5863_v52, %v5862_v51  ;;  %v5666_v16 = vmax.f32 %v5591_v60, 0.0  ;;  %5543 = vmatmul.bf16.gmra.mxu3 %v11996_v2  ;;  %5632 = vmatmul.bf16.gmra.mxu0 %v12000_v37  ;;  %v5866_v44 = vrot.slane %v5862_v51, 4  ;;  %v12029_v30 = vld [vmem:[#allocation4 + $0x354] sm:$0xf0]  ;;  %v2657_v51 = vld [vmem:[#allocation2 + $0xac] sm:$0xf] }
 0x2ee   : > { %v12035_v37 = vld [vmem:[#allocation4 + $0x338] sm:$0xf]  ;;  %10615 = vmatpush.bf16.msrb.mxu3 %v13857_v47  ;;  %v13590_v60 = vld [vmem:[#allocation4 + $0x358] sm:$0xf0] }
 0x2ef   : > { %v6171_v58 = vsel %vm14491_vm13, %v5865_v61, %v6170_v29  ;;  %v5813_v13 = vpack.c.bf16 %v5666_v16, %v5666_v16  ;;  %v6278_v53 = vld [vmem:[#allocation3 + $0x10] sm:$0xf]  ;;  %v12560_v29 = vor.u32 %v13925_v57, %v12559_v17  ;;  %v5769_v16 = vsel %vm14456_vm8, 0, %v5768_v1 }
 0x2f0   : > { %6172 = vst [vmem:[#allocation3 + $0x18] sm:$0xf] %v6171_v58  ;;  %v5504_v31 = vpop.f32.mrf.mxu3  ;;  %v12032_v17 = vor.u32 %v13585_v3, %v12029_v30  ;;  %v12036_v57 = vor.u32 %v13590_v60, %v12035_v37  ;;  %v13865_v3 = vld [vmem:[#allocation11 + $0xb0] sm:$0xff]  ;;  %v2966_v37 = vshll.u32 %v2657_v51, 16 }
 0x2f1   : > { %v15548_v36 = vpop.f32.mrf.mxu1  ;;  %v5868_v20 = vshrl.u32 %v5813_v13, 16  ;;  %v5505_v49 = vadd.f32 %v5504_v31, %v15241_v18  ;;  %6310 = vst [vmem:[#allocation5 + $0x6c] sm:$0xf] %v6278_v53  ;;  %v5871_v2 = vshll.u32 %v5813_v13, 16  ;;  %v2957_v18 = vshrl.u32 %v2656_v45, 16  ;;  %v13873_v60 = vld [vmem:[#allocation11 + $0xf0] sm:$0xff]  ;;  %10704 = vmatpush.bf16.msrb.mxu0 %v13865_v3 }
 0x2f2   : > { %v5595_v11 = vpop.f32.mrf.mxu0  ;;  %v12651_v61 = vld [vmem:[#allocation5 + $0x48] sm:$0xf]  ;;  %5770 = vst [vmem:[#allocation3 + $0x38] sm:$0x1] %v5769_v16  ;;  %v2658_v13 = vld [vmem:[#allocation2 + $0xb0] sm:$0x1]  ;;  %10793 = vmatpush.bf16.msrb.mxu1 %v13873_v60 }
 0x2f3   : > { %v5870_v40 = vrot.slane %v5868_v20, 7  ;;  %v5594_v23 = vadd.f32 %v5593_v42, %v5505_v49  ;;  %v2960_v53 = vshll.u32 %v2656_v45, 16  ;;  %v3152_v49 = vld [vmem:[#allocation2 + $0xa8] sm:$0xe]  ;;  %v6177_v16 = vld [vmem:[#allocation3 + $0x24] sm:$0xf] }
 0x2f5   : > { %v5873_v63 = vor.u32 %v5871_v2, %v5870_v40  ;;  %v5875_v9 = vrot.slane %v5870_v40, 4  ;;  %v5667_v52 = vmax.f32 %v5594_v23, 0.0  ;;  %v2959_v23 = vrot.slane %v2957_v18, 4 }
 0x2f6   : > { %v2962_v30 = vrot.slane %v2960_v53, 5 }
 0x2f7   : > { %v5874_v42 = vsel %vm14470_vm11, %v5866_v44, %v5873_v63  ;;  %v6175_v21 = vsel %vm14436_vm2, %v5875_v9, %v6174_v62  ;;  %v5814_v58 = vpack.c.bf16 %v5667_v52, %v5667_v52  ;;  %v6279_v2 = vld [vmem:[#allocation3 + $0x18] sm:$0xf]  ;;  %v3153_v63 = vld [vmem:[#allocation2 + $0xac] sm:$0xf]  ;;  %v13881_v52 = vld [vmem:[#allocation11 + $0x130] sm:$0xff] }
 0x2f8   : > { %6173 = vst [vmem:[#allocation3 + $0x1c] sm:$0xf] %v5874_v42  ;;  %v5506_v10 = vpop.f32.mrf.mxu3  ;;  %v13712_v20 = vld [vmem:[#allocation5 + $0x68] sm:$0xf0]  ;;  %v2970_v42 = vshrl.u32 %v2657_v51, 16  ;;  %10882 = vmatpush.bf16.msrb.mxu2 %v13881_v52 }
 0x2f9   : > { %v15559_v31 = vpop.f32.mrf.mxu1  ;;  %6176 = vst [vmem:[#allocation3 + $0x20] sm:$0x1] %v6175_v21  ;;  %v5877_v47 = vshrl.u32 %v5814_v58, 16  ;;  %v5507_v40 = vadd.f32 %v5506_v10, %v15255_v7  ;;  %v12652_v44 = vor.u32 %v13712_v20, %v12651_v61  ;;  %v5880_v62 = vshll.u32 %v5814_v58, 16 }
 0x2fa   : > { %v5598_v1 = vpop.f32.mrf.mxu0  ;;  %6311 = vst [vmem:[#allocation5 + $0x90] sm:$0xf] %v6279_v2  ;;  %v2976_v7 = vshll.u32 %v2658_v13, 16  ;;  %v11601_v61 = vrot.slane %v3152_v49, 9  ;;  %v2963_v58 = vor.u32 %v2962_v30, %v2959_v23  ;;  %v2972_v10 = vrot.slane %v2970_v42, 4 }
 0x2fb   : > { %v15562_v45 = vrot.slane %v5877_v47, 7  ;;  %v5596_v9 = vadd.f32 %v5595_v11, %v5507_v40  ;;  %10538 = vmatmul.bf16.gmra.mxu2 %v12652_v44  ;;  %v2968_v11 = vrot.slane %v2966_v37, 5  ;;  %v3154_v49 = vld [vmem:[#allocation2 + $0xb0] sm:$0x1]  ;;  %v12563_v44 = vld [vmem:[#allocation4 + $0x328] sm:$0xf] }
 0x2fc   : > { %9326 = vmatmul.bf16.gmra.mxu1 %v12560_v29  ;;  %v3298_v29 = vrot.slane %v3153_v63, 5  ;;  %v13926_v2 = vld [vmem:[#allocation4 + $0x348] sm:$0xf0]  ;;  %v2978_v63 = vrot.slane %v2976_v7, 5  ;;  %v6181_v30 = vld [vmem:[#allocation3 + $0x2c] sm:$0x1] }
 0x2fd   : > { %v5882_v18 = vor.u32 %v5880_v62, %v15562_v45  ;;  %v5668_v21 = vmax.f32 %v5596_v9, 0.0  ;;  %5548 = vmatmul.bf16.gmra.mxu3 %v12032_v17  ;;  %5637 = vmatmul.bf16.gmra.mxu0 %v12036_v57  ;;  %v2964_v57 = vrot.slane %v2963_v58, 4  ;;  %v2973_v62 = vor.u32 %v2972_v10, %v2968_v11  ;;  %v5717_v9 = vld [vmem:[#allocation3 + $0x3c] sm:$0x1]  ;;  %v5771_v7 = vld [vmem:[#allocation3 + $0x44] sm:$0x1] }
 0x2fe   : > { %v3299_v51 = vsel %vm14485_vm12, %v11601_v61, %v3298_v29  ;;  %v5883_v52 = vrot.slane %v15562_v45, 4  ;;  %v2659_v58 = vld [vmem:[#allocation2 + $0xb4] sm:$0xf] }
 0x2ff   : > { %v6178_v53 = vsel %vm14491_vm13, %v5882_v18, %v6177_v16  ;;  %v5815_v20 = vpack.c.bf16 %v5668_v21, %v5668_v21  ;;  %v6280_v47 = vld [vmem:[#allocation3 + $0x1c] sm:$0xf]  ;;  %v2969_v60 = vsel %vm14518_vm14, %v2964_v57, %v2968_v11  ;;  %3380 = vst [vmem:[#allocation4 + $0x380] sm:$0xf] %v3299_v51  ;;  %v2974_v61 = vrot.slane %v2973_v62, 4 }
 0x300   : > { %6179 = vst [vmem:[#allocation3 + $0x24] sm:$0xf] %v6178_v53  ;;  %v5509_v17 = vpop.f32.mrf.mxu3  ;;  %v3300_v18 = vrot.slane %v3298_v29, 4  ;;  %v3301_v21 = vrot.slane %v3154_v49, 5  ;;  %v2660_v11 = vld [vmem:[#allocation2 + $0xb8] sm:$0xf] }
 0x301   : > { %v15569_v13 = vpop.f32.mrf.mxu1  ;;  %v5885_v40 = vshrl.u32 %v5815_v20, 16  ;;  %v5510_v23 = vadd.f32 %v5509_v17, %v15261_v32  ;;  %6312 = vst [vmem:[#allocation5 + $0xb4] sm:$0xf] %v6280_v47  ;;  %v5888_v3 = vshll.u32 %v5815_v20, 16  ;;  %v5718_v32 = vsel %vm14436_vm2, 0, %v5717_v9 }
 0x302   : > { %v5600_v37 = vpop.f32.mrf.mxu0  ;;  %3108 = vst [vmem:[#allocation4 + $0x37c] sm:$0xf] %v2969_v60  ;;  %v2979_v20 = vsel %vm14518_vm14, %v2974_v61, %v2978_v63  ;;  %v12564_v47 = vor.u32 %v13926_v2, %v12563_v44  ;;  %v12687_v51 = vld [vmem:[#allocation5 + $0x90] sm:$0xf]  ;;  %v5772_v29 = vsel %vm14456_vm8, 0, %v5771_v7  ;;  %v2984_v63 = vshll.u32 %v2659_v58, 16 }
 0x303   : > { %v5887_v16 = vrot.slane %v5885_v40, 7  ;;  %v5599_v42 = vadd.f32 %v5598_v1, %v5510_v23  ;;  %5719 = vst [vmem:[#allocation3 + $0x3c] sm:$0x1] %v5718_v32  ;;  %v3302_v1 = vsel %vm14485_vm12, %v3300_v18, %v3301_v21  ;;  %v2981_v23 = vshrl.u32 %v2659_v58, 16 }
 0x304   : > { %3109 = vst [vmem:[#allocation4 + $0x3a0] sm:$0xf] %v2979_v20  ;;  %v2990_v9 = vshll.u32 %v2660_v11, 16  ;;  %v2986_v21 = vrot.slane %v2984_v63, 5 }
 0x305   : > { %v5890_v10 = vor.u32 %v5888_v3, %v5887_v16  ;;  %v5892_v45 = vrot.slane %v5887_v16, 4  ;;  %v5669_v53 = vmax.f32 %v5599_v42, 0.0  ;;  %3381 = vst [vmem:[#allocation4 + $0x3a4] sm:$0xf] %v3302_v1  ;;  %v2661_v42 = vld [vmem:[#allocation2 + $0xbc] sm:$0x1] }
 0x306   : > { %5773 = vst [vmem:[#allocation3 + $0x44] sm:$0x1] %v5772_v29  ;;  %v2983_v18 = vrot.slane %v2981_v23, 4  ;;  %v2992_v58 = vrot.slane %v2990_v9, 5  ;;  %v3000_v1 = vshll.u32 %v2661_v42, 16 }
 0x307   : > { %v5891_v17 = vsel %vm14470_vm11, %v5883_v52, %v5890_v10  ;;  %v6182_v57 = vsel %vm14436_vm2, %v5892_v45, %v6181_v30  ;;  %v5816_v49 = vpack.c.bf16 %v5669_v53, %v5669_v53  ;;  %v6281_v40 = vld [vmem:[#allocation3 + $0x24] sm:$0xf]  ;;  %v2994_v10 = vshrl.u32 %v2660_v11, 16  ;;  %v6184_v45 = vld [vmem:[#allocation3 + $0x30] sm:$0xf] }
 0x308   : > { %6180 = vst [vmem:[#allocation3 + $0x28] sm:$0xf] %v5891_v17  ;;  %v5511_v2 = vpop.f32.mrf.mxu3  ;;  %v13721_v62 = vld [vmem:[#allocation5 + $0xb0] sm:$0xf0]  ;;  %v12071_v53 = vld [vmem:[#allocation4 + $0x380] sm:$0xf]  ;;  %v2987_v20 = vor.u32 %v2986_v21, %v2983_v18 }
 0x309   : > { %v15587_v44 = vpop.f32.mrf.mxu1  ;;  %6183 = vst [vmem:[#allocation3 + $0x2c] sm:$0x1] %v6182_v57  ;;  %v5894_v3 = vshrl.u32 %v5816_v49, 16  ;;  %v5897_v60 = vshll.u32 %v5816_v49, 16  ;;  %v5512_v16 = vadd.f32 %v5511_v2, %v15278_v33  ;;  %v12688_v52 = vor.u32 %v13721_v62, %v12687_v51  ;;  %v13594_v30 = vld [vmem:[#allocation4 + $0x37c] sm:$0xf] }
 0x30a   : > { %v5603_v61 = vpop.f32.mrf.mxu0  ;;  %6313 = vst [vmem:[#allocation5 + $0xd8] sm:$0xf] %v6281_v40  ;;  %v2996_v57 = vrot.slane %v2994_v10, 4  ;;  %v3155_v29 = vld [vmem:[#allocation2 + $0xb4] sm:$0xe]  ;;  %v3002_v2 = vrot.slane %v3000_v1, 5 }
 0x30b   : > { %v15590_v32 = vrot.slane %v5894_v3, 7  ;;  %v5601_v7 = vadd.f32 %v5600_v37, %v5512_v16  ;;  %10543 = vmatmul.bf16.gmra.mxu2 %v12688_v52  ;;  %v12065_v17 = vld [vmem:[#allocation4 + $0x39c] sm:$0xf0]  ;;  %v3156_v62 = vld [vmem:[#allocation2 + $0xb8] sm:$0xf]  ;;  %v11602_v42 = vrot.slane %v3155_v29, 9 }
 0x30c   : > { %9331 = vmatmul.bf16.gmra.mxu1 %v12564_v47  ;;  %v12068_v49 = vor.u32 %v13594_v30, %v12065_v17  ;;  %v13599_v23 = vld [vmem:[#allocation4 + $0x3a0] sm:$0xf0]  ;;  %v2988_v47 = vrot.slane %v2987_v20, 4  ;;  %v2997_v9 = vor.u32 %v2996_v57, %v2992_v58  ;;  %v3157_v3 = vld [vmem:[#allocation2 + $0xbc] sm:$0x1]  ;;  %v3305_v30 = vrot.slane %v3156_v62, 5 }
 0x30d   : > { %v5899_v33 = vor.u32 %v5897_v60, %v15590_v32  ;;  %v5670_v51 = vmax.f32 %v5601_v7, 0.0  ;;  %v12072_v11 = vor.u32 %v13599_v23, %v12071_v53  ;;  %v3308_v18 = vrot.slane %v3157_v3, 5  ;;  %v13856_v21 = vld [vmem:[#allocation11 + $0x68] sm:$0xff]  ;;  %v12567_v53 = vld [vmem:[#allocation4 + $0x370] sm:$0xf] }
 0x30e   : > { %5553 = vmatmul.bf16.gmra.mxu3 %v12068_v49  ;;  %v2993_v52 = vsel %vm14518_vm14, %v2988_v47, %v2992_v58  ;;  %v13927_v20 = vld [vmem:[#allocation4 + $0x390] sm:$0xf0]  ;;  %v3307_v17 = vrot.slane %v3305_v30, 4  ;;  %v5900_v58 = vrot.slane %v15590_v32, 4  ;;  %v5720_v47 = vld [vmem:[#allocation3 + $0x48] sm:$0x1] }
 0x30f   : > { %v6185_v37 = vsel %vm14491_vm13, %v5899_v33, %v6184_v45  ;;  %v5817_v40 = vpack.c.bf16 %v5670_v51, %v5670_v51  ;;  %v6282_v63 = vld [vmem:[#allocation3 + $0x28] sm:$0xf]  ;;  %5642 = vmatmul.bf16.gmra.mxu0 %v12072_v11  ;;  %v6188_v45 = vld [vmem:[#allocation3 + $0x38] sm:$0x1]  ;;  %v2998_v33 = vrot.slane %v2997_v9, 4  ;;  %v3306_v51 = vsel %vm14485_vm12, %v11602_v42, %v3305_v30  ;;  %10616 = vmatpush.bf16.msrb.mxu3 %v13856_v21 }
 0x310   : > { %6186 = vst [vmem:[#allocation3 + $0x30] sm:$0xf] %v6185_v37  ;;  %v5514_v60 = vpop.f32.mrf.mxu3  ;;  %v3309_v23 = vsel %vm14485_vm12, %v3307_v17, %v3308_v18  ;;  %v5774_v62 = vld [vmem:[#allocation3 + $0x50] sm:$0x1]  ;;  %v2662_v37 = vld [vmem:[#allocation2 + $0xc0] sm:$0xf]  ;;  %v12568_v30 = vor.u32 %v13927_v20, %v12567_v53 }
 0x311   : > { %v15595_v16 = vpop.f32.mrf.mxu1  ;;  %v5902_v7 = vshrl.u32 %v5817_v40, 16  ;;  %v5515_v10 = vadd.f32 %v5514_v60, %v15288_v14  ;;  %6314 = vst [vmem:[#allocation5 + $0xfc] sm:$0xf] %v6282_v63  ;;  %v5905_v29 = vshll.u32 %v5817_v40, 16  ;;  %v3003_v14 = vsel %vm14518_vm14, %v2998_v33, %v3002_v2  ;;  %v12723_v40 = vld [vmem:[#allocation5 + $0xd8] sm:$0xf] }
 0x312   : > { %v5605_v1 = vpop.f32.mrf.mxu0  ;;  %3110 = vst [vmem:[#allocation4 + $0x3c4] sm:$0xf] %v2993_v52  ;;  %v5721_v32 = vsel %vm14436_vm2, 0, %v5720_v47  ;;  %v5775_v2 = vsel %vm14456_vm8, 0, %v5774_v62  ;;  %v2663_v3 = vld [vmem:[#allocation2 + $0xc4] sm:$0xf] }
 0x313   : > { %v5904_v57 = vrot.slane %v5902_v7, 7  ;;  %v5604_v49 = vadd.f32 %v5603_v61, %v5515_v10  ;;  %3382 = vst [vmem:[#allocation4 + $0x3c8] sm:$0xf] %v3306_v51  ;;  %v5428_v61 = vadd.f32 %v15305_v26, %v15298_v0  ;;  %v3005_v60 = vshrl.u32 %v2662_v37, 16  ;;  %v2664_v7 = vld [vmem:[#allocation2 + $0xc8] sm:$0x1] }
 0x314   : > { %3111 = vst [vmem:[#allocation4 + $0x3e8] sm:$0xf] %v3003_v14  ;;  %v3008_v51 = vshll.u32 %v2662_v37, 16  ;;  %v6191_v14 = vld [vmem:[#allocation3 + $0x3c] sm:$0xf]  ;;  %v13880_v20 = vld [vmem:[#allocation11 + $0x128] sm:$0xff] }
 0x315   : > { %v5907_v11 = vor.u32 %v5905_v29, %v5904_v57  ;;  %v5909_v63 = vrot.slane %v5904_v57, 4  ;;  %v5671_v9 = vmax.f32 %v5604_v49, 0.0  ;;  %3383 = vst [vmem:[#allocation4 + $0x3ec] sm:$0xf] %v3309_v23  ;;  %v3007_v33 = vrot.slane %v3005_v60, 4  ;;  %v13864_v23 = vld [vmem:[#allocation11 + $0xa8] sm:$0xff]  ;;  %10883 = vmatpush.bf16.msrb.mxu2 %v13880_v20 }
 0x316   : > { %5722 = vst [vmem:[#allocation3 + $0x48] sm:$0x1] %v5721_v32  ;;  %v3014_v37 = vshll.u32 %v2663_v3, 16  ;;  %10705 = vmatpush.bf16.msrb.mxu0 %v13864_v23  ;;  %v3018_v32 = vshrl.u32 %v2663_v3, 16 }
 0x317   : > { %v5908_v52 = vsel %vm14470_vm11, %v5900_v58, %v5907_v11  ;;  %v6189_v42 = vsel %vm14436_vm2, %v5909_v63, %v6188_v45  ;;  %v5818_v18 = vpack.c.bf16 %v5671_v9, %v5671_v9  ;;  %v6283_v21 = vld [vmem:[#allocation3 + $0x30] sm:$0xf]  ;;  %5776 = vst [vmem:[#allocation3 + $0x50] sm:$0x1] %v5775_v2  ;;  %v3010_v11 = vrot.slane %v3008_v51, 5  ;;  %v13872_v63 = vld [vmem:[#allocation11 + $0xe8] sm:$0xff] }
 0x318   : > { %6187 = vst [vmem:[#allocation3 + $0x34] sm:$0xf] %v5908_v52  ;;  %v5516_v26 = vpop.f32.mrf.mxu3  ;;  %v13730_v10 = vld [vmem:[#allocation5 + $0xf8] sm:$0xf0]  ;;  %10794 = vmatpush.bf16.msrb.mxu1 %v13872_v63 }
 0x319   : > { %v15617_v0 = vpop.f32.mrf.mxu1  ;;  %6190 = vst [vmem:[#allocation3 + $0x38] sm:$0x1] %v6189_v42  ;;  %v5911_v17 = vshrl.u32 %v5818_v18, 16  ;;  %v5914_v57 = vshll.u32 %v5818_v18, 16  ;;  %v5517_v29 = vadd.f32 %v5516_v26, %v5428_v61  ;;  %v12724_v58 = vor.u32 %v13730_v10, %v12723_v40  ;;  %v13603_v49 = vld [vmem:[#allocation4 + $0x3c4] sm:$0xf] }
 0x31a   : > { %v5608_v45 = vpop.f32.mrf.mxu0  ;;  %v12107_v53 = vld [vmem:[#allocation4 + $0x3c8] sm:$0xf]  ;;  %6315 = vst [vmem:[#allocation5 + $0x120] sm:$0xf] %v6283_v21  ;;  %v3024_v61 = vshll.u32 %v2664_v7, 16  ;;  %v3016_v26 = vrot.slane %v3014_v37, 5 }
 0x31b   : > { %v15619_v47 = vrot.slane %v5911_v17, 7  ;;  %v5606_v62 = vadd.f32 %v5605_v1, %v5517_v29  ;;  %10548 = vmatmul.bf16.gmra.mxu2 %v12724_v58  ;;  %v12101_v9 = vld [vmem:[#allocation4 + $0x3e4] sm:$0xf0]  ;;  %v3158_v40 = vld [vmem:[#allocation2 + $0xc0] sm:$0xe]  ;;  %v3011_v1 = vor.u32 %v3010_v11, %v3007_v33  ;;  %v3020_v21 = vrot.slane %v3018_v32, 4 }
 0x31c   : > { %9336 = vmatmul.bf16.gmra.mxu1 %v12568_v30  ;;  %v12104_v52 = vor.u32 %v13603_v49, %v12101_v9  ;;  %v13608_v42 = vld [vmem:[#allocation4 + $0x3e8] sm:$0xf0]  ;;  %v3159_v30 = vld [vmem:[#allocation2 + $0xc4] sm:$0xf]  ;;  %v3160_v10 = vld [vmem:[#allocation2 + $0xc8] sm:$0x1] }
 0x31d   : > { %v5916_v60 = vor.u32 %v5914_v57, %v15619_v47  ;;  %v5672_v2 = vmax.f32 %v5606_v62, 0.0  ;;  %v12108_v18 = vor.u32 %v13608_v42, %v12107_v53  ;;  %v3026_v3 = vrot.slane %v3024_v61, 5  ;;  %v6195_v11 = vld [vmem:[#allocation3 + $0x44] sm:$0x1]  ;;  %v13928_v37 = vld [vmem:[#allocation4 + $0x3d8] sm:$0xf0] }
 0x31e   : > { %v11603_v7 = vrot.slane %v3158_v40, 9  ;;  %5558 = vmatmul.bf16.gmra.mxu3 %v12104_v52  ;;  %v3012_v49 = vrot.slane %v3011_v1, 4  ;;  %v3021_v20 = vor.u32 %v3020_v21, %v3016_v26  ;;  %v3312_v23 = vrot.slane %v3159_v30, 5  ;;  %v5723_v42 = vld [vmem:[#allocation3 + $0x54] sm:$0x1] }
 0x31f   : > { %v6192_v51 = vsel %vm14491_vm13, %v5916_v60, %v6191_v14  ;;  %v5819_v17 = vpack.c.bf16 %v5672_v2, %v5672_v2  ;;  %v6284_v29 = vld [vmem:[#allocation3 + $0x34] sm:$0xf]  ;;  %v3315_v53 = vrot.slane %v3160_v10, 5  ;;  %5647 = vmatmul.bf16.gmra.mxu0 %v12108_v18  ;;  %v12571_v14 = vld [vmem:[#allocation4 + $0x3b8] sm:$0xf]  ;;  %v5724_v18 = vsel %vm14436_vm2, 0, %v5723_v42 }
 0x320   : > { %6193 = vst [vmem:[#allocation3 + $0x3c] sm:$0xf] %v6192_v51  ;;  %v5519_v57 = vpop.f32.mrf.mxu3  ;;  %v3017_v9 = vsel %vm14518_vm14, %v3012_v49, %v3016_v26  ;;  %v3022_v32 = vrot.slane %v3021_v20, 4  ;;  %v3313_v61 = vsel %vm14485_vm12, %v11603_v7, %v3312_v23  ;;  %v3314_v40 = vrot.slane %v3312_v23, 4  ;;  %v5777_v1 = vld [vmem:[#allocation3 + $0x5c] sm:$0x1] }
 0x321   : > { %v15624_v58 = vpop.f32.mrf.mxu1  ;;  %v5919_v33 = vshrl.u32 %v5819_v17, 16  ;;  %v5520_v62 = vadd.f32 %v5519_v57, %v15313_v24  ;;  %6316 = vst [vmem:[#allocation5 + $0x144] sm:$0xf] %v6284_v29  ;;  %v5922_v2 = vshll.u32 %v5819_v17, 16  ;;  %v5917_v26 = vrot.slane %v15619_v47, 4  ;;  %v13863_v7 = vld [vmem:[#allocation11 + $0xa0] sm:$0xff] }
 0x322   : > { %v5610_v63 = vpop.f32.mrf.mxu0  ;;  %3112 = vst [vmem:[#allocation4 + $0x40c] sm:$0xf] %v3017_v9  ;;  %v3027_v24 = vsel %vm14518_vm14, %v3022_v32, %v3026_v3  ;;  %v3316_v30 = vsel %vm14485_vm12, %v3314_v40, %v3315_v53  ;;  %v12759_v17 = vld [vmem:[#allocation5 + $0x120] sm:$0xf]  ;;  %v5778_v29 = vsel %vm14456_vm8, 0, %v5777_v1  ;;  %v12572_v20 = vor.u32 %v13928_v37, %v12571_v14  ;;  %10706 = vmatpush.bf16.msrb.mxu0 %v13863_v7 }
 0x323   : > { %v5921_v60 = vrot.slane %v5919_v33, 7  ;;  %v5609_v52 = vadd.f32 %v5608_v45, %v5520_v62  ;;  %3384 = vst [vmem:[#allocation4 + $0x410] sm:$0xf] %v3313_v61  ;;  %v5433_v45 = vadd.f32 %v15326_v43, %v15321_v50  ;;  %v13855_v3 = vld [vmem:[#allocation11 + $0x60] sm:$0xff]  ;;  %v2665_v14 = vld [vmem:[#allocation2 + $0xcc] sm:$0xf] }
 0x324   : > { %3113 = vst [vmem:[#allocation4 + $0x430] sm:$0xf] %v3027_v24  ;;  %v13871_v57 = vld [vmem:[#allocation11 + $0xe0] sm:$0xff]  ;;  %10617 = vmatpush.bf16.msrb.mxu3 %v13855_v3  ;;  %v6198_v37 = vld [vmem:[#allocation3 + $0x48] sm:$0xf] }
 0x325   : > { %v5924_v21 = vor.u32 %v5922_v2, %v5921_v60  ;;  %v5926_v10 = vrot.slane %v5921_v60, 4  ;;  %v5673_v51 = vmax.f32 %v5609_v52, 0.0  ;;  %3385 = vst [vmem:[#allocation4 + $0x434] sm:$0xf] %v3316_v30  ;;  %v413_v33 = vld [vmem:[#allocation2 + $0xd4] sm:$0x1]  ;;  %10795 = vmatpush.bf16.msrb.mxu1 %v13871_v57 }
 0x326   : > { %5725 = vst [vmem:[#allocation3 + $0x54] sm:$0x1] %v5724_v18  ;;  %v414_v9 = vsel %vm14456_vm8, 0, %v413_v33  ;;  %v2666_v52 = vld [vmem:[#allocation2 + $0xd0] sm:$0xf]  ;;  %v3029_v18 = vshrl.u32 %v2665_v14, 16 }
 0x327   : > { %v5925_v49 = vsel %vm14470_vm11, %v5917_v26, %v5924_v21  ;;  %v6196_v47 = vsel %vm14436_vm2, %v5926_v10, %v6195_v11  ;;  %v5820_v23 = vpack.c.bf16 %v5673_v51, %v5673_v51  ;;  %v6285_v53 = vld [vmem:[#allocation3 + $0x3c] sm:$0xf]  ;;  %5779 = vst [vmem:[#allocation3 + $0x5c] sm:$0x1] %v5778_v29  ;;  %v3032_v26 = vshll.u32 %v2665_v14, 16 }
 0x328   : > { %6194 = vst [vmem:[#allocation3 + $0x40] sm:$0xf] %v5925_v49  ;;  %v5521_v43 = vpop.f32.mrf.mxu3  ;;  %v13739_v62 = vld [vmem:[#allocation5 + $0x140] sm:$0xf0]  ;;  %v3038_v21 = vshll.u32 %v2666_v52, 16  ;;  %v3031_v7 = vrot.slane %v3029_v18, 4 }
 0x329   : > { %v15646_v50 = vpop.f32.mrf.mxu1  ;;  %6197 = vst [vmem:[#allocation3 + $0x44] sm:$0x1] %v6196_v47  ;;  %v5928_v32 = vshrl.u32 %v5820_v23, 16  ;;  %v5931_v61 = vshll.u32 %v5820_v23, 16  ;;  %v5522_v40 = vadd.f32 %v5521_v43, %v5433_v45  ;;  %v12760_v11 = vor.u32 %v13739_v62, %v12759_v17  ;;  %v13612_v2 = vld [vmem:[#allocation4 + $0x40c] sm:$0xf] }
 0x32a   : > { %v5613_v60 = vpop.f32.mrf.mxu0  ;;  %v12143_v30 = vld [vmem:[#allocation4 + $0x410] sm:$0xf]  ;;  %6317 = vst [vmem:[#allocation5 + $0x168] sm:$0xf] %v6285_v53  ;;  %v3161_v3 = vld [vmem:[#allocation2 + $0xcc] sm:$0xe] }
 0x32b   : > { %v15650_v42 = vrot.slane %v5928_v32, 7  ;;  %v5611_v24 = vadd.f32 %v5610_v63, %v5522_v40  ;;  %10553 = vmatmul.bf16.gmra.mxu2 %v12760_v11  ;;  %v12137_v1 = vld [vmem:[#allocation4 + $0x42c] sm:$0xf0]  ;;  %415 = vst [vmem:[#allocation2 + $0xd4] sm:$0x1] %v414_v9  ;;  %v3034_v57 = vrot.slane %v3032_v26, 5 }
 0x32c   : > { %9341 = vmatmul.bf16.gmra.mxu1 %v12572_v20  ;;  %v12140_v45 = vor.u32 %v13612_v2, %v12137_v1  ;;  %v13617_v17 = vld [vmem:[#allocation4 + $0x430] sm:$0xf0]  ;;  %v13854_v49 = vld [vmem:[#allocation11 + $0x58] sm:$0xff]  ;;  %v3042_v23 = vshrl.u32 %v2666_v52, 16  ;;  %v3162_v53 = vld [vmem:[#allocation2 + $0xd0] sm:$0xf] }
 0x32d   : > { %v5933_v10 = vor.u32 %v5931_v61, %v15650_v42  ;;  %v5674_v51 = vmax.f32 %v5611_v24, 0.0  ;;  %v12144_v29 = vor.u32 %v13617_v17, %v12143_v30  ;;  %v11604_v33 = vrot.slane %v3161_v3, 9  ;;  %v13862_v40 = vld [vmem:[#allocation11 + $0x98] sm:$0xff]  ;;  %10618 = vmatpush.bf16.msrb.mxu3 %v13854_v49  ;;  %v13929_v24 = vld [vmem:[#allocation4 + $0x420] sm:$0xf0]  ;;  %v13853_v3 = vld [vmem:[#allocation11 + $0x50] sm:$0xff] }
 0x32e   : > { %5563 = vmatmul.bf16.gmra.mxu3 %v12140_v45  ;;  %v3035_v9 = vor.u32 %v3034_v57, %v3031_v7  ;;  %v3040_v32 = vrot.slane %v3038_v21, 5  ;;  %v3319_v61 = vrot.slane %v3162_v53, 5  ;;  %v5934_v11 = vrot.slane %v15650_v42, 4  ;;  %10707 = vmatpush.bf16.msrb.mxu0 %v13862_v40  ;;  %v13870_v42 = vld [vmem:[#allocation11 + $0xd8] sm:$0xff]  ;;  %v13869_v40 = vld [vmem:[#allocation11 + $0xd0] sm:$0xff] }
 0x32f   : > { %v6199_v63 = vsel %vm14491_vm13, %v5933_v10, %v6198_v37  ;;  %v5821_v47 = vpack.c.bf16 %v5674_v51, %v5674_v51  ;;  %v6286_v20 = vld [vmem:[#allocation3 + $0x40] sm:$0xf]  ;;  %5652 = vmatmul.bf16.gmra.mxu0 %v12144_v29  ;;  %v15658_v37 = vld [vmem:[#allocation4 + $0x400] sm:$0xf]  ;;  %v3044_v1 = vrot.slane %v3042_v23, 4  ;;  %10796 = vmatpush.bf16.msrb.mxu1 %v13870_v42 }
 0x330   : > { %6200 = vst [vmem:[#allocation3 + $0x48] sm:$0xf] %v6199_v63  ;;  %v5524_v62 = vpop.f32.mrf.mxu3  ;;  %v3036_v18 = vrot.slane %v3035_v9, 4  ;;  %v3320_v26 = vsel %vm14485_vm12, %v11604_v33, %v3319_v61  ;;  %v3321_v21 = vrot.slane %v3319_v61, 4  ;;  %v6202_v29 = vld [vmem:[#allocation3 + $0x50] sm:$0x1]  ;;  %v5438_v63 = vadd.f32 %v15351_v15, %v15342_v5 }
 0x331   : > { %v15655_v43 = vpop.f32.mrf.mxu1  ;;  %v5936_v14 = vshrl.u32 %v5821_v47, 16  ;;  %v5939_v2 = vshll.u32 %v5821_v47, 16  ;;  %v5525_v52 = vadd.f32 %v5524_v62, %v15336_v59  ;;  %6318 = vst [vmem:[#allocation5 + $0x18c] sm:$0xf] %v6286_v20  ;;  %v3045_v7 = vor.u32 %v3044_v1, %v3040_v32  ;;  %10619 = vmatpush.bf16.msrb.mxu3 %v13853_v3  ;;  %v12795_v33 = vld [vmem:[#allocation5 + $0x168] sm:$0xf] }
 0x332   : > { %v15661_v30 = vpop.f32.mrf.mxu0  ;;  %v2667_v45 = vld [vmem:[#allocation2 + $0xd4] sm:$0x1]  ;;  %v3041_v59 = vsel %vm14518_vm14, %v3036_v18, %v3040_v32  ;;  %3386 = vst [vmem:[#allocation4 + $0x458] sm:$0xf] %v3320_v26  ;;  %v12576_v53 = vor.u32 %v13929_v24, %v15658_v37  ;;  %v13861_v61 = vld [vmem:[#allocation11 + $0x90] sm:$0xff] }
 0x333   : > { %v5938_v10 = vrot.slane %v5936_v14, 7  ;;  %v5614_v51 = vadd.f32 %v5613_v60, %v5525_v52  ;;  %v3163_v17 = vld [vmem:[#allocation2 + $0xd4] sm:$0x1]  ;;  %v3048_v57 = vshll.u32 %v2667_v45, 16  ;;  %3114 = vst [vmem:[#allocation4 + $0x454] sm:$0xf] %v3041_v59  ;;  %10708 = vmatpush.bf16.msrb.mxu0 %v13861_v61  ;;  %10797 = vmatpush.bf16.msrb.mxu1 %v13869_v40 }
 0x334   : > { %v3322_v49 = vrot.slane %v3163_v17, 5  ;;  %v5726_v60 = vld [vmem:[#allocation3 + $0x60] sm:$0x1]  ;;  %v3046_v62 = vrot.slane %v3045_v7, 4  ;;  %v5780_v52 = vld [vmem:[#allocation3 + $0x68] sm:$0x1] }
 0x335   : > { %v5941_v47 = vor.u32 %v5939_v2, %v5938_v10  ;;  %v5943_v20 = vrot.slane %v5938_v10, 4  ;;  %v5675_v23 = vmax.f32 %v5614_v51, 0.0  ;;  %v3050_v9 = vrot.slane %v3048_v57, 5  ;;  %v13852_v14 = vld [vmem:[#allocation11 + $0x48] sm:$0xff]  ;;  %v13851_v17 = vld [vmem:[#allocation11 + $0x40] sm:$0xff] }
 0x336   : > { %v3323_v32 = vsel %vm14485_vm12, %v3321_v21, %v3322_v49  ;;  %v5727_v37 = vsel %vm14436_vm2, 0, %v5726_v60  ;;  %v13868_v21 = vld [vmem:[#allocation11 + $0xc8] sm:$0xff]  ;;  %10620 = vmatpush.bf16.msrb.mxu3 %v13852_v14  ;;  %v5781_v45 = vsel %vm14456_vm8, 0, %v5780_v52  ;;  %v6205_v3 = vld [vmem:[#allocation3 + $0x54] sm:$0xf]  ;;  %v13879_v7 = vld [vmem:[#allocation11 + $0x120] sm:$0xff] }
 0x337   : > { %v5942_v5 = vsel %vm14470_vm11, %v5934_v11, %v5941_v47  ;;  %v6203_v15 = vsel %vm14436_vm2, %v5943_v20, %v6202_v29  ;;  %v5822_v2 = vpack.c.bf16 %v5675_v23, %v5675_v23  ;;  %3387 = vst [vmem:[#allocation4 + $0x47c] sm:$0xf] %v3323_v32  ;;  %v3051_v26 = vsel %vm14518_vm14, %v3046_v62, %v3050_v9  ;;  %v13860_v11 = vld [vmem:[#allocation11 + $0x88] sm:$0xff]  ;;  %v6287_v59 = vld [vmem:[#allocation3 + $0x48] sm:$0xf]  ;;  %v13867_v20 = vld [vmem:[#allocation11 + $0xc0] sm:$0xff] }
 0x338   : > { %6201 = vst [vmem:[#allocation3 + $0x4c] sm:$0xf] %v5942_v5  ;;  %v5526_v18 = vpop.f32.mrf.mxu3  ;;  %v13748_v1 = vld [vmem:[#allocation5 + $0x188] sm:$0xf0]  ;;  %10709 = vmatpush.bf16.msrb.mxu0 %v13860_v11  ;;  %10798 = vmatpush.bf16.msrb.mxu1 %v13868_v21  ;;  %v5756_v60 = vld [vmem:[#allocation3 + $0x8] sm:$0x1] }
 0x339   : > { %v15678_v24 = vpop.f32.mrf.mxu1  ;;  %6204 = vst [vmem:[#allocation3 + $0x50] sm:$0x1] %v6203_v15  ;;  %v5945_v42 = vshrl.u32 %v5822_v2, 16  ;;  %v5527_v10 = vadd.f32 %v5526_v18, %v5438_v63  ;;  %v12796_v51 = vor.u32 %v13748_v1, %v12795_v33  ;;  %v5948_v49 = vshll.u32 %v5822_v2, 16  ;;  %v13859_v63 = vld [vmem:[#allocation11 + $0x80] sm:$0xff]  ;;  %10884 = vmatpush.bf16.msrb.mxu2 %v13879_v7 }
 0x33a   : > { %v5618_v29 = vpop.f32.mrf.mxu0  ;;  %3115 = vst [vmem:[#allocation4 + $0x478] sm:$0xf] %v3051_v26  ;;  %v12179_v23 = vld [vmem:[#allocation4 + $0x458] sm:$0xf]  ;;  %v13621_v9 = vld [vmem:[#allocation4 + $0x454] sm:$0xf]  ;;  %10621 = vmatpush.bf16.msrb.mxu3 %v13851_v17 }
 0x33b   : > { %v15684_v57 = vrot.slane %v5945_v42, 7  ;;  %v5616_v47 = vadd.f32 %v15661_v30, %v5527_v10  ;;  %10558 = vmatmul.bf16.gmra.mxu2 %v12796_v51  ;;  %5728 = vst [vmem:[#allocation3 + $0x60] sm:$0x1] %v5727_v37  ;;  %v6339_v32 = vld [vmem:[#allocation3] sm:$0xf]  ;;  %v5443_v42 = vadd.f32 %v15370_v41, %v15361_v27 }
 0x33c   : > { %9346 = vmatmul.bf16.gmra.mxu1 %v12576_v53  ;;  %5782 = vst [vmem:[#allocation3 + $0x68] sm:$0x1] %v5781_v45  ;;  %v5757_v53 = vsel %vm14456_vm8, 0, %v5756_v60  ;;  %v15692_v5 = vld [vmem:[#allocation4 + $0x448] sm:$0xf]  ;;  %v6388_v52 = vshrl.u32 %v6339_v32, 16  ;;  %10710 = vmatpush.bf16.msrb.mxu0 %v13859_v63 }
 0x33d   : > { %v5950_v33 = vor.u32 %v5948_v49, %v15684_v57  ;;  %v5676_v62 = vmax.f32 %v5616_v47, 0.0  ;;  %6319 = vst [vmem:[#allocation5 + $0x1b0] sm:$0xf] %v6287_v59  ;;  %v15694_v15 = vld [vmem:[#allocation4 + $0x468] sm:$0xf0]  ;;  %10799 = vmatpush.bf16.msrb.mxu1 %v13867_v20  ;;  %v6391_v26 = vshll.u32 %v6339_v32, 16 }
 0x33e   : > { %v13626_v30 = vld [vmem:[#allocation4 + $0x478] sm:$0xf0]  ;;  %5758 = vst [vmem:[#allocation3 + $0x8] sm:$0x1] %v5757_v53  ;;  %v6340_v37 = vld [vmem:[#allocation3 + $0x4] sm:$0xf]  ;;  %v12580_v27 = vor.u32 %v15694_v15, %v15692_v5 }
 0x33f   : > { %v6206_v61 = vsel %vm14491_vm13, %v5950_v33, %v6205_v3  ;;  %v5823_v40 = vpack.c.bf16 %v5676_v62, %v5676_v62  ;;  %v12180_v14 = vor.u32 %v13626_v30, %v12179_v23  ;;  %v6288_v2 = vld [vmem:[#allocation3 + $0x4c] sm:$0xf]  ;;  %v6397_v11 = vshll.u32 %v6340_v37, 16  ;;  %v17075_v45 = vld [vmem:[#allocation23_spill] sm:$0xff]  ;;  %v6835_v33 = vld [vmem:[#allocation3] sm:$0xe] }
 0x340   : > { %6207 = vst [vmem:[#allocation3 + $0x54] sm:$0xf] %v6206_v61  ;;  %v5529_v1 = vpop.f32.mrf.mxu3  ;;  %v6401_v21 = vshrl.u32 %v6340_v37, 16  ;;  %v6390_v7 = vrot.slane %v6388_v52, 4  ;;  %v6393_v49 = vrot.slane %v6391_v26, 5  ;;  %v5951_v62 = vrot.slane %v15684_v57, 4 }
 0x341   : > { %v15696_v18 = vpop.f32.mrf.mxu1  ;;  %v5953_v10 = vshrl.u32 %v5823_v40, 16  ;;  %v12173_v51 = vld [vmem:[#allocation4 + $0x474] sm:$0xf0]  ;;  %5657 = vmatmul.bf16.gmra.mxu0 %v12180_v14  ;;  %v5530_v17 = vadd.f32 %v5529_v1, %v17075_v45  ;;  %6320 = vst [vmem:[#allocation5 + $0x1d4] sm:$0xf] %v6288_v2  ;;  %v6399_v47 = vrot.slane %v6397_v11, 5 }
 0x342   : > { %17074 = vst [vmem:[#allocation21_spill] sm:$0xff] %v15696_v18  ;;  %v12176_v3 = vor.u32 %v13621_v9, %v12173_v51  ;;  %v5620_v59 = vpop.f32.mrf.mxu0  ;;  %v5956_v63 = vshll.u32 %v5823_v40, 16  ;;  %v6403_v60 = vrot.slane %v6401_v21, 4  ;;  %v6209_v53 = vld [vmem:[#allocation3 + $0x5c] sm:$0x1]  ;;  %v6394_v41 = vor.u32 %v6393_v49, %v6390_v7 }
 0x343   : > { %v5955_v23 = vrot.slane %v5953_v10, 7  ;;  %v5619_v20 = vadd.f32 %v5618_v29, %v5530_v17  ;;  %v6836_v30 = vld [vmem:[#allocation3 + $0x4] sm:$0xf]  ;;  %v12469_v32 = vrot.slane %v6835_v33, 9  ;;  %v7107_v11 = vld [vmem:[#allocation3 + $0xc] sm:$0xf] }
 0x344   : > { %5568 = vmatmul.bf16.gmra.mxu3 %v12176_v3  ;;  %v6404_v37 = vor.u32 %v6403_v60, %v6399_v47  ;;  %v6395_v40 = vrot.slane %v6394_v41, 4  ;;  %v6933_v1 = vrot.slane %v6836_v30, 5  ;;  %v12831_v21 = vld [vmem:[#allocation5 + $0x1b0] sm:$0xf]  ;;  %7139 = vst [vmem:[#allocation5 + $0xc] sm:$0xf] %v7107_v11 }
 0x345   : > { %v5958_v9 = vor.u32 %v5956_v63, %v5955_v23  ;;  %v5960_v61 = vrot.slane %v5955_v23, 4  ;;  %v5677_v14 = vmax.f32 %v5619_v20, 0.0  ;;  %v6341_v2 = vld [vmem:[#allocation3 + $0x8] sm:$0x1]  ;;  %v5729_v33 = vld [vmem:[#allocation3 + $0x6c] sm:$0x1] }
 0x346   : > { %v6837_v52 = vld [vmem:[#allocation3 + $0x8] sm:$0x1]  ;;  %v6407_v29 = vshll.u32 %v6341_v2, 16  ;;  %v6405_v10 = vrot.slane %v6404_v37, 4  ;;  %v6400_v3 = vsel %vm14518_vm14, %v6395_v40, %v6399_v47  ;;  %v6935_v49 = vrot.slane %v6933_v1, 4 }
 0x347   : > { %v6936_v26 = vrot.slane %v6837_v52, 5  ;;  %v5959_v57 = vsel %vm14470_vm11, %v5951_v62, %v5958_v9  ;;  %v6210_v5 = vsel %vm14436_vm2, %v5960_v61, %v6209_v53  ;;  %v5824_v15 = vpack.c.bf16 %v5677_v14, %v5677_v14  ;;  %v6212_v62 = vld [vmem:[#allocation3 + $0x60] sm:$0xf]  ;;  %6803 = vst [vmem:[#allocation5 + $0x4] sm:$0xf] %v6400_v3 }
 0x348   : > { %6208 = vst [vmem:[#allocation3 + $0x58] sm:$0xf] %v5959_v57  ;;  %v5531_v45 = vpop.f32.mrf.mxu3  ;;  %v13757_v17 = vld [vmem:[#allocation5 + $0x1d0] sm:$0xf0]  ;;  %v6409_v7 = vrot.slane %v6407_v29, 5  ;;  %v6934_v60 = vsel %vm14485_vm12, %v12469_v32, %v6933_v1  ;;  %v5730_v32 = vsel %vm14436_vm2, 0, %v5729_v33 }
 0x349   : > { %v15708_v51 = vpop.f32.mrf.mxu1  ;;  %6211 = vst [vmem:[#allocation3 + $0x5c] sm:$0x1] %v6210_v5  ;;  %v5962_v23 = vshrl.u32 %v5824_v15, 16  ;;  %v5532_v63 = vadd.f32 %v5531_v45, %v5443_v42  ;;  %v12832_v20 = vor.u32 %v13757_v17, %v12831_v21  ;;  %v6937_v30 = vsel %vm14485_vm12, %v6935_v49, %v6936_v26  ;;  %v7108_v47 = vld [vmem:[#allocation3 + $0x10] sm:$0xf] }
 0x34a   : > { %17076 = vst [vmem:[#allocation22_spill] sm:$0xff] %v15708_v51  ;;  %v5623_v53 = vpop.f32.mrf.mxu0  ;;  %v6410_v41 = vsel %vm14518_vm14, %v6405_v10, %v6409_v7  ;;  %v5783_v9 = vld [vmem:[#allocation3 + $0x74] sm:$0x1]  ;;  %v5965_v42 = vshll.u32 %v5824_v15, 16  ;;  %v6342_v2 = vld [vmem:[#allocation3 + $0xc] sm:$0xf] }
 0x34b   : > { %v15718_v61 = vrot.slane %v5962_v23, 7  ;;  %v5621_v14 = vadd.f32 %v5620_v59, %v5532_v63  ;;  %10563 = vmatmul.bf16.gmra.mxu2 %v12832_v20  ;;  %6804 = vst [vmem:[#allocation5 + $0x28] sm:$0xf] %v6410_v41  ;;  %v6343_v37 = vld [vmem:[#allocation3 + $0x10] sm:$0xf]  ;;  %v5784_v29 = vsel %vm14456_vm8, 0, %v5783_v9 }
 0x34c   : > { %9351 = vmatmul.bf16.gmra.mxu1 %v12580_v27  ;;  %7075 = vst [vmem:[#allocation5 + $0x8] sm:$0xf] %v6934_v60  ;;  %v6344_v27 = vld [vmem:[#allocation3 + $0x14] sm:$0x1]  ;;  %v6412_v1 = vshrl.u32 %v6342_v2, 16  ;;  %v6415_v26 = vshll.u32 %v6342_v2, 16  ;;  %v5448_v2 = vadd.f32 %v15389_v54, %v15380_v55 }
 0x34d   : > { %v5967_v52 = vor.u32 %v5965_v42, %v15718_v61  ;;  %v5678_v40 = vmax.f32 %v5621_v14, 0.0  ;;  %7076 = vst [vmem:[#allocation5 + $0x2c] sm:$0xf] %v6937_v30  ;;  %v6289_v57 = vld [vmem:[#allocation3 + $0x54] sm:$0xf]  ;;  %v6421_v5 = vshll.u32 %v6343_v37, 16 }
 0x34e   : > { %7140 = vst [vmem:[#allocation5 + $0x30] sm:$0xf] %v7108_v47  ;;  %v6425_v15 = vshrl.u32 %v6343_v37, 16  ;;  %v6414_v17 = vrot.slane %v6412_v1, 4  ;;  %v6417_v3 = vrot.slane %v6415_v26, 5  ;;  %v6431_v63 = vshll.u32 %v6344_v27, 16 }
 0x34f   : > { %v6213_v59 = vsel %vm14491_vm13, %v5967_v52, %v6212_v62  ;;  %v5825_v11 = vpack.c.bf16 %v5678_v40, %v5678_v40  ;;  %5731 = vst [vmem:[#allocation3 + $0x6c] sm:$0x1] %v5730_v32  ;;  %v6290_v45 = vld [vmem:[#allocation3 + $0x58] sm:$0xf]  ;;  %v13699_v49 = vld [vmem:[#allocation5 + $0x4] sm:$0xf] }
 0x350   : > { %6214 = vst [vmem:[#allocation3 + $0x60] sm:$0xf] %v6213_v59  ;;  %v5534_v10 = vpop.f32.mrf.mxu3  ;;  %v6216_v20 = vld [vmem:[#allocation3 + $0x68] sm:$0x1]  ;;  %v6418_v62 = vor.u32 %v6417_v3, %v6414_v17  ;;  %v6423_v41 = vrot.slane %v6421_v5, 5  ;;  %v6427_v30 = vrot.slane %v6425_v15, 4 }
 0x351   : > { %v15727_v21 = vpop.f32.mrf.mxu1  ;;  %v5970_v7 = vshrl.u32 %v5825_v11, 16  ;;  %v5535_v23 = vadd.f32 %v5534_v10, %v15374_v38  ;;  %5785 = vst [vmem:[#allocation3 + $0x74] sm:$0x1] %v5784_v29  ;;  %v5973_v9 = vshll.u32 %v5825_v11, 16  ;;  %v5968_v38 = vrot.slane %v15718_v61, 4 }
 0x352   : > { %17077 = vst [vmem:[#allocation38_spill] sm:$0xff] %v15727_v21  ;;  %v12617_v60 = vld [vmem:[#allocation5 + $0x24] sm:$0xf0]  ;;  %v5625_v33 = vpop.f32.mrf.mxu0  ;;  %v6419_v52 = vrot.slane %v6418_v62, 4  ;;  %v6428_v40 = vor.u32 %v6427_v30, %v6423_v41  ;;  %v6838_v29 = vld [vmem:[#allocation3 + $0xc] sm:$0xe] }
 0x353   : > { %6321 = vst [vmem:[#allocation5 + $0x1f8] sm:$0xf] %v6289_v57  ;;  %v5972_v47 = vrot.slane %v5970_v7, 7  ;;  %v12620_v42 = vor.u32 %v13699_v49, %v12617_v60  ;;  %v12623_v14 = vld [vmem:[#allocation5 + $0x8] sm:$0xf]  ;;  %v5624_v32 = vadd.f32 %v5623_v53, %v5535_v23  ;;  %v6433_v15 = vrot.slane %v6431_v63, 5 }
 0x354   : > { %6322 = vst [vmem:[#allocation5 + $0x21c] sm:$0xf] %v6290_v45  ;;  %v13704_v37 = vld [vmem:[#allocation5 + $0x28] sm:$0xf0]  ;;  %v6839_v11 = vld [vmem:[#allocation3 + $0x10] sm:$0xf]  ;;  %v6424_v53 = vsel %vm14518_vm14, %v6419_v52, %v6423_v41 }
 0x355   : > { %v5975_v27 = vor.u32 %v5973_v9, %v5972_v47  ;;  %v5977_v1 = vrot.slane %v5972_v47, 4  ;;  %10622 = vmatmul.bf16.vlgmr.msrb.gmra.mxu3 %v12620_v42  ;;  %v12624_v26 = vor.u32 %v13704_v37, %v12623_v14  ;;  %v12625_v59 = vld [vmem:[#allocation5 + $0x2c] sm:$0xf0]  ;;  %v5679_v57 = vmax.f32 %v5624_v32, 0.0  ;;  %v6840_v10 = vld [vmem:[#allocation3 + $0x14] sm:$0x1] }
 0x356   : > { %v6429_v5 = vrot.slane %v6428_v40, 4  ;;  %v12470_v55 = vrot.slane %v6838_v29, 9  ;;  %v13700_v45 = vld [vmem:[#allocation5 + $0xc] sm:$0xf]  ;;  %6805 = vst [vmem:[#allocation5 + $0x4c] sm:$0xf] %v6424_v53 }
 0x357   : > { %v5976_v54 = vsel %vm14470_vm11, %v5968_v38, %v5975_v27  ;;  %v6217_v61 = vsel %vm14436_vm2, %v5977_v1, %v6216_v20  ;;  %10711 = vmatmul.bf16.vlgmr.msrb.gmra.mxu0 %v12624_v26  ;;  %v5826_v17 = vpack.c.bf16 %v5679_v57, %v5679_v57  ;;  %v6940_v3 = vrot.slane %v6839_v11, 5  ;;  %v7109_v60 = vld [vmem:[#allocation3 + $0x18] sm:$0xf]  ;;  %v6219_v9 = vld [vmem:[#allocation3 + $0x6c] sm:$0xf]  ;;  %v13878_v38 = vld [vmem:[#allocation11 + $0x118] sm:$0xff] }
 0x358   : > { %6215 = vst [vmem:[#allocation3 + $0x64] sm:$0xf] %v5976_v54  ;;  %v12628_v49 = vor.u32 %v13700_v45, %v12625_v59  ;;  %v5536_v23 = vpop.f32.mrf.mxu3  ;;  %v6434_v63 = vsel %vm14518_vm14, %v6429_v5, %v6433_v15  ;;  %v6943_v47 = vrot.slane %v6840_v10, 5  ;;  %v7110_v27 = vld [vmem:[#allocation3 + $0x1c] sm:$0xf]  ;;  %10885 = vmatpush.bf16.msrb.mxu2 %v13878_v38  ;;  %v15760_v38 = vpop.f32.mrf.mxu2 }
 0x359   : > { %v15739_v7 = vpop.f32.mrf.mxu1  ;;  %6218 = vst [vmem:[#allocation3 + $0x68] sm:$0x1] %v6217_v61  ;;  %v5979_v62 = vshrl.u32 %v5826_v17, 16  ;;  %v5537_v41 = vadd.f32 %v5536_v23, %v5448_v2  ;;  %v6941_v20 = vsel %vm14485_vm12, %v12470_v55, %v6940_v3  ;;  %v6942_v32 = vrot.slane %v6940_v3, 4  ;;  %v5732_v1 = vld [vmem:[#allocation3 + $0x78] sm:$0x1] }
 0x35a   : > { %17078 = vst [vmem:[#allocation40_spill] sm:$0xff] %v15739_v7  ;;  %v12867_v30 = vld [vmem:[#allocation5 + $0x1f8] sm:$0xf]  ;;  %v5628_v42 = vpop.f32.mrf.mxu0  ;;  %v5982_v52 = vshll.u32 %v5826_v17, 16  ;;  %v5786_v26 = vld [vmem:[#allocation3 + $0x80] sm:$0x1] }
 0x35b   : > { %v13766_v14 = vld [vmem:[#allocation5 + $0x218] sm:$0xf0]  ;;  %6806 = vst [vmem:[#allocation5 + $0x70] sm:$0xf] %v6434_v63  ;;  %v15745_v37 = vrot.slane %v5979_v62, 7  ;;  %v5626_v40 = vadd.f32 %v5625_v33, %v5537_v41  ;;  %v6944_v2 = vsel %vm14485_vm12, %v6942_v32, %v6943_v47  ;;  %v5733_v11 = vsel %vm14436_vm2, 0, %v5732_v1 }
 0x35c   : > { %10800 = vmatmul.bf16.vlgmr.msrb.gmra.mxu1 %v12628_v49  ;;  %v12868_v29 = vor.u32 %v13766_v14, %v12867_v30  ;;  %7077 = vst [vmem:[#allocation5 + $0x50] sm:$0xf] %v6941_v20  ;;  %v5787_v33 = vsel %vm14456_vm8, 0, %v5786_v26  ;;  %v6291_v15 = vld [vmem:[#allocation3 + $0x60] sm:$0xf] }
 0x35d   : > { %7141 = vst [vmem:[#allocation5 + $0x54] sm:$0xf] %v7109_v60  ;;  %v5984_v59 = vor.u32 %v5982_v52, %v15745_v37  ;;  %v5680_v57 = vmax.f32 %v5626_v40, 0.0  ;;  %v13708_v54 = vld [vmem:[#allocation5 + $0x4c] sm:$0xf]  ;;  %v5985_v63 = vrot.slane %v15745_v37, 4 }
 0x35e   : > { %10568 = vmatmul.bf16.gmra.mxu2 %v12868_v29  ;;  %7078 = vst [vmem:[#allocation5 + $0x74] sm:$0xf] %v6944_v2  ;;  %v6345_v45 = vld [vmem:[#allocation3 + $0x18] sm:$0xf]  ;;  %v6346_v17 = vld [vmem:[#allocation3 + $0x1c] sm:$0xf] }
 0x35f   : > { %7142 = vst [vmem:[#allocation5 + $0x78] sm:$0xf] %v7110_v27  ;;  %v6220_v53 = vsel %vm14491_vm13, %v5984_v59, %v6219_v9  ;;  %v5827_v5 = vpack.c.bf16 %v5680_v57, %v5680_v57  ;;  %v6292_v10 = vld [vmem:[#allocation3 + $0x64] sm:$0xf]  ;;  %v6223_v62 = vld [vmem:[#allocation3 + $0x74] sm:$0x1] }
 0x360   : > { %5734 = vst [vmem:[#allocation3 + $0x78] sm:$0x1] %v5733_v11  ;;  %v5539_v61 = vpop.f32.mrf.mxu3  ;;  %v6347_v30 = vld [vmem:[#allocation3 + $0x20] sm:$0x1]  ;;  %v6436_v32 = vshrl.u32 %v6345_v45, 16  ;;  %v6439_v40 = vshll.u32 %v6345_v45, 16  ;;  %v5453_v11 = vadd.f32 %v15406_v4, %v15397_v28 }
 0x361   : > { %6221 = vst [vmem:[#allocation3 + $0x6c] sm:$0xf] %v6220_v53  ;;  %v15756_v55 = vpop.f32.mrf.mxu1  ;;  %v5987_v3 = vshrl.u32 %v5827_v5, 16  ;;  %v5540_v23 = vadd.f32 %v5539_v61, %v15393_v25  ;;  %v5990_v60 = vshll.u32 %v5827_v5, 16  ;;  %v6445_v29 = vshll.u32 %v6346_v17, 16 }
 0x362   : > { %17079 = vst [vmem:[#allocation41_spill] sm:$0xff] %v15756_v55  ;;  %v12653_v49 = vld [vmem:[#allocation5 + $0x6c] sm:$0xf0]  ;;  %v5630_v41 = vpop.f32.mrf.mxu0  ;;  %v6449_v25 = vshrl.u32 %v6346_v17, 16  ;;  %v6455_v27 = vshll.u32 %v6347_v30, 16  ;;  %v17101_v55 = vld [vmem:[#allocation34_spill] sm:$0xff] }
 0x363   : > { %5788 = vst [vmem:[#allocation3 + $0x80] sm:$0x1] %v5787_v33  ;;  %v5989_v20 = vrot.slane %v5987_v3, 7  ;;  %v12656_v47 = vor.u32 %v13708_v54, %v12653_v49  ;;  %v12659_v9 = vld [vmem:[#allocation5 + $0x50] sm:$0xf]  ;;  %v5629_v14 = vadd.f32 %v5628_v42, %v5540_v23  ;;  %v6438_v42 = vrot.slane %v6436_v32, 4 }
 0x364   : > { %6323 = vst [vmem:[#allocation5 + $0x240] sm:$0xf] %v6291_v15  ;;  %v6841_v57 = vld [vmem:[#allocation3 + $0x18] sm:$0xe]  ;;  %v6441_v33 = vrot.slane %v6439_v40, 5  ;;  %v6447_v53 = vrot.slane %v6445_v29, 5 }
 0x365   : > { %6324 = vst [vmem:[#allocation5 + $0x264] sm:$0xf] %v6292_v10  ;;  %v13713_v52 = vld [vmem:[#allocation5 + $0x70] sm:$0xf0]  ;;  %v5992_v2 = vor.u32 %v5990_v60, %v5989_v20  ;;  %v5994_v37 = vrot.slane %v5989_v20, 4  ;;  %10627 = vmatmul.bf16.gmra.mxu3 %v12656_v47  ;;  %v5681_v59 = vmax.f32 %v5629_v14, 0.0 }
 0x366   : > { %v12660_v1 = vor.u32 %v13713_v52, %v12659_v9  ;;  %v12661_v26 = vld [vmem:[#allocation5 + $0x74] sm:$0xf0]  ;;  %v13709_v10 = vld [vmem:[#allocation5 + $0x54] sm:$0xf]  ;;  %v6451_v61 = vrot.slane %v6449_v25, 4  ;;  %v6442_v28 = vor.u32 %v6441_v33, %v6438_v42  ;;  %v6457_v4 = vrot.slane %v6455_v27, 5 }
 0x367   : > { %v5993_v5 = vsel %vm14470_vm11, %v5985_v63, %v5992_v2  ;;  %v6224_v15 = vsel %vm14436_vm2, %v5994_v37, %v6223_v62  ;;  %v5828_v54 = vpack.c.bf16 %v5681_v59, %v5681_v59  ;;  %v6842_v45 = vld [vmem:[#allocation3 + $0x1c] sm:$0xf]  ;;  %v12664_v3 = vor.u32 %v13709_v10, %v12661_v26  ;;  %v6843_v47 = vld [vmem:[#allocation3 + $0x20] sm:$0x1]  ;;  %v6226_v29 = vld [vmem:[#allocation3 + $0x78] sm:$0xf] }
 0x368   : > { %10716 = vmatmul.bf16.gmra.mxu0 %v12660_v1  ;;  %6222 = vst [vmem:[#allocation3 + $0x70] sm:$0xf] %v5993_v5  ;;  %v5541_v49 = vpop.f32.mrf.mxu3  ;;  %v12471_v23 = vrot.slane %v6841_v57, 9  ;;  %v6452_v20 = vor.u32 %v6451_v61, %v6447_v53  ;;  %v6443_v32 = vrot.slane %v6442_v28, 4  ;;  %v6947_v52 = vrot.slane %v6842_v45, 5  ;;  %v15772_v1 = vpop.f32.mrf.mxu2 }
 0x369   : > { %v15768_v17 = vpop.f32.mrf.mxu1  ;;  %6225 = vst [vmem:[#allocation3 + $0x74] sm:$0x1] %v6224_v15  ;;  %v5996_v60 = vshrl.u32 %v5828_v54, 16  ;;  %v5999_v30 = vshll.u32 %v5828_v54, 16  ;;  %v5542_v63 = vadd.f32 %v5541_v49, %v5453_v11  ;;  %v7111_v27 = vld [vmem:[#allocation3 + $0x24] sm:$0xf] }
 0x36a   : > { %17080 = vst [vmem:[#allocation42_spill] sm:$0xff] %v15768_v17  ;;  %v5633_v62 = vpop.f32.mrf.mxu0  ;;  %v6453_v37 = vrot.slane %v6452_v20, 4  ;;  %v6448_v26 = vsel %vm14518_vm14, %v6443_v32, %v6447_v53  ;;  %v6948_v59 = vsel %vm14485_vm12, %v12471_v23, %v6947_v52  ;;  %v6949_v57 = vrot.slane %v6947_v52, 4  ;;  %v5735_v42 = vld [vmem:[#allocation3 + $0x84] sm:$0x1] }
 0x36b   : > { %v12903_v9 = vld [vmem:[#allocation5 + $0x240] sm:$0xf]  ;;  %v15770_v40 = vrot.slane %v5996_v60, 7  ;;  %v5631_v25 = vadd.f32 %v5630_v41, %v5542_v63  ;;  %v6950_v11 = vrot.slane %v6843_v47, 5  ;;  %7143 = vst [vmem:[#allocation5 + $0x9c] sm:$0xf] %v7111_v27 }
 0x36c   : > { %v13775_v14 = vld [vmem:[#allocation5 + $0x260] sm:$0xf0]  ;;  %10805 = vmatmul.bf16.gmra.mxu1 %v12664_v3  ;;  %v6458_v41 = vsel %vm14518_vm14, %v6453_v37, %v6457_v4  ;;  %6807 = vst [vmem:[#allocation5 + $0x94] sm:$0xf] %v6448_v26  ;;  %v5789_v15 = vld [vmem:[#allocation3 + $0x8c] sm:$0x1] }
 0x36d   : > { %v12904_v2 = vor.u32 %v13775_v14, %v12903_v9  ;;  %v6001_v33 = vor.u32 %v5999_v30, %v15770_v40  ;;  %v5682_v5 = vmax.f32 %v5631_v25, 0.0  ;;  %v6002_v10 = vrot.slane %v15770_v40, 4  ;;  %6808 = vst [vmem:[#allocation5 + $0xb8] sm:$0xf] %v6458_v41  ;;  %v7112_v54 = vld [vmem:[#allocation3 + $0x28] sm:$0xf] }
 0x36e   : > { %v6951_v53 = vsel %vm14485_vm12, %v6949_v57, %v6950_v11  ;;  %7079 = vst [vmem:[#allocation5 + $0x98] sm:$0xf] %v6948_v59  ;;  %v5736_v3 = vsel %vm14436_vm2, 0, %v5735_v42  ;;  %v5790_v49 = vsel %vm14456_vm8, 0, %v5789_v15  ;;  %v6348_v28 = vld [vmem:[#allocation3 + $0x24] sm:$0xf] }
 0x36f   : > { %10573 = vmatmul.bf16.gmra.mxu2 %v12904_v2  ;;  %v6227_v61 = vsel %vm14491_vm13, %v6001_v33, %v6226_v29  ;;  %v5829_v45 = vpack.c.bf16 %v5682_v5, %v5682_v5  ;;  %v6293_v60 = vld [vmem:[#allocation3 + $0x6c] sm:$0xf]  ;;  %v6349_v30 = vld [vmem:[#allocation3 + $0x28] sm:$0xf]  ;;  %7080 = vst [vmem:[#allocation5 + $0xbc] sm:$0xf] %v6951_v53 }
 0x370   : > { %6228 = vst [vmem:[#allocation3 + $0x78] sm:$0xf] %v6227_v61  ;;  %v5544_v23 = vpop.f32.mrf.mxu3  ;;  %v6350_v63 = vld [vmem:[#allocation3 + $0x2c] sm:$0x1]  ;;  %v6294_v9 = vld [vmem:[#allocation3 + $0x70] sm:$0xf]  ;;  %v15793_v15 = vpop.f32.mrf.mxu2 }
 0x371   : > { %v15790_v4 = vpop.f32.mrf.mxu1  ;;  %v6004_v20 = vshrl.u32 %v5829_v45, 16  ;;  %v5545_v47 = vadd.f32 %v5544_v23, %v15409_v12  ;;  %v6460_v14 = vshrl.u32 %v6348_v28, 16  ;;  %v6007_v32 = vshll.u32 %v5829_v45, 16  ;;  %v6230_v52 = vld [vmem:[#allocation3 + $0x80] sm:$0x1] }
 0x372   : > { %17081 = vst [vmem:[#allocation43_spill] sm:$0xff] %v15790_v4  ;;  %v5635_v40 = vpop.f32.mrf.mxu0  ;;  %v6463_v29 = vshll.u32 %v6348_v28, 16  ;;  %v6469_v25 = vshll.u32 %v6349_v30, 16  ;;  %v6473_v2 = vshrl.u32 %v6349_v30, 16  ;;  %v6479_v59 = vshll.u32 %v6350_v63, 16 }
 0x373   : > { %7144 = vst [vmem:[#allocation5 + $0xc0] sm:$0xf] %v7112_v54  ;;  %v6006_v37 = vrot.slane %v6004_v20, 7  ;;  %v5634_v27 = vadd.f32 %v5633_v62, %v5545_v47  ;;  %v6462_v26 = vrot.slane %v6460_v14, 4  ;;  %v13717_v57 = vld [vmem:[#allocation5 + $0x94] sm:$0xf] }
 0x374   : > { %5737 = vst [vmem:[#allocation3 + $0x84] sm:$0x1] %v5736_v3  ;;  %v6465_v11 = vrot.slane %v6463_v29, 5  ;;  %v6471_v42 = vrot.slane %v6469_v25, 5  ;;  %v12689_v5 = vld [vmem:[#allocation5 + $0xb4] sm:$0xf0] }
 0x375   : > { %5791 = vst [vmem:[#allocation3 + $0x8c] sm:$0x1] %v5790_v49  ;;  %v6009_v33 = vor.u32 %v6007_v32, %v6006_v37  ;;  %v6011_v12 = vrot.slane %v6006_v37, 4  ;;  %v5683_v41 = vmax.f32 %v5634_v27, 0.0  ;;  %v12692_v53 = vor.u32 %v13717_v57, %v12689_v5  ;;  %v12695_v54 = vld [vmem:[#allocation5 + $0x98] sm:$0xf] }
 0x376   : > { %6325 = vst [vmem:[#allocation5 + $0x288] sm:$0xf] %v6293_v60  ;;  %v6466_v61 = vor.u32 %v6465_v11, %v6462_v26  ;;  %v6475_v45 = vrot.slane %v6473_v2, 4  ;;  %v17082_v62 = vld [vmem:[#allocation24_spill] sm:$0xff]  ;;  %v17083_v3 = vld [vmem:[#allocation25_spill] sm:$0xff]  ;;  %v6481_v2 = vrot.slane %v6479_v59, 5 }
 0x377   : > { %6326 = vst [vmem:[#allocation5 + $0x2ac] sm:$0xf] %v6294_v9  ;;  %v5458_v28 = vadd.f32 %v17083_v3, %v17082_v62  ;;  %v6010_v49 = vsel %vm14470_vm11, %v6002_v10, %v6009_v33  ;;  %v6231_v23 = vsel %vm14436_vm2, %v6011_v12, %v6230_v52  ;;  %v13718_v30 = vld [vmem:[#allocation5 + $0x9c] sm:$0xf]  ;;  %v5830_v63 = vpack.c.bf16 %v5683_v41, %v5683_v41  ;;  %v6844_v20 = vld [vmem:[#allocation3 + $0x24] sm:$0xe] }
 0x378   : > { %v6845_v60 = vld [vmem:[#allocation3 + $0x28] sm:$0xf]  ;;  %v6846_v47 = vld [vmem:[#allocation3 + $0x2c] sm:$0x1]  ;;  %6229 = vst [vmem:[#allocation3 + $0x7c] sm:$0xf] %v6010_v49  ;;  %10632 = vmatmul.bf16.gmra.mxu3 %v12692_v53  ;;  %v5546_v32 = vpop.f32.mrf.mxu3  ;;  %v6476_v25 = vor.u32 %v6475_v45, %v6471_v42 }
 0x379   : > { %v15801_v14 = vpop.f32.mrf.mxu1  ;;  %v13722_v9 = vld [vmem:[#allocation5 + $0xb8] sm:$0xf0]  ;;  %v6467_v29 = vrot.slane %v6466_v61, 4  ;;  %6232 = vst [vmem:[#allocation3 + $0x80] sm:$0x1] %v6231_v23  ;;  %v6013_v27 = vshrl.u32 %v5830_v63, 16  ;;  %v5547_v26 = vadd.f32 %v5546_v32, %v5458_v28 }
 0x37a   : > { %17084 = vst [vmem:[#allocation44_spill] sm:$0xff] %v15801_v14  ;;  %v12696_v37 = vor.u32 %v13722_v9, %v12695_v54  ;;  %v12697_v10 = vld [vmem:[#allocation5 + $0xbc] sm:$0xf0]  ;;  %v12472_v52 = vrot.slane %v6844_v20, 9  ;;  %v5638_v11 = vpop.f32.mrf.mxu0  ;;  %v6477_v12 = vrot.slane %v6476_v25, 4  ;;  %v6954_v5 = vrot.slane %v6845_v60, 5 }
 0x37b   : > { %v12700_v57 = vor.u32 %v13718_v30, %v12697_v10  ;;  %v6472_v33 = vsel %vm14518_vm14, %v6467_v29, %v6471_v42  ;;  %v15805_v41 = vrot.slane %v6013_v27, 7  ;;  %v6016_v53 = vshll.u32 %v5830_v63, 16  ;;  %v6233_v61 = vld [vmem:[#allocation3 + $0x84] sm:$0xf]  ;;  %v7113_v42 = vld [vmem:[#allocation3 + $0x30] sm:$0xf] }
 0x37c   : > { %10721 = vmatmul.bf16.gmra.mxu0 %v12696_v37  ;;  %v5636_v45 = vadd.f32 %v5635_v40, %v5547_v26  ;;  %6809 = vst [vmem:[#allocation5 + $0xdc] sm:$0xf] %v6472_v33  ;;  %v6482_v54 = vsel %vm14518_vm14, %v6477_v12, %v6481_v2  ;;  %v6955_v62 = vsel %vm14485_vm12, %v12472_v52, %v6954_v5  ;;  %v6956_v3 = vrot.slane %v6954_v5, 4  ;;  %v13877_v49 = vld [vmem:[#allocation11 + $0x110] sm:$0xff]  ;;  %v5738_v9 = vld [vmem:[#allocation3 + $0x90] sm:$0x1] }
 0x37d   : > { %10810 = vmatmul.bf16.gmra.mxu1 %v12700_v57  ;;  %v12939_v59 = vld [vmem:[#allocation5 + $0x288] sm:$0xf]  ;;  %v6957_v28 = vrot.slane %v6846_v47, 5  ;;  %v6018_v23 = vor.u32 %v6016_v53, %v15805_v41  ;;  %6810 = vst [vmem:[#allocation5 + $0x100] sm:$0xf] %v6482_v54  ;;  %10886 = vmatpush.bf16.msrb.mxu2 %v13877_v49  ;;  %v5739_v10 = vsel %vm14436_vm2, 0, %v5738_v9 }
 0x37e   : > { %v5684_v30 = vmax.f32 %v5636_v45, 0.0  ;;  %v13784_v20 = vld [vmem:[#allocation5 + $0x2a8] sm:$0xf0]  ;;  %v15812_v40 = vpop.f32.mrf.mxu2  ;;  %7081 = vst [vmem:[#allocation5 + $0xe0] sm:$0xf] %v6955_v62  ;;  %v6019_v5 = vrot.slane %v15805_v41, 4 }
 0x37f   : > { %v12940_v63 = vor.u32 %v13784_v20, %v12939_v59  ;;  %v6958_v60 = vsel %vm14485_vm12, %v6956_v3, %v6957_v28  ;;  %v5792_v32 = vld [vmem:[#allocation3 + $0x98] sm:$0x1]  ;;  %v6234_v47 = vsel %vm14491_vm13, %v6018_v23, %v6233_v61  ;;  %v7114_v25 = vld [vmem:[#allocation3 + $0x34] sm:$0xf]  ;;  %7145 = vst [vmem:[#allocation5 + $0xe4] sm:$0xf] %v7113_v42 }
 0x380   : > { %v5831_v29 = vpack.c.bf16 %v5684_v30, %v5684_v30  ;;  %7082 = vst [vmem:[#allocation5 + $0x104] sm:$0xf] %v6958_v60  ;;  %v5549_v37 = vpop.f32.mrf.mxu3  ;;  %v6295_v27 = vld [vmem:[#allocation3 + $0x78] sm:$0xf]  ;;  %v5793_v57 = vsel %vm14456_vm8, 0, %v5792_v32 }
 0x381   : > { %6235 = vst [vmem:[#allocation3 + $0x84] sm:$0xf] %v6234_v47  ;;  %v15818_v2 = vpop.f32.mrf.mxu1  ;;  %10578 = vmatmul.bf16.gmra.mxu2 %v12940_v63  ;;  %v5550_v52 = vadd.f32 %v5549_v37, %v15425_v6  ;;  %v6296_v33 = vld [vmem:[#allocation3 + $0x7c] sm:$0xf]  ;;  %v6351_v12 = vld [vmem:[#allocation3 + $0x30] sm:$0xf] }
 0x382   : > { %17085 = vst [vmem:[#allocation23_spill] sm:$0xff] %v15818_v2  ;;  %v6021_v26 = vshrl.u32 %v5831_v29, 16  ;;  %v6024_v53 = vshll.u32 %v5831_v29, 16  ;;  %v6237_v61 = vld [vmem:[#allocation3 + $0x8c] sm:$0x1]  ;;  %v6484_v3 = vshrl.u32 %v6351_v12, 16  ;;  %v5640_v42 = vpop.f32.mrf.mxu0 }
 0x383   : > { %7146 = vst [vmem:[#allocation5 + $0x108] sm:$0xf] %v7114_v25  ;;  %v6352_v45 = vld [vmem:[#allocation3 + $0x34] sm:$0xf]  ;;  %v5639_v62 = vadd.f32 %v5638_v11, %v5550_v52  ;;  %v6487_v6 = vshll.u32 %v6351_v12, 16  ;;  %v17087_v29 = vld [vmem:[#allocation27_spill] sm:$0xff] }
 0x384   : > { %v6023_v59 = vrot.slane %v6021_v26, 7  ;;  %v13726_v54 = vld [vmem:[#allocation5 + $0xdc] sm:$0xf]  ;;  %5740 = vst [vmem:[#allocation3 + $0x90] sm:$0x1] %v5739_v10  ;;  %v6493_v49 = vshll.u32 %v6352_v45, 16 }
 0x385   : > { %v12725_v28 = vld [vmem:[#allocation5 + $0xfc] sm:$0xf0]  ;;  %5794 = vst [vmem:[#allocation3 + $0x98] sm:$0x1] %v5793_v57  ;;  %v5685_v20 = vmax.f32 %v5639_v62, 0.0  ;;  %v6486_v32 = vrot.slane %v6484_v3, 4 }
 0x386   : > { %v6026_v23 = vor.u32 %v6024_v53, %v6023_v59  ;;  %v6028_v30 = vrot.slane %v6023_v59, 4  ;;  %6327 = vst [vmem:[#allocation5 + $0x2d0] sm:$0xf] %v6295_v27  ;;  %v6353_v63 = vld [vmem:[#allocation3 + $0x38] sm:$0x1]  ;;  %v12728_v41 = vor.u32 %v13726_v54, %v12725_v28  ;;  %v15826_v9 = vpop.f32.mrf.mxu2  ;;  %v6489_v47 = vrot.slane %v6487_v6, 5 }
 0x387   : > { %v13731_v60 = vld [vmem:[#allocation5 + $0x100] sm:$0xf0]  ;;  %6328 = vst [vmem:[#allocation5 + $0x2f4] sm:$0xf] %v6296_v33  ;;  %v17086_v11 = vld [vmem:[#allocation26_spill] sm:$0xff]  ;;  %v5832_v52 = vpack.c.bf16 %v5685_v20, %v5685_v20  ;;  %v6495_v54 = vrot.slane %v6493_v49, 5 }
 0x388   : > { %v5463_v25 = vadd.f32 %v17087_v29, %v17086_v11  ;;  %v6027_v37 = vsel %vm14470_vm11, %v6019_v5, %v6026_v23  ;;  %v6238_v10 = vsel %vm14436_vm2, %v6028_v30, %v6237_v61  ;;  %v12731_v26 = vld [vmem:[#allocation5 + $0xe0] sm:$0xf]  ;;  %v6847_v27 = vld [vmem:[#allocation3 + $0x30] sm:$0xe]  ;;  %v6848_v57 = vld [vmem:[#allocation3 + $0x34] sm:$0xf]  ;;  %10637 = vmatmul.bf16.gmra.mxu3 %v12728_v41  ;;  %v5551_v53 = vpop.f32.mrf.mxu3  ;;  %v6490_v59 = vor.u32 %v6489_v47, %v6486_v32 }
 0x389   : > { %6236 = vst [vmem:[#allocation3 + $0x88] sm:$0xf] %v6027_v37  ;;  %v15834_v12 = vpop.f32.mrf.mxu1  ;;  %v13727_v33 = vld [vmem:[#allocation5 + $0xe4] sm:$0xf]  ;;  %v6497_v62 = vshrl.u32 %v6352_v45, 16  ;;  %v12732_v3 = vor.u32 %v13731_v60, %v12731_v26  ;;  %v6030_v5 = vshrl.u32 %v5832_v52, 16 }
 0x38a   : > { %17088 = vst [vmem:[#allocation24_spill] sm:$0xff] %v15834_v12  ;;  %v12733_v28 = vld [vmem:[#allocation5 + $0x104] sm:$0xf0]  ;;  %v6033_v6 = vshll.u32 %v5832_v52, 16  ;;  %v5552_v23 = vadd.f32 %v5551_v53, %v5463_v25  ;;  %v6491_v30 = vrot.slane %v6490_v59, 4  ;;  %v6503_v11 = vshll.u32 %v6353_v63, 16 }
 0x38b   : > { %6239 = vst [vmem:[#allocation3 + $0x8c] sm:$0x1] %v6238_v10  ;;  %v12736_v61 = vor.u32 %v13727_v33, %v12733_v28  ;;  %v6499_v20 = vrot.slane %v6497_v62, 4  ;;  %v15836_v29 = vrot.slane %v6030_v5, 7  ;;  %v6849_v41 = vld [vmem:[#allocation3 + $0x38] sm:$0x1] }
 0x38c   : > { %10726 = vmatmul.bf16.gmra.mxu0 %v12732_v3  ;;  %v5641_v37 = vadd.f32 %v5640_v42, %v5552_v23  ;;  %v12473_v12 = vrot.slane %v6847_v27, 9  ;;  %v6961_v2 = vrot.slane %v6848_v57, 5  ;;  %v6240_v49 = vld [vmem:[#allocation3 + $0x90] sm:$0xf]  ;;  %v6496_v60 = vsel %vm14518_vm14, %v6491_v30, %v6495_v54  ;;  %v7115_v47 = vld [vmem:[#allocation3 + $0x3c] sm:$0xf]  ;;  %v5643_v52 = vpop.f32.mrf.mxu0 }
 0x38d   : > { %10815 = vmatmul.bf16.gmra.mxu1 %v12736_v61  ;;  %v12975_v45 = vld [vmem:[#allocation5 + $0x2d0] sm:$0xf]  ;;  %v6500_v32 = vor.u32 %v6499_v20, %v6495_v54  ;;  %v6035_v25 = vor.u32 %v6033_v6, %v15836_v29  ;;  %v6505_v63 = vrot.slane %v6503_v11, 5  ;;  %6811 = vst [vmem:[#allocation5 + $0x124] sm:$0xf] %v6496_v60  ;;  %v6964_v59 = vrot.slane %v6849_v41, 5 }
 0x38e   : > { %v5686_v10 = vmax.f32 %v5641_v37, 0.0  ;;  %v13793_v26 = vld [vmem:[#allocation5 + $0x2f0] sm:$0xf0]  ;;  %v6962_v42 = vsel %vm14485_vm12, %v12473_v12, %v6961_v2  ;;  %v15843_v57 = vpop.f32.mrf.mxu2  ;;  %v6963_v53 = vrot.slane %v6961_v2, 4  ;;  %7147 = vst [vmem:[#allocation5 + $0x12c] sm:$0xf] %v7115_v47 }
 0x38f   : > { %v12976_v27 = vor.u32 %v13793_v26, %v12975_v45  ;;  %v6501_v33 = vrot.slane %v6500_v32, 4  ;;  %7083 = vst [vmem:[#allocation5 + $0x128] sm:$0xf] %v6962_v42  ;;  %v6241_v54 = vsel %vm14491_vm13, %v6035_v25, %v6240_v49  ;;  %v5741_v3 = vld [vmem:[#allocation3 + $0x9c] sm:$0x1]  ;;  %v6036_v49 = vrot.slane %v15836_v29, 4 }
 0x390   : > { %v5833_v62 = vpack.c.bf16 %v5686_v10, %v5686_v10  ;;  %v5795_v28 = vld [vmem:[#allocation3 + $0xa4] sm:$0x1]  ;;  %6242 = vst [vmem:[#allocation3 + $0x90] sm:$0xf] %v6241_v54  ;;  %v6965_v6 = vsel %vm14485_vm12, %v6963_v53, %v6964_v59  ;;  %v7116_v2 = vld [vmem:[#allocation3 + $0x40] sm:$0xf] }
 0x391   : > { %v15847_v5 = vpop.f32.mrf.mxu1  ;;  %10583 = vmatmul.bf16.gmra.mxu2 %v12976_v27  ;;  %v6506_v12 = vsel %vm14518_vm14, %v6501_v33, %v6505_v63  ;;  %v5742_v23 = vsel %vm14436_vm2, 0, %v5741_v3  ;;  %v5796_v30 = vsel %vm14456_vm8, 0, %v5795_v28  ;;  %v6297_v20 = vld [vmem:[#allocation3 + $0x84] sm:$0xf]  ;;  %v6244_v11 = vld [vmem:[#allocation3 + $0x98] sm:$0x1]  ;;  %v5554_v32 = vpop.f32.mrf.mxu3 }
 0x392   : > { %17089 = vst [vmem:[#allocation25_spill] sm:$0xff] %v15847_v5  ;;  %v6038_v61 = vshrl.u32 %v5833_v62, 16  ;;  %v6354_v37 = vld [vmem:[#allocation3 + $0x3c] sm:$0xf]  ;;  %v6355_v41 = vld [vmem:[#allocation3 + $0x40] sm:$0xf] }
 0x393   : > { %6812 = vst [vmem:[#allocation5 + $0x148] sm:$0xf] %v6506_v12  ;;  %v6041_v60 = vshll.u32 %v5833_v62, 16  ;;  %v6508_v47 = vshrl.u32 %v6354_v37, 16  ;;  %v17090_v25 = vld [vmem:[#allocation28_spill] sm:$0xff]  ;;  %v6511_v63 = vshll.u32 %v6354_v37, 16 }
 0x394   : > { %7084 = vst [vmem:[#allocation5 + $0x14c] sm:$0xf] %v6965_v6  ;;  %v6040_v45 = vrot.slane %v6038_v61, 7  ;;  %v5555_v10 = vadd.f32 %v5554_v32, %v17090_v25  ;;  %v6298_v26 = vld [vmem:[#allocation3 + $0x88] sm:$0xf]  ;;  %v6517_v42 = vshll.u32 %v6355_v41, 16  ;;  %v5645_v28 = vpop.f32.mrf.mxu0 }
 0x395   : > { %7148 = vst [vmem:[#allocation5 + $0x150] sm:$0xf] %v7116_v2  ;;  %v6356_v53 = vld [vmem:[#allocation3 + $0x44] sm:$0x1]  ;;  %v6510_v59 = vrot.slane %v6508_v47, 4  ;;  %v6513_v62 = vrot.slane %v6511_v63, 5 }
 0x396   : > { %5743 = vst [vmem:[#allocation3 + $0x9c] sm:$0x1] %v5742_v23  ;;  %v6043_v27 = vor.u32 %v6041_v60, %v6040_v45  ;;  %v6045_v33 = vrot.slane %v6040_v45, 4  ;;  %v13735_v54 = vld [vmem:[#allocation5 + $0x124] sm:$0xf]  ;;  %v5644_v3 = vadd.f32 %v5643_v52, %v5555_v10  ;;  %v15859_v29 = vpop.f32.mrf.mxu2  ;;  %v6519_v23 = vrot.slane %v6517_v42, 5 }
 0x397   : > { %5797 = vst [vmem:[#allocation3 + $0xa4] sm:$0x1] %v5796_v30  ;;  %v12767_v2 = vld [vmem:[#allocation5 + $0x128] sm:$0xf]  ;;  %v6521_v61 = vshrl.u32 %v6355_v41, 16  ;;  %v6514_v32 = vor.u32 %v6513_v62, %v6510_v59  ;;  %v17092_v47 = vld [vmem:[#allocation29_spill] sm:$0xff] }
 0x398   : > { %6329 = vst [vmem:[#allocation5 + $0x318] sm:$0xf] %v6297_v20  ;;  %v6044_v12 = vsel %vm14470_vm11, %v6036_v49, %v6043_v27  ;;  %v6245_v6 = vsel %vm14436_vm2, %v6045_v33, %v6244_v11  ;;  %v6850_v30 = vld [vmem:[#allocation3 + $0x3c] sm:$0xe]  ;;  %v13736_v45 = vld [vmem:[#allocation5 + $0x12c] sm:$0xf] }
 0x399   : > { %6330 = vst [vmem:[#allocation5 + $0x33c] sm:$0xf] %v6298_v26  ;;  %v15865_v37 = vpop.f32.mrf.mxu1  ;;  %v5687_v60 = vmax.f32 %v5644_v3, 0.0  ;;  %v6527_v20 = vshll.u32 %v6356_v53, 16  ;;  %v17093_v25 = vld [vmem:[#allocation30_spill] sm:$0xff]  ;;  %v6523_v11 = vrot.slane %v6521_v61, 4  ;;  %v5556_v5 = vpop.f32.mrf.mxu3 }
 0x39a   : > { %6243 = vst [vmem:[#allocation3 + $0x94] sm:$0xf] %v6044_v12  ;;  %v12761_v52 = vld [vmem:[#allocation5 + $0x144] sm:$0xf0]  ;;  %v5468_v10 = vadd.f32 %v17093_v25, %v17092_v47  ;;  %v6515_v41 = vrot.slane %v6514_v32, 4  ;;  %v12474_v12 = vrot.slane %v6850_v30, 9 }
 0x39b   : > { %17091 = vst [vmem:[#allocation26_spill] sm:$0xff] %v15865_v37  ;;  %v12764_v49 = vor.u32 %v13735_v54, %v12761_v52  ;;  %v13740_v63 = vld [vmem:[#allocation5 + $0x148] sm:$0xf0]  ;;  %v5834_v42 = vpack.c.bf16 %v5687_v60, %v5687_v60  ;;  %v6851_v33 = vld [vmem:[#allocation3 + $0x40] sm:$0xf]  ;;  %v6524_v14 = vor.u32 %v6523_v11, %v6519_v23  ;;  %v6529_v3 = vrot.slane %v6527_v20, 5 }
 0x39c   : > { %6246 = vst [vmem:[#allocation3 + $0x98] sm:$0x1] %v6245_v6  ;;  %v12768_v27 = vor.u32 %v13740_v63, %v12767_v2  ;;  %v12769_v26 = vld [vmem:[#allocation5 + $0x14c] sm:$0xf0]  ;;  %v6852_v59 = vld [vmem:[#allocation3 + $0x44] sm:$0x1]  ;;  %v5557_v6 = vadd.f32 %v5556_v5, %v5468_v10  ;;  %v6520_v54 = vsel %vm14518_vm14, %v6515_v41, %v6519_v23  ;;  %v5648_v25 = vpop.f32.mrf.mxu0 }
 0x39d   : > { %10642 = vmatmul.bf16.gmra.mxu3 %v12764_v49  ;;  %v12772_v37 = vor.u32 %v13736_v45, %v12769_v26  ;;  %v6968_v53 = vrot.slane %v6851_v33, 5  ;;  %v6047_v62 = vshrl.u32 %v5834_v42, 16  ;;  %v6050_v47 = vshll.u32 %v5834_v42, 16  ;;  %v7117_v2 = vld [vmem:[#allocation3 + $0x48] sm:$0xf] }
 0x39e   : > { %10731 = vmatmul.bf16.gmra.mxu0 %v12768_v27  ;;  %v6247_v61 = vld [vmem:[#allocation3 + $0x9c] sm:$0xf]  ;;  %v6525_v60 = vrot.slane %v6524_v14, 4  ;;  %6813 = vst [vmem:[#allocation5 + $0x16c] sm:$0xf] %v6520_v54  ;;  %v5646_v20 = vadd.f32 %v5645_v28, %v5557_v6  ;;  %v15875_v63 = vpop.f32.mrf.mxu2  ;;  %v6971_v5 = vrot.slane %v6852_v59, 5 }
 0x39f   : > { %10820 = vmatmul.bf16.gmra.mxu1 %v12772_v37  ;;  %v13011_v52 = vld [vmem:[#allocation5 + $0x318] sm:$0xf]  ;;  %v6969_v30 = vsel %vm14485_vm12, %v12474_v12, %v6968_v53  ;;  %v6970_v45 = vrot.slane %v6968_v53, 4  ;;  %v15873_v32 = vrot.slane %v6047_v62, 7  ;;  %v7118_v10 = vld [vmem:[#allocation3 + $0x4c] sm:$0xf] }
 0x3a0   : > { %v13802_v49 = vld [vmem:[#allocation5 + $0x338] sm:$0xf0]  ;;  %7085 = vst [vmem:[#allocation5 + $0x170] sm:$0xf] %v6969_v30  ;;  %v6530_v37 = vsel %vm14518_vm14, %v6525_v60, %v6529_v3  ;;  %v5744_v14 = vld [vmem:[#allocation3 + $0xa8] sm:$0x1] }
 0x3a1   : > { %v13012_v23 = vor.u32 %v13802_v49, %v13011_v52  ;;  %7149 = vst [vmem:[#allocation5 + $0x174] sm:$0xf] %v7117_v2  ;;  %v6052_v11 = vor.u32 %v6050_v47, %v15873_v32  ;;  %v15880_v27 = vpop.f32.mrf.mxu1  ;;  %v5688_v26 = vmax.f32 %v5646_v20, 0.0  ;;  %v6972_v28 = vsel %vm14485_vm12, %v6970_v45, %v6971_v5  ;;  %v5798_v42 = vld [vmem:[#allocation3 + $0xb0] sm:$0x1]  ;;  %v13876_v53 = vld [vmem:[#allocation11 + $0x108] sm:$0xff]  ;;  %v5559_v62 = vpop.f32.mrf.mxu3 }
 0x3a2   : > { %17094 = vst [vmem:[#allocation27_spill] sm:$0xff] %v15880_v27  ;;  %v5745_v41 = vsel %vm14436_vm2, 0, %v5744_v14  ;;  %v5799_v3 = vsel %vm14456_vm8, 0, %v5798_v42  ;;  %v6299_v59 = vld [vmem:[#allocation3 + $0x90] sm:$0xf]  ;;  %v5560_v2 = vadd.f32 %v5559_v62, %v15460_v34  ;;  %10887 = vmatpush.bf16.msrb.mxu2 %v13876_v53  ;;  %v6053_v60 = vrot.slane %v15873_v32, 4 }
 0x3a3   : > { %6814 = vst [vmem:[#allocation5 + $0x190] sm:$0xf] %v6530_v37  ;;  %10588 = vmatmul.bf16.gmra.mxu2 %v13012_v23  ;;  %v6248_v33 = vsel %vm14491_vm13, %v6052_v11, %v6247_v61  ;;  %v5835_v12 = vpack.c.bf16 %v5688_v26, %v5688_v26  ;;  %v6300_v47 = vld [vmem:[#allocation3 + $0x94] sm:$0xf]  ;;  %v6357_v6 = vld [vmem:[#allocation3 + $0x48] sm:$0xf] }
 0x3a4   : > { %7086 = vst [vmem:[#allocation5 + $0x194] sm:$0xf] %v6972_v28  ;;  %v6358_v52 = vld [vmem:[#allocation3 + $0x4c] sm:$0xf]  ;;  %v6251_v30 = vld [vmem:[#allocation3 + $0xa4] sm:$0x1]  ;;  %v5649_v5 = vadd.f32 %v5648_v25, %v5560_v2  ;;  %v5650_v23 = vpop.f32.mrf.mxu0 }
 0x3a5   : > { %7150 = vst [vmem:[#allocation5 + $0x198] sm:$0xf] %v7118_v10  ;;  %v6055_v54 = vshrl.u32 %v5835_v12, 16  ;;  %v6058_v61 = vshll.u32 %v5835_v12, 16  ;;  %v13744_v20 = vld [vmem:[#allocation5 + $0x16c] sm:$0xf] }
 0x3a6   : > { %6249 = vst [vmem:[#allocation3 + $0x9c] sm:$0xf] %v6248_v33  ;;  %v15892_v37 = vpop.f32.mrf.mxu2  ;;  %v6532_v10 = vshrl.u32 %v6357_v6, 16  ;;  %v6535_v34 = vshll.u32 %v6357_v6, 16  ;;  %v6541_v11 = vshll.u32 %v6358_v52, 16  ;;  %v17095_v26 = vld [vmem:[#allocation31_spill] sm:$0xff] }
 0x3a7   : > { %5746 = vst [vmem:[#allocation3 + $0xa8] sm:$0x1] %v5745_v41  ;;  %v6057_v45 = vrot.slane %v6055_v54, 7  ;;  %v12803_v49 = vld [vmem:[#allocation5 + $0x170] sm:$0xf]  ;;  %v5473_v28 = vadd.f32 %v17095_v26, %v15464_v39  ;;  %v5689_v12 = vmax.f32 %v5649_v5, 0.0 }
 0x3a8   : > { %5800 = vst [vmem:[#allocation3 + $0xb0] sm:$0x1] %v5799_v3  ;;  %v6359_v3 = vld [vmem:[#allocation3 + $0x50] sm:$0x1]  ;;  %v13745_v62 = vld [vmem:[#allocation5 + $0x174] sm:$0xf] }
 0x3a9   : > { %6331 = vst [vmem:[#allocation5 + $0x360] sm:$0xf] %v6299_v59  ;;  %v6060_v32 = vor.u32 %v6058_v61, %v6057_v45  ;;  %v6062_v42 = vrot.slane %v6057_v45, 4  ;;  %v15896_v41 = vpop.f32.mrf.mxu1  ;;  %v6534_v59 = vrot.slane %v6532_v10, 4  ;;  %v6537_v2 = vrot.slane %v6535_v34, 5 }
 0x3aa   : > { %v12797_v14 = vld [vmem:[#allocation5 + $0x18c] sm:$0xf0]  ;;  %6332 = vst [vmem:[#allocation5 + $0x384] sm:$0xf] %v6300_v47  ;;  %v5836_v39 = vpack.c.bf16 %v5689_v12, %v5689_v12  ;;  %v6543_v61 = vrot.slane %v6541_v11, 5 }
 0x3ab   : > { %17096 = vst [vmem:[#allocation28_spill] sm:$0xff] %v15896_v41  ;;  %v13749_v33 = vld [vmem:[#allocation5 + $0x190] sm:$0xf0]  ;;  %v12800_v25 = vor.u32 %v13744_v20, %v12797_v14  ;;  %v6061_v47 = vsel %vm14470_vm11, %v6053_v60, %v6060_v32  ;;  %v6252_v6 = vsel %vm14436_vm2, %v6062_v42, %v6251_v30  ;;  %v6853_v45 = vld [vmem:[#allocation3 + $0x48] sm:$0xe]  ;;  %v5561_v41 = vpop.f32.mrf.mxu3  ;;  %v6538_v20 = vor.u32 %v6537_v2, %v6534_v59 }
 0x3ac   : > { %v12804_v53 = vor.u32 %v13749_v33, %v12803_v49  ;;  %v12805_v54 = vld [vmem:[#allocation5 + $0x194] sm:$0xf0]  ;;  %v6854_v26 = vld [vmem:[#allocation3 + $0x4c] sm:$0xf]  ;;  %6250 = vst [vmem:[#allocation3 + $0xa0] sm:$0xf] %v6061_v47  ;;  %v5562_v34 = vadd.f32 %v5561_v41, %v5473_v28 }
 0x3ad   : > { %10647 = vmatmul.bf16.gmra.mxu3 %v12800_v25  ;;  %v12808_v5 = vor.u32 %v13745_v62, %v12805_v54  ;;  %v6545_v49 = vshrl.u32 %v6358_v52, 16  ;;  %v6551_v14 = vshll.u32 %v6359_v3, 16  ;;  %v6855_v33 = vld [vmem:[#allocation3 + $0x50] sm:$0x1]  ;;  %6253 = vst [vmem:[#allocation3 + $0xa4] sm:$0x1] %v6252_v6  ;;  %v5653_v62 = vpop.f32.mrf.mxu0 }
 0x3ae   : > { %10736 = vmatmul.bf16.gmra.mxu0 %v12804_v53  ;;  %v6064_v10 = vshrl.u32 %v5836_v39, 16  ;;  %v7119_v60 = vld [vmem:[#allocation3 + $0x54] sm:$0xf]  ;;  %v6067_v32 = vshll.u32 %v5836_v39, 16  ;;  %v6254_v30 = vld [vmem:[#allocation3 + $0xa8] sm:$0xf]  ;;  %v5651_v25 = vadd.f32 %v5650_v23, %v5562_v34  ;;  %v15904_v52 = vpop.f32.mrf.mxu2 }
 0x3af   : > { %10825 = vmatmul.bf16.gmra.mxu1 %v12808_v5  ;;  %v6539_v11 = vrot.slane %v6538_v20, 4  ;;  %v6547_v12 = vrot.slane %v6545_v49, 4  ;;  %v6553_v27 = vrot.slane %v6551_v14, 5  ;;  %v12475_v3 = vrot.slane %v6853_v45, 9  ;;  %v7120_v2 = vld [vmem:[#allocation3 + $0x58] sm:$0xf] }
 0x3b0   : > { %v13047_v42 = vld [vmem:[#allocation5 + $0x360] sm:$0xf]  ;;  %v15902_v47 = vrot.slane %v6064_v10, 7  ;;  %v6975_v59 = vrot.slane %v6854_v26, 5  ;;  %7151 = vst [vmem:[#allocation5 + $0x1bc] sm:$0xf] %v7119_v60 }
 0x3b1   : > { %v13811_v54 = vld [vmem:[#allocation5 + $0x380] sm:$0xf0]  ;;  %v6544_v28 = vsel %vm14518_vm14, %v6539_v11, %v6543_v61  ;;  %v6548_v41 = vor.u32 %v6547_v12, %v6543_v61  ;;  %v5747_v6 = vld [vmem:[#allocation3 + $0xb4] sm:$0x1]  ;;  %v15909_v5 = vpop.f32.mrf.mxu1  ;;  %v5690_v20 = vmax.f32 %v5651_v25, 0.0  ;;  %v6978_v49 = vrot.slane %v6855_v33, 5 }
 0x3b2   : > { %v13048_v53 = vor.u32 %v13811_v54, %v13047_v42  ;;  %v6069_v39 = vor.u32 %v6067_v32, %v15902_v47  ;;  %17097 = vst [vmem:[#allocation29_spill] sm:$0xff] %v15909_v5  ;;  %v6976_v23 = vsel %vm14485_vm12, %v12475_v3, %v6975_v59  ;;  %v6977_v26 = vrot.slane %v6975_v59, 4  ;;  %v5801_v14 = vld [vmem:[#allocation3 + $0xbc] sm:$0x1]  ;;  %v15913_v10 = vld [vmem:[#allocation3 + $0xc] sm:$0xf] }
 0x3b3   : > { %6815 = vst [vmem:[#allocation5 + $0x1b4] sm:$0xf] %v6544_v28  ;;  %v6549_v45 = vrot.slane %v6548_v41, 4  ;;  %v5837_v34 = vpack.c.bf16 %v5690_v20, %v5690_v20  ;;  %v5748_v60 = vsel %vm14436_vm2, 0, %v5747_v6  ;;  %v5564_v42 = vpop.f32.mrf.mxu3  ;;  %v6301_v11 = vld [vmem:[#allocation3 + $0x9c] sm:$0xf] }
 0x3b4   : > { %10593 = vmatmul.bf16.gmra.mxu2 %v13048_v53  ;;  %7087 = vst [vmem:[#allocation5 + $0x1b8] sm:$0xf] %v6976_v23  ;;  %v6255_v61 = vsel %vm14491_vm13, %v6069_v39, %v6254_v30  ;;  %v6979_v33 = vsel %vm14485_vm12, %v6977_v26, %v6978_v49  ;;  %v6360_v12 = vld [vmem:[#allocation3 + $0x54] sm:$0xf]  ;;  %v6361_v25 = vld [vmem:[#allocation3 + $0x58] sm:$0xf] }
 0x3b5   : > { %7152 = vst [vmem:[#allocation5 + $0x1e0] sm:$0xf] %v7120_v2  ;;  %v6554_v32 = vsel %vm14518_vm14, %v6549_v45, %v6553_v27  ;;  %v6072_v54 = vshrl.u32 %v5837_v34, 16  ;;  %v17098_v3 = vld [vmem:[#allocation32_spill] sm:$0xff]  ;;  %v5802_v59 = vsel %vm14456_vm8, 0, %v5801_v14  ;;  %v6556_v41 = vshrl.u32 %v6360_v12, 16  ;;  %v5655_v45 = vpop.f32.mrf.mxu0 }
 0x3b6   : > { %6256 = vst [vmem:[#allocation3 + $0xa8] sm:$0xf] %v6255_v61  ;;  %v5565_v30 = vadd.f32 %v5564_v42, %v17098_v3  ;;  %v6362_v53 = vld [vmem:[#allocation3 + $0x5c] sm:$0x1]  ;;  %v6258_v28 = vld [vmem:[#allocation3 + $0xb0] sm:$0x1]  ;;  %v15928_v26 = vpop.f32.mrf.mxu2 }
 0x3b7   : > { %6816 = vst [vmem:[#allocation5 + $0x1d8] sm:$0xf] %v6554_v32  ;;  %v6559_v2 = vshll.u32 %v6360_v12, 16  ;;  %v6565_v27 = vshll.u32 %v6361_v25, 16  ;;  %v6569_v6 = vshrl.u32 %v6361_v25, 16  ;;  %v6074_v20 = vrot.slane %v6072_v54, 7 }
 0x3b8   : > { %7088 = vst [vmem:[#allocation5 + $0x1dc] sm:$0xf] %v6979_v33  ;;  %v15926_v39 = vld [vmem:[#allocation3 + $0x10] sm:$0xf]  ;;  %v6075_v23 = vshll.u32 %v5837_v34, 16  ;;  %v5654_v49 = vadd.f32 %v5653_v62, %v5565_v30  ;;  %v6070_v14 = vrot.slane %v15902_v47, 4 }
 0x3b9   : > { %5749 = vst [vmem:[#allocation3 + $0xb4] sm:$0x1] %v5748_v60  ;;  %v6302_v61 = vld [vmem:[#allocation3 + $0xa0] sm:$0xf]  ;;  %v6558_v33 = vrot.slane %v6556_v41, 4  ;;  %v6561_v42 = vrot.slane %v6559_v2, 5  ;;  %v15932_v25 = vpop.f32.mrf.mxu1 }
 0x3ba   : > { %5803 = vst [vmem:[#allocation3 + $0xbc] sm:$0x1] %v5802_v59  ;;  %v6077_v12 = vor.u32 %v6075_v23, %v6074_v20  ;;  %v6079_v3 = vrot.slane %v6074_v20, 4  ;;  %v13754_v5 = vld [vmem:[#allocation5 + $0x1bc] sm:$0xf]  ;;  %v5691_v54 = vmax.f32 %v5654_v49, 0.0 }
 0x3bb   : > { %17099 = vst [vmem:[#allocation30_spill] sm:$0xff] %v15932_v25  ;;  %v6575_v62 = vshll.u32 %v6362_v53, 16  ;;  %v13753_v34 = vld [vmem:[#allocation5 + $0x1b4] sm:$0xf]  ;;  %v6562_v30 = vor.u32 %v6561_v42, %v6558_v33  ;;  %v6567_v4 = vrot.slane %v6565_v27, 5  ;;  %v6571_v17 = vrot.slane %v6569_v6, 4  ;;  %v5566_v27 = vpop.f32.mrf.mxu3 }
 0x3bc   : > { %6333 = vst [vmem:[#allocation5 + $0x3a8] sm:$0xf] %v6301_v11  ;;  %v12841_v60 = vld [vmem:[#allocation5 + $0x1dc] sm:$0xf0]  ;;  %v17100_v32 = vld [vmem:[#allocation33_spill] sm:$0xff]  ;;  %v6078_v59 = vsel %vm14470_vm11, %v6070_v14, %v6077_v12  ;;  %v6259_v41 = vsel %vm14436_vm2, %v6079_v3, %v6258_v28  ;;  %v5838_v20 = vpack.c.bf16 %v5691_v54, %v5691_v54  ;;  %v7229_v53 = vshll.u32 %v15926_v39, 16 }
 0x3bd   : > { %6334 = vst [vmem:[#allocation5 + $0x3cc] sm:$0xf] %v6302_v61  ;;  %v5478_v47 = vadd.f32 %v17101_v55, %v17100_v32  ;;  %v12839_v2 = vld [vmem:[#allocation5 + $0x1b8] sm:$0xf]  ;;  %v6856_v23 = vld [vmem:[#allocation3 + $0x54] sm:$0xe]  ;;  %v12844_v61 = vor.u32 %v13754_v5, %v12841_v60  ;;  %v6572_v33 = vor.u32 %v6571_v17, %v6567_v4 }
 0x3be   : > { %v6857_v11 = vld [vmem:[#allocation3 + $0x58] sm:$0xf]  ;;  %6257 = vst [vmem:[#allocation3 + $0xac] sm:$0xf] %v6078_v59  ;;  %v12833_v49 = vld [vmem:[#allocation5 + $0x1d4] sm:$0xf0]  ;;  %v15945_v60 = vpop.f32.mrf.mxu2 }
 0x3bf   : > { %v6563_v6 = vrot.slane %v6562_v30, 4  ;;  %6260 = vst [vmem:[#allocation3 + $0xb0] sm:$0x1] %v6259_v41  ;;  %v12836_v55 = vor.u32 %v13753_v34, %v12833_v49  ;;  %v13758_v32 = vld [vmem:[#allocation5 + $0x1d8] sm:$0xf0]  ;;  %v6081_v42 = vshrl.u32 %v5838_v20, 16  ;;  %v5567_v14 = vadd.f32 %v5566_v27, %v5478_v47  ;;  %10830 = vmatmul.bf16.gmra.mxu1 %v12844_v61  ;;  %v5658_v49 = vpop.f32.mrf.mxu0 }
 0x3c0   : > { %v6577_v12 = vrot.slane %v6575_v62, 5  ;;  %v12840_v25 = vor.u32 %v13758_v32, %v12839_v2  ;;  %v6084_v28 = vshll.u32 %v5838_v20, 16  ;;  %v6573_v54 = vrot.slane %v6572_v33, 4  ;;  %v6858_v7 = vld [vmem:[#allocation3 + $0x5c] sm:$0x1] }
 0x3c1   : > { %v6568_v3 = vsel %vm14518_vm14, %v6563_v6, %v6567_v4  ;;  %10652 = vmatmul.bf16.gmra.mxu3 %v12836_v55  ;;  %v15943_v59 = vrot.slane %v6081_v42, 7  ;;  %v5656_v5 = vadd.f32 %v5655_v45, %v5567_v14  ;;  %v12476_v17 = vrot.slane %v6856_v23, 9  ;;  %v6261_v30 = vld [vmem:[#allocation3 + $0xb4] sm:$0xf]  ;;  %v7121_v41 = vld [vmem:[#allocation3 + $0x60] sm:$0xf]  ;;  %v15950_v2 = vpop.f32.mrf.mxu1 }
 0x3c2   : > { %6817 = vst [vmem:[#allocation5 + $0x1fc] sm:$0xf] %v6568_v3  ;;  %v6982_v34 = vrot.slane %v6857_v11, 5  ;;  %10741 = vmatmul.bf16.gmra.mxu0 %v12840_v25  ;;  %v6578_v47 = vsel %vm14518_vm14, %v6573_v54, %v6577_v12  ;;  %v6985_v23 = vrot.slane %v6858_v7, 5  ;;  %v5750_v27 = vld [vmem:[#allocation3 + $0xc0] sm:$0x1] }
 0x3c3   : > { %v13083_v62 = vld [vmem:[#allocation5 + $0x3a8] sm:$0xf]  ;;  %v6086_v4 = vor.u32 %v6084_v28, %v15943_v59  ;;  %17102 = vst [vmem:[#allocation31_spill] sm:$0xff] %v15950_v2  ;;  %v5692_v20 = vmax.f32 %v5656_v5, 0.0  ;;  %v13875_v6 = vld [vmem:[#allocation11 + $0x100] sm:$0xff]  ;;  %v7233_v12 = vshrl.u32 %v15926_v39, 16 }
 0x3c4   : > { %v13820_v61 = vld [vmem:[#allocation5 + $0x3c8] sm:$0xf0]  ;;  %6818 = vst [vmem:[#allocation5 + $0x220] sm:$0xf] %v6578_v47  ;;  %v6983_v45 = vsel %vm14485_vm12, %v12476_v17, %v6982_v34  ;;  %v6984_v25 = vrot.slane %v6982_v34, 4  ;;  %v5751_v28 = vsel %vm14436_vm2, 0, %v5750_v27  ;;  %10888 = vmatpush.bf16.msrb.mxu2 %v13875_v6 }
 0x3c5   : > { %v13084_v11 = vor.u32 %v13820_v61, %v13083_v62  ;;  %7089 = vst [vmem:[#allocation5 + $0x200] sm:$0xf] %v6983_v45  ;;  %v6262_v33 = vsel %vm14491_vm13, %v6086_v4, %v6261_v30  ;;  %v5839_v55 = vpack.c.bf16 %v5692_v20, %v5692_v20  ;;  %v7122_v32 = vld [vmem:[#allocation3 + $0x64] sm:$0xf]  ;;  %v5804_v42 = vld [vmem:[#allocation3 + $0xc8] sm:$0x1] }
 0x3c6   : > { %7153 = vst [vmem:[#allocation5 + $0x204] sm:$0xf] %v7121_v41  ;;  %v6986_v7 = vsel %vm14485_vm12, %v6984_v25, %v6985_v23  ;;  %v5805_v54 = vsel %vm14456_vm8, 0, %v5804_v42  ;;  %v6303_v5 = vld [vmem:[#allocation3 + $0xa8] sm:$0xf]  ;;  %v15964_v17 = vrot.slane %v7229_v53, 5  ;;  %v15966_v47 = vpop.f32.mrf.mxu2 }
 0x3c7   : > { %6263 = vst [vmem:[#allocation3 + $0xb4] sm:$0xf] %v6262_v33  ;;  %10598 = vmatmul.bf16.gmra.mxu2 %v13084_v11  ;;  %v6089_v3 = vshrl.u32 %v5839_v55, 16  ;;  %v6092_v34 = vshll.u32 %v5839_v55, 16  ;;  %v6265_v30 = vld [vmem:[#allocation3 + $0xbc] sm:$0x1]  ;;  %v5569_v61 = vpop.f32.mrf.mxu3 }
 0x3c8   : > { %7090 = vst [vmem:[#allocation5 + $0x224] sm:$0xf] %v6986_v7  ;;  %v6363_v39 = vld [vmem:[#allocation3 + $0x60] sm:$0xf]  ;;  %v6304_v41 = vld [vmem:[#allocation3 + $0xac] sm:$0xf] }
 0x3c9   : > { %7154 = vst [vmem:[#allocation5 + $0x228] sm:$0xf] %v7122_v32  ;;  %v6091_v62 = vrot.slane %v6089_v3, 7  ;;  %v6580_v4 = vshrl.u32 %v6363_v39, 16  ;;  %v6364_v45 = vld [vmem:[#allocation3 + $0x64] sm:$0xf]  ;;  %v15969_v53 = vpop.f32.mrf.mxu1 }
 0x3ca   : > { %5752 = vst [vmem:[#allocation3 + $0xc0] sm:$0x1] %v5751_v28  ;;  %v6087_v23 = vrot.slane %v15943_v59, 4  ;;  %v17104_v27 = vld [vmem:[#allocation36_spill] sm:$0xff]  ;;  %v6365_v33 = vld [vmem:[#allocation3 + $0x68] sm:$0x1] }
 0x3cb   : > { %v12869_v20 = vld [vmem:[#allocation5 + $0x21c] sm:$0xf0]  ;;  %5806 = vst [vmem:[#allocation3 + $0xc8] sm:$0x1] %v5805_v54  ;;  %v6094_v11 = vor.u32 %v6092_v34, %v6091_v62  ;;  %v6096_v25 = vrot.slane %v6091_v62, 4  ;;  %v5570_v6 = vadd.f32 %v5569_v61, %v17104_v27  ;;  %v6582_v42 = vrot.slane %v6580_v4, 4  ;;  %v5660_v34 = vpop.f32.mrf.mxu0 }
 0x3cc   : > { %17103 = vst [vmem:[#allocation32_spill] sm:$0xff] %v15969_v53  ;;  %v13762_v55 = vld [vmem:[#allocation5 + $0x1fc] sm:$0xf]  ;;  %v12875_v32 = vld [vmem:[#allocation5 + $0x200] sm:$0xf]  ;;  %v6583_v7 = vshll.u32 %v6363_v39, 16 }
 0x3cd   : > { %6335 = vst [vmem:[#allocation5 + $0x3f0] sm:$0xf] %v6303_v5  ;;  %v6095_v28 = vsel %vm14470_vm11, %v6087_v23, %v6094_v11  ;;  %v6266_v3 = vsel %vm14436_vm2, %v6096_v25, %v6265_v30  ;;  %v13763_v59 = vld [vmem:[#allocation5 + $0x204] sm:$0xf]  ;;  %v5659_v54 = vadd.f32 %v5658_v49, %v5570_v6  ;;  %v6589_v62 = vshll.u32 %v6364_v45, 16  ;;  %v17105_v61 = vld [vmem:[#allocation37_spill] sm:$0xff] }
 0x3ce   : > { %6336 = vst [vmem:[#allocation5 + $0x414] sm:$0xf] %v6304_v41  ;;  %v6859_v14 = vld [vmem:[#allocation3 + $0x60] sm:$0xe]  ;;  %v6860_v19 = vld [vmem:[#allocation3 + $0x64] sm:$0xf]  ;;  %v5483_v5 = vadd.f32 %v15760_v38, %v17105_v61  ;;  %v12872_v39 = vor.u32 %v13762_v55, %v12869_v20  ;;  %v15980_v38 = vpop.f32.mrf.mxu2 }
 0x3cf   : > { %6264 = vst [vmem:[#allocation3 + $0xb8] sm:$0xf] %v6095_v28  ;;  %v13767_v27 = vld [vmem:[#allocation5 + $0x220] sm:$0xf0]  ;;  %v6585_v41 = vrot.slane %v6583_v7, 5  ;;  %v6593_v4 = vshrl.u32 %v6364_v45, 16  ;;  %v5571_v20 = vpop.f32.mrf.mxu3 }
 0x3d0   : > { %6267 = vst [vmem:[#allocation3 + $0xbc] sm:$0x1] %v6266_v3  ;;  %v12876_v53 = vor.u32 %v13767_v27, %v12875_v32  ;;  %v12877_v23 = vld [vmem:[#allocation5 + $0x224] sm:$0xf0]  ;;  %v5693_v11 = vmax.f32 %v5659_v54, 0.0  ;;  %v6591_v2 = vrot.slane %v6589_v62, 5 }
 0x3d1   : > { %v12880_v30 = vor.u32 %v13763_v59, %v12877_v23  ;;  %v6586_v25 = vor.u32 %v6585_v41, %v6582_v42  ;;  %v6595_v49 = vrot.slane %v6593_v4, 4  ;;  %v6599_v6 = vshll.u32 %v6365_v33, 16  ;;  %v6861_v21 = vld [vmem:[#allocation3 + $0x68] sm:$0x1]  ;;  %10657 = vmatmul.bf16.gmra.mxu3 %v12872_v39  ;;  %v15982_v33 = vpop.f32.mrf.mxu1  ;;  %v7123_v27 = vld [vmem:[#allocation3 + $0x6c] sm:$0xf] }
 0x3d2   : > { %v15978_v51 = vrot.slane %v7233_v12, 4  ;;  %v5840_v18 = vpack.c.bf16 %v5693_v11, %v5693_v11  ;;  %v12477_v28 = vrot.slane %v6859_v14, 9  ;;  %v6989_v7 = vrot.slane %v6860_v19, 5  ;;  %10746 = vmatmul.bf16.gmra.mxu0 %v12876_v53  ;;  %17106 = vst [vmem:[#allocation33_spill] sm:$0xff] %v15982_v33  ;;  %v6268_v14 = vld [vmem:[#allocation3 + $0xc0] sm:$0xf] }
 0x3d3   : > { %10835 = vmatmul.bf16.gmra.mxu1 %v12880_v30  ;;  %v6587_v55 = vrot.slane %v6586_v25, 4  ;;  %v6596_v32 = vor.u32 %v6595_v49, %v6591_v2  ;;  %v6601_v3 = vrot.slane %v6599_v6, 5  ;;  %v6992_v59 = vrot.slane %v6861_v21, 5  ;;  %v13890_v23 = vld [vmem:[#allocation11 + $0x178] sm:$0xff]  ;;  %7155 = vst [vmem:[#allocation5 + $0x24c] sm:$0xf] %v7123_v27 }
 0x3d4   : > { %v13119_v45 = vld [vmem:[#allocation5 + $0x3f0] sm:$0xf]  ;;  %v6098_v42 = vshrl.u32 %v5840_v18, 16  ;;  %v6101_v54 = vshll.u32 %v5840_v18, 16  ;;  %v5572_v12 = vadd.f32 %v5571_v20, %v5483_v5  ;;  %v6990_v61 = vsel %vm14485_vm12, %v12477_v28, %v6989_v7  ;;  %v7124_v18 = vld [vmem:[#allocation3 + $0x70] sm:$0xf]  ;;  %v10712_v20 = vpop.f32.mrf.mxu0  ;;  %10970 = vmatpush.bf16.msra.mxu3 %v13890_v23 }
 0x3d5   : > { %v13829_v62 = vld [vmem:[#allocation5 + $0x410] sm:$0xf0]  ;;  %v6592_v53 = vsel %vm14518_vm14, %v6587_v55, %v6591_v2  ;;  %v6597_v41 = vrot.slane %v6596_v32, 4  ;;  %v6991_v4 = vrot.slane %v6989_v7, 4  ;;  %7091 = vst [vmem:[#allocation5 + $0x248] sm:$0xf] %v6990_v61 }
 0x3d6   : > { %v13120_v19 = vor.u32 %v13829_v62, %v13119_v45  ;;  %v15988_v39 = vrot.slane %v6098_v42, 7  ;;  %v5661_v21 = vadd.f32 %v5660_v34, %v5572_v12  ;;  %6819 = vst [vmem:[#allocation5 + $0x244] sm:$0xf] %v6592_v53  ;;  %v6305_v30 = vld [vmem:[#allocation3 + $0xb4] sm:$0xf]  ;;  %v17107_v49 = vshrl.u32 %v15913_v10, 16  ;;  %v16009_v53 = vpop.f32.mrf.mxu2 }
 0x3d7   : > { %v6602_v5 = vsel %vm14518_vm14, %v6597_v41, %v6601_v3  ;;  %v6993_v11 = vsel %vm14485_vm12, %v6991_v4, %v6992_v59  ;;  %v6366_v25 = vld [vmem:[#allocation3 + $0x6c] sm:$0xf]  ;;  %v6367_v2 = vld [vmem:[#allocation3 + $0x70] sm:$0xf]  ;;  %v7236_v34 = vor.u32 %v15978_v51, %v15964_v17  ;;  %v6368_v45 = vld [vmem:[#allocation3 + $0x74] sm:$0x1] }
 0x3d8   : > { %10603 = vmatmul.bf16.gmra.mxu2 %v13120_v19  ;;  %v15996_v6 = vrot.slane %v17107_v49, 4  ;;  %v6103_v28 = vor.u32 %v6101_v54, %v15988_v39  ;;  %v5694_v7 = vmax.f32 %v5661_v21, 0.0  ;;  %6820 = vst [vmem:[#allocation5 + $0x268] sm:$0xf] %v6602_v5  ;;  %v6604_v55 = vshrl.u32 %v6366_v25, 16  ;;  %v17109_v27 = vld [vmem:[#allocation39_spill] sm:$0xff] }
 0x3d9   : > { %7092 = vst [vmem:[#allocation5 + $0x26c] sm:$0xf] %v6993_v11  ;;  %v6607_v32 = vshll.u32 %v6366_v25, 16  ;;  %v6613_v3 = vshll.u32 %v6367_v2, 16  ;;  %v6617_v59 = vshrl.u32 %v6367_v2, 16  ;;  %v17108_v42 = vshll.u32 %v15913_v10, 16  ;;  %v16014_v48 = vpop.f32.mrf.mxu1 }
 0x3da   : > { %v6269_v62 = vsel %vm14491_vm13, %v6103_v28, %v6268_v14  ;;  %v5841_v51 = vpack.c.bf16 %v5694_v7, %v5694_v7  ;;  %7156 = vst [vmem:[#allocation5 + $0x270] sm:$0xf] %v7124_v18  ;;  %v6306_v54 = vld [vmem:[#allocation3 + $0xb8] sm:$0xf]  ;;  %v6623_v61 = vshll.u32 %v6368_v45, 16  ;;  %v10535_v19 = vadd.f32 %v15772_v1, %v17109_v27  ;;  %v10623_v14 = vpop.f32.mrf.mxu3 }
 0x3db   : > { %v16003_v12 = vrot.slane %v17108_v42, 5  ;;  %6270 = vst [vmem:[#allocation3 + $0xc0] sm:$0xf] %v6269_v62  ;;  %v6606_v41 = vrot.slane %v6604_v55, 4  ;;  %v6609_v4 = vrot.slane %v6607_v32, 5  ;;  %v6615_v21 = vrot.slane %v6613_v3, 5 }
 0x3dc   : > { %v16011_v23 = vrot.slane %v7236_v34, 4  ;;  %v6104_v10 = vrot.slane %v15988_v39, 4  ;;  %v6106_v5 = vshrl.u32 %v5841_v51, 16  ;;  %6337 = vst [vmem:[#allocation5 + $0x438] sm:$0xf] %v6305_v30  ;;  %v6109_v18 = vshll.u32 %v5841_v51, 16 }
 0x3dd   : > { %v6272_v11 = vld [vmem:[#allocation3 + $0xc8] sm:$0x1]  ;;  %v10624_v25 = vadd.f32 %v10623_v14, %v10535_v19  ;;  %6338 = vst [vmem:[#allocation5 + $0x45c] sm:$0xf] %v6306_v54  ;;  %v6610_v1 = vor.u32 %v6609_v4, %v6606_v41  ;;  %v6619_v2 = vrot.slane %v6617_v59, 4  ;;  %v17110_v28 = vld [vmem:[#allocation35_spill] sm:$0xff]  ;;  %v7226_v3 = vor.u32 %v16003_v12, %v15996_v6 }
 0x3de   : > { %v6862_v49 = vld [vmem:[#allocation3 + $0x6c] sm:$0xe]  ;;  %v10537_v7 = vadd.f32 %v15793_v15, %v17110_v28  ;;  %v6108_v45 = vrot.slane %v6106_v5, 7  ;;  %v13771_v34 = vld [vmem:[#allocation5 + $0x244] sm:$0xf]  ;;  %v6625_v32 = vrot.slane %v6623_v61, 5  ;;  %v10714_v5 = vpop.f32.mrf.mxu0 }
 0x3df   : > { %v12911_v55 = vld [vmem:[#allocation5 + $0x248] sm:$0xf]  ;;  %v6863_v39 = vld [vmem:[#allocation3 + $0x70] sm:$0xf]  ;;  %v16020_v30 = vadd.f32 %v10712_v20, %v10624_v25  ;;  %v6611_v62 = vrot.slane %v6610_v1, 4  ;;  %v6620_v51 = vor.u32 %v6619_v2, %v6615_v21  ;;  %v12478_v14 = vrot.slane %v6862_v49, 9 }
 0x3e0   : > { %v12905_v42 = vld [vmem:[#allocation5 + $0x264] sm:$0xf0]  ;;  %v6864_v54 = vld [vmem:[#allocation3 + $0x74] sm:$0x1]  ;;  %v6996_v27 = vrot.slane %v6863_v39, 5  ;;  %v6111_v59 = vor.u32 %v6109_v18, %v6108_v45  ;;  %v6113_v19 = vrot.slane %v6108_v45, 4 }
 0x3e1   : > { %v12908_v41 = vor.u32 %v13771_v34, %v12905_v42  ;;  %v13776_v4 = vld [vmem:[#allocation5 + $0x268] sm:$0xf0]  ;;  %v12913_v61 = vld [vmem:[#allocation5 + $0x26c] sm:$0xf0]  ;;  %v6616_v33 = vsel %vm14518_vm14, %v6611_v62, %v6615_v21  ;;  %v6621_v6 = vrot.slane %v6620_v51, 4  ;;  %v6999_v12 = vrot.slane %v6864_v54, 5 }
 0x3e2   : > { %v13772_v15 = vld [vmem:[#allocation5 + $0x24c] sm:$0xf]  ;;  %v12912_v28 = vor.u32 %v13776_v4, %v12911_v55  ;;  %v13914_v20 = vld [vmem:[#allocation11 + $0x238] sm:$0xff]  ;;  %v6112_v25 = vsel %vm14470_vm11, %v6104_v10, %v6111_v59  ;;  %v6273_v18 = vsel %vm14436_vm2, %v6113_v19, %v6272_v11  ;;  %6821 = vst [vmem:[#allocation5 + $0x28c] sm:$0xf] %v6616_v33  ;;  %v6998_v2 = vrot.slane %v6996_v27, 4  ;;  %v16032_v11 = vpop.f32.mrf.mxu1  ;;  %v10625_v33 = vpop.f32.mrf.mxu3 }
 0x3e3   : > { %10662 = vmatmul.bf16.gmra.mxu3 %v12908_v41  ;;  %v12916_v1 = vor.u32 %v13772_v15, %v12913_v61  ;;  %v7173_v45 = vld [vmem:[#allocation3 + $0x14] sm:$0x1]  ;;  %6271 = vst [vmem:[#allocation3 + $0xc4] sm:$0xf] %v6112_v25  ;;  %v13155_v34 = vld [vmem:[#allocation5 + $0x438] sm:$0xf]  ;;  %v6626_v21 = vsel %vm14518_vm14, %v6621_v6, %v6625_v32  ;;  %v6997_v55 = vsel %vm14485_vm12, %v12478_v14, %v6996_v27  ;;  %v16036_v19 = vpop.f32.mrf.mxu2 }
 0x3e4   : > { %v13898_v49 = vld [vmem:[#allocation11 + $0x1b8] sm:$0xff]  ;;  %10751 = vmatmul.bf16.gmra.mxu0 %v12912_v28  ;;  %v7125_v35 = vld [vmem:[#allocation3 + $0x78] sm:$0xf]  ;;  %v7227_v10 = vrot.slane %v7226_v3, 4  ;;  %v7239_v39 = vshll.u32 %v7173_v45, 16  ;;  %11237 = vmatpush.bf16.msra.mxu2 %v13914_v20  ;;  %v7000_v62 = vsel %vm14485_vm12, %v6998_v2, %v6999_v12  ;;  %v10626_v32 = vadd.f32 %v10625_v33, %v10537_v7 }
 0x3e5   : > { %6274 = vst [vmem:[#allocation3 + $0xc8] sm:$0x1] %v6273_v18  ;;  %10840 = vmatmul.bf16.gmra.mxu1 %v12916_v1  ;;  %v13838_v42 = vld [vmem:[#allocation5 + $0x458] sm:$0xf0]  ;;  %v7126_v51 = vld [vmem:[#allocation3 + $0x7c] sm:$0xf]  ;;  %11059 = vmatpush.bf16.msra.mxu0 %v13898_v49 }
 0x3e6   : > { %v6369_v54 = vld [vmem:[#allocation3 + $0x78] sm:$0xf]  ;;  %v13156_v59 = vor.u32 %v13838_v42, %v13155_v34  ;;  %6822 = vst [vmem:[#allocation5 + $0x2b0] sm:$0xf] %v6626_v21  ;;  %v7241_v3 = vrot.slane %v7239_v39, 5  ;;  %v16038_v28 = vadd.f32 %v10714_v5, %v10626_v32  ;;  %v7232_v61 = vsel %vm14518_vm14, %v7227_v10, %v15964_v17  ;;  %v10717_v12 = vpop.f32.mrf.mxu0  ;;  %v13906_v45 = vld [vmem:[#allocation11 + $0x1f8] sm:$0xff] }
 0x3e7   : > { %v6370_v27 = vld [vmem:[#allocation3 + $0x7c] sm:$0xf]  ;;  %v6628_v41 = vshrl.u32 %v6369_v54, 16  ;;  %7093 = vst [vmem:[#allocation5 + $0x290] sm:$0xf] %v6997_v55  ;;  %v6631_v15 = vshll.u32 %v6369_v54, 16  ;;  %v10540_v17 = vadd.f32 %v15812_v40, %v15537_v56  ;;  %11148 = vmatpush.bf16.msra.mxu1 %v13906_v45 }
 0x3e8   : > { %v6371_v4 = vld [vmem:[#allocation3 + $0x80] sm:$0x1]  ;;  %v6637_v14 = vshll.u32 %v6370_v27, 16  ;;  %10608 = vmatmul.bf16.gmra.mxu2 %v13156_v59  ;;  %7094 = vst [vmem:[#allocation5 + $0x2b4] sm:$0xf] %v7000_v62  ;;  %v6641_v6 = vshrl.u32 %v6370_v27, 16  ;;  %v7242_v20 = vsel %vm14518_vm14, %v16011_v23, %v7241_v3 }
 0x3e9   : > { %v6630_v7 = vrot.slane %v6628_v41, 4  ;;  %7157 = vst [vmem:[#allocation5 + $0x294] sm:$0xf] %v7125_v35  ;;  %v6633_v25 = vrot.slane %v6631_v15, 5  ;;  %v6865_v1 = vld [vmem:[#allocation3 + $0x78] sm:$0xe] }
 0x3ea   : > { %v6639_v18 = vrot.slane %v6637_v14, 5  ;;  %7158 = vst [vmem:[#allocation5 + $0x2b8] sm:$0xf] %v7126_v51  ;;  %v6643_v5 = vrot.slane %v6641_v6, 4  ;;  %v6647_v2 = vshll.u32 %v6371_v4, 16  ;;  %v12479_v35 = vrot.slane %v6865_v1, 9  ;;  %v16048_v23 = vpop.f32.mrf.mxu1  ;;  %v10628_v39 = vpop.f32.mrf.mxu3 }
 0x3eb   : > { %7635 = vst [vmem:[#allocation5 + $0x10] sm:$0xf] %v7232_v61  ;;  %v6634_v49 = vor.u32 %v6633_v25, %v6630_v7  ;;  %v6866_v34 = vld [vmem:[#allocation3 + $0x7c] sm:$0xf]  ;;  %v6867_v55 = vld [vmem:[#allocation3 + $0x80] sm:$0x1]  ;;  %v10629_v51 = vadd.f32 %v10628_v39, %v10540_v17  ;;  %v16050_v54 = vpop.f32.mrf.mxu2 }
 0x3ec   : > { %7636 = vst [vmem:[#allocation5 + $0x34] sm:$0xf] %v7242_v20  ;;  %v6644_v21 = vor.u32 %v6643_v5, %v6639_v18  ;;  %v7003_v10 = vrot.slane %v6866_v34, 5  ;;  %v13780_v42 = vld [vmem:[#allocation5 + $0x28c] sm:$0xf]  ;;  %v6649_v59 = vrot.slane %v6647_v2, 5 }
 0x3ed   : > { %v6635_v33 = vrot.slane %v6634_v49, 4  ;;  %v12941_v62 = vld [vmem:[#allocation5 + $0x2ac] sm:$0xf0]  ;;  %v7127_v40 = vld [vmem:[#allocation3 + $0x84] sm:$0xf]  ;;  %v7006_v15 = vrot.slane %v6867_v55, 5  ;;  %v16056_v14 = vadd.f32 %v10717_v12, %v10629_v51  ;;  %v10542_v55 = vadd.f32 %v15826_v9, %v15548_v36 }
 0x3ee   : > { %v6645_v32 = vrot.slane %v6644_v21, 4  ;;  %v7004_v56 = vsel %vm14485_vm12, %v12479_v35, %v7003_v10  ;;  %v12947_v3 = vld [vmem:[#allocation5 + $0x290] sm:$0xf]  ;;  %v7005_v4 = vrot.slane %v7003_v10, 4  ;;  %v7174_v6 = vld [vmem:[#allocation3 + $0x18] sm:$0xf]  ;;  %v12944_v20 = vor.u32 %v13780_v42, %v12941_v62  ;;  %v10719_v49 = vpop.f32.mrf.mxu0 }
 0x3ef   : > { %v13785_v27 = vld [vmem:[#allocation5 + $0x2b0] sm:$0xf0]  ;;  %v6640_v41 = vsel %vm14518_vm14, %v6635_v33, %v6639_v18  ;;  %7095 = vst [vmem:[#allocation5 + $0x2d8] sm:$0xf] %v7004_v56  ;;  %v7128_v7 = vld [vmem:[#allocation3 + $0x88] sm:$0xf] }
 0x3f0   : > { %v6650_v61 = vsel %vm14518_vm14, %v6645_v32, %v6649_v59  ;;  %6823 = vst [vmem:[#allocation5 + $0x2d4] sm:$0xf] %v6640_v41  ;;  %v7007_v1 = vsel %vm14485_vm12, %v7005_v4, %v7006_v15  ;;  %v7175_v5 = vld [vmem:[#allocation3 + $0x1c] sm:$0xf]  ;;  %v12948_v2 = vor.u32 %v13785_v27, %v12947_v3  ;;  %v13781_v18 = vld [vmem:[#allocation5 + $0x294] sm:$0xf] }
 0x3f1   : > { %v12949_v25 = vld [vmem:[#allocation5 + $0x2b4] sm:$0xf0]  ;;  %6824 = vst [vmem:[#allocation5 + $0x2f8] sm:$0xf] %v6650_v61  ;;  %v7176_v45 = vld [vmem:[#allocation3 + $0x20] sm:$0x1] }
 0x3f2   : > { %7096 = vst [vmem:[#allocation5 + $0x2fc] sm:$0xf] %v7007_v1  ;;  %v12952_v12 = vor.u32 %v13781_v18, %v12949_v25  ;;  %v7244_v17 = vshrl.u32 %v7174_v6, 16  ;;  %v7247_v21 = vshll.u32 %v7174_v6, 16  ;;  %v12631_v35 = vld [vmem:[#allocation5 + $0x10] sm:$0xf]  ;;  %v16064_v33 = vpop.f32.mrf.mxu1  ;;  %v10630_v42 = vpop.f32.mrf.mxu3 }
 0x3f3   : > { %10667 = vmatmul.bf16.gmra.mxu3 %v12944_v20  ;;  %v13705_v34 = vld [vmem:[#allocation5 + $0x30] sm:$0xf0]  ;;  %7159 = vst [vmem:[#allocation5 + $0x2dc] sm:$0xf] %v7127_v40  ;;  %v7253_v10 = vshll.u32 %v7175_v5, 16  ;;  %v7257_v39 = vshrl.u32 %v7175_v5, 16  ;;  %v10631_v40 = vadd.f32 %v10630_v42, %v10542_v55  ;;  %v16066_v3 = vpop.f32.mrf.mxu2 }
 0x3f4   : > { %10756 = vmatmul.bf16.gmra.mxu0 %v12948_v2  ;;  %7160 = vst [vmem:[#allocation5 + $0x300] sm:$0xf] %v7128_v7  ;;  %v12632_v62 = vor.u32 %v13705_v34, %v12631_v35  ;;  %v7246_v51 = vrot.slane %v7244_v17, 4  ;;  %v7249_v32 = vrot.slane %v7247_v21, 5  ;;  %v6372_v59 = vld [vmem:[#allocation3 + $0x84] sm:$0xf] }
 0x3f5   : > { %10845 = vmatmul.bf16.gmra.mxu1 %v12952_v12  ;;  %v6373_v56 = vld [vmem:[#allocation3 + $0x88] sm:$0xf]  ;;  %v7255_v27 = vrot.slane %v7253_v10, 5  ;;  %v7259_v41 = vrot.slane %v7257_v39, 4  ;;  %v7263_v36 = vshll.u32 %v7176_v45, 16  ;;  %v6652_v15 = vshrl.u32 %v6372_v59, 16 }
 0x3f6   : > { %v13889_v9 = vld [vmem:[#allocation11 + $0x170] sm:$0xff]  ;;  %v7250_v4 = vor.u32 %v7249_v32, %v7246_v51  ;;  %v6655_v61 = vshll.u32 %v6372_v59, 16  ;;  %v16068_v7 = vadd.f32 %v10719_v49, %v10631_v40  ;;  %v6661_v25 = vshll.u32 %v6373_v56, 16  ;;  %v6868_v12 = vld [vmem:[#allocation3 + $0x84] sm:$0xe] }
 0x3f7   : > { %v7260_v6 = vor.u32 %v7259_v41, %v7255_v27  ;;  %v6374_v20 = vld [vmem:[#allocation3 + $0x8c] sm:$0x1]  ;;  %v6665_v1 = vshrl.u32 %v6373_v56, 16  ;;  %10971 = vmatpush.bf16.msra.mxu3 %v13889_v9  ;;  %v6654_v2 = vrot.slane %v6652_v15, 4  ;;  %v7265_v17 = vrot.slane %v7263_v36, 5 }
 0x3f8   : > { %10889 = vmatmul.bf16.vlgmr.msrb.gmra.mxu2 %v12632_v62  ;;  %v7251_v5 = vrot.slane %v7250_v4, 4  ;;  %v6657_v18 = vrot.slane %v6655_v61, 5  ;;  %v6663_v21 = vrot.slane %v6661_v25, 5  ;;  %v6671_v49 = vshll.u32 %v6374_v20, 16  ;;  %v6869_v10 = vld [vmem:[#allocation3 + $0x88] sm:$0xf] }
 0x3f9   : > { %v7261_v34 = vrot.slane %v7260_v6, 4  ;;  %v6667_v45 = vrot.slane %v6665_v1, 4  ;;  %v12977_v39 = vld [vmem:[#allocation5 + $0x2f4] sm:$0xf0]  ;;  %v6870_v51 = vld [vmem:[#allocation3 + $0x8c] sm:$0x1]  ;;  %v10722_v56 = vpop.f32.mrf.mxu0 }
 0x3fa   : > { %v7256_v55 = vsel %vm14518_vm14, %v7251_v5, %v7255_v27  ;;  %v6658_v35 = vor.u32 %v6657_v18, %v6654_v2  ;;  %v12480_v32 = vrot.slane %v6868_v12, 9  ;;  %v7010_v59 = vrot.slane %v6869_v10, 5  ;;  %v13794_v40 = vld [vmem:[#allocation5 + $0x2f8] sm:$0xf0]  ;;  %v16074_v4 = vpop.f32.mrf.mxu1  ;;  %v13789_v27 = vld [vmem:[#allocation5 + $0x2d4] sm:$0xf] }
 0x3fb   : > { %v7266_v42 = vsel %vm14518_vm14, %v7261_v34, %v7265_v17  ;;  %7637 = vst [vmem:[#allocation5 + $0x58] sm:$0xf] %v7256_v55  ;;  %v6668_v62 = vor.u32 %v6667_v45, %v6663_v21  ;;  %v12985_v41 = vld [vmem:[#allocation5 + $0x2fc] sm:$0xf0]  ;;  %v6673_v9 = vrot.slane %v6671_v49, 5  ;;  %v16076_v15 = vpop.f32.mrf.mxu2  ;;  %v7013_v25 = vrot.slane %v6870_v51, 5  ;;  %v10633_v55 = vpop.f32.mrf.mxu3 }
 0x3fc   : > { %7638 = vst [vmem:[#allocation5 + $0x7c] sm:$0xf] %v7266_v42  ;;  %v6659_v36 = vrot.slane %v6658_v35, 4  ;;  %v7011_v6 = vsel %vm14485_vm12, %v12480_v32, %v7010_v59  ;;  %v7012_v20 = vrot.slane %v7010_v59, 4  ;;  %v7129_v1 = vld [vmem:[#allocation3 + $0x90] sm:$0xf]  ;;  %v10545_v5 = vadd.f32 %v15843_v57, %v15559_v31 }
 0x3fd   : > { %17111 = vst [vmem:[#allocation34_spill] sm:$0xff] %v16074_v4  ;;  %v6669_v61 = vrot.slane %v6668_v62, 4  ;;  %v12983_v2 = vld [vmem:[#allocation5 + $0x2d8] sm:$0xf]  ;;  %v13790_v18 = vld [vmem:[#allocation5 + $0x2dc] sm:$0xf]  ;;  %v12980_v57 = vor.u32 %v13789_v27, %v12977_v39 }
 0x3fe   : > { %v6664_v12 = vsel %vm14518_vm14, %v6659_v36, %v6663_v21  ;;  %7097 = vst [vmem:[#allocation5 + $0x320] sm:$0xf] %v7011_v6  ;;  %v7130_v34 = vld [vmem:[#allocation3 + $0x94] sm:$0xf]  ;;  %v7177_v17 = vld [vmem:[#allocation3 + $0x24] sm:$0xf]  ;;  %v7014_v49 = vsel %vm14485_vm12, %v7012_v20, %v7013_v25  ;;  %v10634_v62 = vadd.f32 %v10633_v55, %v10545_v5  ;;  %v12984_v59 = vor.u32 %v13794_v40, %v12983_v2 }
 0x3ff   : > { %v7178_v45 = vld [vmem:[#allocation3 + $0x28] sm:$0xf]  ;;  %v6674_v35 = vsel %vm14518_vm14, %v6669_v61, %v6673_v9  ;;  %6825 = vst [vmem:[#allocation5 + $0x31c] sm:$0xf] %v6664_v12  ;;  %v7179_v10 = vld [vmem:[#allocation3 + $0x2c] sm:$0x1]  ;;  %v12988_v36 = vor.u32 %v13790_v18, %v12985_v41  ;;  %v10547_v40 = vadd.f32 %v15859_v29, %v15569_v13 }
 0x400   : > { %v7268_v42 = vshrl.u32 %v7177_v17, 16  ;;  %v7271_v31 = vshll.u32 %v7177_v17, 16  ;;  %6826 = vst [vmem:[#allocation5 + $0x340] sm:$0xf] %v6674_v35  ;;  %v7277_v51 = vshll.u32 %v7178_v45, 16  ;;  %v7281_v21 = vshrl.u32 %v7178_v45, 16 }
 0x401   : > { %v13913_v32 = vld [vmem:[#allocation11 + $0x230] sm:$0xff]  ;;  %7098 = vst [vmem:[#allocation5 + $0x344] sm:$0xf] %v7014_v49  ;;  %v16088_v9 = vadd.f32 %v10722_v56, %v10634_v62  ;;  %v7287_v25 = vshll.u32 %v7179_v10, 16  ;;  %v10724_v41 = vpop.f32.mrf.mxu0  ;;  %v6375_v56 = vld [vmem:[#allocation3 + $0x90] sm:$0xf] }
 0x402   : > { %v7270_v6 = vrot.slane %v7268_v42, 4  ;;  %v7273_v8 = vrot.slane %v7271_v31, 5  ;;  %v13897_v4 = vld [vmem:[#allocation11 + $0x1b0] sm:$0xff]  ;;  %7161 = vst [vmem:[#allocation5 + $0x324] sm:$0xf] %v7129_v1  ;;  %v7279_v61 = vrot.slane %v7277_v51, 5  ;;  %11238 = vmatpush.bf16.msra.mxu2 %v13913_v32  ;;  %v16092_v17 = vpop.f32.mrf.mxu1 }
 0x403   : > { %10672 = vmatmul.bf16.gmra.mxu3 %v12980_v57  ;;  %v7283_v20 = vrot.slane %v7281_v21, 4  ;;  %v12667_v39 = vld [vmem:[#allocation5 + $0x58] sm:$0xf]  ;;  %v13714_v27 = vld [vmem:[#allocation5 + $0x78] sm:$0xf0]  ;;  %11060 = vmatpush.bf16.msra.mxu0 %v13897_v4  ;;  %v6676_v55 = vshrl.u32 %v6375_v56, 16  ;;  %v10635_v13 = vpop.f32.mrf.mxu3 }
 0x404   : > { %10761 = vmatmul.bf16.gmra.mxu0 %v12984_v59  ;;  %7162 = vst [vmem:[#allocation5 + $0x348] sm:$0xf] %v7130_v34  ;;  %v7274_v5 = vor.u32 %v7273_v8, %v7270_v6  ;;  %v12668_v2 = vor.u32 %v13714_v27, %v12667_v39  ;;  %v6376_v12 = vld [vmem:[#allocation3 + $0x94] sm:$0xf]  ;;  %v6377_v1 = vld [vmem:[#allocation3 + $0x98] sm:$0x1]  ;;  %v16094_v29 = vpop.f32.mrf.mxu2  ;;  %v10636_v21 = vadd.f32 %v10635_v13, %v10547_v40 }
 0x405   : > { %10850 = vmatmul.bf16.gmra.mxu1 %v12988_v36  ;;  %v7284_v18 = vor.u32 %v7283_v20, %v7279_v61  ;;  %v6679_v35 = vshll.u32 %v6375_v56, 16  ;;  %v6685_v49 = vshll.u32 %v6376_v12, 16  ;;  %v7289_v34 = vrot.slane %v7287_v25, 5  ;;  %v13905_v31 = vld [vmem:[#allocation11 + $0x1f0] sm:$0xff]  ;;  %v6871_v6 = vld [vmem:[#allocation3 + $0x90] sm:$0xe] }
 0x406   : > { %v7275_v45 = vrot.slane %v7274_v5, 4  ;;  %v6689_v8 = vshrl.u32 %v6376_v12, 16  ;;  %v6695_v42 = vshll.u32 %v6377_v1, 16  ;;  %v6678_v57 = vrot.slane %v6676_v55, 4  ;;  %11149 = vmatpush.bf16.msra.mxu1 %v13905_v31  ;;  %v6872_v25 = vld [vmem:[#allocation3 + $0x94] sm:$0xf] }
 0x407   : > { %v7285_v10 = vrot.slane %v7284_v18, 4  ;;  %v6681_v62 = vrot.slane %v6679_v35, 5  ;;  %v6687_v51 = vrot.slane %v6685_v49, 5  ;;  %v16100_v20 = vadd.f32 %v10724_v41, %v10636_v21  ;;  %v6873_v39 = vld [vmem:[#allocation3 + $0x98] sm:$0x1] }
 0x408   : > { %10894 = vmatmul.bf16.gmra.mxu2 %v12668_v2  ;;  %v7280_v4 = vsel %vm14518_vm14, %v7275_v45, %v7279_v61  ;;  %v6691_v36 = vrot.slane %v6689_v8, 4  ;;  %v13013_v27 = vld [vmem:[#allocation5 + $0x33c] sm:$0xf0]  ;;  %v6697_v2 = vrot.slane %v6695_v42, 5  ;;  %v7131_v18 = vld [vmem:[#allocation3 + $0x9c] sm:$0xf]  ;;  %v10550_v35 = vadd.f32 %v15875_v63, %v15587_v44 }
 0x409   : > { %v7290_v32 = vsel %vm14518_vm14, %v7285_v10, %v7289_v34  ;;  %7639 = vst [vmem:[#allocation5 + $0xa0] sm:$0xf] %v7280_v4  ;;  %v6682_v59 = vor.u32 %v6681_v62, %v6678_v57  ;;  %v7132_v56 = vld [vmem:[#allocation3 + $0xa0] sm:$0xf]  ;;  %v10727_v40 = vpop.f32.mrf.mxu0  ;;  %v13803_v12 = vld [vmem:[#allocation5 + $0x340] sm:$0xf0] }
 0x40a   : > { %7640 = vst [vmem:[#allocation5 + $0xc4] sm:$0xf] %v7290_v32  ;;  %v6692_v61 = vor.u32 %v6691_v36, %v6687_v51  ;;  %v12481_v1 = vrot.slane %v6871_v6, 9  ;;  %v7017_v45 = vrot.slane %v6872_v25, 5  ;;  %v7180_v55 = vld [vmem:[#allocation3 + $0x30] sm:$0xf]  ;;  %v16104_v49 = vpop.f32.mrf.mxu1 }
 0x40b   : > { %v6683_v5 = vrot.slane %v6682_v59, 4  ;;  %7163 = vst [vmem:[#allocation5 + $0x36c] sm:$0xf] %v7131_v18  ;;  %v13798_v41 = vld [vmem:[#allocation5 + $0x31c] sm:$0xf]  ;;  %v7292_v42 = vshrl.u32 %v7180_v55, 16  ;;  %v10638_v63 = vpop.f32.mrf.mxu3 }
 0x40c   : > { %17112 = vst [vmem:[#allocation36_spill] sm:$0xff] %v16104_v49  ;;  %v6693_v34 = vrot.slane %v6692_v61, 4  ;;  %v7181_v8 = vld [vmem:[#allocation3 + $0x34] sm:$0xf]  ;;  %v13019_v31 = vld [vmem:[#allocation5 + $0x320] sm:$0xf]  ;;  %v7018_v13 = vsel %vm14485_vm12, %v12481_v1, %v7017_v45  ;;  %v16110_v32 = vpop.f32.mrf.mxu2  ;;  %v13016_v6 = vor.u32 %v13798_v41, %v13013_v27  ;;  %v10639_v25 = vadd.f32 %v10638_v63, %v10550_v35 }
 0x40d   : > { %v6688_v10 = vsel %vm14518_vm14, %v6683_v5, %v6687_v51  ;;  %7164 = vst [vmem:[#allocation5 + $0x390] sm:$0xf] %v7132_v56  ;;  %v7019_v4 = vrot.slane %v7017_v45, 4  ;;  %v7020_v57 = vrot.slane %v6873_v39, 5  ;;  %v7295_v62 = vshll.u32 %v7180_v55, 16 }
 0x40e   : > { %6827 = vst [vmem:[#allocation5 + $0x364] sm:$0xf] %v6688_v10  ;;  %v13799_v21 = vld [vmem:[#allocation5 + $0x324] sm:$0xf]  ;;  %v13021_v44 = vld [vmem:[#allocation5 + $0x344] sm:$0xf0]  ;;  %v6698_v51 = vsel %vm14518_vm14, %v6693_v34, %v6697_v2  ;;  %v13020_v18 = vor.u32 %v13803_v12, %v13019_v31  ;;  %v16116_v10 = vadd.f32 %v10727_v40, %v10639_v25 }
 0x40f   : > { %7099 = vst [vmem:[#allocation5 + $0x368] sm:$0xf] %v7018_v13  ;;  %v7294_v59 = vrot.slane %v7292_v42, 4  ;;  %v7301_v36 = vshll.u32 %v7181_v8, 16  ;;  %v7021_v5 = vsel %vm14485_vm12, %v7019_v4, %v7020_v57  ;;  %v7182_v61 = vld [vmem:[#allocation3 + $0x38] sm:$0x1]  ;;  %v13024_v55 = vor.u32 %v13799_v21, %v13021_v44 }
 0x410   : > { %6828 = vst [vmem:[#allocation5 + $0x388] sm:$0xf] %v6698_v51  ;;  %v7297_v39 = vrot.slane %v7295_v62, 5  ;;  %v7305_v45 = vshrl.u32 %v7181_v8, 16  ;;  %v6378_v34 = vld [vmem:[#allocation3 + $0x9c] sm:$0xf] }
 0x411   : > { %v13723_v56 = vld [vmem:[#allocation5 + $0xc0] sm:$0xf0]  ;;  %7100 = vst [vmem:[#allocation5 + $0x38c] sm:$0xf] %v7021_v5  ;;  %v7303_v1 = vrot.slane %v7301_v36, 5  ;;  %v7311_v41 = vshll.u32 %v7182_v61, 16  ;;  %v10729_v57 = vpop.f32.mrf.mxu0  ;;  %v10552_v36 = vadd.f32 %v15892_v37, %v15595_v16 }
 0x412   : > { %17113 = vst [vmem:[#allocation37_spill] sm:$0xff] %v16116_v10  ;;  %v7298_v2 = vor.u32 %v7297_v39, %v7294_v59  ;;  %v6379_v42 = vld [vmem:[#allocation3 + $0xa0] sm:$0xf]  ;;  %v6380_v27 = vld [vmem:[#allocation3 + $0xa4] sm:$0x1]  ;;  %v7307_v35 = vrot.slane %v7305_v45, 4 }
 0x413   : > { %10677 = vmatmul.bf16.gmra.mxu3 %v13016_v6  ;;  %v6700_v13 = vshrl.u32 %v6378_v34, 16  ;;  %v6703_v4 = vshll.u32 %v6378_v34, 16  ;;  %v12703_v12 = vld [vmem:[#allocation5 + $0xa0] sm:$0xf]  ;;  %v6709_v62 = vshll.u32 %v6379_v42, 16  ;;  %v6713_v63 = vshrl.u32 %v6379_v42, 16  ;;  %v16122_v6 = vpop.f32.mrf.mxu1  ;;  %v10640_v45 = vpop.f32.mrf.mxu3 }
 0x414   : > { %10766 = vmatmul.bf16.gmra.mxu0 %v13020_v18  ;;  %v7299_v31 = vrot.slane %v7298_v2, 4  ;;  %v6719_v8 = vshll.u32 %v6380_v27, 16  ;;  %v16118_v51 = vld [vmem:[#allocation3 + $0x10] sm:$0xf]  ;;  %v12704_v40 = vor.u32 %v13723_v56, %v12703_v12  ;;  %v7308_v21 = vor.u32 %v7307_v35, %v7303_v1  ;;  %17114 = vst [vmem:[#allocation39_spill] sm:$0xff] %v16122_v6  ;;  %v13888_v18 = vld [vmem:[#allocation11 + $0x168] sm:$0xff] }
 0x415   : > { %10855 = vmatmul.bf16.gmra.mxu1 %v13024_v55  ;;  %v6702_v44 = vrot.slane %v6700_v13, 4  ;;  %v6705_v59 = vrot.slane %v6703_v4, 5  ;;  %v6711_v5 = vrot.slane %v6709_v62, 5  ;;  %v6715_v61 = vrot.slane %v6713_v63, 4  ;;  %v6874_v39 = vld [vmem:[#allocation3 + $0x9c] sm:$0xe]  ;;  %v16126_v55 = vpop.f32.mrf.mxu2  ;;  %10972 = vmatpush.bf16.msra.mxu3 %v13888_v18 }
 0x416   : > { %v7304_v25 = vsel %vm14518_vm14, %v7299_v31, %v7303_v1  ;;  %v7309_v56 = vrot.slane %v7308_v21, 4  ;;  %v7313_v2 = vrot.slane %v7311_v41, 5  ;;  %v16988_v42 = vrot.slane %v16118_v51, 5  ;;  %v6875_v35 = vld [vmem:[#allocation3 + $0xa0] sm:$0xf] }
 0x417   : > { %7641 = vst [vmem:[#allocation5 + $0xe8] sm:$0xf] %v7304_v25  ;;  %v6706_v34 = vor.u32 %v6705_v59, %v6702_v44  ;;  %v10641_v16 = vadd.f32 %v10640_v45, %v10552_v36  ;;  %v6716_v37 = vor.u32 %v6715_v61, %v6711_v5  ;;  %v6721_v27 = vrot.slane %v6719_v8, 5  ;;  %v6876_v13 = vld [vmem:[#allocation3 + $0xa4] sm:$0x1] }
 0x418   : > { %10899 = vmatmul.bf16.gmra.mxu2 %v12704_v40  ;;  %v7314_v1 = vsel %vm14518_vm14, %v7309_v56, %v7313_v2  ;;  %v12482_v12 = vrot.slane %v6874_v39, 9  ;;  %v7024_v31 = vrot.slane %v6875_v35, 5  ;;  %v7133_v62 = vld [vmem:[#allocation3 + $0xa8] sm:$0xf]  ;;  %v16131_v63 = vld [vmem:[#allocation3 + $0x18] sm:$0xf] }
 0x419   : > { %v6707_v4 = vrot.slane %v6706_v34, 4  ;;  %v16133_v41 = vadd.f32 %v10729_v57, %v10641_v16  ;;  %7642 = vst [vmem:[#allocation5 + $0x10c] sm:$0xf] %v7314_v1  ;;  %v6717_v40 = vrot.slane %v6716_v37, 4  ;;  %v7027_v21 = vrot.slane %v6876_v13, 5 }
 0x41a   : > { %v7183_v44 = vld [vmem:[#allocation3 + $0x3c] sm:$0xf]  ;;  %v13049_v59 = vld [vmem:[#allocation5 + $0x384] sm:$0xf0]  ;;  %v7025_v36 = vsel %vm14485_vm12, %v12482_v12, %v7024_v31  ;;  %v7026_v25 = vrot.slane %v7024_v31, 4 }
 0x41b   : > { %17115 = vst [vmem:[#allocation35_spill] sm:$0xff] %v16133_v41  ;;  %v6712_v8 = vsel %vm14518_vm14, %v6707_v4, %v6711_v5  ;;  %v7184_v61 = vld [vmem:[#allocation3 + $0x40] sm:$0xf]  ;;  %v7316_v39 = vshrl.u32 %v7183_v44, 16  ;;  %v13812_v18 = vld [vmem:[#allocation5 + $0x388] sm:$0xf0]  ;;  %v6722_v57 = vsel %vm14518_vm14, %v6717_v40, %v6721_v27  ;;  %v10732_v16 = vpop.f32.mrf.mxu0 }
 0x41c   : > { %7165 = vst [vmem:[#allocation5 + $0x3b4] sm:$0xf] %v7133_v62  ;;  %v13057_v45 = vld [vmem:[#allocation5 + $0x38c] sm:$0xf0]  ;;  %v7185_v56 = vld [vmem:[#allocation3 + $0x44] sm:$0x1]  ;;  %v7028_v5 = vsel %vm14485_vm12, %v7026_v25, %v7027_v21  ;;  %v16150_v21 = vpop.f32.mrf.mxu1 }
 0x41d   : > { %6829 = vst [vmem:[#allocation5 + $0x3ac] sm:$0xf] %v6712_v8  ;;  %v7319_v2 = vshll.u32 %v7183_v44, 16  ;;  %v7325_v34 = vshll.u32 %v7184_v61, 16  ;;  %v13807_v37 = vld [vmem:[#allocation5 + $0x364] sm:$0xf]  ;;  %v16148_v8 = vpop.f32.mrf.mxu2 }
 0x41e   : > { %6830 = vst [vmem:[#allocation5 + $0x3d0] sm:$0xf] %v6722_v57  ;;  %v7134_v35 = vld [vmem:[#allocation3 + $0xac] sm:$0xf]  ;;  %v7318_v13 = vrot.slane %v7316_v39, 4  ;;  %v7329_v1 = vshrl.u32 %v7184_v61, 16  ;;  %v13052_v25 = vor.u32 %v13807_v37, %v13049_v59 }
 0x41f   : > { %v16145_v4 = vrot.slane %v16988_v42, 4  ;;  %v13808_v12 = vld [vmem:[#allocation5 + $0x36c] sm:$0xf]  ;;  %7101 = vst [vmem:[#allocation5 + $0x3b0] sm:$0xf] %v7025_v36  ;;  %v7321_v27 = vrot.slane %v7319_v2, 5  ;;  %v10555_v36 = vadd.f32 %v15904_v52, %v15617_v0 }
 0x420   : > { %v7327_v31 = vrot.slane %v7325_v34, 5  ;;  %v7335_v62 = vshll.u32 %v7185_v56, 16  ;;  %v13055_v44 = vld [vmem:[#allocation5 + $0x368] sm:$0xf]  ;;  %7102 = vst [vmem:[#allocation5 + $0x3d4] sm:$0xf] %v7028_v5  ;;  %v13060_v56 = vor.u32 %v13808_v12, %v13057_v45  ;;  %v10643_v49 = vpop.f32.mrf.mxu3 }
 0x421   : > { %v7331_v57 = vrot.slane %v7329_v1, 4  ;;  %17116 = vst [vmem:[#allocation45_spill] sm:$0xff] %v16150_v21  ;;  %v7322_v61 = vor.u32 %v7321_v27, %v7318_v13  ;;  %v13912_v39 = vld [vmem:[#allocation11 + $0x228] sm:$0xff]  ;;  %v6381_v6 = vld [vmem:[#allocation3 + $0xa8] sm:$0xf]  ;;  %v13056_v2 = vor.u32 %v13812_v18, %v13055_v44  ;;  %v10644_v13 = vadd.f32 %v10643_v49, %v10555_v36 }
 0x422   : > { %7166 = vst [vmem:[#allocation5 + $0x3d8] sm:$0xf] %v7134_v35  ;;  %v13896_v42 = vld [vmem:[#allocation11 + $0x1a8] sm:$0xff]  ;;  %v6382_v40 = vld [vmem:[#allocation3 + $0xac] sm:$0xf]  ;;  %v7337_v10 = vrot.slane %v7335_v62, 5  ;;  %11239 = vmatpush.bf16.msra.mxu2 %v13912_v39 }
 0x423   : > { %v7332_v34 = vor.u32 %v7331_v57, %v7327_v31  ;;  %v6383_v41 = vld [vmem:[#allocation3 + $0xb0] sm:$0x1]  ;;  %10682 = vmatmul.bf16.gmra.mxu3 %v13052_v25  ;;  %v13732_v5 = vld [vmem:[#allocation5 + $0x108] sm:$0xf0]  ;;  %v7323_v1 = vrot.slane %v7322_v61, 4  ;;  %v6724_v59 = vshrl.u32 %v6381_v6, 16  ;;  %11061 = vmatpush.bf16.msra.mxu0 %v13896_v42  ;;  %v16158_v57 = vadd.f32 %v10732_v16, %v10644_v13 }
 0x424   : > { %v6727_v37 = vshll.u32 %v6381_v6, 16  ;;  %v16154_v35 = vld [vmem:[#allocation3 + $0x1c] sm:$0xf]  ;;  %10771 = vmatmul.bf16.gmra.mxu0 %v13056_v2  ;;  %v6733_v21 = vshll.u32 %v6382_v40, 16  ;;  %v6737_v0 = vshrl.u32 %v6382_v40, 16  ;;  %v6743_v44 = vshll.u32 %v6383_v41, 16  ;;  %v10734_v6 = vpop.f32.mrf.mxu0 }
 0x425   : > { %v7333_v27 = vrot.slane %v7332_v34, 4  ;;  %10860 = vmatmul.bf16.gmra.mxu1 %v13060_v56  ;;  %v12739_v52 = vld [vmem:[#allocation5 + $0xe8] sm:$0xf]  ;;  %v7328_v18 = vsel %vm14518_vm14, %v7323_v1, %v7327_v31  ;;  %v6726_v45 = vrot.slane %v6724_v59, 4  ;;  %v8056_v40 = vshll.u32 %v16131_v63, 16 }
 0x426   : > { %v6729_v12 = vrot.slane %v6727_v37, 5  ;;  %v13904_v62 = vld [vmem:[#allocation11 + $0x1e8] sm:$0xff]  ;;  %v12740_v25 = vor.u32 %v13732_v5, %v12739_v52  ;;  %7643 = vst [vmem:[#allocation5 + $0x130] sm:$0xf] %v7328_v18  ;;  %v6735_v61 = vrot.slane %v6733_v21, 5  ;;  %v6739_v36 = vrot.slane %v6737_v0, 4  ;;  %v16164_v56 = vpop.f32.mrf.mxu2  ;;  %v16168_v0 = vpop.f32.mrf.mxu1 }
 0x427   : > { %v7338_v49 = vsel %vm14518_vm14, %v7333_v27, %v7337_v10  ;;  %11150 = vmatpush.bf16.msra.mxu1 %v13904_v62  ;;  %v7186_v42 = vld [vmem:[#allocation3 + $0x48] sm:$0xf]  ;;  %v8062_v31 = vshll.u32 %v16154_v35, 16  ;;  %v6745_v41 = vrot.slane %v6743_v44, 5  ;;  %v6878_v2 = vld [vmem:[#allocation3 + $0xac] sm:$0xf]  ;;  %v10557_v59 = vadd.f32 %v15928_v26, %v15624_v58 }
 0x428   : > { %7644 = vst [vmem:[#allocation5 + $0x154] sm:$0xf] %v7338_v49  ;;  %v6730_v39 = vor.u32 %v6729_v12, %v6726_v45  ;;  %10904 = vmatmul.bf16.gmra.mxu2 %v12740_v25  ;;  %v6877_v16 = vld [vmem:[#allocation3 + $0xa8] sm:$0xe]  ;;  %v6740_v5 = vor.u32 %v6739_v36, %v6735_v61  ;;  %v6879_v10 = vld [vmem:[#allocation3 + $0xb0] sm:$0x1]  ;;  %v10645_v52 = vpop.f32.mrf.mxu3 }
 0x429   : > { %v12483_v1 = vrot.slane %v6877_v16, 9  ;;  %v7135_v21 = vld [vmem:[#allocation3 + $0xb4] sm:$0xf]  ;;  %v7031_v37 = vrot.slane %v6878_v2, 5  ;;  %v7034_v13 = vrot.slane %v6879_v10, 5  ;;  %17117 = vst [vmem:[#allocation46_spill] sm:$0xff] %v16168_v0  ;;  %v10646_v62 = vadd.f32 %v10645_v52, %v10557_v59 }
 0x42a   : > { %v6731_v34 = vrot.slane %v6730_v39, 4  ;;  %v7136_v27 = vld [vmem:[#allocation3 + $0xb8] sm:$0xf]  ;;  %7167 = vst [vmem:[#allocation5 + $0x3fc] sm:$0xf] %v7135_v21  ;;  %v6741_v45 = vrot.slane %v6740_v5, 4 }
 0x42b   : > { %7168 = vst [vmem:[#allocation5 + $0x420] sm:$0xf] %v7136_v27  ;;  %v7187_v12 = vld [vmem:[#allocation3 + $0x4c] sm:$0xf]  ;;  %v7340_v44 = vshrl.u32 %v7186_v42, 16  ;;  %v7032_v25 = vsel %vm14485_vm12, %v12483_v1, %v7031_v37  ;;  %v7033_v58 = vrot.slane %v7031_v37, 4  ;;  %v16177_v2 = vadd.f32 %v10734_v6, %v10646_v62 }
 0x42c   : > { %v6736_v18 = vsel %vm14518_vm14, %v6731_v34, %v6735_v61  ;;  %v7188_v26 = vld [vmem:[#allocation3 + $0x50] sm:$0x1]  ;;  %v7343_v49 = vshll.u32 %v7186_v42, 16  ;;  %v8066_v39 = vshrl.u32 %v16154_v35, 16  ;;  %v6746_v36 = vsel %vm14518_vm14, %v6741_v45, %v6745_v41  ;;  %7103 = vst [vmem:[#allocation5 + $0x3f8] sm:$0xf] %v7032_v25  ;;  %v10737_v34 = vpop.f32.mrf.mxu0 }
 0x42d   : > { %6831 = vst [vmem:[#allocation5 + $0x3f4] sm:$0xf] %v6736_v18  ;;  %v7342_v16 = vrot.slane %v7340_v44, 4  ;;  %v7349_v61 = vshll.u32 %v7187_v12, 16  ;;  %v13085_v5 = vld [vmem:[#allocation5 + $0x3cc] sm:$0xf0]  ;;  %v7035_v10 = vsel %vm14485_vm12, %v7033_v58, %v7034_v13 }
 0x42e   : > { %17118 = vst [vmem:[#allocation47_spill] sm:$0xff] %v16177_v2  ;;  %v7345_v1 = vrot.slane %v7343_v49, 5  ;;  %v7353_v21 = vshrl.u32 %v7187_v12, 16  ;;  %v13821_v59 = vld [vmem:[#allocation5 + $0x3d0] sm:$0xf0]  ;;  %v7359_v35 = vshll.u32 %v7188_v26, 16  ;;  %v16189_v12 = vpop.f32.mrf.mxu2 }
 0x42f   : > { %6832 = vst [vmem:[#allocation5 + $0x418] sm:$0xf] %v6746_v36  ;;  %v7351_v42 = vrot.slane %v7349_v61, 5  ;;  %v17119_v37 = vshrl.u32 %v16131_v63, 16  ;;  %v13816_v27 = vld [vmem:[#allocation5 + $0x3ac] sm:$0xf]  ;;  %v10560_v63 = vadd.f32 %v15945_v60, %v15646_v50 }
 0x430   : > { %7104 = vst [vmem:[#allocation5 + $0x41c] sm:$0xf] %v7035_v10  ;;  %v13817_v52 = vld [vmem:[#allocation5 + $0x3b4] sm:$0xf]  ;;  %v13093_v6 = vld [vmem:[#allocation5 + $0x3d4] sm:$0xf0]  ;;  %v7346_v18 = vor.u32 %v7345_v1, %v7342_v16  ;;  %v13088_v13 = vor.u32 %v13816_v27, %v13085_v5 }
 0x431   : > { %v16183_v41 = vrot.slane %v17119_v37, 4  ;;  %v7355_v45 = vrot.slane %v7353_v21, 4  ;;  %v16185_v44 = vrot.slane %v8056_v40, 5  ;;  %v16187_v62 = vrot.slane %v8062_v31, 5  ;;  %v13091_v25 = vld [vmem:[#allocation5 + $0x3b0] sm:$0xf]  ;;  %v10648_v31 = vpop.f32.mrf.mxu3 }
 0x432   : > { %v13887_v58 = vld [vmem:[#allocation11 + $0x160] sm:$0xff]  ;;  %v13092_v26 = vor.u32 %v13821_v59, %v13091_v25  ;;  %v13741_v36 = vld [vmem:[#allocation5 + $0x150] sm:$0xf0]  ;;  %v7347_v61 = vrot.slane %v7346_v18, 4  ;;  %v6384_v16 = vld [vmem:[#allocation3 + $0xb4] sm:$0xf]  ;;  %v13096_v40 = vor.u32 %v13817_v52, %v13093_v6  ;;  %v10649_v0 = vadd.f32 %v10648_v31, %v10560_v63 }
 0x433   : > { %v13895_v49 = vld [vmem:[#allocation11 + $0x1a0] sm:$0xff]  ;;  %v7356_v10 = vor.u32 %v7355_v45, %v7351_v42  ;;  %v16193_v1 = vrot.slane %v8066_v39, 4  ;;  %10687 = vmatmul.bf16.gmra.mxu3 %v13088_v13  ;;  %v7361_v5 = vrot.slane %v7359_v35, 5  ;;  %v16195_v27 = vld [vmem:[#allocation3 + $0x54] sm:$0xf]  ;;  %v6748_v18 = vshrl.u32 %v6384_v16, 16  ;;  %v16199_v39 = vpop.f32.mrf.mxu1 }
 0x434   : > { %v13903_v37 = vld [vmem:[#allocation11 + $0x1e0] sm:$0xff]  ;;  %11062 = vmatpush.bf16.msra.mxu0 %v13895_v49  ;;  %v12775_v2 = vld [vmem:[#allocation5 + $0x130] sm:$0xf]  ;;  %v7352_v50 = vsel %vm14518_vm14, %v7347_v61, %v7351_v42  ;;  %10973 = vmatpush.bf16.msra.mxu3 %v13887_v58  ;;  %17120 = vst [vmem:[#allocation48_spill] sm:$0xff] %v16199_v39  ;;  %v6751_v35 = vshll.u32 %v6384_v16, 16  ;;  %v16201_v13 = vadd.f32 %v10737_v34, %v10649_v0  ;;  %v13886_v63 = vld [vmem:[#allocation11 + $0x158] sm:$0xff] }
 0x435   : > { %v6385_v21 = vld [vmem:[#allocation3 + $0xb8] sm:$0xf]  ;;  %10776 = vmatmul.bf16.gmra.mxu0 %v13092_v26  ;;  %v7357_v60 = vrot.slane %v7356_v10, 4  ;;  %v6386_v59 = vld [vmem:[#allocation3 + $0xbc] sm:$0x1]  ;;  %10865 = vmatmul.bf16.gmra.mxu1 %v13096_v40  ;;  %v12776_v52 = vor.u32 %v13741_v36, %v12775_v2  ;;  %v6750_v49 = vrot.slane %v6748_v18, 4  ;;  %v10739_v26 = vpop.f32.mrf.mxu0 }
 0x436   : > { %7645 = vst [vmem:[#allocation5 + $0x178] sm:$0xf] %v7352_v50  ;;  %v6757_v6 = vshll.u32 %v6385_v21, 16  ;;  %v6880_v45 = vld [vmem:[#allocation3 + $0xb4] sm:$0xe]  ;;  %11151 = vmatpush.bf16.msra.mxu1 %v13903_v37  ;;  %v7364_v58 = vshrl.u32 %v16195_v27, 16 }
 0x437   : > { %17121 = vst [vmem:[#allocation49_spill] sm:$0xff] %v16201_v13  ;;  %v7362_v25 = vsel %vm14518_vm14, %v7357_v60, %v7361_v5  ;;  %v6881_v42 = vld [vmem:[#allocation3 + $0xb8] sm:$0xf]  ;;  %v6753_v61 = vrot.slane %v6751_v35, 5  ;;  %v6761_v2 = vshrl.u32 %v6385_v21, 16  ;;  %v13894_v36 = vld [vmem:[#allocation11 + $0x198] sm:$0xff]  ;;  %v16206_v37 = vpop.f32.mrf.mxu2  ;;  %v10562_v21 = vadd.f32 %v15966_v47, %v15655_v43 }
 0x438   : > { %7646 = vst [vmem:[#allocation5 + $0x19c] sm:$0xf] %v7362_v25  ;;  %v6759_v10 = vrot.slane %v6757_v6, 5  ;;  %10909 = vmatmul.bf16.gmra.mxu2 %v12776_v52  ;;  %v6767_v16 = vshll.u32 %v6386_v59, 16  ;;  %v6882_v40 = vld [vmem:[#allocation3 + $0xbc] sm:$0x1]  ;;  %10974 = vmatpush.bf16.msra.mxu3 %v13886_v63 }
 0x439   : > { %v12484_v0 = vrot.slane %v6880_v45, 9  ;;  %v7038_v34 = vrot.slane %v6881_v42, 5  ;;  %v13902_v31 = vld [vmem:[#allocation11 + $0x1d8] sm:$0xff]  ;;  %v7190_v5 = vld [vmem:[#allocation3 + $0x58] sm:$0xf]  ;;  %v6754_v50 = vor.u32 %v6753_v61, %v6750_v49  ;;  %v6763_v60 = vrot.slane %v6761_v2, 4  ;;  %11063 = vmatpush.bf16.msra.mxu0 %v13894_v36  ;;  %v10650_v49 = vpop.f32.mrf.mxu3 }
 0x43a   : > { %v7137_v18 = vld [vmem:[#allocation3 + $0xc0] sm:$0xf]  ;;  %v7138_v39 = vld [vmem:[#allocation3 + $0xc4] sm:$0xf]  ;;  %v7367_v35 = vshll.u32 %v16195_v27, 16  ;;  %v7041_v6 = vrot.slane %v6882_v40, 5  ;;  %11152 = vmatpush.bf16.msra.mxu1 %v13902_v31  ;;  %v10651_v27 = vadd.f32 %v10650_v49, %v10562_v21 }
 0x43b   : > { %v7039_v59 = vsel %vm14485_vm12, %v12484_v0, %v7038_v34  ;;  %v7040_v52 = vrot.slane %v7038_v34, 4  ;;  %7169 = vst [vmem:[#allocation5 + $0x444] sm:$0xf] %v7137_v18  ;;  %v13885_v45 = vld [vmem:[#allocation11 + $0x150] sm:$0xff]  ;;  %v6755_v63 = vrot.slane %v6754_v50, 4  ;;  %v6764_v61 = vor.u32 %v6763_v60, %v6759_v10  ;;  %v13884_v47 = vld [vmem:[#allocation11 + $0x148] sm:$0xff] }
 0x43c   : > { %v13893_v25 = vld [vmem:[#allocation11 + $0x190] sm:$0xff]  ;;  %7105 = vst [vmem:[#allocation5 + $0x440] sm:$0xf] %v7039_v59  ;;  %v7191_v36 = vld [vmem:[#allocation3 + $0x5c] sm:$0x1]  ;;  %v6769_v13 = vrot.slane %v6767_v16, 5  ;;  %10975 = vmatpush.bf16.msra.mxu3 %v13885_v45  ;;  %v16217_v18 = vadd.f32 %v10739_v26, %v10651_v27  ;;  %v8059_v26 = vor.u32 %v16185_v44, %v16183_v41 }
 0x43d   : > { %v7667_v42 = vld [vmem:[#allocation3 + $0xc] sm:$0xe]  ;;  %v7042_v43 = vsel %vm14485_vm12, %v7040_v52, %v7041_v6  ;;  %7170 = vst [vmem:[#allocation5 + $0x468] sm:$0xf] %v7138_v39  ;;  %v7366_v40 = vrot.slane %v7364_v58, 4  ;;  %v6760_v0 = vsel %vm14518_vm14, %v6755_v63, %v6759_v10  ;;  %v6765_v34 = vrot.slane %v6764_v61, 4  ;;  %11064 = vmatpush.bf16.msra.mxu0 %v13893_v25  ;;  %v16219_v6 = vpop.f32.mrf.mxu1 }
 0x43e   : > { %v13901_v2 = vld [vmem:[#allocation11 + $0x1d0] sm:$0xff]  ;;  %7106 = vst [vmem:[#allocation5 + $0x464] sm:$0xf] %v7042_v43  ;;  %v13892_v31 = vld [vmem:[#allocation11 + $0x188] sm:$0xff]  ;;  %v7369_v50 = vrot.slane %v7367_v35, 5  ;;  %v7373_v60 = vshll.u32 %v7190_v5, 16 }
 0x43f   : > { %v13825_v21 = vld [vmem:[#allocation5 + $0x3f4] sm:$0xf]  ;;  %v13121_v16 = vld [vmem:[#allocation5 + $0x414] sm:$0xf0]  ;;  %v13129_v59 = vld [vmem:[#allocation5 + $0x41c] sm:$0xf0]  ;;  %11153 = vmatpush.bf16.msra.mxu1 %v13901_v2  ;;  %v6770_v10 = vsel %vm14518_vm14, %v6765_v34, %v6769_v13  ;;  %v10742_v27 = vpop.f32.mrf.mxu0  ;;  %v16227_v13 = vpop.f32.mrf.mxu2 }
 0x440   : > { %6833 = vst [vmem:[#allocation5 + $0x43c] sm:$0xf] %v6760_v0  ;;  %v13900_v39 = vld [vmem:[#allocation11 + $0x1c8] sm:$0xff]  ;;  %v7377_v52 = vshrl.u32 %v7190_v5, 16  ;;  %v13830_v58 = vld [vmem:[#allocation5 + $0x418] sm:$0xf0]  ;;  %v7370_v45 = vor.u32 %v7369_v50, %v7366_v40  ;;  %10976 = vmatpush.bf16.msra.mxu3 %v13884_v47  ;;  %v8069_v5 = vor.u32 %v16193_v1, %v16187_v62  ;;  %v13124_v43 = vor.u32 %v13825_v21, %v13121_v16 }
 0x441   : > { %17122 = vst [vmem:[#allocation50_spill] sm:$0xff] %v16219_v6  ;;  %v7375_v25 = vrot.slane %v7373_v60, 5  ;;  %v7669_v49 = vld [vmem:[#allocation3 + $0x14] sm:$0x1]  ;;  %v7383_v63 = vshll.u32 %v7191_v36, 16  ;;  %v12485_v61 = vrot.slane %v7667_v42, 9  ;;  %11065 = vmatpush.bf16.msra.mxu0 %v13892_v31 }
 0x442   : > { %6834 = vst [vmem:[#allocation5 + $0x460] sm:$0xf] %v6770_v10  ;;  %v7379_v35 = vrot.slane %v7377_v52, 4  ;;  %v7768_v2 = vrot.slane %v7669_v49, 5  ;;  %v13127_v0 = vld [vmem:[#allocation5 + $0x3f8] sm:$0xf] }
 0x443   : > { %v13826_v6 = vld [vmem:[#allocation5 + $0x3fc] sm:$0xf]  ;;  %v7371_v40 = vrot.slane %v7370_v45, 4  ;;  %v13128_v34 = vor.u32 %v13830_v58, %v13127_v0  ;;  %v12811_v50 = vld [vmem:[#allocation5 + $0x178] sm:$0xf]  ;;  %11154 = vmatpush.bf16.msra.mxu1 %v13900_v39  ;;  %v13883_v47 = vld [vmem:[#allocation11 + $0x140] sm:$0xff]  ;;  %10692 = vmatmul.bf16.gmra.mxu3 %v13124_v43  ;;  %v10565_v45 = vadd.f32 %v15980_v38, %v15678_v24 }
 0x444   : > { %v13750_v41 = vld [vmem:[#allocation5 + $0x198] sm:$0xf0]  ;;  %v7380_v44 = vor.u32 %v7379_v35, %v7375_v25  ;;  %v13891_v36 = vld [vmem:[#allocation11 + $0x180] sm:$0xff]  ;;  %v17123_v42 = vrot.slane %v16118_v51, 5  ;;  %v7769_v60 = vsel %vm14485_vm12, %v16145_v4, %v7768_v2  ;;  %v13132_v21 = vor.u32 %v13826_v6, %v13129_v59  ;;  %10977 = vmatpush.bf16.msra.mxu3 %v13883_v47  ;;  %v8006_v6 = vld [vmem:[#allocation3 + $0x20] sm:$0x1]  ;;  %v10653_v49 = vpop.f32.mrf.mxu3 }
 0x445   : > { %v7376_v31 = vsel %vm14518_vm14, %v7371_v40, %v7375_v25  ;;  %v13899_v16 = vld [vmem:[#allocation11 + $0x1c0] sm:$0xff]  ;;  %10781 = vmatmul.bf16.gmra.mxu0 %v13128_v34  ;;  %v7385_v10 = vrot.slane %v7383_v63, 5  ;;  %v8060_v51 = vrot.slane %v8059_v26, 4  ;;  %v12812_v4 = vor.u32 %v13750_v41, %v12811_v50  ;;  %7908 = vst [vmem:[#allocation5 + $0x38] sm:$0xf] %v7769_v60  ;;  %v16245_v43 = vpop.f32.mrf.mxu1  ;;  %v17124_v60 = vld [vmem:[#allocation21_spill] sm:$0xff] }
 0x446   : > { %v7766_v1 = vsel %vm14485_vm12, %v12485_v61, %v17123_v42  ;;  %v13911_v52 = vld [vmem:[#allocation11 + $0x220] sm:$0xff]  ;;  %v7381_v58 = vrot.slane %v7380_v44, 4  ;;  %7647 = vst [vmem:[#allocation5 + $0x1c0] sm:$0xf] %v7376_v31  ;;  %10870 = vmatmul.bf16.gmra.mxu1 %v13132_v21  ;;  %11066 = vmatpush.bf16.msra.mxu0 %v13891_v36  ;;  %v8070_v25 = vrot.slane %v8069_v5, 4  ;;  %v8072_v63 = vshll.u32 %v8006_v6, 16 }
 0x447   : > { %7907 = vst [vmem:[#allocation5 + $0x14] sm:$0xf] %v7766_v1  ;;  %v7940_v39 = vld [vmem:[#allocation3 + $0x18] sm:$0xf]  ;;  %v7941_v59 = vld [vmem:[#allocation3 + $0x1c] sm:$0xf]  ;;  %11155 = vmatpush.bf16.msra.mxu1 %v13899_v16  ;;  %11240 = vmatpush.bf16.msra.mxu2 %v13911_v52  ;;  %v8065_v26 = vsel %vm14518_vm14, %v8060_v51, %v16187_v62  ;;  %v10654_v38 = vadd.f32 %v10653_v49, %v10565_v45  ;;  %v10744_v40 = vpop.f32.mrf.mxu0 }
 0x448   : > { %v7386_v35 = vsel %vm14518_vm14, %v7381_v58, %v7385_v10  ;;  %7972 = vst [vmem:[#allocation5 + $0x18] sm:$0xf] %v7940_v39  ;;  %v7670_v24 = vld [vmem:[#allocation3 + $0x18] sm:$0xe]  ;;  %v7671_v61 = vld [vmem:[#allocation3 + $0x1c] sm:$0xf]  ;;  %10914 = vmatmul.bf16.gmra.mxu2 %v12812_v4  ;;  %v10567_v21 = vadd.f32 %v16009_v53, %v17124_v60 }
 0x449   : > { %7648 = vst [vmem:[#allocation5 + $0x1e4] sm:$0xf] %v7386_v35  ;;  %v8074_v2 = vrot.slane %v8072_v63, 5  ;;  %v7672_v5 = vld [vmem:[#allocation3 + $0x20] sm:$0x1]  ;;  %v16247_v0 = vadd.f32 %v10742_v27, %v10654_v38  ;;  %v12486_v34 = vrot.slane %v7670_v24, 9 }
 0x44a   : > { %7973 = vst [vmem:[#allocation5 + $0x3c] sm:$0xf] %v7941_v59  ;;  %v7772_v50 = vrot.slane %v7671_v61, 5  ;;  %v7942_v41 = vld [vmem:[#allocation3 + $0x24] sm:$0xf]  ;;  %v16251_v47 = vpop.f32.mrf.mxu2  ;;  %v7775_v1 = vrot.slane %v7672_v5, 5 }
 0x44b   : > { %8468 = vst [vmem:[#allocation5 + $0x1c] sm:$0xf] %v8065_v26  ;;  %v8075_v62 = vsel %vm14518_vm14, %v8070_v25, %v8074_v2  ;;  %v7943_v44 = vld [vmem:[#allocation3 + $0x28] sm:$0xf]  ;;  %v8007_v27 = vld [vmem:[#allocation3 + $0x24] sm:$0xf] }
 0x44c   : > { %7974 = vst [vmem:[#allocation5 + $0x60] sm:$0xf] %v7942_v41  ;;  %v7773_v36 = vsel %vm14485_vm12, %v12486_v34, %v7772_v50  ;;  %v7774_v42 = vrot.slane %v7772_v50, 4  ;;  %v10655_v16 = vpop.f32.mrf.mxu3  ;;  %v13157_v52 = vld [vmem:[#allocation5 + $0x45c] sm:$0xf0]  ;;  %v8077_v45 = vshrl.u32 %v8007_v27, 16 }
 0x44d   : > { %8469 = vst [vmem:[#allocation5 + $0x40] sm:$0xf] %v8075_v62  ;;  %v13165_v39 = vld [vmem:[#allocation5 + $0x464] sm:$0xf0]  ;;  %v10656_v58 = vadd.f32 %v10655_v16, %v10567_v21  ;;  %v13839_v10 = vld [vmem:[#allocation5 + $0x460] sm:$0xf0]  ;;  %v16261_v41 = vpop.f32.mrf.mxu1 }
 0x44e   : > { %7909 = vst [vmem:[#allocation5 + $0x5c] sm:$0xf] %v7773_v36  ;;  %v7776_v31 = vsel %vm14485_vm12, %v7774_v42, %v7775_v1  ;;  %v8008_v51 = vld [vmem:[#allocation3 + $0x28] sm:$0xf]  ;;  %v8080_v4 = vshll.u32 %v8007_v27, 16  ;;  %v8079_v24 = vrot.slane %v8077_v45, 4 }
 0x44f   : > { %7975 = vst [vmem:[#allocation5 + $0x84] sm:$0xf] %v7943_v44  ;;  %v13834_v59 = vld [vmem:[#allocation5 + $0x43c] sm:$0xf]  ;;  %v13163_v6 = vld [vmem:[#allocation5 + $0x440] sm:$0xf]  ;;  %v16259_v49 = vadd.f32 %v10744_v40, %v10656_v58  ;;  %v10747_v35 = vpop.f32.mrf.mxu0 }
 0x450   : > { %7910 = vst [vmem:[#allocation5 + $0x80] sm:$0xf] %v7776_v31  ;;  %v13835_v25 = vld [vmem:[#allocation5 + $0x444] sm:$0xf]  ;;  %v13160_v53 = vor.u32 %v13834_v59, %v13157_v52  ;;  %v8009_v63 = vld [vmem:[#allocation3 + $0x2c] sm:$0x1]  ;;  %v13164_v61 = vor.u32 %v13839_v10, %v13163_v6 }
 0x451   : > { %17125 = vst [vmem:[#allocation21_spill] sm:$0xff] %v16259_v49  ;;  %v13759_v26 = vld [vmem:[#allocation5 + $0x1e0] sm:$0xf0]  ;;  %v8082_v38 = vrot.slane %v8080_v4, 5  ;;  %v13168_v2 = vor.u32 %v13835_v25, %v13165_v39  ;;  %v7192_v5 = vld [vmem:[#allocation3 + $0x60] sm:$0xf] }
 0x452   : > { %v7193_v34 = vld [vmem:[#allocation3 + $0x64] sm:$0xf]  ;;  %v8086_v50 = vshll.u32 %v8008_v51, 16  ;;  %17126 = vst [vmem:[#allocation51_spill] sm:$0xff] %v16261_v41  ;;  %v16263_v62 = vpop.f32.mrf.mxu2  ;;  %v12847_v44 = vld [vmem:[#allocation5 + $0x1c0] sm:$0xf] }
 0x453   : > { %10697 = vmatmul.bf16.gmra.mxu3 %v13160_v53  ;;  %v7194_v36 = vld [vmem:[#allocation3 + $0x68] sm:$0x1]  ;;  %v7388_v40 = vshrl.u32 %v7192_v5, 16  ;;  %v7391_v42 = vshll.u32 %v7192_v5, 16  ;;  %v7397_v1 = vshll.u32 %v7193_v34, 16  ;;  %v8090_v27 = vshrl.u32 %v8008_v51, 16 }
 0x454   : > { %v7401_v60 = vshrl.u32 %v7193_v34, 16  ;;  %v7407_v21 = vshll.u32 %v7194_v36, 16  ;;  %v8083_v31 = vor.u32 %v8082_v38, %v8079_v24  ;;  %v8096_v16 = vshll.u32 %v8009_v63, 16  ;;  %v7673_v52 = vld [vmem:[#allocation3 + $0x24] sm:$0xe]  ;;  %v17127_v39 = vld [vmem:[#allocation22_spill] sm:$0xff]  ;;  %v10658_v6 = vpop.f32.mrf.mxu3 }
 0x455   : > { %10786 = vmatmul.bf16.gmra.mxu0 %v13164_v61  ;;  %v10570_v58 = vadd.f32 %v16036_v19, %v17127_v39  ;;  %v7390_v10 = vrot.slane %v7388_v40, 4  ;;  %v7393_v45 = vrot.slane %v7391_v42, 5  ;;  %v7399_v4 = vrot.slane %v7397_v1, 5  ;;  %v7674_v59 = vld [vmem:[#allocation3 + $0x28] sm:$0xf] }
 0x456   : > { %10875 = vmatmul.bf16.gmra.mxu1 %v13168_v2  ;;  %v12848_v25 = vor.u32 %v13759_v26, %v12847_v44  ;;  %v7403_v53 = vrot.slane %v7401_v60, 4  ;;  %v7409_v5 = vrot.slane %v7407_v21, 5  ;;  %v8084_v41 = vrot.slane %v8083_v31, 4  ;;  %v7675_v51 = vld [vmem:[#allocation3 + $0x2c] sm:$0x1] }
 0x457   : > { %v10659_v61 = vadd.f32 %v10658_v6, %v10570_v58  ;;  %v7394_v34 = vor.u32 %v7393_v45, %v7390_v10  ;;  %v8088_v36 = vrot.slane %v8086_v50, 5  ;;  %v8092_v24 = vrot.slane %v8090_v27, 4  ;;  %v7944_v63 = vld [vmem:[#allocation3 + $0x30] sm:$0xf]  ;;  %v7945_v38 = vld [vmem:[#allocation3 + $0x34] sm:$0xf]  ;;  %v10749_v1 = vpop.f32.mrf.mxu0 }
 0x458   : > { %10919 = vmatmul.bf16.gmra.mxu2 %v12848_v25  ;;  %v7404_v49 = vor.u32 %v7403_v53, %v7399_v4  ;;  %v8098_v19 = vrot.slane %v8096_v16, 5  ;;  %v12487_v2 = vrot.slane %v7673_v52, 9  ;;  %v7779_v40 = vrot.slane %v7674_v59, 5  ;;  %7976 = vst [vmem:[#allocation5 + $0xa8] sm:$0xf] %v7944_v63  ;;  %v17128_v6 = vld [vmem:[#allocation38_spill] sm:$0xff]  ;;  %v16283_v53 = vpop.f32.mrf.mxu1 }
 0x459   : > { %v16267_v42 = vadd.f32 %v10747_v35, %v10659_v61  ;;  %v7395_v26 = vrot.slane %v7394_v34, 4  ;;  %v8089_v44 = vsel %vm14518_vm14, %v8084_v41, %v8088_v36  ;;  %v8093_v60 = vor.u32 %v8092_v24, %v8088_v36  ;;  %7977 = vst [vmem:[#allocation5 + $0xcc] sm:$0xf] %v7945_v38  ;;  %v8010_v21 = vld [vmem:[#allocation3 + $0x30] sm:$0xf] }
 0x45a   : > { %v7405_v50 = vrot.slane %v7404_v49, 4  ;;  %8470 = vst [vmem:[#allocation5 + $0x64] sm:$0xf] %v8089_v44  ;;  %v7780_v27 = vsel %vm14485_vm12, %v12487_v2, %v7779_v40  ;;  %v7781_v31 = vrot.slane %v7779_v40, 4  ;;  %v7782_v16 = vrot.slane %v7675_v51, 5 }
 0x45b   : > { %v16273_v52 = vpop.f32.mrf.mxu2  ;;  %v7400_v35 = vsel %vm14518_vm14, %v7395_v26, %v7399_v4  ;;  %v8094_v39 = vrot.slane %v8093_v60, 4  ;;  %7911 = vst [vmem:[#allocation5 + $0xa4] sm:$0xf] %v7780_v27  ;;  %v8011_v58 = vld [vmem:[#allocation3 + $0x34] sm:$0xf]  ;;  %v8101_v10 = vshrl.u32 %v8010_v21, 16  ;;  %v10572_v25 = vadd.f32 %v16050_v54, %v17128_v6 }
 0x45c   : > { %v12633_v41 = vld [vmem:[#allocation5 + $0x34] sm:$0xf0]  ;;  %v7410_v45 = vsel %vm14518_vm14, %v7405_v50, %v7409_v5  ;;  %7649 = vst [vmem:[#allocation5 + $0x208] sm:$0xf] %v7400_v35  ;;  %v7783_v49 = vsel %vm14485_vm12, %v7781_v31, %v7782_v16  ;;  %v8104_v59 = vshll.u32 %v8010_v21, 16  ;;  %v8110_v36 = vshll.u32 %v8011_v58, 16  ;;  %v10660_v5 = vpop.f32.mrf.mxu3 }
 0x45d   : > { %17129 = vst [vmem:[#allocation22_spill] sm:$0xff] %v16283_v53  ;;  %v13701_v51 = vld [vmem:[#allocation5 + $0x14] sm:$0xf]  ;;  %v13706_v4 = vld [vmem:[#allocation5 + $0x38] sm:$0xf0]  ;;  %v8099_v61 = vsel %vm14518_vm14, %v8094_v39, %v8098_v19  ;;  %v8114_v24 = vshrl.u32 %v8011_v58, 16  ;;  %v10661_v40 = vadd.f32 %v10660_v5, %v10572_v25 }
 0x45e   : > { %7650 = vst [vmem:[#allocation5 + $0x22c] sm:$0xf] %v7410_v45  ;;  %v8012_v34 = vld [vmem:[#allocation3 + $0x38] sm:$0x1]  ;;  %v8103_v63 = vrot.slane %v8101_v10, 4  ;;  %v8106_v38 = vrot.slane %v8104_v59, 5  ;;  %v12636_v60 = vor.u32 %v13701_v51, %v12633_v41 }
 0x45f   : > { %8471 = vst [vmem:[#allocation5 + $0x88] sm:$0xf] %v8099_v61  ;;  %v7676_v2 = vld [vmem:[#allocation3 + $0x30] sm:$0xe]  ;;  %v12641_v26 = vld [vmem:[#allocation5 + $0x3c] sm:$0xf0]  ;;  %v16287_v27 = vadd.f32 %v10749_v1, %v10661_v40 }
 0x460   : > { %7912 = vst [vmem:[#allocation5 + $0xc8] sm:$0xf] %v7783_v49  ;;  %v8112_v54 = vrot.slane %v8110_v36, 5  ;;  %v8116_v44 = vrot.slane %v8114_v24, 4  ;;  %v12639_v21 = vld [vmem:[#allocation5 + $0x18] sm:$0xf]  ;;  %v8107_v25 = vor.u32 %v8106_v38, %v8103_v63 }
 0x461   : > { %v7677_v50 = vld [vmem:[#allocation3 + $0x34] sm:$0xf]  ;;  %17130 = vst [vmem:[#allocation38_spill] sm:$0xff] %v16287_v27  ;;  %v10752_v31 = vpop.f32.mrf.mxu0  ;;  %v8120_v16 = vshll.u32 %v8012_v34, 16  ;;  %v12488_v35 = vrot.slane %v7676_v2, 9  ;;  %v12640_v58 = vor.u32 %v13706_v4, %v12639_v21  ;;  %v17131_v24 = vld [vmem:[#allocation40_spill] sm:$0xff] }
 0x462   : > { %v13702_v19 = vld [vmem:[#allocation5 + $0x1c] sm:$0xf]  ;;  %v7786_v39 = vrot.slane %v7677_v50, 5  ;;  %v7195_v10 = vld [vmem:[#allocation3 + $0x6c] sm:$0xf]  ;;  %v8117_v61 = vor.u32 %v8116_v44, %v8112_v54  ;;  %v10575_v5 = vadd.f32 %v16066_v3, %v17131_v24 }
 0x463   : > { %v12644_v45 = vor.u32 %v13702_v19, %v12641_v26  ;;  %v7196_v59 = vld [vmem:[#allocation3 + $0x70] sm:$0xf]  ;;  %v7197_v6 = vld [vmem:[#allocation3 + $0x74] sm:$0x1]  ;;  %10978 = vmatmul.bf16.vlgmr.msra.gmra.mxu3 %v12636_v60  ;;  %v16289_v49 = vpop.f32.mrf.mxu2  ;;  %v7412_v41 = vshrl.u32 %v7195_v10, 16  ;;  %v7415_v51 = vshll.u32 %v7195_v10, 16 }
 0x464   : > { %v7421_v36 = vshll.u32 %v7196_v59, 16  ;;  %v7425_v1 = vshrl.u32 %v7196_v59, 16  ;;  %v13910_v2 = vld [vmem:[#allocation11 + $0x218] sm:$0xff]  ;;  %v7678_v4 = vld [vmem:[#allocation3 + $0x38] sm:$0x1]  ;;  %v7787_v40 = vsel %vm14485_vm12, %v12488_v35, %v7786_v39  ;;  %v7431_v60 = vshll.u32 %v7197_v6, 16  ;;  %v16295_v59 = vpop.f32.mrf.mxu1 }
 0x465   : > { %11067 = vmatmul.bf16.vlgmr.msra.gmra.mxu0 %v12640_v58  ;;  %v13768_v34 = vld [vmem:[#allocation5 + $0x228] sm:$0xf0]  ;;  %v12883_v63 = vld [vmem:[#allocation5 + $0x208] sm:$0xf]  ;;  %v7414_v38 = vrot.slane %v7412_v41, 4  ;;  %v7417_v26 = vrot.slane %v7415_v51, 5  ;;  %11241 = vmatpush.bf16.msra.mxu2 %v13910_v2 }
 0x466   : > { %11156 = vmatmul.bf16.vlgmr.msra.gmra.mxu1 %v12644_v45  ;;  %v7423_v44 = vrot.slane %v7421_v36, 5  ;;  %v10663_v21 = vpop.f32.mrf.mxu3  ;;  %v12884_v50 = vor.u32 %v13768_v34, %v12883_v63  ;;  %v7427_v19 = vrot.slane %v7425_v1, 4  ;;  %v8108_v10 = vrot.slane %v8107_v25, 4  ;;  %7913 = vst [vmem:[#allocation5 + $0xec] sm:$0xf] %v7787_v40 }
 0x467   : > { %v10664_v3 = vadd.f32 %v10663_v21, %v10575_v5  ;;  %v7418_v58 = vor.u32 %v7417_v26, %v7414_v38  ;;  %v8118_v24 = vrot.slane %v8117_v61, 4  ;;  %v8122_v27 = vrot.slane %v8120_v16, 5  ;;  %v7946_v53 = vld [vmem:[#allocation3 + $0x3c] sm:$0xf]  ;;  %v8014_v2 = vld [vmem:[#allocation3 + $0x40] sm:$0xf] }
 0x468   : > { %10924 = vmatmul.bf16.gmra.mxu2 %v12884_v50  ;;  %v7428_v35 = vor.u32 %v7427_v19, %v7423_v44  ;;  %v8113_v45 = vsel %vm14518_vm14, %v8108_v10, %v8112_v54  ;;  %v7788_v41 = vrot.slane %v7786_v39, 4  ;;  %v7789_v6 = vrot.slane %v7678_v4, 5  ;;  %7978 = vst [vmem:[#allocation5 + $0xf0] sm:$0xf] %v7946_v53  ;;  %v8013_v16 = vld [vmem:[#allocation3 + $0x3c] sm:$0xf] }
 0x469   : > { %v16299_v51 = vadd.f32 %v10752_v31, %v10664_v3  ;;  %v10754_v36 = vpop.f32.mrf.mxu0  ;;  %v7419_v25 = vrot.slane %v7418_v58, 4  ;;  %v7433_v1 = vrot.slane %v7431_v60, 5  ;;  %v8123_v5 = vsel %vm14518_vm14, %v8118_v24, %v8122_v27  ;;  %8472 = vst [vmem:[#allocation5 + $0xac] sm:$0xf] %v8113_v45  ;;  %v7947_v31 = vld [vmem:[#allocation3 + $0x40] sm:$0xf] }
 0x46a   : > { %v7429_v61 = vrot.slane %v7428_v35, 4  ;;  %8473 = vst [vmem:[#allocation5 + $0xd0] sm:$0xf] %v8123_v5  ;;  %v7790_v34 = vsel %vm14485_vm12, %v7788_v41, %v7789_v6  ;;  %v8125_v54 = vshrl.u32 %v8013_v16, 16  ;;  %v8128_v4 = vshll.u32 %v8013_v16, 16  ;;  %v17133_v26 = vld [vmem:[#allocation41_spill] sm:$0xff] }
 0x46b   : > { %17132 = vst [vmem:[#allocation40_spill] sm:$0xff] %v16299_v51  ;;  %v16305_v39 = vpop.f32.mrf.mxu2  ;;  %v7424_v53 = vsel %vm14518_vm14, %v7419_v25, %v7423_v44  ;;  %v8134_v40 = vshll.u32 %v8014_v2, 16  ;;  %v8138_v38 = vshrl.u32 %v8014_v2, 16  ;;  %v10577_v60 = vadd.f32 %v16076_v15, %v17133_v26  ;;  %v13715_v21 = vld [vmem:[#allocation5 + $0x80] sm:$0xf0] }
 0x46c   : > { %7914 = vst [vmem:[#allocation5 + $0x110] sm:$0xf] %v7790_v34  ;;  %v7434_v27 = vsel %vm14518_vm14, %v7429_v61, %v7433_v1  ;;  %v8127_v63 = vrot.slane %v8125_v54, 4  ;;  %v8015_v50 = vld [vmem:[#allocation3 + $0x44] sm:$0x1]  ;;  %v8130_v19 = vrot.slane %v8128_v4, 5  ;;  %v16315_v34 = vpop.f32.mrf.mxu1 }
 0x46d   : > { %7651 = vst [vmem:[#allocation5 + $0x250] sm:$0xf] %v7424_v53  ;;  %v8136_v10 = vrot.slane %v8134_v40, 5  ;;  %v12669_v44 = vld [vmem:[#allocation5 + $0x7c] sm:$0xf0]  ;;  %v8140_v58 = vrot.slane %v8138_v38, 4 }
 0x46e   : > { %7652 = vst [vmem:[#allocation5 + $0x274] sm:$0xf] %v7434_v27  ;;  %v10665_v3 = vpop.f32.mrf.mxu3  ;;  %v12677_v35 = vld [vmem:[#allocation5 + $0x84] sm:$0xf0]  ;;  %v8131_v45 = vor.u32 %v8130_v19, %v8127_v63  ;;  %v7679_v41 = vld [vmem:[#allocation3 + $0x3c] sm:$0xe] }
 0x46f   : > { %7979 = vst [vmem:[#allocation5 + $0x114] sm:$0xf] %v7947_v31  ;;  %v10666_v24 = vadd.f32 %v10665_v3, %v10577_v60  ;;  %v7680_v6 = vld [vmem:[#allocation3 + $0x40] sm:$0xf]  ;;  %v13710_v25 = vld [vmem:[#allocation5 + $0x5c] sm:$0xf]  ;;  %v8141_v1 = vor.u32 %v8140_v58, %v8136_v10 }
 0x470   : > { %v8144_v5 = vshll.u32 %v8015_v50, 16  ;;  %v7793_v16 = vrot.slane %v7680_v6, 5  ;;  %v17134_v61 = vld [vmem:[#allocation42_spill] sm:$0xff]  ;;  %17135 = vst [vmem:[#allocation41_spill] sm:$0xff] %v16315_v34  ;;  %v12672_v53 = vor.u32 %v13710_v25, %v12669_v44  ;;  %v12675_v31 = vld [vmem:[#allocation5 + $0x60] sm:$0xf] }
 0x471   : > { %v10580_v15 = vadd.f32 %v16094_v29, %v17134_v61  ;;  %v16317_v2 = vadd.f32 %v10754_v36, %v10666_v24  ;;  %v10757_v54 = vpop.f32.mrf.mxu0  ;;  %v13711_v4 = vld [vmem:[#allocation5 + $0x64] sm:$0xf]  ;;  %v7681_v40 = vld [vmem:[#allocation3 + $0x44] sm:$0x1]  ;;  %v12676_v27 = vor.u32 %v13715_v21, %v12675_v31  ;;  %v7198_v38 = vld [vmem:[#allocation3 + $0x78] sm:$0xf] }
 0x472   : > { %v12680_v63 = vor.u32 %v13711_v4, %v12677_v35  ;;  %v7199_v26 = vld [vmem:[#allocation3 + $0x7c] sm:$0xf]  ;;  %v8132_v60 = vrot.slane %v8131_v45, 4  ;;  %v12489_v19 = vrot.slane %v7679_v41, 9  ;;  %v7200_v3 = vld [vmem:[#allocation3 + $0x80] sm:$0x1] }
 0x473   : > { %17136 = vst [vmem:[#allocation42_spill] sm:$0xff] %v16317_v2  ;;  %10983 = vmatmul.bf16.gmra.mxu3 %v12672_v53  ;;  %v16319_v50 = vpop.f32.mrf.mxu2  ;;  %v7436_v29 = vshrl.u32 %v7198_v38, 16  ;;  %v7439_v58 = vshll.u32 %v7198_v38, 16  ;;  %v7445_v6 = vshll.u32 %v7199_v26, 16  ;;  %v7449_v36 = vshrl.u32 %v7199_v26, 16 }
 0x474   : > { %v8137_v44 = vsel %vm14518_vm14, %v8132_v60, %v8136_v10  ;;  %v8142_v25 = vrot.slane %v8141_v1, 4  ;;  %v8146_v21 = vrot.slane %v8144_v5, 5  ;;  %v7794_v35 = vsel %vm14485_vm12, %v12489_v19, %v7793_v16  ;;  %v7948_v45 = vld [vmem:[#allocation3 + $0x48] sm:$0xf]  ;;  %v8017_v19 = vld [vmem:[#allocation3 + $0x4c] sm:$0xf] }
 0x475   : > { %11072 = vmatmul.bf16.gmra.mxu0 %v12676_v27  ;;  %v13777_v24 = vld [vmem:[#allocation5 + $0x270] sm:$0xf0]  ;;  %v12919_v41 = vld [vmem:[#allocation5 + $0x250] sm:$0xf]  ;;  %v7438_v61 = vrot.slane %v7436_v29, 4  ;;  %v7441_v53 = vrot.slane %v7439_v58, 5 }
 0x476   : > { %11161 = vmatmul.bf16.gmra.mxu1 %v12680_v63  ;;  %v7447_v31 = vrot.slane %v7445_v6, 5  ;;  %v7796_v4 = vrot.slane %v7681_v40, 5  ;;  %v10668_v38 = vpop.f32.mrf.mxu3  ;;  %v12920_v2 = vor.u32 %v13777_v24, %v12919_v41  ;;  %v7451_v26 = vrot.slane %v7449_v36, 4  ;;  %8474 = vst [vmem:[#allocation5 + $0xf4] sm:$0xf] %v8137_v44 }
 0x477   : > { %v7455_v27 = vshll.u32 %v7200_v3, 16  ;;  %v8016_v34 = vld [vmem:[#allocation3 + $0x48] sm:$0xf]  ;;  %v10669_v51 = vadd.f32 %v10668_v38, %v10580_v15  ;;  %v7442_v10 = vor.u32 %v7441_v53, %v7438_v61  ;;  %v8147_v1 = vsel %vm14518_vm14, %v8142_v25, %v8146_v21  ;;  %7915 = vst [vmem:[#allocation5 + $0x134] sm:$0xf] %v7794_v35  ;;  %v17137_v53 = vld [vmem:[#allocation43_spill] sm:$0xff] }
 0x478   : > { %v7795_v5 = vrot.slane %v7793_v16, 4  ;;  %10929 = vmatmul.bf16.gmra.mxu2 %v12920_v2  ;;  %v10802_v63 = vadd.f32 %v16014_v48, %v16020_v30  ;;  %v7452_v60 = vor.u32 %v7451_v26, %v7447_v31  ;;  %8475 = vst [vmem:[#allocation5 + $0x118] sm:$0xf] %v8147_v1  ;;  %v7949_v40 = vld [vmem:[#allocation3 + $0x4c] sm:$0xf]  ;;  %v8149_v36 = vshrl.u32 %v8016_v34, 16  ;;  %v16333_v48 = vpop.f32.mrf.mxu1 }
 0x479   : > { %v16329_v29 = vadd.f32 %v10757_v54, %v10669_v51  ;;  %v10759_v3 = vpop.f32.mrf.mxu0  ;;  %v7443_v58 = vrot.slane %v7442_v10, 4  ;;  %7980 = vst [vmem:[#allocation5 + $0x138] sm:$0xf] %v7948_v45  ;;  %v8018_v6 = vld [vmem:[#allocation3 + $0x50] sm:$0x1]  ;;  %v7457_v24 = vrot.slane %v7455_v27, 5 }
 0x47a   : > { %v7797_v15 = vsel %vm14485_vm12, %v7795_v5, %v7796_v4  ;;  %v7453_v16 = vrot.slane %v7452_v60, 4  ;;  %v8152_v2 = vshll.u32 %v8016_v34, 16  ;;  %v8158_v44 = vshll.u32 %v8017_v19, 16  ;;  %7981 = vst [vmem:[#allocation5 + $0x15c] sm:$0xf] %v7949_v40 }
 0x47b   : > { %7916 = vst [vmem:[#allocation5 + $0x158] sm:$0xf] %v7797_v15  ;;  %v10890_v30 = vpop.f32.mrf.mxu2  ;;  %v7448_v51 = vsel %vm14518_vm14, %v7443_v58, %v7447_v31  ;;  %v8151_v54 = vrot.slane %v8149_v36, 4  ;;  %v8162_v25 = vshrl.u32 %v8017_v19, 16  ;;  %v7682_v21 = vld [vmem:[#allocation3 + $0x48] sm:$0xe]  ;;  %v10582_v4 = vadd.f32 %v16110_v32, %v17137_v53 }
 0x47c   : > { %v16337_v35 = vadd.f32 %v10890_v30, %v10802_v63  ;;  %v7458_v45 = vsel %vm14518_vm14, %v7453_v16, %v7457_v24  ;;  %7653 = vst [vmem:[#allocation5 + $0x298] sm:$0xf] %v7448_v51  ;;  %v8154_v41 = vrot.slane %v8152_v2, 5  ;;  %v8160_v61 = vrot.slane %v8158_v44, 5  ;;  %v7683_v34 = vld [vmem:[#allocation3 + $0x4c] sm:$0xf] }
 0x47d   : > { %v12711_v38 = vld [vmem:[#allocation5 + $0xa8] sm:$0xf]  ;;  %v13724_v26 = vld [vmem:[#allocation5 + $0xc8] sm:$0xf0]  ;;  %7654 = vst [vmem:[#allocation5 + $0x2bc] sm:$0xf] %v7458_v45 }
 0x47e   : > { %v8164_v31 = vrot.slane %v8162_v25, 4  ;;  %v10670_v27 = vpop.f32.mrf.mxu3  ;;  %v12705_v10 = vld [vmem:[#allocation5 + $0xc4] sm:$0xf0]  ;;  %v8155_v1 = vor.u32 %v8154_v41, %v8151_v54  ;;  %v8168_v5 = vshll.u32 %v8018_v6, 16  ;;  %v12490_v63 = vrot.slane %v7682_v21, 9 }
 0x47f   : > { %v7800_v60 = vrot.slane %v7683_v34, 5  ;;  %v10671_v40 = vadd.f32 %v10670_v27, %v10582_v4  ;;  %v12713_v19 = vld [vmem:[#allocation5 + $0xcc] sm:$0xf0]  ;;  %v7684_v15 = vld [vmem:[#allocation3 + $0x50] sm:$0x1]  ;;  %v12712_v24 = vor.u32 %v13724_v26, %v12711_v38  ;;  %v10804_v25 = vadd.f32 %v16032_v11, %v16038_v28 }
 0x480   : > { %v8165_v58 = vor.u32 %v8164_v31, %v8160_v61  ;;  %v7950_v36 = vld [vmem:[#allocation3 + $0x54] sm:$0xf]  ;;  %v13719_v16 = vld [vmem:[#allocation5 + $0xa4] sm:$0xf]  ;;  %v8156_v2 = vrot.slane %v8155_v1, 4  ;;  %v8170_v4 = vrot.slane %v8168_v5, 5 }
 0x481   : > { %v7801_v32 = vsel %vm14485_vm12, %v12490_v63, %v7800_v60  ;;  %v7802_v44 = vrot.slane %v7800_v60, 4  ;;  %7982 = vst [vmem:[#allocation5 + $0x180] sm:$0xf] %v7950_v36  ;;  %v16345_v30 = vadd.f32 %v10759_v3, %v10671_v40  ;;  %v10762_v51 = vpop.f32.mrf.mxu0  ;;  %v12708_v54 = vor.u32 %v13719_v16, %v12705_v10  ;;  %v13720_v6 = vld [vmem:[#allocation5 + $0xac] sm:$0xf]  ;;  %v13909_v60 = vld [vmem:[#allocation11 + $0x210] sm:$0xff] }
 0x482   : > { %v8166_v21 = vrot.slane %v8165_v58, 4  ;;  %7917 = vst [vmem:[#allocation5 + $0x17c] sm:$0xf] %v7801_v32  ;;  %v12716_v45 = vor.u32 %v13720_v6, %v12713_v19  ;;  %v7201_v41 = vld [vmem:[#allocation3 + $0x84] sm:$0xf]  ;;  %v8161_v53 = vsel %vm14518_vm14, %v8156_v2, %v8160_v61  ;;  %v7803_v38 = vrot.slane %v7684_v15, 5  ;;  %v16359_v58 = vpop.f32.mrf.mxu1  ;;  %11242 = vmatpush.bf16.msra.mxu2 %v13909_v60 }
 0x483   : > { %v7202_v34 = vld [vmem:[#allocation3 + $0x88] sm:$0xf]  ;;  %10988 = vmatmul.bf16.gmra.mxu3 %v12708_v54  ;;  %v10892_v26 = vpop.f32.mrf.mxu2  ;;  %v7203_v3 = vld [vmem:[#allocation3 + $0x8c] sm:$0x1]  ;;  %v7460_v31 = vshrl.u32 %v7201_v41, 16  ;;  %v7463_v27 = vshll.u32 %v7201_v41, 16 }
 0x484   : > { %v7469_v10 = vshll.u32 %v7202_v34, 16  ;;  %v7473_v1 = vshrl.u32 %v7202_v34, 16  ;;  %v16351_v63 = vadd.f32 %v10892_v26, %v10804_v25  ;;  %v12955_v11 = vld [vmem:[#allocation5 + $0x298] sm:$0xf]  ;;  %v13786_v28 = vld [vmem:[#allocation5 + $0x2b8] sm:$0xf0]  ;;  %v8171_v40 = vsel %vm14518_vm14, %v8166_v21, %v8170_v4 }
 0x485   : > { %11077 = vmatmul.bf16.gmra.mxu0 %v12712_v24  ;;  %v7804_v61 = vsel %vm14485_vm12, %v7802_v44, %v7803_v38  ;;  %v17138_v5 = vld [vmem:[#allocation44_spill] sm:$0xff]  ;;  %v7462_v15 = vrot.slane %v7460_v31, 4  ;;  %v7465_v36 = vrot.slane %v7463_v27, 5  ;;  %8476 = vst [vmem:[#allocation5 + $0x13c] sm:$0xf] %v8161_v53  ;;  %v12956_v2 = vor.u32 %v13786_v28, %v12955_v11 }
 0x486   : > { %v10585_v19 = vadd.f32 %v16126_v55, %v17138_v5  ;;  %11166 = vmatmul.bf16.gmra.mxu1 %v12716_v45  ;;  %v7471_v16 = vrot.slane %v7469_v10, 5  ;;  %v10673_v24 = vpop.f32.mrf.mxu3  ;;  %v7475_v32 = vrot.slane %v7473_v1, 4  ;;  %v7479_v54 = vshll.u32 %v7203_v3, 16  ;;  %8477 = vst [vmem:[#allocation5 + $0x160] sm:$0xf] %v8171_v40 }
 0x487   : > { %v8019_v6 = vld [vmem:[#allocation3 + $0x54] sm:$0xf]  ;;  %v7466_v21 = vor.u32 %v7465_v36, %v7462_v15  ;;  %7918 = vst [vmem:[#allocation5 + $0x1a0] sm:$0xf] %v7804_v61  ;;  %v7951_v44 = vld [vmem:[#allocation3 + $0x58] sm:$0xf]  ;;  %v10807_v55 = vadd.f32 %v16048_v23, %v16056_v14 }
 0x488   : > { %v10674_v25 = vadd.f32 %v10673_v24, %v10585_v19  ;;  %10934 = vmatmul.bf16.gmra.mxu2 %v12956_v2  ;;  %v7476_v45 = vor.u32 %v7475_v32, %v7471_v16  ;;  %7983 = vst [vmem:[#allocation5 + $0x1a4] sm:$0xf] %v7951_v44  ;;  %v8020_v41 = vld [vmem:[#allocation3 + $0x58] sm:$0xf]  ;;  %v12741_v4 = vld [vmem:[#allocation5 + $0x10c] sm:$0xf0] }
 0x489   : > { %v10764_v53 = vpop.f32.mrf.mxu0  ;;  %v7467_v38 = vrot.slane %v7466_v21, 4  ;;  %v8021_v26 = vld [vmem:[#allocation3 + $0x5c] sm:$0x1]  ;;  %v8173_v3 = vshrl.u32 %v8019_v6, 16  ;;  %v8176_v31 = vshll.u32 %v8019_v6, 16  ;;  %v7481_v10 = vrot.slane %v7479_v54, 5 }
 0x48a   : > { %v16363_v34 = vadd.f32 %v10762_v51, %v10674_v25  ;;  %v7477_v27 = vrot.slane %v7476_v45, 4  ;;  %v8182_v1 = vshll.u32 %v8020_v41, 16  ;;  %v8186_v11 = vshrl.u32 %v8020_v41, 16  ;;  %v7685_v28 = vld [vmem:[#allocation3 + $0x54] sm:$0xe]  ;;  %v17139_v2 = vld [vmem:[#allocation23_spill] sm:$0xff] }
 0x48b   : > { %v10895_v60 = vpop.f32.mrf.mxu2  ;;  %v7472_v23 = vsel %vm14518_vm14, %v7467_v38, %v7471_v16  ;;  %v8175_v14 = vrot.slane %v8173_v3, 4  ;;  %v8178_v40 = vrot.slane %v8176_v31, 5  ;;  %v8192_v61 = vshll.u32 %v8021_v26, 16  ;;  %v7686_v51 = vld [vmem:[#allocation3 + $0x58] sm:$0xf]  ;;  %v16373_v26 = vpop.f32.mrf.mxu1 }
 0x48c   : > { %v16367_v5 = vadd.f32 %v10895_v60, %v10807_v55  ;;  %v13728_v19 = vld [vmem:[#allocation5 + $0xec] sm:$0xf]  ;;  %v7482_v15 = vsel %vm14518_vm14, %v7477_v27, %v7481_v10  ;;  %7655 = vst [vmem:[#allocation5 + $0x2e0] sm:$0xf] %v7472_v23  ;;  %v8184_v36 = vrot.slane %v8182_v1, 5  ;;  %v8188_v24 = vrot.slane %v8186_v11, 4 }
 0x48d   : > { %v10587_v32 = vadd.f32 %v16148_v8, %v17139_v2  ;;  %v12747_v54 = vld [vmem:[#allocation5 + $0xf0] sm:$0xf]  ;;  %v13733_v6 = vld [vmem:[#allocation5 + $0x110] sm:$0xf0]  ;;  %7656 = vst [vmem:[#allocation5 + $0x304] sm:$0xf] %v7482_v15  ;;  %v8179_v16 = vor.u32 %v8178_v40, %v8175_v14  ;;  %v12744_v21 = vor.u32 %v13728_v19, %v12741_v4 }
 0x48e   : > { %v10675_v25 = vpop.f32.mrf.mxu3  ;;  %v12749_v44 = vld [vmem:[#allocation5 + $0x114] sm:$0xf0]  ;;  %v8189_v45 = vor.u32 %v8188_v24, %v8184_v36  ;;  %v7687_v55 = vld [vmem:[#allocation3 + $0x5c] sm:$0x1]  ;;  %v12491_v41 = vrot.slane %v7685_v28, 9  ;;  %v7807_v38 = vrot.slane %v7686_v51, 5  ;;  %v12748_v11 = vor.u32 %v13733_v6, %v12747_v54 }
 0x48f   : > { %v10676_v3 = vadd.f32 %v10675_v25, %v10587_v32  ;;  %v8180_v31 = vrot.slane %v8179_v16, 4  ;;  %v8194_v27 = vrot.slane %v8192_v61, 5  ;;  %v7810_v10 = vrot.slane %v7687_v55, 5  ;;  %v7952_v1 = vld [vmem:[#allocation3 + $0x60] sm:$0xf] }
 0x490   : > { %v8190_v8 = vrot.slane %v8189_v45, 4  ;;  %v7808_v60 = vsel %vm14485_vm12, %v12491_v41, %v7807_v38  ;;  %v7809_v23 = vrot.slane %v7807_v38, 4  ;;  %7984 = vst [vmem:[#allocation5 + $0x1c8] sm:$0xf] %v7952_v1  ;;  %v8022_v4 = vld [vmem:[#allocation3 + $0x60] sm:$0xf]  ;;  %v10809_v24 = vadd.f32 %v16064_v33, %v16068_v7 }
 0x491   : > { %v16377_v14 = vadd.f32 %v10764_v53, %v10676_v3  ;;  %v10767_v40 = vpop.f32.mrf.mxu0  ;;  %v13729_v28 = vld [vmem:[#allocation5 + $0xf4] sm:$0xf]  ;;  %v8185_v51 = vsel %vm14518_vm14, %v8180_v31, %v8184_v36  ;;  %7919 = vst [vmem:[#allocation5 + $0x1c4] sm:$0xf] %v7808_v60  ;;  %v8197_v19 = vshrl.u32 %v8022_v4, 16  ;;  %v8200_v61 = vshll.u32 %v8022_v4, 16 }
 0x492   : > { %v12752_v15 = vor.u32 %v13729_v28, %v12749_v44  ;;  %v7204_v2 = vld [vmem:[#allocation3 + $0x90] sm:$0xf]  ;;  %v7205_v32 = vld [vmem:[#allocation3 + $0x94] sm:$0xf]  ;;  %v7206_v54 = vld [vmem:[#allocation3 + $0x98] sm:$0x1]  ;;  %v8195_v6 = vsel %vm14518_vm14, %v8190_v8, %v8194_v27  ;;  %v7811_v53 = vsel %vm14485_vm12, %v7809_v23, %v7810_v10 }
 0x493   : > { %10993 = vmatmul.bf16.gmra.mxu3 %v12744_v21  ;;  %v10897_v16 = vpop.f32.mrf.mxu2  ;;  %v12991_v25 = vld [vmem:[#allocation5 + $0x2e0] sm:$0xf]  ;;  %v7484_v36 = vshrl.u32 %v7204_v2, 16  ;;  %v7487_v45 = vshll.u32 %v7204_v2, 16  ;;  %v7493_v55 = vshll.u32 %v7205_v32, 16  ;;  %v7497_v41 = vshrl.u32 %v7205_v32, 16 }
 0x494   : > { %v16387_v44 = vadd.f32 %v10897_v16, %v10809_v24  ;;  %v13795_v33 = vld [vmem:[#allocation5 + $0x300] sm:$0xf0]  ;;  %v7503_v7 = vshll.u32 %v7206_v54, 16  ;;  %8478 = vst [vmem:[#allocation5 + $0x184] sm:$0xf] %v8185_v51  ;;  %v8199_v38 = vrot.slane %v8197_v19, 4  ;;  %v16395_v16 = vpop.f32.mrf.mxu1 }
 0x495   : > { %11082 = vmatmul.bf16.gmra.mxu0 %v12748_v11  ;;  %v17140_v3 = vld [vmem:[#allocation24_spill] sm:$0xff]  ;;  %v7486_v27 = vrot.slane %v7484_v36, 4  ;;  %v7489_v10 = vrot.slane %v7487_v45, 5  ;;  %v7495_v21 = vrot.slane %v7493_v55, 5  ;;  %8479 = vst [vmem:[#allocation5 + $0x1a8] sm:$0xf] %v8195_v6  ;;  %v12992_v8 = vor.u32 %v13795_v33, %v12991_v25 }
 0x496   : > { %v10590_v31 = vadd.f32 %v16164_v56, %v17140_v3  ;;  %11171 = vmatmul.bf16.gmra.mxu1 %v12752_v15  ;;  %v10678_v1 = vpop.f32.mrf.mxu3  ;;  %v7499_v60 = vrot.slane %v7497_v41, 4  ;;  %7920 = vst [vmem:[#allocation5 + $0x1e8] sm:$0xf] %v7811_v53  ;;  %v8202_v23 = vrot.slane %v8200_v61, 5  ;;  %v16391_v11 = vld [vmem:[#allocation3 + $0x1c] sm:$0xf] }
 0x497   : > { %v7490_v28 = vor.u32 %v7489_v10, %v7486_v27  ;;  %v7953_v24 = vld [vmem:[#allocation3 + $0x64] sm:$0xf]  ;;  %v7688_v19 = vld [vmem:[#allocation3 + $0x60] sm:$0xe]  ;;  %v17141_v56 = vld [vmem:[#allocation34_spill] sm:$0xff]  ;;  %v7505_v32 = vrot.slane %v7503_v7, 5 }
 0x498   : > { %v10679_v4 = vadd.f32 %v10678_v1, %v10590_v31  ;;  %v8023_v51 = vld [vmem:[#allocation3 + $0x64] sm:$0xf]  ;;  %10939 = vmatmul.bf16.gmra.mxu2 %v12992_v8  ;;  %v10812_v15 = vadd.f32 %v17141_v56, %v16088_v9  ;;  %v7500_v2 = vor.u32 %v7499_v60, %v7495_v21  ;;  %7985 = vst [vmem:[#allocation5 + $0x1ec] sm:$0xf] %v7953_v24  ;;  %v8024_v54 = vld [vmem:[#allocation3 + $0x68] sm:$0x1] }
 0x499   : > { %v8203_v6 = vor.u32 %v8202_v23, %v8199_v38  ;;  %v10769_v61 = vpop.f32.mrf.mxu0  ;;  %v7491_v25 = vrot.slane %v7490_v28, 4  ;;  %v8206_v36 = vshll.u32 %v8023_v51, 16  ;;  %v8210_v45 = vshrl.u32 %v8023_v51, 16  ;;  %v7689_v55 = vld [vmem:[#allocation3 + $0x64] sm:$0xf]  ;;  %v17142_v23 = vld [vmem:[#allocation25_spill] sm:$0xff] }
 0x49a   : > { %v16397_v53 = vadd.f32 %v10767_v40, %v10679_v4  ;;  %v7501_v41 = vrot.slane %v7500_v2, 4  ;;  %v8216_v3 = vshll.u32 %v8024_v54, 16  ;;  %v12492_v31 = vrot.slane %v7688_v19, 9  ;;  %v7690_v38 = vld [vmem:[#allocation3 + $0x68] sm:$0x1] }
 0x49b   : > { %v8204_v33 = vrot.slane %v8203_v6, 4  ;;  %v10900_v27 = vpop.f32.mrf.mxu2  ;;  %v7496_v9 = vsel %vm14518_vm14, %v7491_v25, %v7495_v21  ;;  %v8208_v7 = vrot.slane %v8206_v36, 5  ;;  %v8212_v10 = vrot.slane %v8210_v45, 4  ;;  %v12777_v28 = vld [vmem:[#allocation5 + $0x154] sm:$0xf0] }
 0x49c   : > { %v7814_v1 = vrot.slane %v7689_v55, 5  ;;  %v8598_v40 = vrot.slane %v16391_v11, 5  ;;  %v16402_v8 = vadd.f32 %v10900_v27, %v10812_v15  ;;  %v7506_v60 = vsel %vm14518_vm14, %v7501_v41, %v7505_v32  ;;  %7657 = vst [vmem:[#allocation5 + $0x328] sm:$0xf] %v7496_v9  ;;  %v13742_v56 = vld [vmem:[#allocation5 + $0x158] sm:$0xf0] }
 0x49d   : > { %v10592_v4 = vadd.f32 %v16189_v12, %v17142_v23  ;;  %7658 = vst [vmem:[#allocation5 + $0x34c] sm:$0xf] %v7506_v60  ;;  %v8209_v21 = vsel %vm14518_vm14, %v8204_v33, %v8208_v7  ;;  %v8213_v24 = vor.u32 %v8212_v10, %v8208_v7  ;;  %v7817_v2 = vrot.slane %v7690_v38, 5  ;;  %v12785_v32 = vld [vmem:[#allocation5 + $0x15c] sm:$0xf0] }
 0x49e   : > { %v7815_v51 = vsel %vm14485_vm12, %v12492_v31, %v7814_v1  ;;  %v10680_v19 = vpop.f32.mrf.mxu3  ;;  %8480 = vst [vmem:[#allocation5 + $0x1cc] sm:$0xf] %v8209_v21  ;;  %v7816_v15 = vrot.slane %v7814_v1, 4  ;;  %v8218_v25 = vrot.slane %v8216_v3, 5  ;;  %v8500_v12 = vld [vmem:[#allocation3 + $0x18] sm:$0xe]  ;;  %v10814_v1 = vadd.f32 %v16092_v17, %v16100_v20  ;;  %v16420_v21 = vpop.f32.mrf.mxu1 }
 0x49f   : > { %v10681_v54 = vadd.f32 %v10680_v19, %v10592_v4  ;;  %v8214_v6 = vrot.slane %v8213_v24, 4  ;;  %7921 = vst [vmem:[#allocation5 + $0x20c] sm:$0xf] %v7815_v51  ;;  %v13737_v36 = vld [vmem:[#allocation5 + $0x134] sm:$0xf]  ;;  %v13908_v17 = vld [vmem:[#allocation11 + $0x208] sm:$0xff] }
 0x4a0   : > { %v12783_v45 = vld [vmem:[#allocation5 + $0x138] sm:$0xf]  ;;  %v7818_v55 = vsel %vm14485_vm12, %v7816_v15, %v7817_v2  ;;  %v8025_v41 = vld [vmem:[#allocation3 + $0x6c] sm:$0xf]  ;;  %v12780_v27 = vor.u32 %v13737_v36, %v12777_v28  ;;  %v13738_v9 = vld [vmem:[#allocation5 + $0x13c] sm:$0xf]  ;;  %11243 = vmatpush.bf16.msra.mxu2 %v13908_v17 }
 0x4a1   : > { %v16414_v33 = vadd.f32 %v10769_v61, %v10681_v54  ;;  %v10772_v31 = vpop.f32.mrf.mxu0  ;;  %v8219_v7 = vsel %vm14518_vm14, %v8214_v6, %v8218_v25  ;;  %7922 = vst [vmem:[#allocation5 + $0x230] sm:$0xf] %v7818_v55  ;;  %v7954_v10 = vld [vmem:[#allocation3 + $0x6c] sm:$0xf]  ;;  %v12784_v38 = vor.u32 %v13742_v56, %v12783_v45  ;;  %v12788_v3 = vor.u32 %v13738_v9, %v12785_v32  ;;  %v7207_v60 = vld [vmem:[#allocation3 + $0x9c] sm:$0xf] }
 0x4a2   : > { %v7208_v23 = vld [vmem:[#allocation3 + $0xa0] sm:$0xf]  ;;  %v8221_v4 = vshrl.u32 %v8025_v41, 16  ;;  %v7209_v24 = vld [vmem:[#allocation3 + $0xa4] sm:$0x1]  ;;  %v7508_v28 = vshrl.u32 %v7207_v60, 16 }
 0x4a3   : > { %10998 = vmatmul.bf16.gmra.mxu3 %v12780_v27  ;;  %v10902_v61 = vpop.f32.mrf.mxu2  ;;  %v7511_v51 = vshll.u32 %v7207_v60, 16  ;;  %v7517_v19 = vshll.u32 %v7208_v23, 16  ;;  %v7521_v15 = vshrl.u32 %v7208_v23, 16  ;;  %v17143_v2 = vld [vmem:[#allocation26_spill] sm:$0xff]  ;;  %8481 = vst [vmem:[#allocation5 + $0x1f0] sm:$0xf] %v8219_v7 }
 0x4a4   : > { %v10595_v54 = vadd.f32 %v16206_v37, %v17143_v2  ;;  %v16424_v56 = vadd.f32 %v10902_v61, %v10814_v1  ;;  %v13804_v32 = vld [vmem:[#allocation5 + $0x348] sm:$0xf0]  ;;  %v8224_v20 = vshll.u32 %v8025_v41, 16  ;;  %v13027_v6 = vld [vmem:[#allocation5 + $0x328] sm:$0xf]  ;;  %v7510_v25 = vrot.slane %v7508_v28, 4 }
 0x4a5   : > { %11087 = vmatmul.bf16.gmra.mxu0 %v12784_v38  ;;  %v7513_v36 = vrot.slane %v7511_v51, 5  ;;  %v7519_v45 = vrot.slane %v7517_v19, 5  ;;  %v12501_v55 = vrot.slane %v8500_v12, 9  ;;  %v13028_v9 = vor.u32 %v13804_v32, %v13027_v6  ;;  %7986 = vst [vmem:[#allocation5 + $0x210] sm:$0xf] %v7954_v10  ;;  %v17144_v12 = vld [vmem:[#allocation37_spill] sm:$0xff] }
 0x4a6   : > { %11176 = vmatmul.bf16.gmra.mxu1 %v12788_v3  ;;  %v10683_v27 = vpop.f32.mrf.mxu3  ;;  %v7523_v60 = vrot.slane %v7521_v15, 4  ;;  %v7527_v23 = vshll.u32 %v7209_v24, 16  ;;  %v8502_v37 = vld [vmem:[#allocation3 + $0x20] sm:$0x1]  ;;  %v8600_v38 = vrot.slane %v8598_v40, 4  ;;  %v8223_v19 = vrot.slane %v8221_v4, 4 }
 0x4a7   : > { %v10684_v1 = vadd.f32 %v10683_v27, %v10595_v54  ;;  %v7514_v61 = vor.u32 %v7513_v36, %v7510_v25  ;;  %v7955_v7 = vld [vmem:[#allocation3 + $0x70] sm:$0xf]  ;;  %v8599_v3 = vsel %vm14485_vm12, %v12501_v55, %v8598_v40  ;;  %v17145_v28 = vld [vmem:[#allocation36_spill] sm:$0xff]  ;;  %v8027_v10 = vld [vmem:[#allocation3 + $0x74] sm:$0x1]  ;;  %v8226_v15 = vrot.slane %v8224_v20, 5 }
 0x4a8   : > { %v8026_v41 = vld [vmem:[#allocation3 + $0x70] sm:$0xf]  ;;  %10944 = vmatmul.bf16.gmra.mxu2 %v13028_v9  ;;  %v10817_v51 = vadd.f32 %v17145_v28, %v17144_v12  ;;  %v7524_v24 = vor.u32 %v7523_v60, %v7519_v45  ;;  %7987 = vst [vmem:[#allocation5 + $0x234] sm:$0xf] %v7955_v7  ;;  %v8601_v6 = vrot.slane %v8502_v37, 5  ;;  %v7529_v11 = vrot.slane %v7527_v23, 5 }
 0x4a9   : > { %v16434_v2 = vadd.f32 %v10772_v31, %v10684_v1  ;;  %v10774_v54 = vpop.f32.mrf.mxu0  ;;  %v7515_v32 = vrot.slane %v7514_v61, 4  ;;  %v8230_v17 = vshll.u32 %v8026_v41, 16  ;;  %v8227_v36 = vor.u32 %v8226_v15, %v8223_v19  ;;  %8740 = vst [vmem:[#allocation5 + $0x20] sm:$0xf] %v8599_v3  ;;  %v7691_v7 = vld [vmem:[#allocation3 + $0x6c] sm:$0xe]  ;;  %v16446_v3 = vpop.f32.mrf.mxu1 }
 0x4aa   : > { %v7525_v25 = vrot.slane %v7524_v24, 4  ;;  %v8234_v27 = vshrl.u32 %v8026_v41, 16  ;;  %v8240_v60 = vshll.u32 %v8027_v10, 16  ;;  %v7692_v4 = vld [vmem:[#allocation3 + $0x70] sm:$0xf]  ;;  %v8602_v31 = vsel %vm14485_vm12, %v8600_v38, %v8601_v6  ;;  %v17147_v61 = vld [vmem:[#allocation27_spill] sm:$0xff] }
 0x4ab   : > { %17146 = vst [vmem:[#allocation43_spill] sm:$0xff] %v16434_v2  ;;  %v10905_v40 = vpop.f32.mrf.mxu2  ;;  %v7520_v55 = vsel %vm14518_vm14, %v7515_v32, %v7519_v45  ;;  %v8232_v9 = vrot.slane %v8230_v17, 5  ;;  %v12813_v1 = vld [vmem:[#allocation5 + $0x19c] sm:$0xf0]  ;;  %v8228_v37 = vrot.slane %v8227_v36, 4  ;;  %v10597_v41 = vadd.f32 %v16227_v13, %v17147_v61 }
 0x4ac   : > { %v16440_v20 = vadd.f32 %v10905_v40, %v10817_v51  ;;  %v7530_v23 = vsel %vm14518_vm14, %v7525_v25, %v7529_v11  ;;  %7659 = vst [vmem:[#allocation5 + $0x370] sm:$0xf] %v7520_v55  ;;  %v13746_v45 = vld [vmem:[#allocation5 + $0x17c] sm:$0xf]  ;;  %v13751_v12 = vld [vmem:[#allocation5 + $0x1a0] sm:$0xf0] }
 0x4ad   : > { %7660 = vst [vmem:[#allocation5 + $0x394] sm:$0xf] %v7530_v23  ;;  %v8236_v28 = vrot.slane %v8234_v27, 4  ;;  %v7693_v24 = vld [vmem:[#allocation3 + $0x74] sm:$0x1]  ;;  %v8233_v51 = vsel %vm14518_vm14, %v8228_v37, %v8232_v9  ;;  %v12493_v19 = vrot.slane %v7691_v7, 9  ;;  %v12816_v36 = vor.u32 %v13746_v45, %v12813_v1 }
 0x4ae   : > { %v10685_v10 = vpop.f32.mrf.mxu3  ;;  %v12821_v38 = vld [vmem:[#allocation5 + $0x1a4] sm:$0xf0]  ;;  %v7821_v15 = vrot.slane %v7692_v4, 5  ;;  %8741 = vst [vmem:[#allocation5 + $0x44] sm:$0xf] %v8602_v31  ;;  %v8242_v13 = vrot.slane %v8240_v60, 5 }
 0x4af   : > { %v10686_v32 = vadd.f32 %v10685_v10, %v10597_v41  ;;  %v12819_v17 = vld [vmem:[#allocation5 + $0x180] sm:$0xf]  ;;  %v13747_v6 = vld [vmem:[#allocation5 + $0x184] sm:$0xf]  ;;  %v8237_v25 = vor.u32 %v8236_v28, %v8232_v9  ;;  %8482 = vst [vmem:[#allocation5 + $0x214] sm:$0xf] %v8233_v51 }
 0x4b0   : > { %v7956_v11 = vld [vmem:[#allocation3 + $0x78] sm:$0xf]  ;;  %v7822_v27 = vsel %vm14485_vm12, %v12493_v19, %v7821_v15  ;;  %v7823_v40 = vrot.slane %v7821_v15, 4  ;;  %v7824_v55 = vrot.slane %v7693_v24, 5  ;;  %v12820_v41 = vor.u32 %v13751_v12, %v12819_v17  ;;  %v7210_v1 = vld [vmem:[#allocation3 + $0xa8] sm:$0xf] }
 0x4b1   : > { %7988 = vst [vmem:[#allocation5 + $0x258] sm:$0xf] %v7956_v11  ;;  %v8028_v23 = vld [vmem:[#allocation3 + $0x78] sm:$0xf]  ;;  %v16452_v61 = vadd.f32 %v10774_v54, %v10686_v32  ;;  %v8238_v4 = vrot.slane %v8237_v25, 4  ;;  %v12824_v9 = vor.u32 %v13747_v6, %v12821_v38  ;;  %v7532_v15 = vshrl.u32 %v7210_v1, 16 }
 0x4b2   : > { %v10777_v7 = vpop.f32.mrf.mxu0  ;;  %7923 = vst [vmem:[#allocation5 + $0x254] sm:$0xf] %v7822_v27  ;;  %v8245_v31 = vshrl.u32 %v8028_v23, 16  ;;  %v8248_v37 = vshll.u32 %v8028_v23, 16  ;;  %v17149_v60 = vld [vmem:[#allocation35_spill] sm:$0xff]  ;;  %v7825_v24 = vsel %vm14485_vm12, %v7823_v40, %v7824_v55  ;;  %v7535_v32 = vshll.u32 %v7210_v1, 16 }
 0x4b3   : > { %17148 = vst [vmem:[#allocation44_spill] sm:$0xff] %v16452_v61  ;;  %v17150_v28 = vld [vmem:[#allocation39_spill] sm:$0xff]  ;;  %v7211_v45 = vld [vmem:[#allocation3 + $0xac] sm:$0xf]  ;;  %v7212_v51 = vld [vmem:[#allocation3 + $0xb0] sm:$0x1]  ;;  %11003 = vmatmul.bf16.gmra.mxu3 %v12816_v36  ;;  %v10907_v19 = vpop.f32.mrf.mxu2  ;;  %v8243_v38 = vsel %vm14518_vm14, %v8238_v4, %v8242_v13 }
 0x4b4   : > { %v10819_v10 = vadd.f32 %v17150_v28, %v17149_v60  ;;  %v13063_v54 = vld [vmem:[#allocation5 + $0x370] sm:$0xf]  ;;  %v7541_v25 = vshll.u32 %v7211_v45, 16  ;;  %v7545_v11 = vshrl.u32 %v7211_v45, 16  ;;  %v13813_v12 = vld [vmem:[#allocation5 + $0x390] sm:$0xf0]  ;;  %v16464_v45 = vpop.f32.mrf.mxu1 }
 0x4b5   : > { %11092 = vmatmul.bf16.gmra.mxu0 %v12820_v41  ;;  %7924 = vst [vmem:[#allocation5 + $0x278] sm:$0xf] %v7825_v24  ;;  %v8247_v17 = vrot.slane %v8245_v31, 4  ;;  %v17151_v6 = vld [vmem:[#allocation28_spill] sm:$0xff]  ;;  %v7534_v36 = vrot.slane %v7532_v15, 4  ;;  %v7537_v40 = vrot.slane %v7535_v32, 5  ;;  %v13064_v28 = vor.u32 %v13813_v12, %v13063_v54 }
 0x4b6   : > { %v16458_v27 = vadd.f32 %v10907_v19, %v10819_v10  ;;  %v10600_v23 = vadd.f32 %v16251_v47, %v17151_v6  ;;  %11181 = vmatmul.bf16.gmra.mxu1 %v12824_v9  ;;  %v7543_v55 = vrot.slane %v7541_v25, 5  ;;  %8483 = vst [vmem:[#allocation5 + $0x238] sm:$0xf] %v8243_v38  ;;  %v10688_v60 = vpop.f32.mrf.mxu3  ;;  %v7547_v1 = vrot.slane %v7545_v11, 4  ;;  %v7957_v13 = vld [vmem:[#allocation3 + $0x7c] sm:$0xf] }
 0x4b7   : > { %v7551_v41 = vshll.u32 %v7212_v51, 16  ;;  %v8250_v10 = vrot.slane %v8248_v37, 5  ;;  %v7538_v61 = vor.u32 %v7537_v40, %v7534_v36  ;;  %v8029_v4 = vld [vmem:[#allocation3 + $0x7c] sm:$0xf]  ;;  %7989 = vst [vmem:[#allocation5 + $0x27c] sm:$0xf] %v7957_v13 }
 0x4b8   : > { %v10689_v19 = vadd.f32 %v10688_v60, %v10600_v23  ;;  %10949 = vmatmul.bf16.gmra.mxu2 %v13064_v28  ;;  %v7548_v31 = vor.u32 %v7547_v1, %v7543_v55  ;;  %v8030_v47 = vld [vmem:[#allocation3 + $0x80] sm:$0x1]  ;;  %v8254_v54 = vshll.u32 %v8029_v4, 16  ;;  %v8258_v11 = vshrl.u32 %v8029_v4, 16  ;;  %v16468_v51 = vld [vmem:[#allocation3 + $0x24] sm:$0xe] }
 0x4b9   : > { %v8251_v9 = vor.u32 %v8250_v10, %v8247_v17  ;;  %v12849_v32 = vld [vmem:[#allocation5 + $0x1e4] sm:$0xf0]  ;;  %v7539_v25 = vrot.slane %v7538_v61, 4  ;;  %v17153_v37 = vld [vmem:[#allocation45_spill] sm:$0xff]  ;;  %v7553_v6 = vrot.slane %v7551_v41, 5  ;;  %v8264_v61 = vshll.u32 %v8030_v47, 16 }
 0x4ba   : > { %v16466_v24 = vadd.f32 %v10777_v7, %v10689_v19  ;;  %v10779_v15 = vpop.f32.mrf.mxu0  ;;  %v10822_v12 = vadd.f32 %v17153_v37, %v16158_v57  ;;  %v7549_v38 = vrot.slane %v7548_v31, 4  ;;  %v16472_v36 = vld [vmem:[#allocation3 + $0x28] sm:$0xf]  ;;  %v13755_v60 = vld [vmem:[#allocation5 + $0x1c4] sm:$0xf]  ;;  %v8256_v17 = vrot.slane %v8254_v54, 5 }
 0x4bb   : > { %v8252_v23 = vrot.slane %v8251_v9, 4  ;;  %v10910_v40 = vpop.f32.mrf.mxu2  ;;  %v7544_v7 = vsel %vm14518_vm14, %v7539_v25, %v7543_v55  ;;  %v8260_v28 = vrot.slane %v8258_v11, 4  ;;  %v7695_v1 = vld [vmem:[#allocation3 + $0x7c] sm:$0xf]  ;;  %v13760_v19 = vld [vmem:[#allocation5 + $0x1e8] sm:$0xf0]  ;;  %v12852_v11 = vor.u32 %v13755_v60, %v12849_v32 }
 0x4bc   : > { %17152 = vst [vmem:[#allocation23_spill] sm:$0xff] %v16466_v24  ;;  %v16476_v10 = vadd.f32 %v10910_v40, %v10822_v12  ;;  %v7554_v57 = vsel %vm14518_vm14, %v7549_v38, %v7553_v6  ;;  %v7694_v41 = vld [vmem:[#allocation3 + $0x78] sm:$0xe]  ;;  %v17155_v13 = vld [vmem:[#allocation29_spill] sm:$0xff]  ;;  %v12855_v31 = vld [vmem:[#allocation5 + $0x1c8] sm:$0xf]  ;;  %v16488_v60 = vpop.f32.mrf.mxu1 }
 0x4bd   : > { %7661 = vst [vmem:[#allocation5 + $0x3b8] sm:$0xf] %v7544_v7  ;;  %v10602_v4 = vadd.f32 %v16263_v62, %v17155_v13  ;;  %v8257_v55 = vsel %vm14518_vm14, %v8252_v23, %v8256_v17  ;;  %v8261_v9 = vor.u32 %v8260_v28, %v8256_v17  ;;  %v7696_v25 = vld [vmem:[#allocation3 + $0x80] sm:$0x1]  ;;  %v12502_v47 = vrot.slane %v16468_v51, 9  ;;  %v17156_v24 = vld [vmem:[#allocation47_spill] sm:$0xff] }
 0x4be   : > { %17154 = vst [vmem:[#allocation24_spill] sm:$0xff] %v16476_v10  ;;  %v10690_v54 = vpop.f32.mrf.mxu3  ;;  %v13756_v37 = vld [vmem:[#allocation5 + $0x1cc] sm:$0xf]  ;;  %v12857_v12 = vld [vmem:[#allocation5 + $0x1ec] sm:$0xf0]  ;;  %v7828_v38 = vrot.slane %v7695_v1, 5  ;;  %v12856_v10 = vor.u32 %v13760_v19, %v12855_v31 }
 0x4bf   : > { %7662 = vst [vmem:[#allocation5 + $0x3dc] sm:$0xf] %v7554_v57  ;;  %v8605_v6 = vrot.slane %v16472_v36, 5  ;;  %v10691_v40 = vadd.f32 %v10690_v54, %v10602_v4  ;;  %v8262_v7 = vrot.slane %v8261_v9, 4  ;;  %v8266_v62 = vrot.slane %v8264_v61, 5  ;;  %v17157_v23 = vld [vmem:[#allocation46_spill] sm:$0xff] }
 0x4c0   : > { %8484 = vst [vmem:[#allocation5 + $0x25c] sm:$0xf] %v8257_v55  ;;  %v12494_v13 = vrot.slane %v7694_v41, 9  ;;  %v7958_v57 = vld [vmem:[#allocation3 + $0x84] sm:$0xf]  ;;  %v10824_v17 = vadd.f32 %v17157_v23, %v17156_v24  ;;  %v7830_v28 = vrot.slane %v7828_v38, 4  ;;  %v12860_v36 = vor.u32 %v13756_v37, %v12857_v12 }
 0x4c1   : > { %v7831_v2 = vrot.slane %v7696_v25, 5  ;;  %7990 = vst [vmem:[#allocation5 + $0x2a0] sm:$0xf] %v7958_v57  ;;  %v8031_v51 = vld [vmem:[#allocation3 + $0x84] sm:$0xf]  ;;  %v16490_v55 = vadd.f32 %v10779_v15, %v10691_v40  ;;  %v8267_v19 = vsel %vm14518_vm14, %v8262_v7, %v8266_v62  ;;  %v13907_v57 = vld [vmem:[#allocation11 + $0x200] sm:$0xff] }
 0x4c2   : > { %v8505_v32 = vld [vmem:[#allocation3 + $0x2c] sm:$0x1]  ;;  %17158 = vst [vmem:[#allocation34_spill] sm:$0xff] %v16488_v60  ;;  %v10782_v1 = vpop.f32.mrf.mxu0  ;;  %v7213_v4 = vld [vmem:[#allocation3 + $0xb4] sm:$0xf]  ;;  %v7829_v24 = vsel %vm14485_vm12, %v12494_v13, %v7828_v38  ;;  %v8269_v12 = vshrl.u32 %v8031_v51, 16  ;;  %11244 = vmatpush.bf16.msra.mxu2 %v13907_v57 }
 0x4c3   : > { %17159 = vst [vmem:[#allocation25_spill] sm:$0xff] %v16490_v55  ;;  %v7214_v9 = vld [vmem:[#allocation3 + $0xb8] sm:$0xf]  ;;  %v7215_v61 = vld [vmem:[#allocation3 + $0xbc] sm:$0x1]  ;;  %v7556_v41 = vshrl.u32 %v7213_v4, 16  ;;  %11008 = vmatmul.bf16.gmra.mxu3 %v12852_v11  ;;  %v10912_v23 = vpop.f32.mrf.mxu2  ;;  %v7832_v37 = vsel %vm14485_vm12, %v7830_v28, %v7831_v2  ;;  %v8606_v2 = vsel %vm14485_vm12, %v12502_v47, %v8605_v6 }
 0x4c4   : > { %v7559_v31 = vshll.u32 %v7213_v4, 16  ;;  %v7565_v25 = vshll.u32 %v7214_v9, 16  ;;  %v7569_v54 = vshrl.u32 %v7214_v9, 16  ;;  %v7575_v15 = vshll.u32 %v7215_v61, 16  ;;  %8485 = vst [vmem:[#allocation5 + $0x280] sm:$0xf] %v8267_v19 }
 0x4c5   : > { %v8607_v40 = vrot.slane %v8605_v6, 4  ;;  %11097 = vmatmul.bf16.gmra.mxu0 %v12856_v10  ;;  %v16498_v55 = vadd.f32 %v10912_v23, %v10824_v17  ;;  %v7558_v62 = vrot.slane %v7556_v41, 4  ;;  %v17161_v4 = vld [vmem:[#allocation30_spill] sm:$0xff]  ;;  %7925 = vst [vmem:[#allocation5 + $0x29c] sm:$0xf] %v7829_v24  ;;  %v8608_v28 = vrot.slane %v8505_v32, 5 }
 0x4c6   : > { %v13822_v7 = vld [vmem:[#allocation5 + $0x3d8] sm:$0xf0]  ;;  %v7561_v38 = vrot.slane %v7559_v31, 5  ;;  %v7567_v13 = vrot.slane %v7565_v25, 5  ;;  %v10605_v9 = vadd.f32 %v16273_v52, %v17161_v4  ;;  %11186 = vmatmul.bf16.gmra.mxu1 %v12860_v36  ;;  %v13099_v11 = vld [vmem:[#allocation5 + $0x3b8] sm:$0xf]  ;;  %v10693_v19 = vpop.f32.mrf.mxu3 }
 0x4c7   : > { %17160 = vst [vmem:[#allocation26_spill] sm:$0xff] %v16498_v55  ;;  %v7571_v61 = vrot.slane %v7569_v54, 4  ;;  %v13100_v10 = vor.u32 %v13822_v7, %v13099_v11  ;;  %v8271_v23 = vrot.slane %v8269_v12, 4  ;;  %v8272_v41 = vshll.u32 %v8031_v51, 16  ;;  %v7959_v55 = vld [vmem:[#allocation3 + $0x88] sm:$0xf] }
 0x4c8   : > { %v7562_v17 = vor.u32 %v7561_v38, %v7558_v62  ;;  %7926 = vst [vmem:[#allocation5 + $0x2c0] sm:$0xf] %v7832_v37  ;;  %v10694_v31 = vadd.f32 %v10693_v19, %v10605_v9  ;;  %v7577_v57 = vrot.slane %v7575_v15, 5  ;;  %v8032_v60 = vld [vmem:[#allocation3 + $0x88] sm:$0xf]  ;;  %v8609_v52 = vsel %vm14485_vm12, %v8607_v40, %v8608_v28  ;;  %v17163_v7 = vld [vmem:[#allocation48_spill] sm:$0xff] }
 0x4c9   : > { %v7572_v25 = vor.u32 %v7571_v61, %v7567_v13  ;;  %10954 = vmatmul.bf16.gmra.mxu2 %v13100_v10  ;;  %7991 = vst [vmem:[#allocation5 + $0x2c4] sm:$0xf] %v7959_v55  ;;  %v8033_v24 = vld [vmem:[#allocation3 + $0x8c] sm:$0x1]  ;;  %v8274_v47 = vrot.slane %v8272_v41, 5  ;;  %v8278_v37 = vshll.u32 %v8032_v60, 16  ;;  %v16512_v55 = vpop.f32.mrf.mxu1 }
 0x4ca   : > { %v7563_v36 = vrot.slane %v7562_v17, 4  ;;  %v16506_v6 = vadd.f32 %v10782_v1, %v10694_v31  ;;  %v10784_v32 = vpop.f32.mrf.mxu0  ;;  %v8282_v12 = vshrl.u32 %v8032_v60, 16  ;;  %8742 = vst [vmem:[#allocation5 + $0x68] sm:$0xf] %v8606_v2  ;;  %v17162_v51 = vld [vmem:[#allocation49_spill] sm:$0xff]  ;;  %v8288_v40 = vshll.u32 %v8033_v24, 16 }
 0x4cb   : > { %v7573_v54 = vrot.slane %v7572_v25, 4  ;;  %v10827_v15 = vadd.f32 %v17163_v7, %v17162_v51  ;;  %v8275_v38 = vor.u32 %v8274_v47, %v8271_v23  ;;  %8743 = vst [vmem:[#allocation5 + $0x8c] sm:$0xf] %v8609_v52  ;;  %v8506_v4 = vld [vmem:[#allocation3 + $0x30] sm:$0xe]  ;;  %v10915_v9 = vpop.f32.mrf.mxu2  ;;  %v8280_v11 = vrot.slane %v8278_v37, 5 }
 0x4cc   : > { %v7568_v62 = vsel %vm14518_vm14, %v7563_v36, %v7567_v13  ;;  %v8284_v60 = vrot.slane %v8282_v12, 4  ;;  %v8507_v61 = vld [vmem:[#allocation3 + $0x34] sm:$0xf]  ;;  %v12885_v28 = vld [vmem:[#allocation5 + $0x22c] sm:$0xf0]  ;;  %v17164_v13 = vld [vmem:[#allocation31_spill] sm:$0xff] }
 0x4cd   : > { %v7578_v1 = vsel %vm14518_vm14, %v7573_v54, %v7577_v57  ;;  %7663 = vst [vmem:[#allocation5 + $0x400] sm:$0xf] %v7568_v62  ;;  %v16516_v2 = vadd.f32 %v10915_v9, %v10827_v15  ;;  %v8276_v19 = vrot.slane %v8275_v38, 4  ;;  %v10607_v10 = vadd.f32 %v16289_v49, %v17164_v13  ;;  %v13769_v17 = vld [vmem:[#allocation5 + $0x230] sm:$0xf0] }
 0x4ce   : > { %7664 = vst [vmem:[#allocation5 + $0x424] sm:$0xf] %v7578_v1  ;;  %v8285_v23 = vor.u32 %v8284_v60, %v8280_v11  ;;  %v8508_v41 = vld [vmem:[#allocation3 + $0x38] sm:$0x1]  ;;  %v12503_v31 = vrot.slane %v8506_v4, 9  ;;  %v8612_v25 = vrot.slane %v8507_v61, 5  ;;  %v10695_v52 = vpop.f32.mrf.mxu3 }
 0x4cf   : > { %v13764_v36 = vld [vmem:[#allocation5 + $0x20c] sm:$0xf]  ;;  %v8281_v57 = vsel %vm14518_vm14, %v8276_v19, %v8280_v11  ;;  %v8290_v24 = vrot.slane %v8288_v40, 5  ;;  %v8615_v47 = vrot.slane %v8508_v41, 5  ;;  %v10696_v54 = vadd.f32 %v10695_v52, %v10607_v10  ;;  %v12891_v37 = vld [vmem:[#allocation5 + $0x210] sm:$0xf] }
 0x4d0   : > { %v8286_v12 = vrot.slane %v8285_v23, 4  ;;  %8486 = vst [vmem:[#allocation5 + $0x2a4] sm:$0xf] %v8281_v57  ;;  %v8613_v51 = vsel %vm14485_vm12, %v12503_v31, %v8612_v25  ;;  %v8614_v49 = vrot.slane %v8612_v25, 4  ;;  %v12888_v7 = vor.u32 %v13764_v36, %v12885_v28  ;;  %v13765_v62 = vld [vmem:[#allocation5 + $0x214] sm:$0xf] }
 0x4d1   : > { %v12892_v15 = vor.u32 %v13769_v17, %v12891_v37  ;;  %v12893_v38 = vld [vmem:[#allocation5 + $0x234] sm:$0xf0]  ;;  %8744 = vst [vmem:[#allocation5 + $0xb0] sm:$0xf] %v8613_v51  ;;  %v16524_v4 = vadd.f32 %v10784_v32, %v10696_v54  ;;  %v7216_v11 = vld [vmem:[#allocation3 + $0xc0] sm:$0xf]  ;;  %v16536_v37 = vpop.f32.mrf.mxu1 }
 0x4d2   : > { %v10787_v9 = vpop.f32.mrf.mxu0  ;;  %v17165_v1 = vld [vmem:[#allocation50_spill] sm:$0xff]  ;;  %v7217_v60 = vld [vmem:[#allocation3 + $0xc4] sm:$0xf]  ;;  %v8291_v61 = vsel %vm14518_vm14, %v8286_v12, %v8290_v24  ;;  %v8616_v19 = vsel %vm14485_vm12, %v8614_v49, %v8615_v47  ;;  %v8509_v13 = vld [vmem:[#allocation3 + $0x3c] sm:$0xe]  ;;  %v7580_v10 = vshrl.u32 %v7216_v11, 16  ;;  %v12896_v32 = vor.u32 %v13765_v62, %v12893_v38 }
 0x4d3   : > { %v10829_v40 = vadd.f32 %v17165_v1, %v16217_v18  ;;  %v7218_v28 = vld [vmem:[#allocation3 + $0xc8] sm:$0x1]  ;;  %v7583_v17 = vshll.u32 %v7216_v11, 16  ;;  %v7589_v23 = vshll.u32 %v7217_v60, 16  ;;  %v7593_v41 = vshrl.u32 %v7217_v60, 16  ;;  %11013 = vmatmul.bf16.gmra.mxu3 %v12888_v7  ;;  %v10917_v31 = vpop.f32.mrf.mxu2  ;;  %v17166_v47 = vld [vmem:[#allocation32_spill] sm:$0xff] }
 0x4d4   : > { %8487 = vst [vmem:[#allocation5 + $0x2c8] sm:$0xf] %v8291_v61  ;;  %v8510_v18 = vld [vmem:[#allocation3 + $0x40] sm:$0xf]  ;;  %v7582_v36 = vrot.slane %v7580_v10, 4  ;;  %v10610_v54 = vadd.f32 %v16305_v39, %v17166_v47  ;;  %v7599_v7 = vshll.u32 %v7218_v28, 16 }
 0x4d5   : > { %v13831_v25 = vld [vmem:[#allocation5 + $0x420] sm:$0xf0]  ;;  %11102 = vmatmul.bf16.gmra.mxu0 %v12892_v15  ;;  %v16532_v52 = vadd.f32 %v10917_v31, %v10829_v40  ;;  %v7585_v57 = vrot.slane %v7583_v17, 5  ;;  %8745 = vst [vmem:[#allocation5 + $0xd4] sm:$0xf] %v8616_v19  ;;  %v7591_v51 = vrot.slane %v7589_v23, 5 }
 0x4d6   : > { %v8511_v24 = vld [vmem:[#allocation3 + $0x44] sm:$0x1]  ;;  %11191 = vmatmul.bf16.gmra.mxu1 %v12896_v32  ;;  %v13135_v12 = vld [vmem:[#allocation5 + $0x400] sm:$0xf]  ;;  %v7595_v49 = vrot.slane %v7593_v41, 4  ;;  %v10698_v62 = vpop.f32.mrf.mxu3  ;;  %v12504_v15 = vrot.slane %v8509_v13, 9 }
 0x4d7   : > { %v13136_v38 = vor.u32 %v13831_v25, %v13135_v12  ;;  %v7586_v1 = vor.u32 %v7585_v57, %v7582_v36  ;;  %v8619_v40 = vrot.slane %v8510_v18, 5  ;;  %v8512_v11 = vld [vmem:[#allocation3 + $0x48] sm:$0xe]  ;;  %v10699_v60 = vadd.f32 %v10698_v62, %v10610_v54  ;;  %v8513_v10 = vld [vmem:[#allocation3 + $0x4c] sm:$0xf] }
 0x4d8   : > { %v7596_v61 = vor.u32 %v7595_v49, %v7591_v51  ;;  %v8622_v19 = vrot.slane %v8511_v24, 5  ;;  %v8514_v31 = vld [vmem:[#allocation3 + $0x50] sm:$0x1]  ;;  %v8626_v23 = vrot.slane %v8513_v10, 5  ;;  %v7601_v36 = vrot.slane %v7599_v7, 5 }
 0x4d9   : > { %10959 = vmatmul.bf16.gmra.mxu2 %v13136_v38  ;;  %v7587_v17 = vrot.slane %v7586_v1, 4  ;;  %v8620_v39 = vsel %vm14485_vm12, %v12504_v15, %v8619_v40  ;;  %v8621_v32 = vrot.slane %v8619_v40, 4  ;;  %v16540_v41 = vadd.f32 %v10787_v9, %v10699_v60  ;;  %v12921_v38 = vld [vmem:[#allocation5 + $0x274] sm:$0xf0]  ;;  %v16558_v1 = vpop.f32.mrf.mxu1  ;;  %v13778_v40 = vld [vmem:[#allocation5 + $0x278] sm:$0xf0] }
 0x4da   : > { %v10789_v28 = vpop.f32.mrf.mxu0  ;;  %v7597_v25 = vrot.slane %v7596_v61, 4  ;;  %8746 = vst [vmem:[#allocation5 + $0xf8] sm:$0xf] %v8620_v39  ;;  %v12505_v13 = vrot.slane %v8512_v11, 9  ;;  %v10832_v18 = vadd.f32 %v16245_v43, %v16247_v0  ;;  %v8628_v12 = vrot.slane %v8626_v23, 4  ;;  %v17167_v43 = vld [vmem:[#allocation33_spill] sm:$0xff] }
 0x4db   : > { %v7592_v57 = vsel %vm14518_vm14, %v7587_v17, %v7591_v51  ;;  %v8623_v24 = vsel %vm14485_vm12, %v8621_v32, %v8622_v19  ;;  %v10920_v47 = vpop.f32.mrf.mxu2  ;;  %v8629_v49 = vrot.slane %v8514_v31, 5  ;;  %v10612_v0 = vadd.f32 %v16319_v50, %v17167_v43  ;;  %v13773_v11 = vld [vmem:[#allocation5 + $0x254] sm:$0xf]  ;;  %v12929_v60 = vld [vmem:[#allocation5 + $0x27c] sm:$0xf0] }
 0x4dc   : > { %v7602_v54 = vsel %vm14518_vm14, %v7597_v25, %v7601_v36  ;;  %7665 = vst [vmem:[#allocation5 + $0x448] sm:$0xf] %v7592_v57  ;;  %v8627_v9 = vsel %vm14485_vm12, %v12505_v13, %v8626_v23  ;;  %v16552_v7 = vadd.f32 %v10920_v47, %v10832_v18  ;;  %v12924_v10 = vor.u32 %v13773_v11, %v12921_v38  ;;  %v12927_v17 = vld [vmem:[#allocation5 + $0x258] sm:$0xf]  ;;  %v13774_v39 = vld [vmem:[#allocation5 + $0x25c] sm:$0xf] }
 0x4dd   : > { %7666 = vst [vmem:[#allocation5 + $0x46c] sm:$0xf] %v7602_v54  ;;  %v8630_v51 = vsel %vm14485_vm12, %v8628_v12, %v8629_v49  ;;  %v12928_v50 = vor.u32 %v13778_v40, %v12927_v17  ;;  %v17168_v32 = vld [vmem:[#allocation21_spill] sm:$0xff]  ;;  %v17169_v31 = vld [vmem:[#allocation51_spill] sm:$0xff]  ;;  %v7697_v25 = vld [vmem:[#allocation3 + $0x84] sm:$0xe]  ;;  %v12932_v13 = vor.u32 %v13774_v39, %v12929_v60 }
 0x4de   : > { %8747 = vst [vmem:[#allocation5 + $0x11c] sm:$0xf] %v8623_v24  ;;  %v10700_v62 = vpop.f32.mrf.mxu3  ;;  %v10834_v23 = vadd.f32 %v17169_v31, %v17168_v32  ;;  %v7698_v36 = vld [vmem:[#allocation3 + $0x88] sm:$0xf]  ;;  %v7699_v24 = vld [vmem:[#allocation3 + $0x8c] sm:$0x1] }
 0x4df   : > { %8748 = vst [vmem:[#allocation5 + $0x140] sm:$0xf] %v8627_v9  ;;  %v10701_v15 = vadd.f32 %v10700_v62, %v10612_v0  ;;  %v12495_v47 = vrot.slane %v7697_v25, 9  ;;  %v7835_v54 = vrot.slane %v7698_v36, 5  ;;  %v7960_v12 = vld [vmem:[#allocation3 + $0x90] sm:$0xf] }
 0x4e0   : > { %8749 = vst [vmem:[#allocation5 + $0x164] sm:$0xf] %v8630_v51  ;;  %v7961_v49 = vld [vmem:[#allocation3 + $0x94] sm:$0xf]  ;;  %v7838_v51 = vrot.slane %v7699_v24, 5 }
 0x4e1   : > { %v16560_v61 = vadd.f32 %v10789_v28, %v10701_v15  ;;  %v7836_v43 = vsel %vm14485_vm12, %v12495_v47, %v7835_v54  ;;  %v7837_v0 = vrot.slane %v7835_v54, 4  ;;  %7992 = vst [vmem:[#allocation5 + $0x2e8] sm:$0xf] %v7960_v12  ;;  %v8034_v62 = vld [vmem:[#allocation3 + $0x90] sm:$0xf] }
 0x4e2   : > { %v11068_v19 = vpop.f32.mrf.mxu0  ;;  %7927 = vst [vmem:[#allocation5 + $0x2e4] sm:$0xf] %v7836_v43  ;;  %v8035_v40 = vld [vmem:[#allocation3 + $0x94] sm:$0xf]  ;;  %v8293_v17 = vshrl.u32 %v8034_v62, 16 }
 0x4e3   : > { %11018 = vmatmul.bf16.gmra.mxu3 %v12924_v10  ;;  %v10922_v18 = vpop.f32.mrf.mxu2  ;;  %v13171_v9 = vld [vmem:[#allocation5 + $0x448] sm:$0xf]  ;;  %v7839_v60 = vsel %vm14485_vm12, %v7837_v0, %v7838_v51  ;;  %7993 = vst [vmem:[#allocation5 + $0x30c] sm:$0xf] %v7961_v49  ;;  %v8036_v10 = vld [vmem:[#allocation3 + $0x98] sm:$0x1] }
 0x4e4   : > { %v13840_v57 = vld [vmem:[#allocation5 + $0x468] sm:$0xf0]  ;;  %v16564_v28 = vadd.f32 %v10922_v18, %v10834_v23  ;;  %7928 = vst [vmem:[#allocation5 + $0x308] sm:$0xf] %v7839_v60  ;;  %v8302_v39 = vshll.u32 %v8035_v40, 16  ;;  %v8306_v32 = vshrl.u32 %v8035_v40, 16  ;;  %v16571_v23 = vpop.f32.mrf.mxu1 }
 0x4e5   : > { %11107 = vmatmul.bf16.gmra.mxu0 %v12928_v50  ;;  %v13172_v15 = vor.u32 %v13840_v57, %v13171_v9  ;;  %v8296_v50 = vshll.u32 %v8034_v62, 16  ;;  %v8515_v31 = vld [vmem:[#allocation3 + $0x54] sm:$0xe]  ;;  %v8312_v54 = vshll.u32 %v8036_v10, 16  ;;  %v8516_v9 = vld [vmem:[#allocation3 + $0x58] sm:$0xf] }
 0x4e6   : > { %11196 = vmatmul.bf16.gmra.mxu1 %v12932_v13  ;;  %v10979_v38 = vpop.f32.mrf.mxu3  ;;  %v8295_v13 = vrot.slane %v8293_v17, 4  ;;  %v8304_v24 = vrot.slane %v8302_v39, 5  ;;  %v8308_v47 = vrot.slane %v8306_v32, 4  ;;  %v12506_v43 = vrot.slane %v8515_v31, 9  ;;  %v13782_v17 = vld [vmem:[#allocation5 + $0x29c] sm:$0xf] }
 0x4e7   : > { %v10980_v11 = vadd.f32 %v10979_v38, %v16337_v35  ;;  %v8298_v18 = vrot.slane %v8296_v50, 5  ;;  %v17170_v35 = vld [vmem:[#allocation22_spill] sm:$0xff]  ;;  %v8633_v0 = vrot.slane %v8516_v9, 5  ;;  %v12957_v38 = vld [vmem:[#allocation5 + $0x2bc] sm:$0xf0]  ;;  %v8314_v60 = vrot.slane %v8312_v54, 5 }
 0x4e8   : > { %v10837_v57 = vadd.f32 %v17170_v35, %v16267_v42  ;;  %v8309_v62 = vor.u32 %v8308_v47, %v8304_v24  ;;  %v8517_v42 = vld [vmem:[#allocation3 + $0x5c] sm:$0x1]  ;;  %v12963_v50 = vld [vmem:[#allocation5 + $0x2a0] sm:$0xf]  ;;  %v12965_v31 = vld [vmem:[#allocation5 + $0x2c4] sm:$0xf0]  ;;  %v12960_v47 = vor.u32 %v13782_v17, %v12957_v38 }
 0x4e9   : > { %10964 = vmatmul.bf16.gmra.mxu2 %v13172_v15  ;;  %v16573_v25 = vadd.f32 %v11068_v19, %v10980_v11  ;;  %v8299_v49 = vor.u32 %v8298_v18, %v8295_v13  ;;  %v8634_v15 = vsel %vm14485_vm12, %v12506_v43, %v8633_v0  ;;  %v13787_v39 = vld [vmem:[#allocation5 + $0x2c0] sm:$0xf0]  ;;  %v8635_v18 = vrot.slane %v8633_v0, 4 }
 0x4ea   : > { %v11070_v36 = vpop.f32.mrf.mxu0  ;;  %v8310_v11 = vrot.slane %v8309_v62, 4  ;;  %8750 = vst [vmem:[#allocation5 + $0x188] sm:$0xf] %v8634_v15  ;;  %v13783_v54 = vld [vmem:[#allocation5 + $0x2a4] sm:$0xf] }
 0x4eb   : > { %v10925_v12 = vpop.f32.mrf.mxu2  ;;  %v8300_v19 = vrot.slane %v8299_v49, 4  ;;  %v13707_v9 = vld [vmem:[#allocation5 + $0x40] sm:$0xf0]  ;;  %v17171_v49 = vld [vmem:[#allocation38_spill] sm:$0xff] }
 0x4ec   : > { %v16577_v51 = vadd.f32 %v10925_v12, %v10837_v57  ;;  %v8315_v13 = vsel %vm14518_vm14, %v8310_v11, %v8314_v60  ;;  %v12964_v12 = vor.u32 %v13787_v39, %v12963_v50  ;;  %v10839_v43 = vadd.f32 %v16295_v59, %v17171_v49  ;;  %v7700_v62 = vld [vmem:[#allocation3 + $0x90] sm:$0xe]  ;;  %v16590_v15 = vpop.f32.mrf.mxu1  ;;  %v8037_v50 = vld [vmem:[#allocation3 + $0x9c] sm:$0xf] }
 0x4ed   : > { %v8305_v32 = vsel %vm14518_vm14, %v8300_v19, %v8304_v24  ;;  %8489 = vst [vmem:[#allocation5 + $0x310] sm:$0xf] %v8315_v13  ;;  %v7701_v24 = vld [vmem:[#allocation3 + $0x94] sm:$0xf]  ;;  %v7702_v19 = vld [vmem:[#allocation3 + $0x98] sm:$0x1] }
 0x4ee   : > { %v10981_v40 = vpop.f32.mrf.mxu3  ;;  %8488 = vst [vmem:[#allocation5 + $0x2ec] sm:$0xf] %v8305_v32  ;;  %v12496_v11 = vrot.slane %v7700_v62, 9  ;;  %v7842_v60 = vrot.slane %v7701_v24, 5  ;;  %v7845_v38 = vrot.slane %v7702_v19, 5  ;;  %v8317_v13 = vshrl.u32 %v8037_v50, 16 }
 0x4ef   : > { %v10982_v10 = vadd.f32 %v10981_v40, %v16351_v63  ;;  %v8636_v63 = vrot.slane %v8517_v42, 5  ;;  %v12968_v40 = vor.u32 %v13783_v54, %v12965_v31  ;;  %v7963_v42 = vld [vmem:[#allocation3 + $0xa0] sm:$0xf]  ;;  %v8320_v49 = vshll.u32 %v8037_v50, 16  ;;  %v17173_v50 = vld [vmem:[#allocation41_spill] sm:$0xff] }
 0x4f0   : > { %v7843_v39 = vsel %vm14485_vm12, %v12496_v11, %v7842_v60  ;;  %v7844_v32 = vrot.slane %v7842_v60, 4  ;;  %7995 = vst [vmem:[#allocation5 + $0x354] sm:$0xf] %v7963_v42  ;;  %v8038_v31 = vld [vmem:[#allocation3 + $0xa0] sm:$0xf] }
 0x4f1   : > { %v16586_v35 = vadd.f32 %v11070_v36, %v10982_v10  ;;  %v12647_v36 = vld [vmem:[#allocation5 + $0x20] sm:$0xf]  ;;  %v7962_v10 = vld [vmem:[#allocation3 + $0x9c] sm:$0xf]  ;;  %v8637_v59 = vsel %vm14485_vm12, %v8635_v18, %v8636_v63  ;;  %7929 = vst [vmem:[#allocation5 + $0x32c] sm:$0xf] %v7843_v39 }
 0x4f2   : > { %v11073_v57 = vpop.f32.mrf.mxu0  ;;  %7994 = vst [vmem:[#allocation5 + $0x330] sm:$0xf] %v7962_v10  ;;  %v12648_v54 = vor.u32 %v13707_v9, %v12647_v36  ;;  %v7846_v24 = vsel %vm14485_vm12, %v7844_v32, %v7845_v38  ;;  %v8319_v18 = vrot.slane %v8317_v13, 4  ;;  %v8330_v63 = vshrl.u32 %v8038_v31, 16  ;;  %v8518_v19 = vld [vmem:[#allocation3 + $0x60] sm:$0xe] }
 0x4f3   : > { %11023 = vmatmul.bf16.gmra.mxu3 %v12960_v47  ;;  %v10927_v0 = vpop.f32.mrf.mxu2  ;;  %8751 = vst [vmem:[#allocation5 + $0x1ac] sm:$0xf] %v8637_v59  ;;  %v8519_v10 = vld [vmem:[#allocation3 + $0x64] sm:$0xf]  ;;  %v12507_v38 = vrot.slane %v8518_v19, 9 }
 0x4f4   : > { %v16592_v17 = vadd.f32 %v10927_v0, %v10839_v43  ;;  %v8326_v43 = vshll.u32 %v8038_v31, 16  ;;  %7930 = vst [vmem:[#allocation5 + $0x350] sm:$0xf] %v7846_v24  ;;  %v8332_v36 = vrot.slane %v8330_v63, 4  ;;  %v17172_v42 = vld [vmem:[#allocation40_spill] sm:$0xff]  ;;  %v8640_v32 = vrot.slane %v8519_v10, 5 }
 0x4f5   : > { %11112 = vmatmul.bf16.gmra.mxu0 %v12964_v12  ;;  %v8039_v12 = vld [vmem:[#allocation3 + $0xa4] sm:$0x1] }
 0x4f6   : > { %11201 = vmatmul.bf16.gmra.mxu1 %v12968_v40  ;;  %v10984_v47 = vpop.f32.mrf.mxu3  ;;  %v8322_v40 = vrot.slane %v8320_v49, 5  ;;  %v8328_v0 = vrot.slane %v8326_v43, 5  ;;  %v8336_v60 = vshll.u32 %v8039_v12, 16  ;;  %v8642_v43 = vrot.slane %v8640_v32, 4  ;;  %v13796_v10 = vld [vmem:[#allocation5 + $0x308] sm:$0xf0] }
 0x4f7   : > { %v10985_v62 = vadd.f32 %v10984_v47, %v16367_v5  ;;  %v10842_v5 = vadd.f32 %v17173_v50, %v17172_v42  ;;  %v8520_v47 = vld [vmem:[#allocation3 + $0x68] sm:$0x1]  ;;  %v13791_v50 = vld [vmem:[#allocation5 + $0x2e4] sm:$0xf] }
 0x4f8   : > { %v8323_v39 = vor.u32 %v8322_v40, %v8319_v18  ;;  %v8333_v59 = vor.u32 %v8332_v36, %v8328_v0  ;;  %v8643_v13 = vrot.slane %v8520_v47, 5  ;;  %v8338_v24 = vrot.slane %v8336_v60, 5  ;;  %v12993_v18 = vld [vmem:[#allocation5 + $0x304] sm:$0xf0] }
 0x4f9   : > { %11245 = vmatmul.bf16.vlgmr.msra.gmra.mxu2 %v12648_v54  ;;  %v16601_v11 = vadd.f32 %v11073_v57, %v10985_v62  ;;  %v8641_v57 = vsel %vm14485_vm12, %v12507_v38, %v8640_v32  ;;  %v16609_v62 = vpop.f32.mrf.mxu1  ;;  %v12999_v47 = vld [vmem:[#allocation5 + $0x2e8] sm:$0xf]  ;;  %v13792_v38 = vld [vmem:[#allocation5 + $0x2ec] sm:$0xf] }
 0x4fa   : > { %v11075_v9 = vpop.f32.mrf.mxu0  ;;  %v8324_v49 = vrot.slane %v8323_v39, 4  ;;  %v8334_v12 = vrot.slane %v8333_v59, 4  ;;  %8752 = vst [vmem:[#allocation5 + $0x1d0] sm:$0xf] %v8641_v57  ;;  %v8644_v40 = vsel %vm14485_vm12, %v8642_v43, %v8643_v13  ;;  %v12996_v39 = vor.u32 %v13791_v50, %v12993_v18  ;;  %v13716_v32 = vld [vmem:[#allocation5 + $0x88] sm:$0xf0] }
 0x4fb   : > { %v10930_v31 = vpop.f32.mrf.mxu2  ;;  %8753 = vst [vmem:[#allocation5 + $0x1f4] sm:$0xf] %v8644_v40  ;;  %v17174_v59 = vld [vmem:[#allocation42_spill] sm:$0xff]  ;;  %v7703_v13 = vld [vmem:[#allocation3 + $0x9c] sm:$0xe] }
 0x4fc   : > { %v16605_v54 = vadd.f32 %v10930_v31, %v10842_v5  ;;  %v8329_v19 = vsel %vm14518_vm14, %v8324_v49, %v8328_v0  ;;  %v8339_v42 = vsel %vm14518_vm14, %v8334_v12, %v8338_v24  ;;  %v13001_v5 = vld [vmem:[#allocation5 + $0x30c] sm:$0xf0]  ;;  %v13000_v31 = vor.u32 %v13796_v10, %v12999_v47  ;;  %v7704_v49 = vld [vmem:[#allocation3 + $0xa0] sm:$0xf]  ;;  %v7705_v57 = vld [vmem:[#allocation3 + $0xa4] sm:$0x1] }
 0x4fd   : > { %8490 = vst [vmem:[#allocation5 + $0x334] sm:$0xf] %v8329_v19  ;;  %v13004_v43 = vor.u32 %v13792_v38, %v13001_v5  ;;  %v12683_v24 = vld [vmem:[#allocation5 + $0x68] sm:$0xf]  ;;  %v7852_v19 = vrot.slane %v7705_v57, 5 }
 0x4fe   : > { %v10986_v63 = vpop.f32.mrf.mxu3  ;;  %8491 = vst [vmem:[#allocation5 + $0x358] sm:$0xf] %v8339_v42  ;;  %v7964_v18 = vld [vmem:[#allocation3 + $0xa8] sm:$0xf]  ;;  %v7965_v40 = vld [vmem:[#allocation3 + $0xac] sm:$0xf]  ;;  %v12684_v47 = vor.u32 %v13716_v32, %v12683_v24  ;;  %v10847_v24 = vadd.f32 %v16359_v58, %v16329_v29 }
 0x4ff   : > { %v10987_v36 = vadd.f32 %v10986_v63, %v16387_v44  ;;  %v10844_v44 = vadd.f32 %v16333_v48, %v17174_v59  ;;  %v12497_v63 = vrot.slane %v7703_v13, 9  ;;  %7996 = vst [vmem:[#allocation5 + $0x378] sm:$0xf] %v7964_v18  ;;  %v8040_v10 = vld [vmem:[#allocation3 + $0xa8] sm:$0xf] }
 0x500   : > { %7997 = vst [vmem:[#allocation5 + $0x39c] sm:$0xf] %v7965_v40  ;;  %v8041_v50 = vld [vmem:[#allocation3 + $0xac] sm:$0xf]  ;;  %v8341_v5 = vshrl.u32 %v8040_v10, 16 }
 0x501   : > { %v16618_v60 = vadd.f32 %v11075_v9, %v10987_v36  ;;  %v7849_v9 = vrot.slane %v7704_v49, 5  ;;  %v16626_v38 = vpop.f32.mrf.mxu1  ;;  %v8344_v49 = vshll.u32 %v8040_v10, 16  ;;  %v8350_v57 = vshll.u32 %v8041_v50, 16  ;;  %v8522_v32 = vld [vmem:[#allocation3 + $0x70] sm:$0xf] }
 0x502   : > { %v11078_v0 = vpop.f32.mrf.mxu0  ;;  %v8343_v13 = vrot.slane %v8341_v5, 4  ;;  %v8647_v5 = vrot.slane %v8522_v32, 5  ;;  %v8523_v29 = vld [vmem:[#allocation3 + $0x74] sm:$0x1] }
 0x503   : > { %11028 = vmatmul.bf16.gmra.mxu3 %v12996_v39  ;;  %v10932_v12 = vpop.f32.mrf.mxu2  ;;  %v7850_v48 = vsel %vm14485_vm12, %v12497_v63, %v7849_v9  ;;  %v7851_v42 = vrot.slane %v7849_v9, 4  ;;  %v8346_v9 = vrot.slane %v8344_v49, 5  ;;  %v8352_v18 = vrot.slane %v8350_v57, 5  ;;  %v13805_v57 = vld [vmem:[#allocation5 + $0x350] sm:$0xf0] }
 0x504   : > { %v16622_v36 = vadd.f32 %v10932_v12, %v10844_v44  ;;  %7931 = vst [vmem:[#allocation5 + $0x374] sm:$0xf] %v7850_v48  ;;  %v8042_v44 = vld [vmem:[#allocation3 + $0xb0] sm:$0x1]  ;;  %v8521_v12 = vld [vmem:[#allocation3 + $0x6c] sm:$0xe] }
 0x505   : > { %11117 = vmatmul.bf16.gmra.mxu0 %v13000_v31  ;;  %v7853_v59 = vsel %vm14485_vm12, %v7851_v42, %v7852_v19  ;;  %v8360_v40 = vshll.u32 %v8042_v44, 16  ;;  %v8347_v19 = vor.u32 %v8346_v9, %v8343_v13  ;;  %v12508_v42 = vrot.slane %v8521_v12, 9  ;;  %v13800_v44 = vld [vmem:[#allocation5 + $0x32c] sm:$0xf]  ;;  %v13035_v13 = vld [vmem:[#allocation5 + $0x330] sm:$0xf] }
 0x506   : > { %17175 = vst [vmem:[#allocation37_spill] sm:$0xff] %v16622_v36  ;;  %11206 = vmatmul.bf16.gmra.mxu1 %v13004_v43  ;;  %v10989_v39 = vpop.f32.mrf.mxu3  ;;  %v8354_v43 = vshrl.u32 %v8041_v50, 16  ;;  %v13029_v50 = vld [vmem:[#allocation5 + $0x34c] sm:$0xf0]  ;;  %v13037_v12 = vld [vmem:[#allocation5 + $0x354] sm:$0xf0] }
 0x507   : > { %v10990_v31 = vadd.f32 %v10989_v39, %v16402_v8  ;;  %7932 = vst [vmem:[#allocation5 + $0x398] sm:$0xf] %v7853_v59  ;;  %v8348_v59 = vrot.slane %v8347_v19, 4  ;;  %v8362_v36 = vrot.slane %v8360_v40, 5  ;;  %v8649_v32 = vrot.slane %v8647_v5, 4 }
 0x508   : > { %v8356_v8 = vrot.slane %v8354_v43, 4  ;;  %v13032_v40 = vor.u32 %v13800_v44, %v13029_v50  ;;  %v13725_v19 = vld [vmem:[#allocation5 + $0xd0] sm:$0xf0]  ;;  %v7967_v44 = vld [vmem:[#allocation3 + $0xb8] sm:$0xf] }
 0x509   : > { %11250 = vmatmul.bf16.gmra.mxu2 %v12684_v47  ;;  %v16631_v63 = vadd.f32 %v11078_v0, %v10990_v31  ;;  %v8648_v0 = vsel %vm14485_vm12, %v12508_v42, %v8647_v5  ;;  %v8353_v43 = vsel %vm14518_vm14, %v8348_v59, %v8352_v18  ;;  %v13036_v42 = vor.u32 %v13805_v57, %v13035_v13  ;;  %v7707_v59 = vld [vmem:[#allocation3 + $0xac] sm:$0xf]  ;;  %v12719_v5 = vld [vmem:[#allocation5 + $0xb0] sm:$0xf]  ;;  %v8044_v57 = vld [vmem:[#allocation3 + $0xb8] sm:$0xf] }
 0x50a   : > { %v11080_v10 = vpop.f32.mrf.mxu0  ;;  %v8357_v47 = vor.u32 %v8356_v8, %v8352_v18  ;;  %8754 = vst [vmem:[#allocation5 + $0x218] sm:$0xf] %v8648_v0  ;;  %v7706_v18 = vld [vmem:[#allocation3 + $0xa8] sm:$0xe]  ;;  %v7708_v0 = vld [vmem:[#allocation3 + $0xb0] sm:$0x1] }
 0x50b   : > { %v10935_v48 = vpop.f32.mrf.mxu2  ;;  %8492 = vst [vmem:[#allocation5 + $0x37c] sm:$0xf] %v8353_v43  ;;  %v7856_v43 = vrot.slane %v7707_v59, 5 }
 0x50c   : > { %v16635_v39 = vadd.f32 %v10935_v48, %v10847_v24  ;;  %v8358_v49 = vrot.slane %v8357_v47, 4  ;;  %v16644_v24 = vpop.f32.mrf.mxu1  ;;  %v13801_v48 = vld [vmem:[#allocation5 + $0x334] sm:$0xf]  ;;  %v10849_v47 = vadd.f32 %v16373_v26, %v16345_v30  ;;  %7999 = vst [vmem:[#allocation5 + $0x3e4] sm:$0xf] %v7967_v44  ;;  %v10852_v44 = vadd.f32 %v16395_v16, %v16363_v34 }
 0x50d   : > { %v7858_v13 = vrot.slane %v7856_v43, 4 }
 0x50e   : > { %v10991_v31 = vpop.f32.mrf.mxu3  ;;  %v8363_v9 = vsel %vm14518_vm14, %v8358_v49, %v8362_v36  ;;  %v13040_v36 = vor.u32 %v13801_v48, %v13037_v12  ;;  %v12498_v49 = vrot.slane %v7706_v18, 9  ;;  %v12720_v48 = vor.u32 %v13725_v19, %v12719_v5  ;;  %v13065_v16 = vld [vmem:[#allocation5 + $0x394] sm:$0xf0] }
 0x50f   : > { %v10992_v58 = vadd.f32 %v10991_v31, %v16424_v56  ;;  %8493 = vst [vmem:[#allocation5 + $0x3a0] sm:$0xf] %v8363_v9  ;;  %v8650_v56 = vrot.slane %v8523_v29, 5  ;;  %v8043_v29 = vld [vmem:[#allocation3 + $0xb4] sm:$0xf]  ;;  %v8374_v18 = vshll.u32 %v8044_v57, 16 }
 0x510   : > { %v7857_v26 = vsel %vm14485_vm12, %v12498_v49, %v7856_v43  ;;  %v8365_v12 = vshrl.u32 %v8043_v29, 16 }
 0x511   : > { %v16646_v8 = vadd.f32 %v11080_v10, %v10992_v58  ;;  %v7859_v10 = vrot.slane %v7708_v0, 5  ;;  %v7966_v58 = vld [vmem:[#allocation3 + $0xb4] sm:$0xf]  ;;  %v8651_v30 = vsel %vm14485_vm12, %v8649_v32, %v8650_v56  ;;  %7933 = vst [vmem:[#allocation5 + $0x3bc] sm:$0xf] %v7857_v26  ;;  %v8378_v0 = vshrl.u32 %v8044_v57, 16 }
 0x512   : > { %7998 = vst [vmem:[#allocation5 + $0x3c0] sm:$0xf] %v7966_v58  ;;  %v11083_v9 = vpop.f32.mrf.mxu0  ;;  %v8367_v56 = vrot.slane %v8365_v12, 4  ;;  %v8376_v49 = vrot.slane %v8374_v18, 5  ;;  %v8525_v58 = vld [vmem:[#allocation3 + $0x7c] sm:$0xf] }
 0x513   : > { %11033 = vmatmul.bf16.gmra.mxu3 %v13032_v40  ;;  %v10937_v31 = vpop.f32.mrf.mxu2  ;;  %v7860_v32 = vsel %vm14485_vm12, %v7858_v13, %v7859_v10  ;;  %8755 = vst [vmem:[#allocation5 + $0x23c] sm:$0xf] %v8651_v30  ;;  %v8380_v19 = vrot.slane %v8378_v0, 4  ;;  %v8654_v10 = vrot.slane %v8525_v58, 5  ;;  %v13814_v0 = vld [vmem:[#allocation5 + $0x398] sm:$0xf0] }
 0x514   : > { %v16650_v50 = vadd.f32 %v10937_v31, %v10849_v47  ;;  %v8368_v47 = vshll.u32 %v8043_v29, 16  ;;  %7934 = vst [vmem:[#allocation5 + $0x3e0] sm:$0xf] %v7860_v32  ;;  %v8526_v29 = vld [vmem:[#allocation3 + $0x80] sm:$0x1]  ;;  %v16663_v13 = vpop.f32.mrf.mxu1 }
 0x515   : > { %11122 = vmatmul.bf16.gmra.mxu0 %v13036_v42  ;;  %v8045_v42 = vld [vmem:[#allocation3 + $0xbc] sm:$0x1]  ;;  %v8381_v57 = vor.u32 %v8380_v19, %v8376_v49  ;;  %v8657_v12 = vrot.slane %v8526_v29, 5  ;;  %v13809_v19 = vld [vmem:[#allocation5 + $0x374] sm:$0xf] }
 0x516   : > { %11211 = vmatmul.bf16.gmra.mxu1 %v13040_v36  ;;  %v10994_v40 = vpop.f32.mrf.mxu3  ;;  %v8524_v36 = vld [vmem:[#allocation3 + $0x78] sm:$0xe]  ;;  %v8370_v31 = vrot.slane %v8368_v47, 5  ;;  %v8384_v5 = vshll.u32 %v8045_v42, 16  ;;  %v8656_v42 = vrot.slane %v8654_v10, 4 }
 0x517   : > { %v10995_v59 = vadd.f32 %v10994_v40, %v16440_v20  ;;  %v12509_v26 = vrot.slane %v8524_v36, 9  ;;  %v8382_v47 = vrot.slane %v8381_v57, 4  ;;  %v13073_v58 = vld [vmem:[#allocation5 + $0x39c] sm:$0xf0]  ;;  %v13810_v29 = vld [vmem:[#allocation5 + $0x37c] sm:$0xf] }
 0x518   : > { %v8371_v20 = vor.u32 %v8370_v31, %v8367_v56  ;;  %v8386_v18 = vrot.slane %v8384_v5, 5  ;;  %v8658_v32 = vsel %vm14485_vm12, %v8656_v42, %v8657_v12  ;;  %v7711_v57 = vld [vmem:[#allocation3 + $0xbc] sm:$0x1]  ;;  %v13076_v12 = vor.u32 %v13810_v29, %v13073_v58  ;;  %v8048_v58 = vld [vmem:[#allocation3 + $0xc8] sm:$0x1] }
 0x519   : > { %11255 = vmatmul.bf16.gmra.mxu2 %v12720_v48  ;;  %v16659_v43 = vadd.f32 %v11083_v9, %v10995_v59  ;;  %v8655_v9 = vsel %vm14485_vm12, %v12509_v26, %v8654_v10  ;;  %8757 = vst [vmem:[#allocation5 + $0x284] sm:$0xf] %v8658_v32  ;;  %v7709_v10 = vld [vmem:[#allocation3 + $0xb4] sm:$0xe]  ;;  %v8046_v32 = vld [vmem:[#allocation3 + $0xc0] sm:$0xf] }
 0x51a   : > { %v8372_v48 = vrot.slane %v8371_v20, 4  ;;  %8756 = vst [vmem:[#allocation5 + $0x260] sm:$0xf] %v8655_v9  ;;  %v8387_v36 = vsel %vm14518_vm14, %v8382_v47, %v8386_v18  ;;  %v11085_v31 = vpop.f32.mrf.mxu0  ;;  %v13071_v20 = vld [vmem:[#allocation5 + $0x378] sm:$0xf]  ;;  %v12499_v42 = vrot.slane %v7709_v10, 9 }
 0x51b   : > { %v10940_v30 = vpop.f32.mrf.mxu2  ;;  %8495 = vst [vmem:[#allocation5 + $0x3e8] sm:$0xf] %v8387_v36  ;;  %v13072_v26 = vor.u32 %v13814_v0, %v13071_v20  ;;  %v12755_v9 = vld [vmem:[#allocation5 + $0xf8] sm:$0xf]  ;;  %v7866_v18 = vrot.slane %v7711_v57, 5  ;;  %v8389_v36 = vshrl.u32 %v8046_v32, 16  ;;  %v10857_v57 = vadd.f32 %v16446_v3, %v16397_v53 }
 0x51c   : > { %v16665_v40 = vadd.f32 %v10940_v30, %v10852_v44  ;;  %v8377_v59 = vsel %vm14518_vm14, %v8372_v48, %v8376_v49  ;;  %v13068_v44 = vor.u32 %v13809_v19, %v13065_v16  ;;  %v13734_v49 = vld [vmem:[#allocation5 + $0x118] sm:$0xf0]  ;;  %v7710_v30 = vld [vmem:[#allocation3 + $0xb8] sm:$0xf]  ;;  %v8047_v0 = vld [vmem:[#allocation3 + $0xc4] sm:$0xf] }
 0x51d   : > { %8494 = vst [vmem:[#allocation5 + $0x3c4] sm:$0xf] %v8377_v59  ;;  %v7863_v47 = vrot.slane %v7710_v30, 5  ;;  %v7969_v59 = vld [vmem:[#allocation3 + $0xc4] sm:$0xf]  ;;  %v8392_v20 = vshll.u32 %v8046_v32, 16 }
 0x51e   : > { %v10996_v34 = vpop.f32.mrf.mxu3  ;;  %8001 = vst [vmem:[#allocation5 + $0x42c] sm:$0xf] %v7969_v59  ;;  %v8398_v29 = vshll.u32 %v8047_v0, 16  ;;  %v8528_v30 = vld [vmem:[#allocation3 + $0x88] sm:$0xf] }
 0x51f   : > { %v10997_v56 = vadd.f32 %v10996_v34, %v16458_v27  ;;  %v10854_v27 = vadd.f32 %v16420_v21, %v16377_v14  ;;  %v7968_v34 = vld [vmem:[#allocation3 + $0xc0] sm:$0xf]  ;;  %v7864_v14 = vsel %vm14485_vm12, %v12499_v42, %v7863_v47  ;;  %v7865_v21 = vrot.slane %v7863_v47, 4  ;;  %v8529_v47 = vld [vmem:[#allocation3 + $0x8c] sm:$0x1] }
 0x520   : > { %8000 = vst [vmem:[#allocation5 + $0x408] sm:$0xf] %v7968_v34  ;;  %v8394_v10 = vrot.slane %v8392_v20, 5  ;;  %v8661_v34 = vrot.slane %v8528_v30, 5  ;;  %v8664_v53 = vrot.slane %v8529_v47, 5 }
 0x521   : > { %v16676_v5 = vadd.f32 %v11085_v31, %v10997_v56  ;;  %v16682_v56 = vpop.f32.mrf.mxu1  ;;  %v12756_v31 = vor.u32 %v13734_v49, %v12755_v9  ;;  %7935 = vst [vmem:[#allocation5 + $0x404] sm:$0xf] %v7864_v14  ;;  %v7867_v19 = vsel %vm14485_vm12, %v7865_v21, %v7866_v18  ;;  %v8408_v49 = vshll.u32 %v8048_v58, 16  ;;  %v13101_v14 = vld [vmem:[#allocation5 + $0x3dc] sm:$0xf0] }
 0x522   : > { %7936 = vst [vmem:[#allocation5 + $0x428] sm:$0xf] %v7867_v19  ;;  %v13823_v58 = vld [vmem:[#allocation5 + $0x3e0] sm:$0xf0]  ;;  %v13818_v20 = vld [vmem:[#allocation5 + $0x3bc] sm:$0xf] }
 0x523   : > { %11038 = vmatmul.bf16.gmra.mxu3 %v13068_v44  ;;  %v10942_v48 = vpop.f32.mrf.mxu2  ;;  %v8391_v44 = vrot.slane %v8389_v36, 4  ;;  %v8663_v36 = vrot.slane %v8661_v34, 4  ;;  %v8410_v19 = vrot.slane %v8408_v49, 5  ;;  %v13107_v30 = vld [vmem:[#allocation5 + $0x3c0] sm:$0xf]  ;;  %v10859_v49 = vadd.f32 %v16464_v45, %v16414_v33 }
 0x524   : > { %v16680_v16 = vadd.f32 %v10942_v48, %v10854_v27  ;;  %v8527_v27 = vld [vmem:[#allocation3 + $0x84] sm:$0xe] }
 0x525   : > { %11127 = vmatmul.bf16.gmra.mxu0 %v13072_v26  ;;  %v8402_v26 = vshrl.u32 %v8047_v0, 16  ;;  %v8395_v42 = vor.u32 %v8394_v10, %v8391_v44  ;;  %v12510_v18 = vrot.slane %v8527_v27, 9  ;;  %v8665_v27 = vsel %vm14485_vm12, %v8663_v36, %v8664_v53 }
 0x526   : > { %11216 = vmatmul.bf16.gmra.mxu1 %v13076_v12  ;;  %v8400_v12 = vrot.slane %v8398_v29, 5  ;;  %v13109_v29 = vld [vmem:[#allocation5 + $0x3e4] sm:$0xf0]  ;;  %v13104_v10 = vor.u32 %v13818_v20, %v13101_v14  ;;  %8759 = vst [vmem:[#allocation5 + $0x2cc] sm:$0xf] %v8665_v27  ;;  %v17176_v27 = vld [vmem:[#allocation43_spill] sm:$0xff] }
 0x527   : > { %v8404_v48 = vrot.slane %v8402_v26, 4  ;;  %v8396_v21 = vrot.slane %v8395_v42, 4  ;;  %v8662_v0 = vsel %vm14485_vm12, %v12510_v18, %v8661_v34  ;;  %v7713_v42 = vld [vmem:[#allocation3 + $0xc4] sm:$0xf]  ;;  %v13743_v34 = vld [vmem:[#allocation5 + $0x160] sm:$0xf0] }
 0x528   : > { %8758 = vst [vmem:[#allocation5 + $0x2a8] sm:$0xf] %v8662_v0  ;;  %v12791_v14 = vld [vmem:[#allocation5 + $0x140] sm:$0xf] }
 0x529   : > { %11260 = vmatmul.bf16.gmra.mxu2 %v12756_v31  ;;  %v8405_v32 = vor.u32 %v8404_v48, %v8400_v12  ;;  %v16694_v3 = vpop.f32.mrf.mxu1  ;;  %v8401_v44 = vsel %vm14518_vm14, %v8396_v21, %v8400_v12  ;;  %v13108_v48 = vor.u32 %v13823_v58, %v13107_v30  ;;  %v7714_v12 = vld [vmem:[#allocation3 + $0xc8] sm:$0x1]  ;;  %v7870_v21 = vrot.slane %v7713_v42, 5  ;;  %v8531_v58 = vld [vmem:[#allocation3 + $0x94] sm:$0xf]  ;;  %v17180_v42 = vld [vmem:[#allocation44_spill] sm:$0xff] }
 0x52a   : > { %8496 = vst [vmem:[#allocation5 + $0x40c] sm:$0xf] %v8401_v44  ;;  %v7873_v33 = vrot.slane %v7714_v12, 5  ;;  %v12792_v45 = vor.u32 %v13743_v34, %v12791_v14  ;;  %v8668_v44 = vrot.slane %v8531_v58, 5  ;;  %v8050_v34 = vld [vmem:[#allocation3 + $0xd0] sm:$0xf] }
 0x52b   : > { %v10945_v9 = vpop.f32.mrf.mxu2  ;;  %v8406_v31 = vrot.slane %v8405_v32, 4  ;;  %v8422_v14 = vshll.u32 %v8050_v34, 16  ;;  %v13832_v58 = vld [vmem:[#allocation5 + $0x428] sm:$0xf0] }
 0x52c   : > { %v16690_v59 = vadd.f32 %v10945_v9, %v10857_v57  ;;  %v13819_v57 = vld [vmem:[#allocation5 + $0x3c4] sm:$0xf]  ;;  %v7712_v9 = vld [vmem:[#allocation3 + $0xc0] sm:$0xe] }
 0x52d   : > { %v8411_v26 = vsel %vm14518_vm14, %v8406_v31, %v8410_v19  ;;  %v13112_v47 = vor.u32 %v13819_v57, %v13109_v29  ;;  %v12500_v32 = vrot.slane %v7712_v9, 9  ;;  %v7872_v31 = vrot.slane %v7870_v21, 4  ;;  %v8530_v19 = vld [vmem:[#allocation3 + $0x90] sm:$0xe]  ;;  %v8532_v29 = vld [vmem:[#allocation3 + $0x98] sm:$0x1] }
 0x52e   : > { %8497 = vst [vmem:[#allocation5 + $0x430] sm:$0xf] %v8411_v26  ;;  %v12511_v26 = vrot.slane %v8530_v19, 9  ;;  %v5753_v57 = vld [vmem:[#allocation3 + $0xcc] sm:$0x1]  ;;  %v8424_v19 = vrot.slane %v8422_v14, 5 }
 0x52f   : > { %v7871_v36 = vsel %vm14485_vm12, %v12500_v32, %v7870_v21  ;;  %v7874_v53 = vsel %vm14485_vm12, %v7872_v31, %v7873_v33  ;;  %v5754_v12 = vsel %vm14436_vm2, 0, %v5753_v57  ;;  %v8670_v31 = vrot.slane %v8668_v44, 4 }
 0x530   : > { %7937 = vst [vmem:[#allocation5 + $0x44c] sm:$0xf] %v7871_v36  ;;  %v8669_v32 = vsel %vm14485_vm12, %v12511_v26, %v8668_v44  ;;  %v8426_v36 = vshrl.u32 %v8050_v34, 16  ;;  %v8671_v33 = vrot.slane %v8532_v29, 5  ;;  %v10864_v44 = vadd.f32 %v16512_v55, %v17180_v42  ;;  %v8533_v55 = vld [vmem:[#allocation3 + $0x9c] sm:$0xe] }
 0x531   : > { %7938 = vst [vmem:[#allocation5 + $0x470] sm:$0xf] %v7874_v53  ;;  %v16710_v20 = vpop.f32.mrf.mxu1  ;;  %v8535_v42 = vld [vmem:[#allocation3 + $0xa4] sm:$0x1] }
 0x532   : > { %5755 = vst [vmem:[#allocation3 + $0xcc] sm:$0x1] %v5754_v12  ;;  %v8428_v53 = vrot.slane %v8426_v36, 4 }
 0x533   : > { %11043 = vmatmul.bf16.gmra.mxu3 %v13104_v10  ;;  %v10947_v18 = vpop.f32.mrf.mxu2  ;;  %v17177_v10 = vld [vmem:[#allocation34_spill] sm:$0xff]  ;;  %8760 = vst [vmem:[#allocation5 + $0x2f0] sm:$0xf] %v8669_v32 }
 0x534   : > { %v16704_v0 = vadd.f32 %v10947_v18, %v10859_v49  ;;  %v10862_v30 = vadd.f32 %v17177_v10, %v17176_v27  ;;  %v5807_v49 = vld [vmem:[#allocation3 + $0xd4] sm:$0x1]  ;;  %v8672_v27 = vsel %vm14485_vm12, %v8670_v31, %v8671_v33  ;;  %v13827_v10 = vld [vmem:[#allocation5 + $0x404] sm:$0xf] }
 0x535   : > { %11132 = vmatmul.bf16.gmra.mxu0 %v13108_v48  ;;  %v7971_v48 = vld [vmem:[#allocation3 + $0xd0] sm:$0xf]  ;;  %v5808_v18 = vsel %vm14456_vm8, 0, %v5807_v49  ;;  %v13145_v57 = vld [vmem:[#allocation5 + $0x42c] sm:$0xf0] }
 0x536   : > { %11221 = vmatmul.bf16.gmra.mxu1 %v13112_v47  ;;  %8003 = vst [vmem:[#allocation5 + $0x474] sm:$0xf] %v7971_v48  ;;  %v8429_v48 = vor.u32 %v8428_v53, %v8424_v19 }
 0x537   : > { %5809 = vst [vmem:[#allocation3 + $0xd4] sm:$0x1] %v5808_v18  ;;  %v13752_v18 = vld [vmem:[#allocation5 + $0x1a8] sm:$0xf0] }
 0x538   : > { %8761 = vst [vmem:[#allocation5 + $0x314] sm:$0xf] %v8672_v27  ;;  %v8430_v53 = vrot.slane %v8429_v48, 4 }
 0x539   : > { %11265 = vmatmul.bf16.gmra.mxu2 %v12792_v45  ;;  %v13137_v45 = vld [vmem:[#allocation5 + $0x424] sm:$0xf0]  ;;  %v16726_v29 = vpop.f32.mrf.mxu1  ;;  %v7970_v34 = vld [vmem:[#allocation3 + $0xcc] sm:$0xf] }
 0x53a   : > { %v13140_v26 = vor.u32 %v13827_v10, %v13137_v45  ;;  %v8049_v32 = vld [vmem:[#allocation3 + $0xcc] sm:$0xf]  ;;  %8002 = vst [vmem:[#allocation5 + $0x450] sm:$0xf] %v7970_v34  ;;  %v12827_v45 = vld [vmem:[#allocation5 + $0x188] sm:$0xf] }
 0x53b   : > { %v10950_v9 = vpop.f32.mrf.mxu2  ;;  %v8413_v31 = vshrl.u32 %v8049_v32, 16  ;;  %v8416_v33 = vshll.u32 %v8049_v32, 16  ;;  %v12828_v27 = vor.u32 %v13752_v18, %v12827_v45 }
 0x53c   : > { %v16720_v21 = vadd.f32 %v10950_v9, %v10862_v30  ;;  %v13143_v30 = vld [vmem:[#allocation5 + $0x408] sm:$0xf]  ;;  %v13828_v9 = vld [vmem:[#allocation5 + $0x40c] sm:$0xf] }
 0x53d   : > { %v13144_v49 = vor.u32 %v13832_v58, %v13143_v30  ;;  %v13148_v12 = vor.u32 %v13828_v9, %v13145_v57  ;;  %v8415_v10 = vrot.slane %v8413_v31, 4  ;;  %v8534_v30 = vld [vmem:[#allocation3 + $0xa0] sm:$0xf] }
 0x53e   : > { %v8051_v36 = vld [vmem:[#allocation3 + $0xd4] sm:$0x1] }
 0x53f   : > { %v8432_v58 = vshll.u32 %v8051_v36, 16  ;;  %v8678_v36 = vrot.slane %v8535_v42, 5 }
 0x541   : > { %v8434_v57 = vrot.slane %v8432_v58, 5  ;;  %v16742_v58 = vpop.f32.mrf.mxu1 }
 0x543   : > { %11048 = vmatmul.bf16.gmra.mxu3 %v13140_v26  ;;  %v10952_v47 = vpop.f32.mrf.mxu2  ;;  %v8418_v26 = vrot.slane %v8416_v33, 5 }
 0x544   : > { %v16728_v14 = vadd.f32 %v10952_v47, %v10864_v44  ;;  %v8675_v44 = vrot.slane %v8534_v30, 5  ;;  %v17181_v47 = vld [vmem:[#allocation23_spill] sm:$0xff]  ;;  %v17182_v30 = vld [vmem:[#allocation25_spill] sm:$0xff] }
 0x545   : > { %11137 = vmatmul.bf16.gmra.mxu0 %v13144_v49  ;;  %v8419_v9 = vor.u32 %v8418_v26, %v8415_v10  ;;  %v12512_v49 = vrot.slane %v8533_v55, 9  ;;  %v10867_v34 = vadd.f32 %v16536_v37, %v17181_v47  ;;  %v13841_v55 = vld [vmem:[#allocation5 + $0x470] sm:$0xf0]  ;;  %v13836_v10 = vld [vmem:[#allocation5 + $0x44c] sm:$0xf] }
 0x546   : > { %11226 = vmatmul.bf16.gmra.mxu1 %v13148_v12  ;;  %v8435_v12 = vsel %vm14518_vm14, %v8430_v53, %v8434_v57  ;;  %v8677_v18 = vrot.slane %v8675_v44, 4  ;;  %v13179_v53 = vld [vmem:[#allocation5 + $0x450] sm:$0xf] }
 0x547   : > { %v8420_v32 = vrot.slane %v8419_v9, 4  ;;  %8499 = vst [vmem:[#allocation5 + $0x478] sm:$0xf] %v8435_v12  ;;  %v8676_v48 = vsel %vm14485_vm12, %v12512_v49, %v8675_v44  ;;  %v13180_v26 = vor.u32 %v13841_v55, %v13179_v53  ;;  %v10869_v9 = vadd.f32 %v16558_v1, %v17182_v30  ;;  %v8536_v12 = vld [vmem:[#allocation3 + $0xa8] sm:$0xe] }
 0x548   : > { %8762 = vst [vmem:[#allocation5 + $0x338] sm:$0xf] %v8676_v48  ;;  %v8679_v37 = vsel %vm14485_vm12, %v8677_v18, %v8678_v36  ;;  %v8537_v18 = vld [vmem:[#allocation3 + $0xac] sm:$0xf]  ;;  %v8538_v36 = vld [vmem:[#allocation3 + $0xb0] sm:$0x1] }
 0x549   : > { %11270 = vmatmul.bf16.gmra.mxu2 %v12828_v27  ;;  %v8425_v45 = vsel %vm14518_vm14, %v8420_v32, %v8424_v19  ;;  %v13173_v27 = vld [vmem:[#allocation5 + $0x46c] sm:$0xf0]  ;;  %8763 = vst [vmem:[#allocation5 + $0x35c] sm:$0xf] %v8679_v37  ;;  %v13761_v19 = vld [vmem:[#allocation5 + $0x1f0] sm:$0xf0]  ;;  %v16748_v48 = vpop.f32.mrf.mxu1 }
 0x54a   : > { %8498 = vst [vmem:[#allocation5 + $0x454] sm:$0xf] %v8425_v45  ;;  %v13176_v57 = vor.u32 %v13836_v10, %v13173_v27  ;;  %v8682_v1 = vrot.slane %v8537_v18, 5  ;;  %v10872_v45 = vadd.f32 %v16571_v23, %v16506_v6  ;;  %v8685_v55 = vrot.slane %v8538_v36, 5  ;;  %v12899_v6 = vld [vmem:[#allocation5 + $0x218] sm:$0xf] }
 0x54b   : > { %v8539_v23 = vld [vmem:[#allocation3 + $0xb4] sm:$0xe] }
 0x54c   : > { %v10955_v31 = vpop.f32.mrf.mxu2  ;;  %v8684_v53 = vrot.slane %v8682_v1, 4 }
 0x54d   : > { %v16736_v33 = vadd.f32 %v10955_v31, %v10867_v34  ;;  %v12863_v34 = vld [vmem:[#allocation5 + $0x1d0] sm:$0xf]  ;;  %v12513_v31 = vrot.slane %v8536_v12, 9  ;;  %v10877_v12 = vadd.f32 %v16609_v62, %v16540_v41  ;;  %v12935_v41 = vld [vmem:[#allocation5 + $0x260] sm:$0xf] }
 0x54e   : > { %v13181_v42 = vld [vmem:[#allocation5 + $0x474] sm:$0xf0]  ;;  %v12864_v32 = vor.u32 %v13761_v19, %v12863_v34  ;;  %v8540_v19 = vld [vmem:[#allocation3 + $0xb8] sm:$0xf]  ;;  %v8542_v62 = vld [vmem:[#allocation3 + $0xc0] sm:$0xe] }
 0x54f   : > { %v8683_v37 = vsel %vm14485_vm12, %v12513_v31, %v8682_v1  ;;  %v8689_v34 = vrot.slane %v8540_v19, 5  ;;  %v10879_v1 = vadd.f32 %v16626_v38, %v16560_v61  ;;  %v16779_v61 = vld [vmem:[%s16983_s4 + $0x1] ss:$0 sm:$0xff] }
 0x550   : > { %8764 = vst [vmem:[#allocation5 + $0x380] sm:$0xf] %v8683_v37  ;;  %v13779_v37 = vld [vmem:[#allocation5 + $0x280] sm:$0xf0] }
 0x551   : > { %v13837_v44 = vld [vmem:[#allocation5 + $0x454] sm:$0xf]  ;;  %v8691_v18 = vrot.slane %v8689_v34, 4 }
 0x552   : > { %v13184_v47 = vor.u32 %v13837_v44, %v13181_v42  ;;  %v8541_v44 = vld [vmem:[#allocation3 + $0xbc] sm:$0x1] }
 0x553   : > { %11053 = vmatmul.bf16.gmra.mxu3 %v13176_v57  ;;  %v10874_v57 = vadd.f32 %v16590_v15, %v16524_v4  ;;  %v8692_v4 = vrot.slane %v8541_v44, 5 }
 0x554   : > { %v10957_v22 = vpop.f32.mrf.mxu2 }
 0x555   : > { %v16746_v49 = vadd.f32 %v10957_v22, %v10869_v9  ;;  %11142 = vmatmul.bf16.gmra.mxu0 %v13180_v26  ;;  %v8686_v26 = vsel %vm14485_vm12, %v8684_v53, %v8685_v55  ;;  %v13770_v9 = vld [vmem:[#allocation5 + $0x238] sm:$0xf0]  ;;  %v8693_v31 = vsel %vm14485_vm12, %v8691_v18, %v8692_v4  ;;  %v12936_v55 = vor.u32 %v13779_v37, %v12935_v41  ;;  %v12971_v4 = vld [vmem:[#allocation5 + $0x2a8] sm:$0xf]  ;;  %v16795_v37 = vpop.f32.mrf.mxu1 }
 0x556   : > { %11231 = vmatmul.bf16.gmra.mxu1 %v13184_v47  ;;  %8765 = vst [vmem:[#allocation5 + $0x3a4] sm:$0xf] %v8686_v26  ;;  %v12900_v22 = vor.u32 %v13770_v9, %v12899_v6  ;;  %v12514_v47 = vrot.slane %v8539_v23, 9  ;;  %v8544_v26 = vld [vmem:[#allocation3 + $0xc8] sm:$0x1]  ;;  %v11158_v9 = vadd.f32 %v16644_v24, %v16573_v25  ;;  %v11163_v41 = vadd.f32 %v16682_v56, %v16601_v11 }
 0x557   : > { %8767 = vst [vmem:[#allocation5 + $0x3ec] sm:$0xf] %v8693_v31  ;;  %v8699_v23 = vrot.slane %v8544_v26, 5  ;;  %v13007_v56 = vld [vmem:[#allocation5 + $0x2f0] sm:$0xf] }
 0x559   : > { %11275 = vmatmul.bf16.gmra.mxu2 %v12864_v32  ;;  %v8690_v32 = vsel %vm14485_vm12, %v12514_v47, %v8689_v34  ;;  %v16787_v47 = vpop.f32.mrf.mxu3  ;;  %v11160_v34 = vadd.f32 %v16663_v13, %v16586_v35 }
 0x55a   : > { %8766 = vst [vmem:[#allocation5 + $0x3c8] sm:$0xf] %v8690_v32  ;;  %v13788_v32 = vld [vmem:[#allocation5 + $0x2c8] sm:$0xf0] }
 0x55b   : > { %v12972_v31 = vor.u32 %v13788_v32, %v12971_v4 }
 0x55c   : > { %v10960_v27 = vpop.f32.mrf.mxu2 }
 0x55d   : > { %v16754_v10 = vadd.f32 %v10960_v27, %v10872_v45  ;;  %v8543_v27 = vld [vmem:[#allocation3 + $0xc4] sm:$0xf] }
 0x564   : > { %v10962_v30 = vpop.f32.mrf.mxu2 }
 0x565   : > { %v16760_v42 = vadd.f32 %v10962_v30, %v10874_v57  ;;  %v12515_v57 = vrot.slane %v8542_v62, 9  ;;  %v8696_v30 = vrot.slane %v8543_v27, 5  ;;  %v11001_v62 = vpop.f32.mrf.mxu3 }
 0x567   : > { %v8697_v38 = vsel %vm14485_vm12, %v12515_v57, %v8696_v30  ;;  %v8698_v6 = vrot.slane %v8696_v30, 4  ;;  %v11165_v57 = vadd.f32 %v16694_v3, %v16618_v60 }
 0x568   : > { %8768 = vst [vmem:[#allocation5 + $0x410] sm:$0xf] %v8697_v38  ;;  %v16806_v38 = vpop.f32.mrf.mxu1 }
 0x569   : > { %11280 = vmatmul.bf16.gmra.mxu2 %v12900_v22  ;;  %v8700_v44 = vsel %vm14485_vm12, %v8698_v6, %v8699_v23 }
 0x56a   : > { %8769 = vst [vmem:[#allocation5 + $0x434] sm:$0xf] %v8700_v44  ;;  %v11168_v44 = vadd.f32 %v16710_v20, %v16631_v63  ;;  %v13043_v63 = vld [vmem:[#allocation5 + $0x338] sm:$0xf] }
 0x56c   : > { %v10965_v15 = vpop.f32.mrf.mxu2 }
 0x56d   : > { %v16766_v36 = vadd.f32 %v10965_v15, %v10877_v12  ;;  %v11004_v11 = vpop.f32.mrf.mxu3 }
 0x570   : > { %v16812_v3 = vpop.f32.mrf.mxu1 }
 0x574   : > { %v10967_v45 = vpop.f32.mrf.mxu2 }
 0x575   : > { %v16772_v53 = vadd.f32 %v10967_v45, %v10879_v1  ;;  %v11088_v1 = vpop.f32.mrf.mxu0 }
 0x579   : > { %11285 = vmatmul.bf16.gmra.mxu2 %v12936_v55 }
 0x57c   : > { %v11246_v22 = vpop.f32.mrf.mxu2 }
 0x57d   : > { %v11247_v19 = vadd.f32 %v11246_v22, %v11158_v9  ;;  %v16801_v26 = vpop.f32.mrf.mxu0  ;;  %v13797_v9 = vld [vmem:[#allocation5 + $0x310] sm:$0xf0] }
 0x57e   : > { %v13008_v22 = vor.u32 %v13797_v9, %v13007_v56 }
 0x57f   : > { %v11328_v25 = vadd.f32 %v16779_v61, %v11247_v19 }
 0x581   : > { %v11360_v24 = vmax.f32 %v11328_v25, 0.0 }
 0x583   : > { %11392 = vst [vmem:[%s16789_s9] sm:$0xff] %v11360_v24 }
 0x584   : > { %v11248_v12 = vpop.f32.mrf.mxu2 }
 0x585   : > { %v11249_v18 = vadd.f32 %v11248_v12, %v11160_v34  ;;  %v11093_v25 = vpop.f32.mrf.mxu0  ;;  %v11006_v12 = vpop.f32.mrf.mxu3 }
 0x587   : > { %v11329_v15 = vadd.f32 %v16779_v61, %v11249_v18  ;;  %v11170_v18 = vadd.f32 %v16726_v29, %v16646_v8  ;;  %v11173_v8 = vadd.f32 %v16742_v58, %v16659_v43  ;;  %v13815_v58 = vld [vmem:[#allocation5 + $0x3a0] sm:$0xf0] }
 0x589   : > { %v11361_v45 = vmax.f32 %v11329_v15, 0.0  ;;  %11290 = vmatmul.bf16.gmra.mxu2 %v12972_v31  ;;  %v13806_v15 = vld [vmem:[#allocation5 + $0x358] sm:$0xf0] }
 0x58b   : > { %11393 = vst [vmem:[%s16789_s9 + $0x8] sm:$0xff] %v11361_v45 }
 0x58c   : > { %v11251_v55 = vpop.f32.mrf.mxu2 }
 0x58d   : > { %v11252_v35 = vadd.f32 %v11251_v55, %v11163_v41  ;;  %v16818_v45 = vpop.f32.mrf.mxu0  ;;  %v13044_v41 = vor.u32 %v13806_v15, %v13043_v63  ;;  %v16821_v55 = vpop.f32.mrf.mxu1 }
 0x58f   : > { %v11330_v13 = vadd.f32 %v16779_v61, %v11252_v35 }
 0x591   : > { %v11362_v27 = vmax.f32 %v11330_v13, 0.0  ;;  %v16823_v13 = vpop.f32.mrf.mxu3 }
 0x593   : > { %11394 = vst [vmem:[%s16789_s9 + $0x10] sm:$0xff] %v11362_v27 }
 0x594   : > { %v11253_v30 = vpop.f32.mrf.mxu2 }
 0x595   : > { %v11254_v6 = vadd.f32 %v11253_v30, %v11165_v57  ;;  %v16829_v30 = vpop.f32.mrf.mxu0 }
 0x597   : > { %v11331_v23 = vadd.f32 %v16779_v61, %v11254_v6  ;;  %v17183_v6 = vld [vmem:[#allocation24_spill] sm:$0xff] }
 0x598   : > { %v11000_v56 = vadd.f32 %v16787_v47, %v17183_v6 }
 0x599   : > { %v11363_v19 = vmax.f32 %v11331_v23, 0.0  ;;  %11295 = vmatmul.bf16.gmra.mxu2 %v13008_v22  ;;  %v16833_v23 = vpop.f32.mrf.mxu1  ;;  %v11175_v22 = vadd.f32 %v16748_v48, %v16676_v5 }
 0x59b   : > { %11395 = vst [vmem:[%s16789_s9 + $0x18] sm:$0xff] %v11363_v19  ;;  %v16838_v19 = vpop.f32.mrf.mxu3 }
 0x59c   : > { %v11256_v24 = vpop.f32.mrf.mxu2 }
 0x59d   : > { %v11257_v60 = vadd.f32 %v11256_v24, %v11168_v44  ;;  %v13079_v24 = vld [vmem:[#allocation5 + $0x380] sm:$0xf]  ;;  %v16841_v47 = vpop.f32.mrf.mxu0 }
 0x59f   : > { %v11332_v34 = vadd.f32 %v16779_v61, %v11257_v60  ;;  %v11089_v60 = vadd.f32 %v11088_v1, %v11000_v56 }
 0x5a1   : > { %v11364_v32 = vmax.f32 %v11332_v34, 0.0  ;;  %v11178_v5 = vadd.f32 %v16795_v37, %v11089_v60  ;;  %v8547_v60 = vld [vmem:[#allocation3 + $0xd4] sm:$0x1] }
 0x5a3   : > { %11396 = vst [vmem:[%s16789_s9 + $0x20] sm:$0xff] %v11364_v32  ;;  %v13080_v32 = vor.u32 %v13815_v58, %v13079_v24 }
 0x5a4   : > { %v11258_v4 = vpop.f32.mrf.mxu2 }
 0x5a5   : > { %v11259_v31 = vadd.f32 %v11258_v4, %v11170_v18  ;;  %v17184_v4 = vld [vmem:[#allocation26_spill] sm:$0xff] }
 0x5a6   : > { %v11002_v15 = vadd.f32 %v11001_v62, %v17184_v4 }
 0x5a7   : > { %v11333_v20 = vadd.f32 %v16779_v61, %v11259_v31  ;;  %v16846_v31 = vpop.f32.mrf.mxu1 }
 0x5a8   : > { %v11091_v1 = vadd.f32 %v16801_v26, %v11002_v15 }
 0x5a9   : > { %v11365_v35 = vmax.f32 %v11333_v20, 0.0  ;;  %11300 = vmatmul.bf16.gmra.mxu2 %v13044_v41  ;;  %v16848_v20 = vpop.f32.mrf.mxu3 }
 0x5aa   : > { %v11180_v62 = vadd.f32 %v16806_v38, %v11091_v1 }
 0x5ab   : > { %11397 = vst [vmem:[%s16789_s9 + $0x28] sm:$0xff] %v11365_v35 }
 0x5ac   : > { %v11261_v29 = vpop.f32.mrf.mxu2 }
 0x5ad   : > { %v11262_v27 = vadd.f32 %v11261_v29, %v11173_v8  ;;  %v11005_v8 = vadd.f32 %v11004_v11, %v16516_v2  ;;  %v16855_v29 = vpop.f32.mrf.mxu0  ;;  %v11007_v2 = vadd.f32 %v11006_v12, %v16532_v52  ;;  %v8545_v11 = vld [vmem:[#allocation3 + $0xcc] sm:$0xe] }
 0x5af   : > { %v11334_v57 = vadd.f32 %v16779_v61, %v11262_v27  ;;  %v13824_v27 = vld [vmem:[#allocation5 + $0x3e8] sm:$0xf0]  ;;  %v11094_v6 = vadd.f32 %v11093_v25, %v11005_v8  ;;  %v16857_v56 = vpop.f32.mrf.mxu1 }
 0x5b1   : > { %v11366_v9 = vmax.f32 %v11334_v57, 0.0  ;;  %v11183_v38 = vadd.f32 %v16812_v3, %v11094_v6 }
 0x5b3   : > { %11398 = vst [vmem:[%s16789_s9 + $0x30] sm:$0xff] %v11366_v9  ;;  %v13115_v9 = vld [vmem:[#allocation5 + $0x3c8] sm:$0xf] }
 0x5b4   : > { %v11263_v43 = vpop.f32.mrf.mxu2 }
 0x5b5   : > { %v11264_v44 = vadd.f32 %v11263_v43, %v11175_v22  ;;  %v13116_v22 = vor.u32 %v13824_v27, %v13115_v9  ;;  %v16860_v43 = vpop.f32.mrf.mxu3  ;;  %v11105_v4 = vpop.f32.mrf.mxu0 }
 0x5b7   : > { %v11335_v34 = vadd.f32 %v16779_v61, %v11264_v44  ;;  %v8546_v44 = vld [vmem:[#allocation3 + $0xd0] sm:$0xf]  ;;  %v11194_v12 = vpop.f32.mrf.mxu1 }
 0x5b8   : > { %v8703_v25 = vrot.slane %v8546_v44, 5 }
 0x5b9   : > { %v11367_v18 = vmax.f32 %v11335_v34, 0.0  ;;  %11305 = vmatmul.bf16.gmra.mxu2 %v13080_v32  ;;  %v12516_v34 = vrot.slane %v8545_v11, 9 }
 0x5bb   : > { %11399 = vst [vmem:[%s16789_s9 + $0x38] sm:$0xff] %v11367_v18  ;;  %v8706_v18 = vrot.slane %v8547_v60, 5  ;;  %v8704_v15 = vsel %vm14485_vm12, %v12516_v34, %v8703_v25  ;;  %v11015_v60 = vadd.f32 %v16848_v20, %v16577_v51 }
 0x5bc   : > { %v11266_v48 = vpop.f32.mrf.mxu2  ;;  %8770 = vst [vmem:[#allocation5 + $0x458] sm:$0xf] %v8704_v15 }
 0x5bd   : > { %v11267_v63 = vadd.f32 %v11266_v48, %v11178_v5  ;;  %v8705_v5 = vrot.slane %v8703_v25, 4  ;;  %v11096_v48 = vadd.f32 %v16818_v45, %v11007_v2  ;;  %v11019_v1 = vpop.f32.mrf.mxu3  ;;  %v11108_v9 = vpop.f32.mrf.mxu0 }
 0x5bf   : > { %v11336_v41 = vadd.f32 %v16779_v61, %v11267_v63  ;;  %v8707_v3 = vsel %vm14485_vm12, %v8705_v5, %v8706_v18  ;;  %v11017_v5 = vadd.f32 %v16860_v43, %v16592_v17 }
 0x5c0   : > { %8771 = vst [vmem:[#allocation5 + $0x47c] sm:$0xf] %v8707_v3 }
 0x5c1   : > { %v11368_v35 = vmax.f32 %v11336_v41, 0.0  ;;  %v11010_v41 = vadd.f32 %v16823_v13, %v16552_v7  ;;  %v11197_v7 = vpop.f32.mrf.mxu1 }
 0x5c3   : > { %11400 = vst [vmem:[%s16789_s9 + $0x40] sm:$0xff] %v11368_v35  ;;  %v11185_v35 = vadd.f32 %v16821_v55, %v11096_v48  ;;  %v11099_v27 = vadd.f32 %v16829_v30, %v11010_v41  ;;  %v13187_v44 = vld [vmem:[#allocation5 + $0x458] sm:$0xf] }
 0x5c4   : > { %v11268_v37 = vpop.f32.mrf.mxu2 }
 0x5c5   : > { %v11269_v57 = vadd.f32 %v11268_v37, %v11180_v62  ;;  %v13833_v62 = vld [vmem:[#allocation5 + $0x430] sm:$0xf0]  ;;  %v13151_v37 = vld [vmem:[#allocation5 + $0x410] sm:$0xf]  ;;  %v11188_v55 = vadd.f32 %v16833_v23, %v11099_v27  ;;  %v11021_v13 = vpop.f32.mrf.mxu3  ;;  %v11110_v11 = vpop.f32.mrf.mxu0 }
 0x5c7   : > { %v11337_v26 = vadd.f32 %v16779_v61, %v11269_v57  ;;  %v13152_v57 = vor.u32 %v13833_v62, %v13151_v37 }
 0x5c9   : > { %v11369_v58 = vmax.f32 %v11337_v26, 0.0  ;;  %11310 = vmatmul.bf16.gmra.mxu2 %v13116_v22  ;;  %v11012_v26 = vadd.f32 %v16838_v19, %v16564_v28  ;;  %v11199_v23 = vpop.f32.mrf.mxu1 }
 0x5cb   : > { %11401 = vst [vmem:[%s16789_s9 + $0x48] sm:$0xff] %v11369_v58  ;;  %v11101_v2 = vadd.f32 %v16841_v47, %v11012_v26  ;;  %v11104_v47 = vadd.f32 %v16855_v29, %v11015_v60 }
 0x5cc   : > { %v11271_v24 = vpop.f32.mrf.mxu2 }
 0x5cd   : > { %v11272_v32 = vadd.f32 %v11271_v24, %v11183_v38  ;;  %v13842_v24 = vld [vmem:[#allocation5 + $0x478] sm:$0xf0]  ;;  %v11190_v28 = vadd.f32 %v16846_v31, %v11101_v2  ;;  %v11193_v51 = vadd.f32 %v16857_v56, %v11104_v47  ;;  %v11113_v20 = vpop.f32.mrf.mxu0 }
 0x5ce   : > { %v13188_v25 = vor.u32 %v13842_v24, %v13187_v44 }
 0x5cf   : > { %v11338_v52 = vadd.f32 %v16779_v61, %v11272_v32  ;;  %v11024_v32 = vpop.f32.mrf.mxu3 }
 0x5d1   : > { %v11370_v63 = vmax.f32 %v11338_v52, 0.0  ;;  %v11106_v52 = vadd.f32 %v11105_v4, %v11017_v5  ;;  %v11202_v3 = vpop.f32.mrf.mxu1 }
 0x5d3   : > { %11402 = vst [vmem:[%s16789_s9 + $0x50] sm:$0xff] %v11370_v63 }
 0x5d4   : > { %v11273_v8 = vpop.f32.mrf.mxu2 }
 0x5d5   : > { %v11274_v45 = vadd.f32 %v11273_v8, %v11185_v35  ;;  %v11020_v35 = vadd.f32 %v11019_v1, %v16605_v54  ;;  %v11195_v8 = vadd.f32 %v11194_v12, %v11106_v52  ;;  %v11115_v17 = vpop.f32.mrf.mxu0 }
 0x5d7   : > { %v11339_v46 = vadd.f32 %v16779_v61, %v11274_v45  ;;  %v11026_v29 = vpop.f32.mrf.mxu3  ;;  %v11109_v43 = vadd.f32 %v11108_v9, %v11020_v35  ;;  %v11025_v9 = vadd.f32 %v11024_v32, %v16635_v39 }
 0x5d9   : > { %v11371_v6 = vmax.f32 %v11339_v46, 0.0  ;;  %11315 = vmatmul.bf16.gmra.mxu2 %v13152_v57  ;;  %v11204_v37 = vpop.f32.mrf.mxu1  ;;  %v17185_v46 = vld [vmem:[#allocation37_spill] sm:$0xff] }
 0x5da   : > { %v11022_v57 = vadd.f32 %v11021_v13, %v17185_v46  ;;  %v11114_v13 = vadd.f32 %v11113_v20, %v11025_v9 }
 0x5db   : > { %11403 = vst [vmem:[%s16789_s9 + $0x58] sm:$0xff] %v11371_v6  ;;  %v11198_v6 = vadd.f32 %v11197_v7, %v11109_v43 }
 0x5dc   : > { %v11276_v22 = vpop.f32.mrf.mxu2 }
 0x5dd   : > { %v11277_v58 = vadd.f32 %v11276_v22, %v11188_v55  ;;  %v11111_v22 = vadd.f32 %v11110_v11, %v11022_v57  ;;  %v11118_v12 = vpop.f32.mrf.mxu0  ;;  %v11027_v11 = vadd.f32 %v11026_v29, %v16650_v50 }
 0x5df   : > { %v11340_v30 = vadd.f32 %v16779_v61, %v11277_v58  ;;  %v11029_v4 = vpop.f32.mrf.mxu3  ;;  %v11200_v2 = vadd.f32 %v11199_v23, %v11111_v22  ;;  %v11116_v32 = vadd.f32 %v11115_v17, %v11027_v11 }
 0x5e1   : > { %v11372_v38 = vmax.f32 %v11340_v30, 0.0  ;;  %v11207_v58 = vpop.f32.mrf.mxu1 }
 0x5e3   : > { %11404 = vst [vmem:[%s16789_s9 + $0x60] sm:$0xff] %v11372_v38 }
 0x5e4   : > { %v11278_v19 = vpop.f32.mrf.mxu2 }
 0x5e5   : > { %v11279_v34 = vadd.f32 %v11278_v19, %v11190_v28  ;;  %v11120_v60 = vpop.f32.mrf.mxu0  ;;  %v11203_v28 = vadd.f32 %v11202_v3, %v11114_v13 }
 0x5e7   : > { %v11341_v18 = vadd.f32 %v16779_v61, %v11279_v34  ;;  %v11031_v30 = vpop.f32.mrf.mxu3 }
 0x5e9   : > { %v11373_v15 = vmax.f32 %v11341_v18, 0.0  ;;  %11320 = vmatmul.bf16.gmra.mxu2 %v13188_v25  ;;  %v11209_v34 = vpop.f32.mrf.mxu1  ;;  %v11030_v18 = vadd.f32 %v11029_v4, %v16665_v40 }
 0x5eb   : > { %11405 = vst [vmem:[%s16789_s9 + $0x68] sm:$0xff] %v11373_v15  ;;  %v11205_v15 = vadd.f32 %v11204_v37, %v11116_v32 }
 0x5ec   : > { %v11281_v31 = vpop.f32.mrf.mxu2 }
 0x5ed   : > { %v11282_v48 = vadd.f32 %v11281_v31, %v11193_v51  ;;  %v11123_v5 = vpop.f32.mrf.mxu0  ;;  %v11119_v31 = vadd.f32 %v11118_v12, %v11030_v18 }
 0x5ef   : > { %v11342_v63 = vadd.f32 %v16779_v61, %v11282_v48  ;;  %v11034_v39 = vpop.f32.mrf.mxu3  ;;  %v11208_v29 = vadd.f32 %v11207_v58, %v11119_v31 }
 0x5f1   : > { %v11374_v41 = vmax.f32 %v11342_v63, 0.0  ;;  %v11212_v50 = vpop.f32.mrf.mxu1  ;;  %v11032_v63 = vadd.f32 %v11031_v30, %v16680_v16 }
 0x5f3   : > { %11406 = vst [vmem:[%s16789_s9 + $0x70] sm:$0xff] %v11374_v41  ;;  %v11121_v40 = vadd.f32 %v11120_v60, %v11032_v63 }
 0x5f4   : > { %v11283_v62 = vpop.f32.mrf.mxu2 }
 0x5f5   : > { %v11284_v45 = vadd.f32 %v11283_v62, %v11195_v8  ;;  %v11125_v8 = vpop.f32.mrf.mxu0  ;;  %v11210_v37 = vadd.f32 %v11209_v34, %v11121_v40 }
 0x5f7   : > { %v11343_v56 = vadd.f32 %v16779_v61, %v11284_v45  ;;  %v11036_v52 = vpop.f32.mrf.mxu3 }
 0x5f9   : > { %v11375_v27 = vmax.f32 %v11343_v56, 0.0  ;;  %v11214_v45 = vpop.f32.mrf.mxu1  ;;  %v11035_v56 = vadd.f32 %v11034_v39, %v16690_v59 }
 0x5fb   : > { %11407 = vst [vmem:[%s16789_s9 + $0x78] sm:$0xff] %v11375_v27  ;;  %v11124_v46 = vadd.f32 %v11123_v5, %v11035_v56 }
 0x5fc   : > { %v11286_v26 = vpop.f32.mrf.mxu2 }
 0x5fd   : > { %v11287_v55 = vadd.f32 %v11286_v26, %v11198_v6  ;;  %v11128_v57 = vpop.f32.mrf.mxu0  ;;  %v11037_v26 = vadd.f32 %v11036_v52, %v16704_v0  ;;  %v11213_v22 = vadd.f32 %v11212_v50, %v11124_v46 }
 0x5ff   : > { %v11344_v54 = vadd.f32 %v16779_v61, %v11287_v55  ;;  %v11039_v43 = vpop.f32.mrf.mxu3  ;;  %v11126_v59 = vadd.f32 %v11125_v8, %v11037_v26 }
 0x600   : > { %v11040_v30 = vadd.f32 %v11039_v43, %v16720_v21 }
 0x601   : > { %v11376_v1 = vmax.f32 %v11344_v54, 0.0  ;;  %v11217_v55 = vpop.f32.mrf.mxu1 }
 0x603   : > { %11408 = vst [vmem:[%s16789_s9 + $0x80] sm:$0xff] %v11376_v1 }
 0x604   : > { %v11288_v38 = vpop.f32.mrf.mxu2 }
 0x605   : > { %v11289_v44 = vadd.f32 %v11288_v38, %v11200_v2  ;;  %v11130_v2 = vpop.f32.mrf.mxu0  ;;  %v11215_v38 = vadd.f32 %v11214_v45, %v11126_v59 }
 0x607   : > { %v11345_v7 = vadd.f32 %v16779_v61, %v11289_v44  ;;  %v11041_v54 = vpop.f32.mrf.mxu3 }
 0x609   : > { %v11377_v24 = vmax.f32 %v11345_v7, 0.0  ;;  %v11219_v13 = vpop.f32.mrf.mxu1 }
 0x60b   : > { %11409 = vst [vmem:[%s16789_s9 + $0x88] sm:$0xff] %v11377_v24  ;;  %v11129_v24 = vadd.f32 %v11128_v57, %v11040_v30 }
 0x60c   : > { %v11291_v19 = vpop.f32.mrf.mxu2 }
 0x60d   : > { %v11292_v25 = vadd.f32 %v11291_v19, %v11203_v28  ;;  %v11042_v28 = vadd.f32 %v11041_v54, %v16728_v14  ;;  %v11218_v19 = vadd.f32 %v11217_v55, %v11129_v24  ;;  %v11133_v34 = vpop.f32.mrf.mxu0 }
 0x60f   : > { %v11346_v23 = vadd.f32 %v16779_v61, %v11292_v25  ;;  %v11044_v0 = vpop.f32.mrf.mxu3  ;;  %v11131_v32 = vadd.f32 %v11130_v2, %v11042_v28 }
 0x611   : > { %v11378_v47 = vmax.f32 %v11346_v23, 0.0  ;;  %v11222_v21 = vpop.f32.mrf.mxu1  ;;  %v11220_v5 = vadd.f32 %v11219_v13, %v11131_v32 }
 0x613   : > { %11410 = vst [vmem:[%s16789_s9 + $0x90] sm:$0xff] %v11378_v47 }
 0x614   : > { %v11293_v51 = vpop.f32.mrf.mxu2 }
 0x615   : > { %v11294_v20 = vadd.f32 %v11293_v51, %v11205_v15  ;;  %v11045_v15 = vadd.f32 %v11044_v0, %v16736_v33  ;;  %v11135_v31 = vpop.f32.mrf.mxu0 }
 0x617   : > { %v11347_v48 = vadd.f32 %v16779_v61, %v11294_v20  ;;  %v11046_v47 = vpop.f32.mrf.mxu3  ;;  %v11134_v14 = vadd.f32 %v11133_v34, %v11045_v15 }
 0x618   : > { %v11047_v63 = vadd.f32 %v11046_v47, %v16746_v49 }
 0x619   : > { %v11379_v3 = vmax.f32 %v11347_v48, 0.0  ;;  %v11224_v48 = vpop.f32.mrf.mxu1 }
 0x61a   : > { %v11136_v8 = vadd.f32 %v11135_v31, %v11047_v63 }
 0x61b   : > { %11411 = vst [vmem:[%s16789_s9 + $0x98] sm:$0xff] %v11379_v3 }
 0x61c   : > { %v11296_v41 = vpop.f32.mrf.mxu2  ;;  %v11225_v43 = vadd.f32 %v11224_v48, %v11136_v8 }
 0x61d   : > { %v11297_v35 = vadd.f32 %v11296_v41, %v11208_v29  ;;  %v11223_v29 = vadd.f32 %v11222_v21, %v11134_v14  ;;  %v11138_v40 = vpop.f32.mrf.mxu0 }
 0x61f   : > { %v11348_v62 = vadd.f32 %v16779_v61, %v11297_v35  ;;  %v11049_v3 = vpop.f32.mrf.mxu3 }
 0x621   : > { %v11380_v17 = vmax.f32 %v11348_v62, 0.0  ;;  %v11227_v45 = vpop.f32.mrf.mxu1 }
 0x623   : > { %11412 = vst [vmem:[%s16789_s9 + $0xa0] sm:$0xff] %v11380_v17  ;;  %v11050_v17 = vadd.f32 %v11049_v3, %v16754_v10 }
 0x624   : > { %v11298_v27 = vpop.f32.mrf.mxu2 }
 0x625   : > { %v11299_v4 = vadd.f32 %v11298_v27, %v11210_v37 }
 0x627   : > { %v11349_v16 = vadd.f32 %v16779_v61, %v11299_v4  ;;  %v11051_v56 = vpop.f32.mrf.mxu3  ;;  %v11139_v4 = vadd.f32 %v11138_v40, %v11050_v17 }
 0x628   : > { %v11052_v57 = vadd.f32 %v11051_v56, %v16760_v42 }
 0x629   : > { %v11381_v6 = vmax.f32 %v11349_v16, 0.0  ;;  %v11140_v16 = vpop.f32.mrf.mxu0 }
 0x62a   : > { %v11141_v10 = vadd.f32 %v11140_v16, %v11052_v57 }
 0x62b   : > { %11413 = vst [vmem:[%s16789_s9 + $0xa8] sm:$0xff] %v11381_v6  ;;  %v11228_v6 = vadd.f32 %v11227_v45, %v11139_v4 }
 0x62c   : > { %v11301_v12 = vpop.f32.mrf.mxu2 }
 0x62d   : > { %v11302_v1 = vadd.f32 %v11301_v12, %v11213_v22  ;;  %v11229_v22 = vpop.f32.mrf.mxu1 }
 0x62f   : > { %v11350_v9 = vadd.f32 %v16779_v61, %v11302_v1  ;;  %v11054_v54 = vpop.f32.mrf.mxu3 }
 0x631   : > { %v11382_v58 = vmax.f32 %v11350_v9, 0.0  ;;  %v11143_v59 = vpop.f32.mrf.mxu0  ;;  %v11055_v9 = vadd.f32 %v11054_v54, %v16766_v36 }
 0x633   : > { %11414 = vst [vmem:[%s16789_s9 + $0xb0] sm:$0xff] %v11382_v58  ;;  %v11230_v58 = vadd.f32 %v11229_v22, %v11141_v10 }
 0x634   : > { %v11303_v44 = vpop.f32.mrf.mxu2 }
 0x635   : > { %v11304_v7 = vadd.f32 %v11303_v44, %v11215_v38  ;;  %v11232_v42 = vpop.f32.mrf.mxu1  ;;  %v11144_v38 = vadd.f32 %v11143_v59, %v11055_v9 }
 0x637   : > { %v11351_v60 = vadd.f32 %v16779_v61, %v11304_v7  ;;  %v11056_v13 = vpop.f32.mrf.mxu3  ;;  %v11233_v0 = vadd.f32 %v11232_v42, %v11144_v38 }
 0x638   : > { %v11057_v24 = vadd.f32 %v11056_v13, %v16772_v53 }
 0x639   : > { %v11383_v11 = vmax.f32 %v11351_v60, 0.0  ;;  %v11145_v60 = vpop.f32.mrf.mxu0 }
 0x63a   : > { %v11146_v28 = vadd.f32 %v11145_v60, %v11057_v24 }
 0x63b   : > { %11415 = vst [vmem:[%s16789_s9 + $0xb8] sm:$0xff] %v11383_v11 }
 0x63c   : > { %v11306_v25 = vpop.f32.mrf.mxu2 }
 0x63d   : > { %v11307_v39 = vadd.f32 %v11306_v25, %v11218_v19  ;;  %v11234_v34 = vpop.f32.mrf.mxu1 }
 0x63f   : > { %v11352_v23 = vadd.f32 %v16779_v61, %v11307_v39  ;;  %v11235_v39 = vadd.f32 %v11234_v34, %v11146_v28 }
 0x641   : > { %v11384_v18 = vmax.f32 %v11352_v23, 0.0 }
 0x643   : > { %11416 = vst [vmem:[%s16789_s9 + $0xc0] sm:$0xff] %v11384_v18 }
 0x644   : > { %v11308_v51 = vpop.f32.mrf.mxu2 }
 0x645   : > { %v11309_v20 = vadd.f32 %v11308_v51, %v11220_v5 }
 0x647   : > { %v11353_v50 = vadd.f32 %v16779_v61, %v11309_v20 }
 0x649   : > { %v11385_v52 = vmax.f32 %v11353_v50, 0.0 }
 0x64b   : > { %11417 = vst [vmem:[%s16789_s9 + $0xc8] sm:$0xff] %v11385_v52 }
 0x64c   : > { %v11311_v41 = vpop.f32.mrf.mxu2 }
 0x64d   : > { %v11312_v35 = vadd.f32 %v11311_v41, %v11223_v29 }
 0x64f   : > { %v11354_v33 = vadd.f32 %v16779_v61, %v11312_v35 }
 0x651   : > { %v11386_v62 = vmax.f32 %v11354_v33, 0.0 }
 0x653   : > { %11418 = vst [vmem:[%s16789_s9 + $0xd0] sm:$0xff] %v11386_v62 }
 0x654   : > { %v11313_v37 = vpop.f32.mrf.mxu2 }
 0x655   : > { %v11314_v27 = vadd.f32 %v11313_v37, %v11225_v43 }
 0x657   : > { %v11355_v49 = vadd.f32 %v16779_v61, %v11314_v27 }
 0x659   : > { %v11387_v46 = vmax.f32 %v11355_v49, 0.0 }
 0x65b   : > { %11419 = vst [vmem:[%s16789_s9 + $0xd8] sm:$0xff] %v11387_v46 }
 0x65c   : > { %v11316_v26 = vpop.f32.mrf.mxu2 }
 0x65d   : > { %v11317_v55 = vadd.f32 %v11316_v26, %v11228_v6 }
 0x65f   : > { %v11356_v12 = vadd.f32 %v16779_v61, %v11317_v55 }
 0x661   : > { %v11388_v1 = vmax.f32 %v11356_v12, 0.0 }
 0x663   : > { %11420 = vst [vmem:[%s16789_s9 + $0xe0] sm:$0xff] %v11388_v1 }
 0x664   : > { %v11318_v2 = vpop.f32.mrf.mxu2 }
 0x665   : > { %v11319_v30 = vadd.f32 %v11318_v2, %v11230_v58 }
 0x667   : > { %v11357_v44 = vadd.f32 %v16779_v61, %v11319_v30 }
 0x669   : > { %v11389_v7 = vmax.f32 %v11357_v44, 0.0 }
 0x66b   : > { %11421 = vst [vmem:[%s16789_s9 + $0xe8] sm:$0xff] %v11389_v7 }
 0x66c   : > { %v11321_v11 = vpop.f32.mrf.mxu2 }
 0x66d   : > { %v11322_v36 = vadd.f32 %v11321_v11, %v11233_v0 }
 0x66f   : > { %v11358_v19 = vadd.f32 %v16779_v61, %v11322_v36 }
 0x671   : > { %v11390_v25 = vmax.f32 %v11358_v19, 0.0 }
 0x673   : > { %11422 = vst [vmem:[%s16789_s9 + $0xf0] sm:$0xff] %v11390_v25 }
 0x674   : > { %v11323_v53 = vpop.f32.mrf.mxu2 }
 0x675   : > { %v11324_v32 = vadd.f32 %v11323_v53, %v11235_v39 }
 0x677   : > { %v11359_v21 = vadd.f32 %v16779_v61, %v11324_v32 }
 0x679   : > { %v11391_v23 = vmax.f32 %v11359_v21, 0.0 }
 0x67b   : > { %11423 = vst [vmem:[%s16789_s9 + $0xf8] sm:$0xff] %v11391_v23 }
 0x67c   : > { %14198 = shalt.err (!%p14195_p10)
}
 0x67d   : > { %s14253_s17 = smov 128   ;;  %s14254_s15 = smov 8  }
 0x67e   : > { %13978 = dma.vmem_to_hbm [thread:$0]  (%p14376_p3), %s11438_s29, 4096, %s11440_s12, %s11425_s22, %s14253_s17, %s14253_s17, %s14254_s15  }
 0x67f PF: > { %s11454_s9 = sand.u32 1, %s14233_s18   ;;  %p17186_p12 = scmp.ge.s32.totalorder %s14245_s21, 2 }
 0x680   : > { %s11455_s30 = scalar_lea.sflag [#allocation8], %s11454_s9 }
 0x681   : > { %p13995_p13 = pnand %p17186_p12, %p14320_p6 }
 0x683   : > { %p13996_p0 = pneg %p13995_p13 }
 0x685   : > { %14228 = dma.done.wait (%p13996_p0), %s11455_s30, 4096  }
 0x686   : > { %14230 = vsyncadd (%p13996_p0), %s11455_s30, 4294963200  ;;  %p20_p5 = scmp.ge.s32.totalorder %s14358_s27, 4   ;;  %s17187_s18 = smov %s14237_s19 }
 0x687   : > { %s17188_s19 = smov %s14241_s20  ;;  %s17189_s20 = smov %s14372_s6 }
 0x688   : > { %s17190_s21 = smov %s14358_s27  ;;  %22 = sbr.rel (!%p20_p5) target bundleno = 7 (0x7), region = 103 }
 0x68d   :  { %11461 = vsyncpa [#allocation7], 1 }
 0x68e   :  { %11463 = vsyncpa [#allocation7 + $0x1], 1 }
 0x68f   :  { %11464 = vsyncpa [#allocation10], 1 }
 0x690   :  { %11465 = vsyncpa [#allocation13], 1 }
 0x691   :  { %11466 = vsyncpa [#allocation8], 1 }
 0x692   :  { %11468 = vsyncpa [#allocation8 + $0x1], 1 }

</bundles_post_ra>
